<compile_context>
chip_gen: v5e
topology: v5e:2x2
jax: 0.10.0
libtpu: 0.0.40
codegen_flags: <defaults>
</compile_context>

<pallas_src>
import jax
import jax.numpy as jnp
from jax import lax
from jax.experimental import pallas as pl
from jax.experimental.pallas import tpu as pltpu


def _sigmoid(z):
    # Explicit exp-based sigmoid: identical formula in kernel and reference.
    return 1.0 / (1.0 + jnp.exp(-z))


def lstm_ln_kernel(x_ref, wih_ref, whh_ref, b_ref, gamma_ref, beta_ref,
                   out_ref, seq_scr):
    # x_ref:     (T, B, H)  time-major input sequence (f32)
    # wih_ref:   (L, H, 4H) input->gates weights, pre-transposed
    # whh_ref:   (L, H, 4H) hidden->gates weights, pre-transposed
    # b_ref:     (L, 1, 4H) combined bias (b_ih + b_hh)
    # gamma_ref: (1, H)     LayerNorm weight
    # beta_ref:  (1, H)     LayerNorm bias
    # out_ref:   (B, H)     LayerNorm(h_T of last layer)
    # seq_scr:   (T, B, H)  VMEM scratch holding the current layer's input sequence
    T, B, H = seq_scr.shape
    L = wih_ref.shape[0]
    eps = 1e-5

    # Layer-0 input sequence -> VMEM scratch; later layers overwrite it in place.
    seq_scr[...] = x_ref[...]

    h_last = jnp.zeros((B, H), jnp.float32)
    for l in range(L):                         # static unroll over layers
        w_ih = wih_ref[l]                      # (H, 4H), stays in VMEM/vregs
        w_hh = whh_ref[l]                      # (H, 4H)
        b = b_ref[l]                           # (1, 4H)
        write_seq = (l < L - 1)                # last layer only needs final h

        def step(t, carry, w_ih=w_ih, w_hh=w_hh, b=b, write_seq=write_seq):
            h_prev, c_prev = carry
            x_t = seq_scr[t]                   # (B, H)
            gates = (jnp.dot(x_t, w_ih, preferred_element_type=jnp.float32)
                     + jnp.dot(h_prev, w_hh, preferred_element_type=jnp.float32)
                     + b)                      # (B, 4H), PyTorch gate order i,f,g,o
            i = _sigmoid(gates[:, 0 * H:1 * H])
            f = _sigmoid(gates[:, 1 * H:2 * H])
            g = jnp.tanh(gates[:, 2 * H:3 * H])
            o = _sigmoid(gates[:, 3 * H:4 * H])
            c = f * c_prev + i * g
            h = o * jnp.tanh(c)
            if write_seq:
                seq_scr[t] = h                 # becomes next layer's input
            return (h, c)

        h0 = jnp.zeros((B, H), jnp.float32)
        c0 = jnp.zeros((B, H), jnp.float32)
        h_last, _ = lax.fori_loop(0, T, step, (h0, c0), unroll=True)

    # LayerNorm over the last layer's final hidden state (PyTorch eps = 1e-5).
    mu = jnp.mean(h_last, axis=-1, keepdims=True)
    xc = h_last - mu
    var = jnp.mean(xc * xc, axis=-1, keepdims=True)
    normed = xc * lax.rsqrt(var + eps)
    out_ref[...] = (normed * gamma_ref[...] + beta_ref[...]).astype(out_ref.dtype)


def lstm_layernorm_forward(x, w_ih, w_hh, b_ih, b_hh, gamma, beta):
    """x: (B, T, I) batch_first. w_ih/w_hh: (L, 4H, H) PyTorch layout.
    b_ih/b_hh: (L, 4H). gamma/beta: (H,). Returns LayerNorm(h[-1]): (B, H)."""
    B, T, I = x.shape
    L, H4, H = w_hh.shape
    assert H4 == 4 * H
    # TODO(synk): support input_size != hidden_size (needs a separate layer-0
    # W_ih block or feature-dim padding); demo uses I == H so all layer weights
    # stack into one VMEM-resident (L, H, 4H) array.
    assert I == H, "this kernel requires input_size == hidden_size"

    x_tm = jnp.transpose(x, (1, 0, 2)).astype(jnp.float32)            # (T, B, H)
    wih_t = jnp.transpose(w_ih, (0, 2, 1)).astype(jnp.float32)        # (L, H, 4H)
    whh_t = jnp.transpose(w_hh, (0, 2, 1)).astype(jnp.float32)        # (L, H, 4H)
    b = (b_ih + b_hh).astype(jnp.float32).reshape(L, 1, 4 * H)        # (L, 1, 4H)
    gamma2 = gamma.reshape(1, H).astype(jnp.float32)
    beta2 = beta.reshape(1, H).astype(jnp.float32)

    # Whole problem fits in VMEM -> full-extent blocks, no grid.
    full = lambda shape: pl.BlockSpec(shape, lambda: (0,) * len(shape),
                                      memory_space=pltpu.VMEM)
    return pl.pallas_call(
        lstm_ln_kernel,
        out_shape=jax.ShapeDtypeStruct((B, H), jnp.float32),
        in_specs=[
            full((T, B, H)),
            full((L, H, 4 * H)),
            full((L, H, 4 * H)),
            full((L, 1, 4 * H)),
            full((1, H)),
            full((1, H)),
        ],
        out_specs=full((B, H)),
        scratch_shapes=[pltpu.VMEM((T, B, H), jnp.float32)],
    )(x_tm, wih_t, whh_t, b, gamma2, beta2)


def reference_forward(x, w_ih, w_hh, b_ih, b_hh, gamma, beta):
    """Pure-JAX reference matching torch.nn.LSTM + LayerNorm(h[-1])."""
    B, T, I = x.shape
    L, H4, H = w_hh.shape
    seq = x.astype(jnp.float32)
    h = jnp.zeros((B, H), jnp.float32)
    for l in range(L):
        h = jnp.zeros((B, H), jnp.float32)
        c = jnp.zeros((B, H), jnp.float32)
        outs = []
        for t in range(T):
            gates = (seq[:, t, :] @ w_ih[l].T + b_ih[l]
                     + h @ w_hh[l].T + b_hh[l])
            i = _sigmoid(gates[:, 0 * H:1 * H])
            f = _sigmoid(gates[:, 1 * H:2 * H])
            g = jnp.tanh(gates[:, 2 * H:3 * H])
            o = _sigmoid(gates[:, 3 * H:4 * H])
            c = f * c + i * g
            h = o * jnp.tanh(c)
            outs.append(h)
        seq = jnp.stack(outs, axis=1)
    mu = h.mean(-1, keepdims=True)
    var = ((h - mu) ** 2).mean(-1, keepdims=True)
    return (h - mu) / jnp.sqrt(var + 1e-5) * gamma + beta


def init_params(key, hidden_size, num_layers, dtype=jnp.float32):
    H, L = hidden_size, num_layers
    ks = jax.random.split(key, 6)
    s = 1.0 / (H ** 0.5)                     # PyTorch LSTM default init bound
    w_ih = jax.random.uniform(ks[0], (L, 4 * H, H), dtype, -s, s)
    w_hh = jax.random.uniform(ks[1], (L, 4 * H, H), dtype, -s, s)
    b_ih = jax.random.uniform(ks[2], (L, 4 * H), dtype, -s, s)
    b_hh = jax.random.uniform(ks[3], (L, 4 * H), dtype, -s, s)
    gamma = 1.0 + 0.1 * jax.random.normal(ks[4], (H,), dtype)
    beta = 0.1 * jax.random.normal(ks[5], (H,), dtype)
    return w_ih, w_hh, b_ih, b_hh, gamma, beta


if __name__ == "__main__":
    key = jax.random.PRNGKey(0)
    k_x, k_p = jax.random.split(key)

    batch, seq_len, hidden, layers = 8, 8, 128, 2   # input_size == hidden_size
    x = jax.random.normal(k_x, (batch, seq_len, hidden), jnp.float32)
    w_ih, w_hh, b_ih, b_hh, gamma, beta = init_params(k_p, hidden, layers)

    out = lstm_layernorm_forward(x, w_ih, w_hh, b_ih, b_hh, gamma, beta)
    out = jax.block_until_ready(out)

    ref = reference_forward(x, w_ih, w_hh, b_ih, b_hh, gamma, beta)
    assert out.shape == (batch, hidden)
    assert jnp.allclose(out, ref, atol=1e-4, rtol=1e-4), float(
        jnp.max(jnp.abs(out - ref)))

    print("KERNEL_OK")
</pallas_src>

<mosaic_0001>
module attributes {stable_mosaic.version = 11 : i64} {
  func.func @lstm_ln_kernel(%arg0: memref<8x8x128xf32, #tpu.memory_space<vmem>>, %arg1: memref<2x128x512xf32, #tpu.memory_space<vmem>>, %arg2: memref<2x128x512xf32, #tpu.memory_space<vmem>>, %arg3: memref<2x1x512xf32, #tpu.memory_space<vmem>>, %arg4: memref<1x128xf32, #tpu.memory_space<vmem>>, %arg5: memref<1x128xf32, #tpu.memory_space<vmem>>, %arg6: memref<8x128xf32, #tpu.memory_space<vmem>>, %arg7: memref<8x8x128xf32, #tpu.memory_space<vmem>>) attributes {dimension_semantics = [], scalar_prefetch = 0 : i64, scratch_operands = 1 : i64, tpu.core_type = #tpu.core_type<tc>} {
    %c0 = arith.constant 0 : index
    %c0_0 = arith.constant 0 : index
    %c0_1 = arith.constant 0 : index
    %0 = vector.load %arg0[%c0, %c0_0, %c0_1] : memref<8x8x128xf32, #tpu.memory_space<vmem>>, vector<8x8x128xf32>
    %c0_2 = arith.constant 0 : index
    %c0_3 = arith.constant 0 : index
    %c0_4 = arith.constant 0 : index
    %1 = vector.load %arg7[%c0_2, %c0_3, %c0_4] : memref<8x8x128xf32, #tpu.memory_space<vmem>>, vector<8x8x128xf32>
    tpu.vector_store %arg7[%c0_2, %c0_3, %c0_4], %0 {strides = array<i32>} : memref<8x8x128xf32, #tpu.memory_space<vmem>>, vector<8x8x128xf32>,
    %c0_5 = arith.constant 0 : index
    %c0_6 = arith.constant 0 : index
    %c0_7 = arith.constant 0 : index
    %2 = vector.load %arg1[%c0_5, %c0_6, %c0_7] : memref<2x128x512xf32, #tpu.memory_space<vmem>>, vector<1x128x512xf32>
    %3 = vector.shape_cast %2 : vector<1x128x512xf32> to vector<128x512xf32>
    %c0_8 = arith.constant 0 : index
    %c0_9 = arith.constant 0 : index
    %c0_10 = arith.constant 0 : index
    %4 = vector.load %arg2[%c0_8, %c0_9, %c0_10] : memref<2x128x512xf32, #tpu.memory_space<vmem>>, vector<1x128x512xf32>
    %5 = vector.shape_cast %4 : vector<1x128x512xf32> to vector<128x512xf32>
    %c0_11 = arith.constant 0 : index
    %c0_12 = arith.constant 0 : index
    %c0_13 = arith.constant 0 : index
    %6 = vector.load %arg3[%c0_11, %c0_12, %c0_13] : memref<2x1x512xf32, #tpu.memory_space<vmem>>, vector<1x1x512xf32>
    %7 = vector.shape_cast %6 : vector<1x1x512xf32> to vector<1x512xf32>
    %cst = arith.constant 0.000000e+00 : f32
    %8 = vector.broadcast %cst : f32 to vector<8x128xf32>
    %cst_14 = arith.constant 0.000000e+00 : f32
    %9 = vector.broadcast %cst_14 : f32 to vector<8x128xf32>
    %c0_i32 = arith.constant 0 : i32
    %10 = arith.index_cast %c0_i32 : i32 to index
    %c0_15 = arith.constant 0 : index
    %c0_16 = arith.constant 0 : index
    %11 = vector.load %arg7[%10, %c0_15, %c0_16] : memref<8x8x128xf32, #tpu.memory_space<vmem>>, vector<1x8x128xf32>
    %12 = vector.shape_cast %11 : vector<1x8x128xf32> to vector<8x128xf32>
    %cst_17 = arith.constant dense<0.000000e+00> : vector<8x512xf32>
    %13 = tpu.matmul %12, %3, %cst_17 {dimension_numbers = #tpu.dot_dimension_numbers<[1], [0], [0], [1], [0, 0, 1, 1], [], []>} : vector<8x128xf32>, vector<128x512xf32>, vector<8x512xf32> -> vector<8x512xf32>
    %cst_18 = arith.constant dense<0.000000e+00> : vector<8x512xf32>
    %14 = tpu.matmul %8, %5, %cst_18 {dimension_numbers = #tpu.dot_dimension_numbers<[1], [0], [0], [1], [0, 0, 1, 1], [], []>} : vector<8x128xf32>, vector<128x512xf32>, vector<8x512xf32> -> vector<8x512xf32>
    %15 = arith.addf %13, %14 : vector<8x512xf32>
    %16 = vector.broadcast %7 : vector<1x512xf32> to vector<8x512xf32>
    %17 = arith.addf %15, %16 : vector<8x512xf32>
    %18 = vector.extract_strided_slice %17 {offsets = [0, 0], sizes = [8, 128], strides = [1, 1]} : vector<8x512xf32> to vector<8x128xf32>
    %cst_19 = arith.constant 0.000000e+00 : f32
    %19 = vector.broadcast %cst_19 : f32 to vector<8x128xf32>
    %20 = arith.subf %19, %18 : vector<8x128xf32>
    %21 = math.exp %20 : vector<8x128xf32>
    %cst_20 = arith.constant 1.000000e+00 : f32
    %22 = vector.broadcast %cst_20 : f32 to vector<8x128xf32>
    %23 = arith.addf %22, %21 : vector<8x128xf32>
    %cst_21 = arith.constant 1.000000e+00 : f32
    %24 = vector.broadcast %cst_21 : f32 to vector<8x128xf32>
    %25 = arith.divf %24, %23 : vector<8x128xf32>
    %26 = vector.extract_strided_slice %17 {offsets = [0, 128], sizes = [8, 128], strides = [1, 1]} : vector<8x512xf32> to vector<8x128xf32>
    %cst_22 = arith.constant 0.000000e+00 : f32
    %27 = vector.broadcast %cst_22 : f32 to vector<8x128xf32>
    %28 = arith.subf %27, %26 : vector<8x128xf32>
    %29 = math.exp %28 : vector<8x128xf32>
    %cst_23 = arith.constant 1.000000e+00 : f32
    %30 = vector.broadcast %cst_23 : f32 to vector<8x128xf32>
    %31 = arith.addf %30, %29 : vector<8x128xf32>
    %cst_24 = arith.constant 1.000000e+00 : f32
    %32 = vector.broadcast %cst_24 : f32 to vector<8x128xf32>
    %33 = arith.divf %32, %31 : vector<8x128xf32>
    %34 = vector.extract_strided_slice %17 {offsets = [0, 256], sizes = [8, 128], strides = [1, 1]} : vector<8x512xf32> to vector<8x128xf32>
    %35 = math.tanh %34 : vector<8x128xf32>
    %36 = vector.extract_strided_slice %17 {offsets = [0, 384], sizes = [8, 128], strides = [1, 1]} : vector<8x512xf32> to vector<8x128xf32>
    %cst_25 = arith.constant 0.000000e+00 : f32
    %37 = vector.broadcast %cst_25 : f32 to vector<8x128xf32>
    %38 = arith.subf %37, %36 : vector<8x128xf32>
    %39 = math.exp %38 : vector<8x128xf32>
    %cst_26 = arith.constant 1.000000e+00 : f32
    %40 = vector.broadcast %cst_26 : f32 to vector<8x128xf32>
    %41 = arith.addf %40, %39 : vector<8x128xf32>
    %cst_27 = arith.constant 1.000000e+00 : f32
    %42 = vector.broadcast %cst_27 : f32 to vector<8x128xf32>
    %43 = arith.divf %42, %41 : vector<8x128xf32>
    %44 = arith.mulf %33, %9 : vector<8x128xf32>
    %45 = arith.mulf %25, %35 : vector<8x128xf32>
    %46 = arith.addf %44, %45 : vector<8x128xf32>
    %47 = math.tanh %46 : vector<8x128xf32>
    %48 = arith.mulf %43, %47 : vector<8x128xf32>
    %49 = arith.index_cast %c0_i32 : i32 to index
    %c0_28 = arith.constant 0 : index
    %c0_29 = arith.constant 0 : index
    %50 = vector.load %arg7[%49, %c0_28, %c0_29] : memref<8x8x128xf32, #tpu.memory_space<vmem>>, vector<1x8x128xf32>
    %51 = vector.shape_cast %50 : vector<1x8x128xf32> to vector<8x128xf32>
    %52 = vector.shape_cast %48 : vector<8x128xf32> to vector<1x8x128xf32>
    tpu.vector_store %arg7[%49, %c0_28, %c0_29], %52 {strides = array<i32>} : memref<8x8x128xf32, #tpu.memory_space<vmem>>, vector<1x8x128xf32>,
    %c1_i32 = arith.constant 1 : i32
    %53 = arith.index_cast %c1_i32 : i32 to index
    %c0_30 = arith.constant 0 : index
    %c0_31 = arith.constant 0 : index
    %54 = vector.load %arg7[%53, %c0_30, %c0_31] : memref<8x8x128xf32, #tpu.memory_space<vmem>>, vector<1x8x128xf32>
    %55 = vector.shape_cast %54 : vector<1x8x128xf32> to vector<8x128xf32>
    %cst_32 = arith.constant dense<0.000000e+00> : vector<8x512xf32>
    %56 = tpu.matmul %55, %3, %cst_32 {dimension_numbers = #tpu.dot_dimension_numbers<[1], [0], [0], [1], [0, 0, 1, 1], [], []>} : vector<8x128xf32>, vector<128x512xf32>, vector<8x512xf32> -> vector<8x512xf32>
    %cst_33 = arith.constant dense<0.000000e+00> : vector<8x512xf32>
    %57 = tpu.matmul %48, %5, %cst_33 {dimension_numbers = #tpu.dot_dimension_numbers<[1], [0], [0], [1], [0, 0, 1, 1], [], []>} : vector<8x128xf32>, vector<128x512xf32>, vector<8x512xf32> -> vector<8x512xf32>
    %58 = arith.addf %56, %57 : vector<8x512xf32>
    %59 = vector.broadcast %7 : vector<1x512xf32> to vector<8x512xf32>
    %60 = arith.addf %58, %59 : vector<8x512xf32>
    %61 = vector.extract_strided_slice %60 {offsets = [0, 0], sizes = [8, 128], strides = [1, 1]} : vector<8x512xf32> to vector<8x128xf32>
    %cst_34 = arith.constant 0.000000e+00 : f32
    %62 = vector.broadcast %cst_34 : f32 to vector<8x128xf32>
    %63 = arith.subf %62, %61 : vector<8x128xf32>
    %64 = math.exp %63 : vector<8x128xf32>
    %cst_35 = arith.constant 1.000000e+00 : f32
    %65 = vector.broadcast %cst_35 : f32 to vector<8x128xf32>
    %66 = arith.addf %65, %64 : vector<8x128xf32>
    %cst_36 = arith.constant 1.000000e+00 : f32
    %67 = vector.broadcast %cst_36 : f32 to vector<8x128xf32>
    %68 = arith.divf %67, %66 : vector<8x128xf32>
    %69 = vector.extract_strided_slice %60 {offsets = [0, 128], sizes = [8, 128], strides = [1, 1]} : vector<8x512xf32> to vector<8x128xf32>
    %cst_37 = arith.constant 0.000000e+00 : f32
    %70 = vector.broadcast %cst_37 : f32 to vector<8x128xf32>
    %71 = arith.subf %70, %69 : vector<8x128xf32>
    %72 = math.exp %71 : vector<8x128xf32>
    %cst_38 = arith.constant 1.000000e+00 : f32
    %73 = vector.broadcast %cst_38 : f32 to vector<8x128xf32>
    %74 = arith.addf %73, %72 : vector<8x128xf32>
    %cst_39 = arith.constant 1.000000e+00 : f32
    %75 = vector.broadcast %cst_39 : f32 to vector<8x128xf32>
    %76 = arith.divf %75, %74 : vector<8x128xf32>
    %77 = vector.extract_strided_slice %60 {offsets = [0, 256], sizes = [8, 128], strides = [1, 1]} : vector<8x512xf32> to vector<8x128xf32>
    %78 = math.tanh %77 : vector<8x128xf32>
    %79 = vector.extract_strided_slice %60 {offsets = [0, 384], sizes = [8, 128], strides = [1, 1]} : vector<8x512xf32> to vector<8x128xf32>
    %cst_40 = arith.constant 0.000000e+00 : f32
    %80 = vector.broadcast %cst_40 : f32 to vector<8x128xf32>
    %81 = arith.subf %80, %79 : vector<8x128xf32>
    %82 = math.exp %81 : vector<8x128xf32>
    %cst_41 = arith.constant 1.000000e+00 : f32
    %83 = vector.broadcast %cst_41 : f32 to vector<8x128xf32>
    %84 = arith.addf %83, %82 : vector<8x128xf32>
    %cst_42 = arith.constant 1.000000e+00 : f32
    %85 = vector.broadcast %cst_42 : f32 to vector<8x128xf32>
    %86 = arith.divf %85, %84 : vector<8x128xf32>
    %87 = arith.mulf %76, %46 : vector<8x128xf32>
    %88 = arith.mulf %68, %78 : vector<8x128xf32>
    %89 = arith.addf %87, %88 : vector<8x128xf32>
    %90 = math.tanh %89 : vector<8x128xf32>
    %91 = arith.mulf %86, %90 : vector<8x128xf32>
    %92 = arith.index_cast %c1_i32 : i32 to index
    %c0_43 = arith.constant 0 : index
    %c0_44 = arith.constant 0 : index
    %93 = vector.load %arg7[%92, %c0_43, %c0_44] : memref<8x8x128xf32, #tpu.memory_space<vmem>>, vector<1x8x128xf32>
    %94 = vector.shape_cast %93 : vector<1x8x128xf32> to vector<8x128xf32>
    %95 = vector.shape_cast %91 : vector<8x128xf32> to vector<1x8x128xf32>
    tpu.vector_store %arg7[%92, %c0_43, %c0_44], %95 {strides = array<i32>} : memref<8x8x128xf32, #tpu.memory_space<vmem>>, vector<1x8x128xf32>,
    %c2_i32 = arith.constant 2 : i32
    %96 = arith.index_cast %c2_i32 : i32 to index
    %c0_45 = arith.constant 0 : index
    %c0_46 = arith.constant 0 : index
    %97 = vector.load %arg7[%96, %c0_45, %c0_46] : memref<8x8x128xf32, #tpu.memory_space<vmem>>, vector<1x8x128xf32>
    %98 = vector.shape_cast %97 : vector<1x8x128xf32> to vector<8x128xf32>
    %cst_47 = arith.constant dense<0.000000e+00> : vector<8x512xf32>
    %99 = tpu.matmul %98, %3, %cst_47 {dimension_numbers = #tpu.dot_dimension_numbers<[1], [0], [0], [1], [0, 0, 1, 1], [], []>} : vector<8x128xf32>, vector<128x512xf32>, vector<8x512xf32> -> vector<8x512xf32>
    %cst_48 = arith.constant dense<0.000000e+00> : vector<8x512xf32>
    %100 = tpu.matmul %91, %5, %cst_48 {dimension_numbers = #tpu.dot_dimension_numbers<[1], [0], [0], [1], [0, 0, 1, 1], [], []>} : vector<8x128xf32>, vector<128x512xf32>, vector<8x512xf32> -> vector<8x512xf32>
    %101 = arith.addf %99, %100 : vector<8x512xf32>
    %102 = vector.broadcast %7 : vector<1x512xf32> to vector<8x512xf32>
    %103 = arith.addf %101, %102 : vector<8x512xf32>
    %104 = vector.extract_strided_slice %103 {offsets = [0, 0], sizes = [8, 128], strides = [1, 1]} : vector<8x512xf32> to vector<8x128xf32>
    %cst_49 = arith.constant 0.000000e+00 : f32
    %105 = vector.broadcast %cst_49 : f32 to vector<8x128xf32>
    %106 = arith.subf %105, %104 : vector<8x128xf32>
    %107 = math.exp %106 : vector<8x128xf32>
    %cst_50 = arith.constant 1.000000e+00 : f32
    %108 = vector.broadcast %cst_50 : f32 to vector<8x128xf32>
    %109 = arith.addf %108, %107 : vector<8x128xf32>
    %cst_51 = arith.constant 1.000000e+00 : f32
    %110 = vector.broadcast %cst_51 : f32 to vector<8x128xf32>
    %111 = arith.divf %110, %109 : vector<8x128xf32>
    %112 = vector.extract_strided_slice %103 {offsets = [0, 128], sizes = [8, 128], strides = [1, 1]} : vector<8x512xf32> to vector<8x128xf32>
    %cst_52 = arith.constant 0.000000e+00 : f32
    %113 = vector.broadcast %cst_52 : f32 to vector<8x128xf32>
    %114 = arith.subf %113, %112 : vector<8x128xf32>
    %115 = math.exp %114 : vector<8x128xf32>
    %cst_53 = arith.constant 1.000000e+00 : f32
    %116 = vector.broadcast %cst_53 : f32 to vector<8x128xf32>
    %117 = arith.addf %116, %115 : vector<8x128xf32>
    %cst_54 = arith.constant 1.000000e+00 : f32
    %118 = vector.broadcast %cst_54 : f32 to vector<8x128xf32>
    %119 = arith.divf %118, %117 : vector<8x128xf32>
    %120 = vector.extract_strided_slice %103 {offsets = [0, 256], sizes = [8, 128], strides = [1, 1]} : vector<8x512xf32> to vector<8x128xf32>
    %121 = math.tanh %120 : vector<8x128xf32>
    %122 = vector.extract_strided_slice %103 {offsets = [0, 384], sizes = [8, 128], strides = [1, 1]} : vector<8x512xf32> to vector<8x128xf32>
    %cst_55 = arith.constant 0.000000e+00 : f32
    %123 = vector.broadcast %cst_55 : f32 to vector<8x128xf32>
    %124 = arith.subf %123, %122 : vector<8x128xf32>
    %125 = math.exp %124 : vector<8x128xf32>
    %cst_56 = arith.constant 1.000000e+00 : f32
    %126 = vector.broadcast %cst_56 : f32 to vector<8x128xf32>
    %127 = arith.addf %126, %125 : vector<8x128xf32>
    %cst_57 = arith.constant 1.000000e+00 : f32
    %128 = vector.broadcast %cst_57 : f32 to vector<8x128xf32>
    %129 = arith.divf %128, %127 : vector<8x128xf32>
    %130 = arith.mulf %119, %89 : vector<8x128xf32>
    %131 = arith.mulf %111, %121 : vector<8x128xf32>
    %132 = arith.addf %130, %131 : vector<8x128xf32>
    %133 = math.tanh %132 : vector<8x128xf32>
    %134 = arith.mulf %129, %133 : vector<8x128xf32>
    %135 = arith.index_cast %c2_i32 : i32 to index
    %c0_58 = arith.constant 0 : index
    %c0_59 = arith.constant 0 : index
    %136 = vector.load %arg7[%135, %c0_58, %c0_59] : memref<8x8x128xf32, #tpu.memory_space<vmem>>, vector<1x8x128xf32>
    %137 = vector.shape_cast %136 : vector<1x8x128xf32> to vector<8x128xf32>
    %138 = vector.shape_cast %134 : vector<8x128xf32> to vector<1x8x128xf32>
    tpu.vector_store %arg7[%135, %c0_58, %c0_59], %138 {strides = array<i32>} : memref<8x8x128xf32, #tpu.memory_space<vmem>>, vector<1x8x128xf32>,
    %c3_i32 = arith.constant 3 : i32
    %139 = arith.index_cast %c3_i32 : i32 to index
    %c0_60 = arith.constant 0 : index
    %c0_61 = arith.constant 0 : index
    %140 = vector.load %arg7[%139, %c0_60, %c0_61] : memref<8x8x128xf32, #tpu.memory_space<vmem>>, vector<1x8x128xf32>
    %141 = vector.shape_cast %140 : vector<1x8x128xf32> to vector<8x128xf32>
    %cst_62 = arith.constant dense<0.000000e+00> : vector<8x512xf32>
    %142 = tpu.matmul %141, %3, %cst_62 {dimension_numbers = #tpu.dot_dimension_numbers<[1], [0], [0], [1], [0, 0, 1, 1], [], []>} : vector<8x128xf32>, vector<128x512xf32>, vector<8x512xf32> -> vector<8x512xf32>
    %cst_63 = arith.constant dense<0.000000e+00> : vector<8x512xf32>
    %143 = tpu.matmul %134, %5, %cst_63 {dimension_numbers = #tpu.dot_dimension_numbers<[1], [0], [0], [1], [0, 0, 1, 1], [], []>} : vector<8x128xf32>, vector<128x512xf32>, vector<8x512xf32> -> vector<8x512xf32>
    %144 = arith.addf %142, %143 : vector<8x512xf32>
    %145 = vector.broadcast %7 : vector<1x512xf32> to vector<8x512xf32>
    %146 = arith.addf %144, %145 : vector<8x512xf32>
    %147 = vector.extract_strided_slice %146 {offsets = [0, 0], sizes = [8, 128], strides = [1, 1]} : vector<8x512xf32> to vector<8x128xf32>
    %cst_64 = arith.constant 0.000000e+00 : f32
    %148 = vector.broadcast %cst_64 : f32 to vector<8x128xf32>
    %149 = arith.subf %148, %147 : vector<8x128xf32>
    %150 = math.exp %149 : vector<8x128xf32>
    %cst_65 = arith.constant 1.000000e+00 : f32
    %151 = vector.broadcast %cst_65 : f32 to vector<8x128xf32>
    %152 = arith.addf %151, %150 : vector<8x128xf32>
    %cst_66 = arith.constant 1.000000e+00 : f32
    %153 = vector.broadcast %cst_66 : f32 to vector<8x128xf32>
    %154 = arith.divf %153, %152 : vector<8x128xf32>
    %155 = vector.extract_strided_slice %146 {offsets = [0, 128], sizes = [8, 128], strides = [1, 1]} : vector<8x512xf32> to vector<8x128xf32>
    %cst_67 = arith.constant 0.000000e+00 : f32
    %156 = vector.broadcast %cst_67 : f32 to vector<8x128xf32>
    %157 = arith.subf %156, %155 : vector<8x128xf32>
    %158 = math.exp %157 : vector<8x128xf32>
    %cst_68 = arith.constant 1.000000e+00 : f32
    %159 = vector.broadcast %cst_68 : f32 to vector<8x128xf32>
    %160 = arith.addf %159, %158 : vector<8x128xf32>
    %cst_69 = arith.constant 1.000000e+00 : f32
    %161 = vector.broadcast %cst_69 : f32 to vector<8x128xf32>
    %162 = arith.divf %161, %160 : vector<8x128xf32>
    %163 = vector.extract_strided_slice %146 {offsets = [0, 256], sizes = [8, 128], strides = [1, 1]} : vector<8x512xf32> to vector<8x128xf32>
    %164 = math.tanh %163 : vector<8x128xf32>
    %165 = vector.extract_strided_slice %146 {offsets = [0, 384], sizes = [8, 128], strides = [1, 1]} : vector<8x512xf32> to vector<8x128xf32>
    %cst_70 = arith.constant 0.000000e+00 : f32
    %166 = vector.broadcast %cst_70 : f32 to vector<8x128xf32>
    %167 = arith.subf %166, %165 : vector<8x128xf32>
    %168 = math.exp %167 : vector<8x128xf32>
    %cst_71 = arith.constant 1.000000e+00 : f32
    %169 = vector.broadcast %cst_71 : f32 to vector<8x128xf32>
    %170 = arith.addf %169, %168 : vector<8x128xf32>
    %cst_72 = arith.constant 1.000000e+00 : f32
    %171 = vector.broadcast %cst_72 : f32 to vector<8x128xf32>
    %172 = arith.divf %171, %170 : vector<8x128xf32>
    %173 = arith.mulf %162, %132 : vector<8x128xf32>
    %174 = arith.mulf %154, %164 : vector<8x128xf32>
    %175 = arith.addf %173, %174 : vector<8x128xf32>
    %176 = math.tanh %175 : vector<8x128xf32>
    %177 = arith.mulf %172, %176 : vector<8x128xf32>
    %178 = arith.index_cast %c3_i32 : i32 to index
    %c0_73 = arith.constant 0 : index
    %c0_74 = arith.constant 0 : index
    %179 = vector.load %arg7[%178, %c0_73, %c0_74] : memref<8x8x128xf32, #tpu.memory_space<vmem>>, vector<1x8x128xf32>
    %180 = vector.shape_cast %179 : vector<1x8x128xf32> to vector<8x128xf32>
    %181 = vector.shape_cast %177 : vector<8x128xf32> to vector<1x8x128xf32>
    tpu.vector_store %arg7[%178, %c0_73, %c0_74], %181 {strides = array<i32>} : memref<8x8x128xf32, #tpu.memory_space<vmem>>, vector<1x8x128xf32>,
    %c4_i32 = arith.constant 4 : i32
    %182 = arith.index_cast %c4_i32 : i32 to index
    %c0_75 = arith.constant 0 : index
    %c0_76 = arith.constant 0 : index
    %183 = vector.load %arg7[%182, %c0_75, %c0_76] : memref<8x8x128xf32, #tpu.memory_space<vmem>>, vector<1x8x128xf32>
    %184 = vector.shape_cast %183 : vector<1x8x128xf32> to vector<8x128xf32>
    %cst_77 = arith.constant dense<0.000000e+00> : vector<8x512xf32>
    %185 = tpu.matmul %184, %3, %cst_77 {dimension_numbers = #tpu.dot_dimension_numbers<[1], [0], [0], [1], [0, 0, 1, 1], [], []>} : vector<8x128xf32>, vector<128x512xf32>, vector<8x512xf32> -> vector<8x512xf32>
    %cst_78 = arith.constant dense<0.000000e+00> : vector<8x512xf32>
    %186 = tpu.matmul %177, %5, %cst_78 {dimension_numbers = #tpu.dot_dimension_numbers<[1], [0], [0], [1], [0, 0, 1, 1], [], []>} : vector<8x128xf32>, vector<128x512xf32>, vector<8x512xf32> -> vector<8x512xf32>
    %187 = arith.addf %185, %186 : vector<8x512xf32>
    %188 = vector.broadcast %7 : vector<1x512xf32> to vector<8x512xf32>
    %189 = arith.addf %187, %188 : vector<8x512xf32>
    %190 = vector.extract_strided_slice %189 {offsets = [0, 0], sizes = [8, 128], strides = [1, 1]} : vector<8x512xf32> to vector<8x128xf32>
    %cst_79 = arith.constant 0.000000e+00 : f32
    %191 = vector.broadcast %cst_79 : f32 to vector<8x128xf32>
    %192 = arith.subf %191, %190 : vector<8x128xf32>
    %193 = math.exp %192 : vector<8x128xf32>
    %cst_80 = arith.constant 1.000000e+00 : f32
    %194 = vector.broadcast %cst_80 : f32 to vector<8x128xf32>
    %195 = arith.addf %194, %193 : vector<8x128xf32>
    %cst_81 = arith.constant 1.000000e+00 : f32
    %196 = vector.broadcast %cst_81 : f32 to vector<8x128xf32>
    %197 = arith.divf %196, %195 : vector<8x128xf32>
    %198 = vector.extract_strided_slice %189 {offsets = [0, 128], sizes = [8, 128], strides = [1, 1]} : vector<8x512xf32> to vector<8x128xf32>
    %cst_82 = arith.constant 0.000000e+00 : f32
    %199 = vector.broadcast %cst_82 : f32 to vector<8x128xf32>
    %200 = arith.subf %199, %198 : vector<8x128xf32>
    %201 = math.exp %200 : vector<8x128xf32>
    %cst_83 = arith.constant 1.000000e+00 : f32
    %202 = vector.broadcast %cst_83 : f32 to vector<8x128xf32>
    %203 = arith.addf %202, %201 : vector<8x128xf32>
    %cst_84 = arith.constant 1.000000e+00 : f32
    %204 = vector.broadcast %cst_84 : f32 to vector<8x128xf32>
    %205 = arith.divf %204, %203 : vector<8x128xf32>
    %206 = vector.extract_strided_slice %189 {offsets = [0, 256], sizes = [8, 128], strides = [1, 1]} : vector<8x512xf32> to vector<8x128xf32>
    %207 = math.tanh %206 : vector<8x128xf32>
    %208 = vector.extract_strided_slice %189 {offsets = [0, 384], sizes = [8, 128], strides = [1, 1]} : vector<8x512xf32> to vector<8x128xf32>
    %cst_85 = arith.constant 0.000000e+00 : f32
    %209 = vector.broadcast %cst_85 : f32 to vector<8x128xf32>
    %210 = arith.subf %209, %208 : vector<8x128xf32>
    %211 = math.exp %210 : vector<8x128xf32>
    %cst_86 = arith.constant 1.000000e+00 : f32
    %212 = vector.broadcast %cst_86 : f32 to vector<8x128xf32>
    %213 = arith.addf %212, %211 : vector<8x128xf32>
    %cst_87 = arith.constant 1.000000e+00 : f32
    %214 = vector.broadcast %cst_87 : f32 to vector<8x128xf32>
    %215 = arith.divf %214, %213 : vector<8x128xf32>
    %216 = arith.mulf %205, %175 : vector<8x128xf32>
    %217 = arith.mulf %197, %207 : vector<8x128xf32>
    %218 = arith.addf %216, %217 : vector<8x128xf32>
    %219 = math.tanh %218 : vector<8x128xf32>
    %220 = arith.mulf %215, %219 : vector<8x128xf32>
    %221 = arith.index_cast %c4_i32 : i32 to index
    %c0_88 = arith.constant 0 : index
    %c0_89 = arith.constant 0 : index
    %222 = vector.load %arg7[%221, %c0_88, %c0_89] : memref<8x8x128xf32, #tpu.memory_space<vmem>>, vector<1x8x128xf32>
    %223 = vector.shape_cast %222 : vector<1x8x128xf32> to vector<8x128xf32>
    %224 = vector.shape_cast %220 : vector<8x128xf32> to vector<1x8x128xf32>
    tpu.vector_store %arg7[%221, %c0_88, %c0_89], %224 {strides = array<i32>} : memref<8x8x128xf32, #tpu.memory_space<vmem>>, vector<1x8x128xf32>,
    %c5_i32 = arith.constant 5 : i32
    %225 = arith.index_cast %c5_i32 : i32 to index
    %c0_90 = arith.constant 0 : index
    %c0_91 = arith.constant 0 : index
    %226 = vector.load %arg7[%225, %c0_90, %c0_91] : memref<8x8x128xf32, #tpu.memory_space<vmem>>, vector<1x8x128xf32>
    %227 = vector.shape_cast %226 : vector<1x8x128xf32> to vector<8x128xf32>
    %cst_92 = arith.constant dense<0.000000e+00> : vector<8x512xf32>
    %228 = tpu.matmul %227, %3, %cst_92 {dimension_numbers = #tpu.dot_dimension_numbers<[1], [0], [0], [1], [0, 0, 1, 1], [], []>} : vector<8x128xf32>, vector<128x512xf32>, vector<8x512xf32> -> vector<8x512xf32>
    %cst_93 = arith.constant dense<0.000000e+00> : vector<8x512xf32>
    %229 = tpu.matmul %220, %5, %cst_93 {dimension_numbers = #tpu.dot_dimension_numbers<[1], [0], [0], [1], [0, 0, 1, 1], [], []>} : vector<8x128xf32>, vector<128x512xf32>, vector<8x512xf32> -> vector<8x512xf32>
    %230 = arith.addf %228, %229 : vector<8x512xf32>
    %231 = vector.broadcast %7 : vector<1x512xf32> to vector<8x512xf32>
    %232 = arith.addf %230, %231 : vector<8x512xf32>
    %233 = vector.extract_strided_slice %232 {offsets = [0, 0], sizes = [8, 128], strides = [1, 1]} : vector<8x512xf32> to vector<8x128xf32>
    %cst_94 = arith.constant 0.000000e+00 : f32
    %234 = vector.broadcast %cst_94 : f32 to vector<8x128xf32>
    %235 = arith.subf %234, %233 : vector<8x128xf32>
    %236 = math.exp %235 : vector<8x128xf32>
    %cst_95 = arith.constant 1.000000e+00 : f32
    %237 = vector.broadcast %cst_95 : f32 to vector<8x128xf32>
    %238 = arith.addf %237, %236 : vector<8x128xf32>
    %cst_96 = arith.constant 1.000000e+00 : f32
    %239 = vector.broadcast %cst_96 : f32 to vector<8x128xf32>
    %240 = arith.divf %239, %238 : vector<8x128xf32>
    %241 = vector.extract_strided_slice %232 {offsets = [0, 128], sizes = [8, 128], strides = [1, 1]} : vector<8x512xf32> to vector<8x128xf32>
    %cst_97 = arith.constant 0.000000e+00 : f32
    %242 = vector.broadcast %cst_97 : f32 to vector<8x128xf32>
    %243 = arith.subf %242, %241 : vector<8x128xf32>
    %244 = math.exp %243 : vector<8x128xf32>
    %cst_98 = arith.constant 1.000000e+00 : f32
    %245 = vector.broadcast %cst_98 : f32 to vector<8x128xf32>
    %246 = arith.addf %245, %244 : vector<8x128xf32>
    %cst_99 = arith.constant 1.000000e+00 : f32
    %247 = vector.broadcast %cst_99 : f32 to vector<8x128xf32>
    %248 = arith.divf %247, %246 : vector<8x128xf32>
    %249 = vector.extract_strided_slice %232 {offsets = [0, 256], sizes = [8, 128], strides = [1, 1]} : vector<8x512xf32> to vector<8x128xf32>
    %250 = math.tanh %249 : vector<8x128xf32>
    %251 = vector.extract_strided_slice %232 {offsets = [0, 384], sizes = [8, 128], strides = [1, 1]} : vector<8x512xf32> to vector<8x128xf32>
    %cst_100 = arith.constant 0.000000e+00 : f32
    %252 = vector.broadcast %cst_100 : f32 to vector<8x128xf32>
    %253 = arith.subf %252, %251 : vector<8x128xf32>
    %254 = math.exp %253 : vector<8x128xf32>
    %cst_101 = arith.constant 1.000000e+00 : f32
    %255 = vector.broadcast %cst_101 : f32 to vector<8x128xf32>
    %256 = arith.addf %255, %254 : vector<8x128xf32>
    %cst_102 = arith.constant 1.000000e+00 : f32
    %257 = vector.broadcast %cst_102 : f32 to vector<8x128xf32>
    %258 = arith.divf %257, %256 : vector<8x128xf32>
    %259 = arith.mulf %248, %218 : vector<8x128xf32>
    %260 = arith.mulf %240, %250 : vector<8x128xf32>
    %261 = arith.addf %259, %260 : vector<8x128xf32>
    %262 = math.tanh %261 : vector<8x128xf32>
    %263 = arith.mulf %258, %262 : vector<8x128xf32>
    %264 = arith.index_cast %c5_i32 : i32 to index
    %c0_103 = arith.constant 0 : index
    %c0_104 = arith.constant 0 : index
    %265 = vector.load %arg7[%264, %c0_103, %c0_104] : memref<8x8x128xf32, #tpu.memory_space<vmem>>, vector<1x8x128xf32>
    %266 = vector.shape_cast %265 : vector<1x8x128xf32> to vector<8x128xf32>
    %267 = vector.shape_cast %263 : vector<8x128xf32> to vector<1x8x128xf32>
    tpu.vector_store %arg7[%264, %c0_103, %c0_104], %267 {strides = array<i32>} : memref<8x8x128xf32, #tpu.memory_space<vmem>>, vector<1x8x128xf32>,
    %c6_i32 = arith.constant 6 : i32
    %268 = arith.index_cast %c6_i32 : i32 to index
    %c0_105 = arith.constant 0 : index
    %c0_106 = arith.constant 0 : index
    %269 = vector.load %arg7[%268, %c0_105, %c0_106] : memref<8x8x128xf32, #tpu.memory_space<vmem>>, vector<1x8x128xf32>
    %270 = vector.shape_cast %269 : vector<1x8x128xf32> to vector<8x128xf32>
    %cst_107 = arith.constant dense<0.000000e+00> : vector<8x512xf32>
    %271 = tpu.matmul %270, %3, %cst_107 {dimension_numbers = #tpu.dot_dimension_numbers<[1], [0], [0], [1], [0, 0, 1, 1], [], []>} : vector<8x128xf32>, vector<128x512xf32>, vector<8x512xf32> -> vector<8x512xf32>
    %cst_108 = arith.constant dense<0.000000e+00> : vector<8x512xf32>
    %272 = tpu.matmul %263, %5, %cst_108 {dimension_numbers = #tpu.dot_dimension_numbers<[1], [0], [0], [1], [0, 0, 1, 1], [], []>} : vector<8x128xf32>, vector<128x512xf32>, vector<8x512xf32> -> vector<8x512xf32>
    %273 = arith.addf %271, %272 : vector<8x512xf32>
    %274 = vector.broadcast %7 : vector<1x512xf32> to vector<8x512xf32>
    %275 = arith.addf %273, %274 : vector<8x512xf32>
    %276 = vector.extract_strided_slice %275 {offsets = [0, 0], sizes = [8, 128], strides = [1, 1]} : vector<8x512xf32> to vector<8x128xf32>
    %cst_109 = arith.constant 0.000000e+00 : f32
    %277 = vector.broadcast %cst_109 : f32 to vector<8x128xf32>
    %278 = arith.subf %277, %276 : vector<8x128xf32>
    %279 = math.exp %278 : vector<8x128xf32>
    %cst_110 = arith.constant 1.000000e+00 : f32
    %280 = vector.broadcast %cst_110 : f32 to vector<8x128xf32>
    %281 = arith.addf %280, %279 : vector<8x128xf32>
    %cst_111 = arith.constant 1.000000e+00 : f32
    %282 = vector.broadcast %cst_111 : f32 to vector<8x128xf32>
    %283 = arith.divf %282, %281 : vector<8x128xf32>
    %284 = vector.extract_strided_slice %275 {offsets = [0, 128], sizes = [8, 128], strides = [1, 1]} : vector<8x512xf32> to vector<8x128xf32>
    %cst_112 = arith.constant 0.000000e+00 : f32
    %285 = vector.broadcast %cst_112 : f32 to vector<8x128xf32>
    %286 = arith.subf %285, %284 : vector<8x128xf32>
    %287 = math.exp %286 : vector<8x128xf32>
    %cst_113 = arith.constant 1.000000e+00 : f32
    %288 = vector.broadcast %cst_113 : f32 to vector<8x128xf32>
    %289 = arith.addf %288, %287 : vector<8x128xf32>
    %cst_114 = arith.constant 1.000000e+00 : f32
    %290 = vector.broadcast %cst_114 : f32 to vector<8x128xf32>
    %291 = arith.divf %290, %289 : vector<8x128xf32>
    %292 = vector.extract_strided_slice %275 {offsets = [0, 256], sizes = [8, 128], strides = [1, 1]} : vector<8x512xf32> to vector<8x128xf32>
    %293 = math.tanh %292 : vector<8x128xf32>
    %294 = vector.extract_strided_slice %275 {offsets = [0, 384], sizes = [8, 128], strides = [1, 1]} : vector<8x512xf32> to vector<8x128xf32>
    %cst_115 = arith.constant 0.000000e+00 : f32
    %295 = vector.broadcast %cst_115 : f32 to vector<8x128xf32>
    %296 = arith.subf %295, %294 : vector<8x128xf32>
    %297 = math.exp %296 : vector<8x128xf32>
    %cst_116 = arith.constant 1.000000e+00 : f32
    %298 = vector.broadcast %cst_116 : f32 to vector<8x128xf32>
    %299 = arith.addf %298, %297 : vector<8x128xf32>
    %cst_117 = arith.constant 1.000000e+00 : f32
    %300 = vector.broadcast %cst_117 : f32 to vector<8x128xf32>
    %301 = arith.divf %300, %299 : vector<8x128xf32>
    %302 = arith.mulf %291, %261 : vector<8x128xf32>
    %303 = arith.mulf %283, %293 : vector<8x128xf32>
    %304 = arith.addf %302, %303 : vector<8x128xf32>
    %305 = math.tanh %304 : vector<8x128xf32>
    %306 = arith.mulf %301, %305 : vector<8x128xf32>
    %307 = arith.index_cast %c6_i32 : i32 to index
    %c0_118 = arith.constant 0 : index
    %c0_119 = arith.constant 0 : index
    %308 = vector.load %arg7[%307, %c0_118, %c0_119] : memref<8x8x128xf32, #tpu.memory_space<vmem>>, vector<1x8x128xf32>
    %309 = vector.shape_cast %308 : vector<1x8x128xf32> to vector<8x128xf32>
    %310 = vector.shape_cast %306 : vector<8x128xf32> to vector<1x8x128xf32>
    tpu.vector_store %arg7[%307, %c0_118, %c0_119], %310 {strides = array<i32>} : memref<8x8x128xf32, #tpu.memory_space<vmem>>, vector<1x8x128xf32>,
    %c7_i32 = arith.constant 7 : i32
    %311 = arith.index_cast %c7_i32 : i32 to index
    %c0_120 = arith.constant 0 : index
    %c0_121 = arith.constant 0 : index
    %312 = vector.load %arg7[%311, %c0_120, %c0_121] : memref<8x8x128xf32, #tpu.memory_space<vmem>>, vector<1x8x128xf32>
    %313 = vector.shape_cast %312 : vector<1x8x128xf32> to vector<8x128xf32>
    %cst_122 = arith.constant dense<0.000000e+00> : vector<8x512xf32>
    %314 = tpu.matmul %313, %3, %cst_122 {dimension_numbers = #tpu.dot_dimension_numbers<[1], [0], [0], [1], [0, 0, 1, 1], [], []>} : vector<8x128xf32>, vector<128x512xf32>, vector<8x512xf32> -> vector<8x512xf32>
    %cst_123 = arith.constant dense<0.000000e+00> : vector<8x512xf32>
    %315 = tpu.matmul %306, %5, %cst_123 {dimension_numbers = #tpu.dot_dimension_numbers<[1], [0], [0], [1], [0, 0, 1, 1], [], []>} : vector<8x128xf32>, vector<128x512xf32>, vector<8x512xf32> -> vector<8x512xf32>
    %316 = arith.addf %314, %315 : vector<8x512xf32>
    %317 = vector.broadcast %7 : vector<1x512xf32> to vector<8x512xf32>
    %318 = arith.addf %316, %317 : vector<8x512xf32>
    %319 = vector.extract_strided_slice %318 {offsets = [0, 0], sizes = [8, 128], strides = [1, 1]} : vector<8x512xf32> to vector<8x128xf32>
    %cst_124 = arith.constant 0.000000e+00 : f32
    %320 = vector.broadcast %cst_124 : f32 to vector<8x128xf32>
    %321 = arith.subf %320, %319 : vector<8x128xf32>
    %322 = math.exp %321 : vector<8x128xf32>
    %cst_125 = arith.constant 1.000000e+00 : f32
    %323 = vector.broadcast %cst_125 : f32 to vector<8x128xf32>
    %324 = arith.addf %323, %322 : vector<8x128xf32>
    %cst_126 = arith.constant 1.000000e+00 : f32
    %325 = vector.broadcast %cst_126 : f32 to vector<8x128xf32>
    %326 = arith.divf %325, %324 : vector<8x128xf32>
    %327 = vector.extract_strided_slice %318 {offsets = [0, 128], sizes = [8, 128], strides = [1, 1]} : vector<8x512xf32> to vector<8x128xf32>
    %cst_127 = arith.constant 0.000000e+00 : f32
    %328 = vector.broadcast %cst_127 : f32 to vector<8x128xf32>
    %329 = arith.subf %328, %327 : vector<8x128xf32>
    %330 = math.exp %329 : vector<8x128xf32>
    %cst_128 = arith.constant 1.000000e+00 : f32
    %331 = vector.broadcast %cst_128 : f32 to vector<8x128xf32>
    %332 = arith.addf %331, %330 : vector<8x128xf32>
    %cst_129 = arith.constant 1.000000e+00 : f32
    %333 = vector.broadcast %cst_129 : f32 to vector<8x128xf32>
    %334 = arith.divf %333, %332 : vector<8x128xf32>
    %335 = vector.extract_strided_slice %318 {offsets = [0, 256], sizes = [8, 128], strides = [1, 1]} : vector<8x512xf32> to vector<8x128xf32>
    %336 = math.tanh %335 : vector<8x128xf32>
    %337 = vector.extract_strided_slice %318 {offsets = [0, 384], sizes = [8, 128], strides = [1, 1]} : vector<8x512xf32> to vector<8x128xf32>
    %cst_130 = arith.constant 0.000000e+00 : f32
    %338 = vector.broadcast %cst_130 : f32 to vector<8x128xf32>
    %339 = arith.subf %338, %337 : vector<8x128xf32>
    %340 = math.exp %339 : vector<8x128xf32>
    %cst_131 = arith.constant 1.000000e+00 : f32
    %341 = vector.broadcast %cst_131 : f32 to vector<8x128xf32>
    %342 = arith.addf %341, %340 : vector<8x128xf32>
    %cst_132 = arith.constant 1.000000e+00 : f32
    %343 = vector.broadcast %cst_132 : f32 to vector<8x128xf32>
    %344 = arith.divf %343, %342 : vector<8x128xf32>
    %345 = arith.mulf %334, %304 : vector<8x128xf32>
    %346 = arith.mulf %326, %336 : vector<8x128xf32>
    %347 = arith.addf %345, %346 : vector<8x128xf32>
    %348 = math.tanh %347 : vector<8x128xf32>
    %349 = arith.mulf %344, %348 : vector<8x128xf32>
    %350 = arith.index_cast %c7_i32 : i32 to index
    %c0_133 = arith.constant 0 : index
    %c0_134 = arith.constant 0 : index
    %351 = vector.load %arg7[%350, %c0_133, %c0_134] : memref<8x8x128xf32, #tpu.memory_space<vmem>>, vector<1x8x128xf32>
    %352 = vector.shape_cast %351 : vector<1x8x128xf32> to vector<8x128xf32>
    %353 = vector.shape_cast %349 : vector<8x128xf32> to vector<1x8x128xf32>
    tpu.vector_store %arg7[%350, %c0_133, %c0_134], %353 {strides = array<i32>} : memref<8x8x128xf32, #tpu.memory_space<vmem>>, vector<1x8x128xf32>,
    %c8_i32 = arith.constant 8 : i32
    %c1 = arith.constant 1 : index
    %c0_135 = arith.constant 0 : index
    %c0_136 = arith.constant 0 : index
    %354 = vector.load %arg1[%c1, %c0_135, %c0_136] : memref<2x128x512xf32, #tpu.memory_space<vmem>>, vector<1x128x512xf32>
    %355 = vector.shape_cast %354 : vector<1x128x512xf32> to vector<128x512xf32>
    %c1_137 = arith.constant 1 : index
    %c0_138 = arith.constant 0 : index
    %c0_139 = arith.constant 0 : index
    %356 = vector.load %arg2[%c1_137, %c0_138, %c0_139] : memref<2x128x512xf32, #tpu.memory_space<vmem>>, vector<1x128x512xf32>
    %357 = vector.shape_cast %356 : vector<1x128x512xf32> to vector<128x512xf32>
    %c1_140 = arith.constant 1 : index
    %c0_141 = arith.constant 0 : index
    %c0_142 = arith.constant 0 : index
    %358 = vector.load %arg3[%c1_140, %c0_141, %c0_142] : memref<2x1x512xf32, #tpu.memory_space<vmem>>, vector<1x1x512xf32>
    %359 = vector.shape_cast %358 : vector<1x1x512xf32> to vector<1x512xf32>
    %cst_143 = arith.constant 0.000000e+00 : f32
    %360 = vector.broadcast %cst_143 : f32 to vector<8x128xf32>
    %cst_144 = arith.constant 0.000000e+00 : f32
    %361 = vector.broadcast %cst_144 : f32 to vector<8x128xf32>
    %c0_i32_145 = arith.constant 0 : i32
    %362 = arith.index_cast %c0_i32_145 : i32 to index
    %c0_146 = arith.constant 0 : index
    %c0_147 = arith.constant 0 : index
    %363 = vector.load %arg7[%362, %c0_146, %c0_147] : memref<8x8x128xf32, #tpu.memory_space<vmem>>, vector<1x8x128xf32>
    %364 = vector.shape_cast %363 : vector<1x8x128xf32> to vector<8x128xf32>
    %cst_148 = arith.constant dense<0.000000e+00> : vector<8x512xf32>
    %365 = tpu.matmul %364, %355, %cst_148 {dimension_numbers = #tpu.dot_dimension_numbers<[1], [0], [0], [1], [0, 0, 1, 1], [], []>} : vector<8x128xf32>, vector<128x512xf32>, vector<8x512xf32> -> vector<8x512xf32>
    %cst_149 = arith.constant dense<0.000000e+00> : vector<8x512xf32>
    %366 = tpu.matmul %360, %357, %cst_149 {dimension_numbers = #tpu.dot_dimension_numbers<[1], [0], [0], [1], [0, 0, 1, 1], [], []>} : vector<8x128xf32>, vector<128x512xf32>, vector<8x512xf32> -> vector<8x512xf32>
    %367 = arith.addf %365, %366 : vector<8x512xf32>
    %368 = vector.broadcast %359 : vector<1x512xf32> to vector<8x512xf32>
    %369 = arith.addf %367, %368 : vector<8x512xf32>
    %370 = vector.extract_strided_slice %369 {offsets = [0, 0], sizes = [8, 128], strides = [1, 1]} : vector<8x512xf32> to vector<8x128xf32>
    %cst_150 = arith.constant 0.000000e+00 : f32
    %371 = vector.broadcast %cst_150 : f32 to vector<8x128xf32>
    %372 = arith.subf %371, %370 : vector<8x128xf32>
    %373 = math.exp %372 : vector<8x128xf32>
    %cst_151 = arith.constant 1.000000e+00 : f32
    %374 = vector.broadcast %cst_151 : f32 to vector<8x128xf32>
    %375 = arith.addf %374, %373 : vector<8x128xf32>
    %cst_152 = arith.constant 1.000000e+00 : f32
    %376 = vector.broadcast %cst_152 : f32 to vector<8x128xf32>
    %377 = arith.divf %376, %375 : vector<8x128xf32>
    %378 = vector.extract_strided_slice %369 {offsets = [0, 128], sizes = [8, 128], strides = [1, 1]} : vector<8x512xf32> to vector<8x128xf32>
    %cst_153 = arith.constant 0.000000e+00 : f32
    %379 = vector.broadcast %cst_153 : f32 to vector<8x128xf32>
    %380 = arith.subf %379, %378 : vector<8x128xf32>
    %381 = math.exp %380 : vector<8x128xf32>
    %cst_154 = arith.constant 1.000000e+00 : f32
    %382 = vector.broadcast %cst_154 : f32 to vector<8x128xf32>
    %383 = arith.addf %382, %381 : vector<8x128xf32>
    %cst_155 = arith.constant 1.000000e+00 : f32
    %384 = vector.broadcast %cst_155 : f32 to vector<8x128xf32>
    %385 = arith.divf %384, %383 : vector<8x128xf32>
    %386 = vector.extract_strided_slice %369 {offsets = [0, 256], sizes = [8, 128], strides = [1, 1]} : vector<8x512xf32> to vector<8x128xf32>
    %387 = math.tanh %386 : vector<8x128xf32>
    %388 = vector.extract_strided_slice %369 {offsets = [0, 384], sizes = [8, 128], strides = [1, 1]} : vector<8x512xf32> to vector<8x128xf32>
    %cst_156 = arith.constant 0.000000e+00 : f32
    %389 = vector.broadcast %cst_156 : f32 to vector<8x128xf32>
    %390 = arith.subf %389, %388 : vector<8x128xf32>
    %391 = math.exp %390 : vector<8x128xf32>
    %cst_157 = arith.constant 1.000000e+00 : f32
    %392 = vector.broadcast %cst_157 : f32 to vector<8x128xf32>
    %393 = arith.addf %392, %391 : vector<8x128xf32>
    %cst_158 = arith.constant 1.000000e+00 : f32
    %394 = vector.broadcast %cst_158 : f32 to vector<8x128xf32>
    %395 = arith.divf %394, %393 : vector<8x128xf32>
    %396 = arith.mulf %385, %361 : vector<8x128xf32>
    %397 = arith.mulf %377, %387 : vector<8x128xf32>
    %398 = arith.addf %396, %397 : vector<8x128xf32>
    %399 = math.tanh %398 : vector<8x128xf32>
    %400 = arith.mulf %395, %399 : vector<8x128xf32>
    %c1_i32_159 = arith.constant 1 : i32
    %401 = arith.index_cast %c1_i32_159 : i32 to index
    %c0_160 = arith.constant 0 : index
    %c0_161 = arith.constant 0 : index
    %402 = vector.load %arg7[%401, %c0_160, %c0_161] : memref<8x8x128xf32, #tpu.memory_space<vmem>>, vector<1x8x128xf32>
    %403 = vector.shape_cast %402 : vector<1x8x128xf32> to vector<8x128xf32>
    %cst_162 = arith.constant dense<0.000000e+00> : vector<8x512xf32>
    %404 = tpu.matmul %403, %355, %cst_162 {dimension_numbers = #tpu.dot_dimension_numbers<[1], [0], [0], [1], [0, 0, 1, 1], [], []>} : vector<8x128xf32>, vector<128x512xf32>, vector<8x512xf32> -> vector<8x512xf32>
    %cst_163 = arith.constant dense<0.000000e+00> : vector<8x512xf32>
    %405 = tpu.matmul %400, %357, %cst_163 {dimension_numbers = #tpu.dot_dimension_numbers<[1], [0], [0], [1], [0, 0, 1, 1], [], []>} : vector<8x128xf32>, vector<128x512xf32>, vector<8x512xf32> -> vector<8x512xf32>
    %406 = arith.addf %404, %405 : vector<8x512xf32>
    %407 = vector.broadcast %359 : vector<1x512xf32> to vector<8x512xf32>
    %408 = arith.addf %406, %407 : vector<8x512xf32>
    %409 = vector.extract_strided_slice %408 {offsets = [0, 0], sizes = [8, 128], strides = [1, 1]} : vector<8x512xf32> to vector<8x128xf32>
    %cst_164 = arith.constant 0.000000e+00 : f32
    %410 = vector.broadcast %cst_164 : f32 to vector<8x128xf32>
    %411 = arith.subf %410, %409 : vector<8x128xf32>
    %412 = math.exp %411 : vector<8x128xf32>
    %cst_165 = arith.constant 1.000000e+00 : f32
    %413 = vector.broadcast %cst_165 : f32 to vector<8x128xf32>
    %414 = arith.addf %413, %412 : vector<8x128xf32>
    %cst_166 = arith.constant 1.000000e+00 : f32
    %415 = vector.broadcast %cst_166 : f32 to vector<8x128xf32>
    %416 = arith.divf %415, %414 : vector<8x128xf32>
    %417 = vector.extract_strided_slice %408 {offsets = [0, 128], sizes = [8, 128], strides = [1, 1]} : vector<8x512xf32> to vector<8x128xf32>
    %cst_167 = arith.constant 0.000000e+00 : f32
    %418 = vector.broadcast %cst_167 : f32 to vector<8x128xf32>
    %419 = arith.subf %418, %417 : vector<8x128xf32>
    %420 = math.exp %419 : vector<8x128xf32>
    %cst_168 = arith.constant 1.000000e+00 : f32
    %421 = vector.broadcast %cst_168 : f32 to vector<8x128xf32>
    %422 = arith.addf %421, %420 : vector<8x128xf32>
    %cst_169 = arith.constant 1.000000e+00 : f32
    %423 = vector.broadcast %cst_169 : f32 to vector<8x128xf32>
    %424 = arith.divf %423, %422 : vector<8x128xf32>
    %425 = vector.extract_strided_slice %408 {offsets = [0, 256], sizes = [8, 128], strides = [1, 1]} : vector<8x512xf32> to vector<8x128xf32>
    %426 = math.tanh %425 : vector<8x128xf32>
    %427 = vector.extract_strided_slice %408 {offsets = [0, 384], sizes = [8, 128], strides = [1, 1]} : vector<8x512xf32> to vector<8x128xf32>
    %cst_170 = arith.constant 0.000000e+00 : f32
    %428 = vector.broadcast %cst_170 : f32 to vector<8x128xf32>
    %429 = arith.subf %428, %427 : vector<8x128xf32>
    %430 = math.exp %429 : vector<8x128xf32>
    %cst_171 = arith.constant 1.000000e+00 : f32
    %431 = vector.broadcast %cst_171 : f32 to vector<8x128xf32>
    %432 = arith.addf %431, %430 : vector<8x128xf32>
    %cst_172 = arith.constant 1.000000e+00 : f32
    %433 = vector.broadcast %cst_172 : f32 to vector<8x128xf32>
    %434 = arith.divf %433, %432 : vector<8x128xf32>
    %435 = arith.mulf %424, %398 : vector<8x128xf32>
    %436 = arith.mulf %416, %426 : vector<8x128xf32>
    %437 = arith.addf %435, %436 : vector<8x128xf32>
    %438 = math.tanh %437 : vector<8x128xf32>
    %439 = arith.mulf %434, %438 : vector<8x128xf32>
    %c2_i32_173 = arith.constant 2 : i32
    %440 = arith.index_cast %c2_i32_173 : i32 to index
    %c0_174 = arith.constant 0 : index
    %c0_175 = arith.constant 0 : index
    %441 = vector.load %arg7[%440, %c0_174, %c0_175] : memref<8x8x128xf32, #tpu.memory_space<vmem>>, vector<1x8x128xf32>
    %442 = vector.shape_cast %441 : vector<1x8x128xf32> to vector<8x128xf32>
    %cst_176 = arith.constant dense<0.000000e+00> : vector<8x512xf32>
    %443 = tpu.matmul %442, %355, %cst_176 {dimension_numbers = #tpu.dot_dimension_numbers<[1], [0], [0], [1], [0, 0, 1, 1], [], []>} : vector<8x128xf32>, vector<128x512xf32>, vector<8x512xf32> -> vector<8x512xf32>
    %cst_177 = arith.constant dense<0.000000e+00> : vector<8x512xf32>
    %444 = tpu.matmul %439, %357, %cst_177 {dimension_numbers = #tpu.dot_dimension_numbers<[1], [0], [0], [1], [0, 0, 1, 1], [], []>} : vector<8x128xf32>, vector<128x512xf32>, vector<8x512xf32> -> vector<8x512xf32>
    %445 = arith.addf %443, %444 : vector<8x512xf32>
    %446 = vector.broadcast %359 : vector<1x512xf32> to vector<8x512xf32>
    %447 = arith.addf %445, %446 : vector<8x512xf32>
    %448 = vector.extract_strided_slice %447 {offsets = [0, 0], sizes = [8, 128], strides = [1, 1]} : vector<8x512xf32> to vector<8x128xf32>
    %cst_178 = arith.constant 0.000000e+00 : f32
    %449 = vector.broadcast %cst_178 : f32 to vector<8x128xf32>
    %450 = arith.subf %449, %448 : vector<8x128xf32>
    %451 = math.exp %450 : vector<8x128xf32>
    %cst_179 = arith.constant 1.000000e+00 : f32
    %452 = vector.broadcast %cst_179 : f32 to vector<8x128xf32>
    %453 = arith.addf %452, %451 : vector<8x128xf32>
    %cst_180 = arith.constant 1.000000e+00 : f32
    %454 = vector.broadcast %cst_180 : f32 to vector<8x128xf32>
    %455 = arith.divf %454, %453 : vector<8x128xf32>
    %456 = vector.extract_strided_slice %447 {offsets = [0, 128], sizes = [8, 128], strides = [1, 1]} : vector<8x512xf32> to vector<8x128xf32>
    %cst_181 = arith.constant 0.000000e+00 : f32
    %457 = vector.broadcast %cst_181 : f32 to vector<8x128xf32>
    %458 = arith.subf %457, %456 : vector<8x128xf32>
    %459 = math.exp %458 : vector<8x128xf32>
    %cst_182 = arith.constant 1.000000e+00 : f32
    %460 = vector.broadcast %cst_182 : f32 to vector<8x128xf32>
    %461 = arith.addf %460, %459 : vector<8x128xf32>
    %cst_183 = arith.constant 1.000000e+00 : f32
    %462 = vector.broadcast %cst_183 : f32 to vector<8x128xf32>
    %463 = arith.divf %462, %461 : vector<8x128xf32>
    %464 = vector.extract_strided_slice %447 {offsets = [0, 256], sizes = [8, 128], strides = [1, 1]} : vector<8x512xf32> to vector<8x128xf32>
    %465 = math.tanh %464 : vector<8x128xf32>
    %466 = vector.extract_strided_slice %447 {offsets = [0, 384], sizes = [8, 128], strides = [1, 1]} : vector<8x512xf32> to vector<8x128xf32>
    %cst_184 = arith.constant 0.000000e+00 : f32
    %467 = vector.broadcast %cst_184 : f32 to vector<8x128xf32>
    %468 = arith.subf %467, %466 : vector<8x128xf32>
    %469 = math.exp %468 : vector<8x128xf32>
    %cst_185 = arith.constant 1.000000e+00 : f32
    %470 = vector.broadcast %cst_185 : f32 to vector<8x128xf32>
    %471 = arith.addf %470, %469 : vector<8x128xf32>
    %cst_186 = arith.constant 1.000000e+00 : f32
    %472 = vector.broadcast %cst_186 : f32 to vector<8x128xf32>
    %473 = arith.divf %472, %471 : vector<8x128xf32>
    %474 = arith.mulf %463, %437 : vector<8x128xf32>
    %475 = arith.mulf %455, %465 : vector<8x128xf32>
    %476 = arith.addf %474, %475 : vector<8x128xf32>
    %477 = math.tanh %476 : vector<8x128xf32>
    %478 = arith.mulf %473, %477 : vector<8x128xf32>
    %c3_i32_187 = arith.constant 3 : i32
    %479 = arith.index_cast %c3_i32_187 : i32 to index
    %c0_188 = arith.constant 0 : index
    %c0_189 = arith.constant 0 : index
    %480 = vector.load %arg7[%479, %c0_188, %c0_189] : memref<8x8x128xf32, #tpu.memory_space<vmem>>, vector<1x8x128xf32>
    %481 = vector.shape_cast %480 : vector<1x8x128xf32> to vector<8x128xf32>
    %cst_190 = arith.constant dense<0.000000e+00> : vector<8x512xf32>
    %482 = tpu.matmul %481, %355, %cst_190 {dimension_numbers = #tpu.dot_dimension_numbers<[1], [0], [0], [1], [0, 0, 1, 1], [], []>} : vector<8x128xf32>, vector<128x512xf32>, vector<8x512xf32> -> vector<8x512xf32>
    %cst_191 = arith.constant dense<0.000000e+00> : vector<8x512xf32>
    %483 = tpu.matmul %478, %357, %cst_191 {dimension_numbers = #tpu.dot_dimension_numbers<[1], [0], [0], [1], [0, 0, 1, 1], [], []>} : vector<8x128xf32>, vector<128x512xf32>, vector<8x512xf32> -> vector<8x512xf32>
    %484 = arith.addf %482, %483 : vector<8x512xf32>
    %485 = vector.broadcast %359 : vector<1x512xf32> to vector<8x512xf32>
    %486 = arith.addf %484, %485 : vector<8x512xf32>
    %487 = vector.extract_strided_slice %486 {offsets = [0, 0], sizes = [8, 128], strides = [1, 1]} : vector<8x512xf32> to vector<8x128xf32>
    %cst_192 = arith.constant 0.000000e+00 : f32
    %488 = vector.broadcast %cst_192 : f32 to vector<8x128xf32>
    %489 = arith.subf %488, %487 : vector<8x128xf32>
    %490 = math.exp %489 : vector<8x128xf32>
    %cst_193 = arith.constant 1.000000e+00 : f32
    %491 = vector.broadcast %cst_193 : f32 to vector<8x128xf32>
    %492 = arith.addf %491, %490 : vector<8x128xf32>
    %cst_194 = arith.constant 1.000000e+00 : f32
    %493 = vector.broadcast %cst_194 : f32 to vector<8x128xf32>
    %494 = arith.divf %493, %492 : vector<8x128xf32>
    %495 = vector.extract_strided_slice %486 {offsets = [0, 128], sizes = [8, 128], strides = [1, 1]} : vector<8x512xf32> to vector<8x128xf32>
    %cst_195 = arith.constant 0.000000e+00 : f32
    %496 = vector.broadcast %cst_195 : f32 to vector<8x128xf32>
    %497 = arith.subf %496, %495 : vector<8x128xf32>
    %498 = math.exp %497 : vector<8x128xf32>
    %cst_196 = arith.constant 1.000000e+00 : f32
    %499 = vector.broadcast %cst_196 : f32 to vector<8x128xf32>
    %500 = arith.addf %499, %498 : vector<8x128xf32>
    %cst_197 = arith.constant 1.000000e+00 : f32
    %501 = vector.broadcast %cst_197 : f32 to vector<8x128xf32>
    %502 = arith.divf %501, %500 : vector<8x128xf32>
    %503 = vector.extract_strided_slice %486 {offsets = [0, 256], sizes = [8, 128], strides = [1, 1]} : vector<8x512xf32> to vector<8x128xf32>
    %504 = math.tanh %503 : vector<8x128xf32>
    %505 = vector.extract_strided_slice %486 {offsets = [0, 384], sizes = [8, 128], strides = [1, 1]} : vector<8x512xf32> to vector<8x128xf32>
    %cst_198 = arith.constant 0.000000e+00 : f32
    %506 = vector.broadcast %cst_198 : f32 to vector<8x128xf32>
    %507 = arith.subf %506, %505 : vector<8x128xf32>
    %508 = math.exp %507 : vector<8x128xf32>
    %cst_199 = arith.constant 1.000000e+00 : f32
    %509 = vector.broadcast %cst_199 : f32 to vector<8x128xf32>
    %510 = arith.addf %509, %508 : vector<8x128xf32>
    %cst_200 = arith.constant 1.000000e+00 : f32
    %511 = vector.broadcast %cst_200 : f32 to vector<8x128xf32>
    %512 = arith.divf %511, %510 : vector<8x128xf32>
    %513 = arith.mulf %502, %476 : vector<8x128xf32>
    %514 = arith.mulf %494, %504 : vector<8x128xf32>
    %515 = arith.addf %513, %514 : vector<8x128xf32>
    %516 = math.tanh %515 : vector<8x128xf32>
    %517 = arith.mulf %512, %516 : vector<8x128xf32>
    %c4_i32_201 = arith.constant 4 : i32
    %518 = arith.index_cast %c4_i32_201 : i32 to index
    %c0_202 = arith.constant 0 : index
    %c0_203 = arith.constant 0 : index
    %519 = vector.load %arg7[%518, %c0_202, %c0_203] : memref<8x8x128xf32, #tpu.memory_space<vmem>>, vector<1x8x128xf32>
    %520 = vector.shape_cast %519 : vector<1x8x128xf32> to vector<8x128xf32>
    %cst_204 = arith.constant dense<0.000000e+00> : vector<8x512xf32>
    %521 = tpu.matmul %520, %355, %cst_204 {dimension_numbers = #tpu.dot_dimension_numbers<[1], [0], [0], [1], [0, 0, 1, 1], [], []>} : vector<8x128xf32>, vector<128x512xf32>, vector<8x512xf32> -> vector<8x512xf32>
    %cst_205 = arith.constant dense<0.000000e+00> : vector<8x512xf32>
    %522 = tpu.matmul %517, %357, %cst_205 {dimension_numbers = #tpu.dot_dimension_numbers<[1], [0], [0], [1], [0, 0, 1, 1], [], []>} : vector<8x128xf32>, vector<128x512xf32>, vector<8x512xf32> -> vector<8x512xf32>
    %523 = arith.addf %521, %522 : vector<8x512xf32>
    %524 = vector.broadcast %359 : vector<1x512xf32> to vector<8x512xf32>
    %525 = arith.addf %523, %524 : vector<8x512xf32>
    %526 = vector.extract_strided_slice %525 {offsets = [0, 0], sizes = [8, 128], strides = [1, 1]} : vector<8x512xf32> to vector<8x128xf32>
    %cst_206 = arith.constant 0.000000e+00 : f32
    %527 = vector.broadcast %cst_206 : f32 to vector<8x128xf32>
    %528 = arith.subf %527, %526 : vector<8x128xf32>
    %529 = math.exp %528 : vector<8x128xf32>
    %cst_207 = arith.constant 1.000000e+00 : f32
    %530 = vector.broadcast %cst_207 : f32 to vector<8x128xf32>
    %531 = arith.addf %530, %529 : vector<8x128xf32>
    %cst_208 = arith.constant 1.000000e+00 : f32
    %532 = vector.broadcast %cst_208 : f32 to vector<8x128xf32>
    %533 = arith.divf %532, %531 : vector<8x128xf32>
    %534 = vector.extract_strided_slice %525 {offsets = [0, 128], sizes = [8, 128], strides = [1, 1]} : vector<8x512xf32> to vector<8x128xf32>
    %cst_209 = arith.constant 0.000000e+00 : f32
    %535 = vector.broadcast %cst_209 : f32 to vector<8x128xf32>
    %536 = arith.subf %535, %534 : vector<8x128xf32>
    %537 = math.exp %536 : vector<8x128xf32>
    %cst_210 = arith.constant 1.000000e+00 : f32
    %538 = vector.broadcast %cst_210 : f32 to vector<8x128xf32>
    %539 = arith.addf %538, %537 : vector<8x128xf32>
    %cst_211 = arith.constant 1.000000e+00 : f32
    %540 = vector.broadcast %cst_211 : f32 to vector<8x128xf32>
    %541 = arith.divf %540, %539 : vector<8x128xf32>
    %542 = vector.extract_strided_slice %525 {offsets = [0, 256], sizes = [8, 128], strides = [1, 1]} : vector<8x512xf32> to vector<8x128xf32>
    %543 = math.tanh %542 : vector<8x128xf32>
    %544 = vector.extract_strided_slice %525 {offsets = [0, 384], sizes = [8, 128], strides = [1, 1]} : vector<8x512xf32> to vector<8x128xf32>
    %cst_212 = arith.constant 0.000000e+00 : f32
    %545 = vector.broadcast %cst_212 : f32 to vector<8x128xf32>
    %546 = arith.subf %545, %544 : vector<8x128xf32>
    %547 = math.exp %546 : vector<8x128xf32>
    %cst_213 = arith.constant 1.000000e+00 : f32
    %548 = vector.broadcast %cst_213 : f32 to vector<8x128xf32>
    %549 = arith.addf %548, %547 : vector<8x128xf32>
    %cst_214 = arith.constant 1.000000e+00 : f32
    %550 = vector.broadcast %cst_214 : f32 to vector<8x128xf32>
    %551 = arith.divf %550, %549 : vector<8x128xf32>
    %552 = arith.mulf %541, %515 : vector<8x128xf32>
    %553 = arith.mulf %533, %543 : vector<8x128xf32>
    %554 = arith.addf %552, %553 : vector<8x128xf32>
    %555 = math.tanh %554 : vector<8x128xf32>
    %556 = arith.mulf %551, %555 : vector<8x128xf32>
    %c5_i32_215 = arith.constant 5 : i32
    %557 = arith.index_cast %c5_i32_215 : i32 to index
    %c0_216 = arith.constant 0 : index
    %c0_217 = arith.constant 0 : index
    %558 = vector.load %arg7[%557, %c0_216, %c0_217] : memref<8x8x128xf32, #tpu.memory_space<vmem>>, vector<1x8x128xf32>
    %559 = vector.shape_cast %558 : vector<1x8x128xf32> to vector<8x128xf32>
    %cst_218 = arith.constant dense<0.000000e+00> : vector<8x512xf32>
    %560 = tpu.matmul %559, %355, %cst_218 {dimension_numbers = #tpu.dot_dimension_numbers<[1], [0], [0], [1], [0, 0, 1, 1], [], []>} : vector<8x128xf32>, vector<128x512xf32>, vector<8x512xf32> -> vector<8x512xf32>
    %cst_219 = arith.constant dense<0.000000e+00> : vector<8x512xf32>
    %561 = tpu.matmul %556, %357, %cst_219 {dimension_numbers = #tpu.dot_dimension_numbers<[1], [0], [0], [1], [0, 0, 1, 1], [], []>} : vector<8x128xf32>, vector<128x512xf32>, vector<8x512xf32> -> vector<8x512xf32>
    %562 = arith.addf %560, %561 : vector<8x512xf32>
    %563 = vector.broadcast %359 : vector<1x512xf32> to vector<8x512xf32>
    %564 = arith.addf %562, %563 : vector<8x512xf32>
    %565 = vector.extract_strided_slice %564 {offsets = [0, 0], sizes = [8, 128], strides = [1, 1]} : vector<8x512xf32> to vector<8x128xf32>
    %cst_220 = arith.constant 0.000000e+00 : f32
    %566 = vector.broadcast %cst_220 : f32 to vector<8x128xf32>
    %567 = arith.subf %566, %565 : vector<8x128xf32>
    %568 = math.exp %567 : vector<8x128xf32>
    %cst_221 = arith.constant 1.000000e+00 : f32
    %569 = vector.broadcast %cst_221 : f32 to vector<8x128xf32>
    %570 = arith.addf %569, %568 : vector<8x128xf32>
    %cst_222 = arith.constant 1.000000e+00 : f32
    %571 = vector.broadcast %cst_222 : f32 to vector<8x128xf32>
    %572 = arith.divf %571, %570 : vector<8x128xf32>
    %573 = vector.extract_strided_slice %564 {offsets = [0, 128], sizes = [8, 128], strides = [1, 1]} : vector<8x512xf32> to vector<8x128xf32>
    %cst_223 = arith.constant 0.000000e+00 : f32
    %574 = vector.broadcast %cst_223 : f32 to vector<8x128xf32>
    %575 = arith.subf %574, %573 : vector<8x128xf32>
    %576 = math.exp %575 : vector<8x128xf32>
    %cst_224 = arith.constant 1.000000e+00 : f32
    %577 = vector.broadcast %cst_224 : f32 to vector<8x128xf32>
    %578 = arith.addf %577, %576 : vector<8x128xf32>
    %cst_225 = arith.constant 1.000000e+00 : f32
    %579 = vector.broadcast %cst_225 : f32 to vector<8x128xf32>
    %580 = arith.divf %579, %578 : vector<8x128xf32>
    %581 = vector.extract_strided_slice %564 {offsets = [0, 256], sizes = [8, 128], strides = [1, 1]} : vector<8x512xf32> to vector<8x128xf32>
    %582 = math.tanh %581 : vector<8x128xf32>
    %583 = vector.extract_strided_slice %564 {offsets = [0, 384], sizes = [8, 128], strides = [1, 1]} : vector<8x512xf32> to vector<8x128xf32>
    %cst_226 = arith.constant 0.000000e+00 : f32
    %584 = vector.broadcast %cst_226 : f32 to vector<8x128xf32>
    %585 = arith.subf %584, %583 : vector<8x128xf32>
    %586 = math.exp %585 : vector<8x128xf32>
    %cst_227 = arith.constant 1.000000e+00 : f32
    %587 = vector.broadcast %cst_227 : f32 to vector<8x128xf32>
    %588 = arith.addf %587, %586 : vector<8x128xf32>
    %cst_228 = arith.constant 1.000000e+00 : f32
    %589 = vector.broadcast %cst_228 : f32 to vector<8x128xf32>
    %590 = arith.divf %589, %588 : vector<8x128xf32>
    %591 = arith.mulf %580, %554 : vector<8x128xf32>
    %592 = arith.mulf %572, %582 : vector<8x128xf32>
    %593 = arith.addf %591, %592 : vector<8x128xf32>
    %594 = math.tanh %593 : vector<8x128xf32>
    %595 = arith.mulf %590, %594 : vector<8x128xf32>
    %c6_i32_229 = arith.constant 6 : i32
    %596 = arith.index_cast %c6_i32_229 : i32 to index
    %c0_230 = arith.constant 0 : index
    %c0_231 = arith.constant 0 : index
    %597 = vector.load %arg7[%596, %c0_230, %c0_231] : memref<8x8x128xf32, #tpu.memory_space<vmem>>, vector<1x8x128xf32>
    %598 = vector.shape_cast %597 : vector<1x8x128xf32> to vector<8x128xf32>
    %cst_232 = arith.constant dense<0.000000e+00> : vector<8x512xf32>
    %599 = tpu.matmul %598, %355, %cst_232 {dimension_numbers = #tpu.dot_dimension_numbers<[1], [0], [0], [1], [0, 0, 1, 1], [], []>} : vector<8x128xf32>, vector<128x512xf32>, vector<8x512xf32> -> vector<8x512xf32>
    %cst_233 = arith.constant dense<0.000000e+00> : vector<8x512xf32>
    %600 = tpu.matmul %595, %357, %cst_233 {dimension_numbers = #tpu.dot_dimension_numbers<[1], [0], [0], [1], [0, 0, 1, 1], [], []>} : vector<8x128xf32>, vector<128x512xf32>, vector<8x512xf32> -> vector<8x512xf32>
    %601 = arith.addf %599, %600 : vector<8x512xf32>
    %602 = vector.broadcast %359 : vector<1x512xf32> to vector<8x512xf32>
    %603 = arith.addf %601, %602 : vector<8x512xf32>
    %604 = vector.extract_strided_slice %603 {offsets = [0, 0], sizes = [8, 128], strides = [1, 1]} : vector<8x512xf32> to vector<8x128xf32>
    %cst_234 = arith.constant 0.000000e+00 : f32
    %605 = vector.broadcast %cst_234 : f32 to vector<8x128xf32>
    %606 = arith.subf %605, %604 : vector<8x128xf32>
    %607 = math.exp %606 : vector<8x128xf32>
    %cst_235 = arith.constant 1.000000e+00 : f32
    %608 = vector.broadcast %cst_235 : f32 to vector<8x128xf32>
    %609 = arith.addf %608, %607 : vector<8x128xf32>
    %cst_236 = arith.constant 1.000000e+00 : f32
    %610 = vector.broadcast %cst_236 : f32 to vector<8x128xf32>
    %611 = arith.divf %610, %609 : vector<8x128xf32>
    %612 = vector.extract_strided_slice %603 {offsets = [0, 128], sizes = [8, 128], strides = [1, 1]} : vector<8x512xf32> to vector<8x128xf32>
    %cst_237 = arith.constant 0.000000e+00 : f32
    %613 = vector.broadcast %cst_237 : f32 to vector<8x128xf32>
    %614 = arith.subf %613, %612 : vector<8x128xf32>
    %615 = math.exp %614 : vector<8x128xf32>
    %cst_238 = arith.constant 1.000000e+00 : f32
    %616 = vector.broadcast %cst_238 : f32 to vector<8x128xf32>
    %617 = arith.addf %616, %615 : vector<8x128xf32>
    %cst_239 = arith.constant 1.000000e+00 : f32
    %618 = vector.broadcast %cst_239 : f32 to vector<8x128xf32>
    %619 = arith.divf %618, %617 : vector<8x128xf32>
    %620 = vector.extract_strided_slice %603 {offsets = [0, 256], sizes = [8, 128], strides = [1, 1]} : vector<8x512xf32> to vector<8x128xf32>
    %621 = math.tanh %620 : vector<8x128xf32>
    %622 = vector.extract_strided_slice %603 {offsets = [0, 384], sizes = [8, 128], strides = [1, 1]} : vector<8x512xf32> to vector<8x128xf32>
    %cst_240 = arith.constant 0.000000e+00 : f32
    %623 = vector.broadcast %cst_240 : f32 to vector<8x128xf32>
    %624 = arith.subf %623, %622 : vector<8x128xf32>
    %625 = math.exp %624 : vector<8x128xf32>
    %cst_241 = arith.constant 1.000000e+00 : f32
    %626 = vector.broadcast %cst_241 : f32 to vector<8x128xf32>
    %627 = arith.addf %626, %625 : vector<8x128xf32>
    %cst_242 = arith.constant 1.000000e+00 : f32
    %628 = vector.broadcast %cst_242 : f32 to vector<8x128xf32>
    %629 = arith.divf %628, %627 : vector<8x128xf32>
    %630 = arith.mulf %619, %593 : vector<8x128xf32>
    %631 = arith.mulf %611, %621 : vector<8x128xf32>
    %632 = arith.addf %630, %631 : vector<8x128xf32>
    %633 = math.tanh %632 : vector<8x128xf32>
    %634 = arith.mulf %629, %633 : vector<8x128xf32>
    %c7_i32_243 = arith.constant 7 : i32
    %635 = arith.index_cast %c7_i32_243 : i32 to index
    %c0_244 = arith.constant 0 : index
    %c0_245 = arith.constant 0 : index
    %636 = vector.load %arg7[%635, %c0_244, %c0_245] : memref<8x8x128xf32, #tpu.memory_space<vmem>>, vector<1x8x128xf32>
    %637 = vector.shape_cast %636 : vector<1x8x128xf32> to vector<8x128xf32>
    %cst_246 = arith.constant dense<0.000000e+00> : vector<8x512xf32>
    %638 = tpu.matmul %637, %355, %cst_246 {dimension_numbers = #tpu.dot_dimension_numbers<[1], [0], [0], [1], [0, 0, 1, 1], [], []>} : vector<8x128xf32>, vector<128x512xf32>, vector<8x512xf32> -> vector<8x512xf32>
    %cst_247 = arith.constant dense<0.000000e+00> : vector<8x512xf32>
    %639 = tpu.matmul %634, %357, %cst_247 {dimension_numbers = #tpu.dot_dimension_numbers<[1], [0], [0], [1], [0, 0, 1, 1], [], []>} : vector<8x128xf32>, vector<128x512xf32>, vector<8x512xf32> -> vector<8x512xf32>
    %640 = arith.addf %638, %639 : vector<8x512xf32>
    %641 = vector.broadcast %359 : vector<1x512xf32> to vector<8x512xf32>
    %642 = arith.addf %640, %641 : vector<8x512xf32>
    %643 = vector.extract_strided_slice %642 {offsets = [0, 0], sizes = [8, 128], strides = [1, 1]} : vector<8x512xf32> to vector<8x128xf32>
    %cst_248 = arith.constant 0.000000e+00 : f32
    %644 = vector.broadcast %cst_248 : f32 to vector<8x128xf32>
    %645 = arith.subf %644, %643 : vector<8x128xf32>
    %646 = math.exp %645 : vector<8x128xf32>
    %cst_249 = arith.constant 1.000000e+00 : f32
    %647 = vector.broadcast %cst_249 : f32 to vector<8x128xf32>
    %648 = arith.addf %647, %646 : vector<8x128xf32>
    %cst_250 = arith.constant 1.000000e+00 : f32
    %649 = vector.broadcast %cst_250 : f32 to vector<8x128xf32>
    %650 = arith.divf %649, %648 : vector<8x128xf32>
    %651 = vector.extract_strided_slice %642 {offsets = [0, 128], sizes = [8, 128], strides = [1, 1]} : vector<8x512xf32> to vector<8x128xf32>
    %cst_251 = arith.constant 0.000000e+00 : f32
    %652 = vector.broadcast %cst_251 : f32 to vector<8x128xf32>
    %653 = arith.subf %652, %651 : vector<8x128xf32>
    %654 = math.exp %653 : vector<8x128xf32>
    %cst_252 = arith.constant 1.000000e+00 : f32
    %655 = vector.broadcast %cst_252 : f32 to vector<8x128xf32>
    %656 = arith.addf %655, %654 : vector<8x128xf32>
    %cst_253 = arith.constant 1.000000e+00 : f32
    %657 = vector.broadcast %cst_253 : f32 to vector<8x128xf32>
    %658 = arith.divf %657, %656 : vector<8x128xf32>
    %659 = vector.extract_strided_slice %642 {offsets = [0, 256], sizes = [8, 128], strides = [1, 1]} : vector<8x512xf32> to vector<8x128xf32>
    %660 = math.tanh %659 : vector<8x128xf32>
    %661 = vector.extract_strided_slice %642 {offsets = [0, 384], sizes = [8, 128], strides = [1, 1]} : vector<8x512xf32> to vector<8x128xf32>
    %cst_254 = arith.constant 0.000000e+00 : f32
    %662 = vector.broadcast %cst_254 : f32 to vector<8x128xf32>
    %663 = arith.subf %662, %661 : vector<8x128xf32>
    %664 = math.exp %663 : vector<8x128xf32>
    %cst_255 = arith.constant 1.000000e+00 : f32
    %665 = vector.broadcast %cst_255 : f32 to vector<8x128xf32>
    %666 = arith.addf %665, %664 : vector<8x128xf32>
    %cst_256 = arith.constant 1.000000e+00 : f32
    %667 = vector.broadcast %cst_256 : f32 to vector<8x128xf32>
    %668 = arith.divf %667, %666 : vector<8x128xf32>
    %669 = arith.mulf %658, %632 : vector<8x128xf32>
    %670 = arith.mulf %650, %660 : vector<8x128xf32>
    %671 = arith.addf %669, %670 : vector<8x128xf32>
    %672 = math.tanh %671 : vector<8x128xf32>
    %673 = arith.mulf %668, %672 : vector<8x128xf32>
    %c8_i32_257 = arith.constant 8 : i32
    %cst_258 = arith.constant dense<0.000000e+00> : vector<8xf32>
    %674 = vector.multi_reduction <add>, %673, %cst_258 [1] : vector<8x128xf32> to vector<8xf32>
    %675 = vector.shape_cast %674 : vector<8xf32> to vector<8x1xf32>
    %cst_259 = arith.constant 1.280000e+02 : f32
    %676 = vector.broadcast %cst_259 : f32 to vector<8x1xf32>
    %677 = arith.divf %675, %676 : vector<8x1xf32>
    %678 = vector.broadcast %677 : vector<8x1xf32> to vector<8x128xf32>
    %679 = arith.subf %673, %678 : vector<8x128xf32>
    %680 = arith.mulf %679, %679 : vector<8x128xf32>
    %cst_260 = arith.constant dense<0.000000e+00> : vector<8xf32>
    %681 = vector.multi_reduction <add>, %680, %cst_260 [1] : vector<8x128xf32> to vector<8xf32>
    %682 = vector.shape_cast %681 : vector<8xf32> to vector<8x1xf32>
    %cst_261 = arith.constant 1.280000e+02 : f32
    %683 = vector.broadcast %cst_261 : f32 to vector<8x1xf32>
    %684 = arith.divf %682, %683 : vector<8x1xf32>
    %cst_262 = arith.constant 9.99999974E-6 : f32
    %685 = vector.broadcast %cst_262 : f32 to vector<8x1xf32>
    %686 = arith.addf %684, %685 : vector<8x1xf32>
    %687 = math.rsqrt %686 : vector<8x1xf32>
    %688 = vector.broadcast %687 : vector<8x1xf32> to vector<8x128xf32>
    %689 = arith.mulf %679, %688 : vector<8x128xf32>
    %c0_263 = arith.constant 0 : index
    %c0_264 = arith.constant 0 : index
    %690 = vector.load %arg4[%c0_263, %c0_264] : memref<1x128xf32, #tpu.memory_space<vmem>>, vector<1x128xf32>
    %691 = vector.broadcast %690 : vector<1x128xf32> to vector<8x128xf32>
    %692 = arith.mulf %689, %691 : vector<8x128xf32>
    %c0_265 = arith.constant 0 : index
    %c0_266 = arith.constant 0 : index
    %693 = vector.load %arg5[%c0_265, %c0_266] : memref<1x128xf32, #tpu.memory_space<vmem>>, vector<1x128xf32>
    %694 = vector.broadcast %693 : vector<1x128xf32> to vector<8x128xf32>
    %695 = arith.addf %692, %694 : vector<8x128xf32>
    %c0_267 = arith.constant 0 : index
    %c0_268 = arith.constant 0 : index
    %696 = vector.load %arg6[%c0_267, %c0_268] : memref<8x128xf32, #tpu.memory_space<vmem>>, vector<8x128xf32>
    tpu.vector_store %arg6[%c0_267, %c0_268], %695 {strides = array<i32>} : memref<8x128xf32, #tpu.memory_space<vmem>>, vector<8x128xf32>,
    return
  }
}

</mosaic_0001>

<bundles_post_ra>
// kernel: tpu_custom_call.1
= control target key start
LH: loop header
LB: loop body
LE: loop exit
PB: predicated region body
PF: predicated region fallthrough
CT: control target
= control target key end

     0   :  { %11 = vsyncpa [#allocation4], 0  ;;  %s8890_s0 = inlined_call_operand.hbm [shape: f32[8,8,128], index: 0, kind: input, shape index: {}]   ;;  %s8891_s1 = inlined_call_operand.hbm [shape: f32[2,128,512], index: 1, kind: input, shape index: {}]   ;;  %s8892_s2 = inlined_call_operand.hbm [shape: f32[2,128,512], index: 2, kind: input, shape index: {}]   ;;  %s8893_s3 = inlined_call_operand.hbm [shape: f32[2,1,512], index: 3, kind: input, shape index: {}]   ;;  %s8894_s4 = inlined_call_operand.vmem [shape: f32[1,128], index: 4, kind: input, shape index: {}]   ;;  %s8895_s5 = inlined_call_operand.vmem [shape: f32[1,128], index: 5, kind: input, shape index: {}]   ;;  %s8896_s6 = inlined_call_operand.hbm [shape: f32[8,128], index: 6, kind: output, shape index: {}]  }
   0x1   :  { %12 = vsyncpa [#allocation7], 0 }
   0x2   :  { %13 = vsyncpa [#allocation10], 0  ;;  %s32_s23 = sshll.u32 %s8891_s1, 4  ;;  %s33_s23 = int_to_ptr.hbm [resolvable:$true] %s32_s23 }
   0x3   :  { %14 = vsyncpa [#allocation5], 0  ;;  %s5017_s24 = smov [#allocation6]   ;;  %s19_s28 = sshll.u32 %s8890_s0, 4  ;;  %s20_s28 = int_to_ptr.hbm [resolvable:$true] %s19_s28 }
   0x4   :  { %s34_s25 = sshll.u32 %s5017_s24, 4  ;;  %s5018_s29 = smov 512   ;;  %s35_s25 = int_to_ptr.vmem [resolvable:$true] %s34_s25 }
   0x5   :  { %s5019_s30 = smov 32   ;;  %s5020_s7 = smov [#allocation3]  }
   0x6   :  { %40 = dma.hbm_to_vmem [thread:$0]  %s33_s23, 16384, %s35_s25, [#allocation7], %s5018_s29, %s5018_s29, %s5019_s30  }
   0x7   :  { %s21_s8 = sshll.u32 %s5020_s7, 4  ;;  %s5021_s9 = smov 128   ;;  %s22_s8 = int_to_ptr.vmem [resolvable:$true] %s21_s8 }
   0x8   :  { %s5022_s10 = smov 8   ;;  %s45_s12 = sshll.u32 %s8892_s2, 4  ;;  %s46_s12 = int_to_ptr.hbm [resolvable:$true] %s45_s12 }
   0x9   :  { %27 = dma.hbm_to_vmem [thread:$0]  %s20_s28, 1024, %s22_s8, [#allocation4], %s5021_s9, %s5021_s9, %s5022_s10  }
   0xa   :  { %s5023_s13 = smov [#allocation8]   ;;  %s58_s16 = sshll.u32 %s8893_s3, 4  ;;  %s59_s16 = int_to_ptr.hbm [resolvable:$true] %s58_s16 }
   0xb   :  { %s47_s14 = sshll.u32 %s5023_s13, 4  ;;  %s5024_s17 = smov [#allocation9]   ;;  %s48_s14 = int_to_ptr.vmem [resolvable:$true] %s47_s14 }
   0xc   :  { %53 = dma.hbm_to_vmem [thread:$0]  %s46_s12, 16384, %s48_s14, [#allocation7], %s5018_s29, %s5018_s29, %s5019_s30  }
   0xd   :  { %s60_s18 = sshll.u32 %s5024_s17, 4  ;;  %s5025_s19 = smov 64   ;;  %s61_s18 = int_to_ptr.vmem [resolvable:$true] %s60_s18 }
   0xe   :  { %s5026_s20 = smov 4  }
   0xf   :  { %66 = dma.hbm_to_vmem [thread:$0]  %s59_s16, 128, %s61_s18, [#allocation10], %s5025_s19, %s5025_s19, %s5026_s20  }
  0x10   :  { %5009 = dma.done.wait [#allocation4], 1024  }
  0x11   :  { %5010 = vsyncadd [#allocation4], 4294966272 }
  0x12   :  { %5011 = dma.done.wait [#allocation7], 32768  }
  0x13   :  { %5012 = vsyncadd [#allocation7], 4294934528 }
  0x14   :  { %5013 = dma.done.wait [#allocation10], 128  }
  0x15   :  { %5014 = vsyncadd [#allocation10], 4294967168  ;;  %v5077_v0 = vld [vmem:[#allocation8 + $0x1e0] sm:$0xff]  ;;  %v5079_v1 = vld [vmem:[#allocation8 + $0x1e8] sm:$0xff]  ;;  %s5029_s23 = smov [#allocation11]   ;;  %s4090_s27 = sshll.u32 %s8896_s6, 4  ;;  %s4091_s27 = int_to_ptr.hbm [resolvable:$true] %s4090_s27 }
  0x16   :  { %v5081_v2 = vld [vmem:[#allocation8 + $0x1f8] sm:$0xff]  ;;  %233 = vmatpush.msra.mxu0 %v5077_v0  ;;  %253 = vmatpush.msra.mxu1 %v5079_v1  ;;  %v5085_v3 = vld [vmem:[#allocation8 + $0x1c0] sm:$0xff]  ;;  %v5087_v4 = vld [vmem:[#allocation8 + $0x1c8] sm:$0xff]  ;;  %s4088_s24 = sshll.u32 %s5029_s23, 4  ;;  %s4089_s24 = int_to_ptr.vmem [resolvable:$true] %s4088_s24 }
  0x17   :  { %v5089_v5 = vld [vmem:[#allocation8 + $0x1d8] sm:$0xff]  ;;  %293 = vmatpush.msra.mxu3 %v5081_v2  ;;  %v5092_v6 = vld [vmem:[#allocation8 + $0x1a0] sm:$0xff]  ;;  %v5094_v7 = vld [vmem:[#allocation8 + $0x1a8] sm:$0xff] }
  0x18   :  { %234 = vmatpush.msra.mxu0 %v5085_v3  ;;  %254 = vmatpush.msra.mxu1 %v5087_v4  ;;  %v5098_v8 = vld [vmem:[#allocation8 + $0x1b8] sm:$0xff]  ;;  %v5101_v9 = vld [vmem:[#allocation8 + $0x180] sm:$0xff]  ;;  %v5103_v10 = vld [vmem:[#allocation8 + $0x188] sm:$0xff] }
  0x19   :  { %294 = vmatpush.msra.mxu3 %v5089_v5  ;;  %v5107_v11 = vld [vmem:[#allocation8 + $0x198] sm:$0xff]  ;;  %v5109_v12 = vld [vmem:[#allocation8 + $0x1f0] sm:$0xff]  ;;  %v5112_v13 = vld [vmem:[#allocation8 + $0x160] sm:$0xff] }
  0x1a   :  { %235 = vmatpush.msra.mxu0 %v5092_v6  ;;  %255 = vmatpush.msra.mxu1 %v5094_v7  ;;  %v5114_v14 = vld [vmem:[#allocation8 + $0x168] sm:$0xff]  ;;  %v5117_v15 = vld [vmem:[#allocation8 + $0x1d0] sm:$0xff]  ;;  %v5121_v16 = vld [vmem:[#allocation8 + $0x178] sm:$0xff] }
  0x1b   :  { %295 = vmatpush.msra.mxu3 %v5098_v8  ;;  %273 = vmatpush.msra.mxu2 %v5109_v12  ;;  %v5123_v17 = vld [vmem:[#allocation8 + $0x1b0] sm:$0xff]  ;;  %v5126_v18 = vld [vmem:[#allocation8 + $0x140] sm:$0xff]  ;;  %v5128_v19 = vld [vmem:[#allocation8 + $0x148] sm:$0xff] }
  0x1c   :  { %236 = vmatpush.msra.mxu0 %v5101_v9  ;;  %256 = vmatpush.msra.mxu1 %v5103_v10  ;;  %v5133_v20 = vld [vmem:[#allocation8 + $0x158] sm:$0xff]  ;;  %v5135_v21 = vld [vmem:[#allocation8 + $0x190] sm:$0xff]  ;;  %v5138_v22 = vld [vmem:[#allocation8 + $0x120] sm:$0xff] }
  0x1d   :  { %296 = vmatpush.msra.mxu3 %v5107_v11  ;;  %274 = vmatpush.msra.mxu2 %v5117_v15  ;;  %v5140_v23 = vld [vmem:[#allocation8 + $0x128] sm:$0xff]  ;;  %v5145_v24 = vld [vmem:[#allocation8 + $0x138] sm:$0xff]  ;;  %v5147_v25 = vld [vmem:[#allocation8 + $0x170] sm:$0xff] }
  0x1e   :  { %237 = vmatpush.msra.mxu0 %v5112_v13  ;;  %257 = vmatpush.msra.mxu1 %v5114_v14  ;;  %v5150_v26 = vld [vmem:[#allocation8 + $0x100] sm:$0xff]  ;;  %v5152_v27 = vld [vmem:[#allocation8 + $0x108] sm:$0xff]  ;;  %v5157_v28 = vld [vmem:[#allocation8 + $0x118] sm:$0xff] }
  0x1f   :  { %297 = vmatpush.msra.mxu3 %v5121_v16  ;;  %275 = vmatpush.msra.mxu2 %v5123_v17  ;;  %v5159_v29 = vld [vmem:[#allocation8 + $0x150] sm:$0xff]  ;;  %v5162_v30 = vld [vmem:[#allocation8 + $0xe0] sm:$0xff]  ;;  %v5164_v31 = vld [vmem:[#allocation8 + $0xe8] sm:$0xff] }
  0x20   :  { %238 = vmatpush.msra.mxu0 %v5126_v18  ;;  %258 = vmatpush.msra.mxu1 %v5128_v19  ;;  %v5169_v32 = vld [vmem:[#allocation8 + $0xf8] sm:$0xff]  ;;  %v5171_v33 = vld [vmem:[#allocation8 + $0x130] sm:$0xff]  ;;  %v5174_v34 = vld [vmem:[#allocation8 + $0xc0] sm:$0xff] }
  0x21   :  { %298 = vmatpush.msra.mxu3 %v5133_v20  ;;  %276 = vmatpush.msra.mxu2 %v5135_v21  ;;  %v5176_v35 = vld [vmem:[#allocation8 + $0xc8] sm:$0xff]  ;;  %v5181_v36 = vld [vmem:[#allocation8 + $0xd8] sm:$0xff]  ;;  %v5183_v37 = vld [vmem:[#allocation8 + $0x110] sm:$0xff] }
  0x22   :  { %239 = vmatpush.msra.mxu0 %v5138_v22  ;;  %259 = vmatpush.msra.mxu1 %v5140_v23  ;;  %9862 = vst [vmem:[#allocation16_spill] sm:$0xff] %v5181_v36  ;;  %v5186_v38 = vld [vmem:[#allocation8 + $0xa0] sm:$0xff]  ;;  %v5188_v39 = vld [vmem:[#allocation8 + $0xa8] sm:$0xff]  ;;  %v5193_v40 = vld [vmem:[#allocation8 + $0xb8] sm:$0xff] }
  0x23   :  { %299 = vmatpush.msra.mxu3 %v5145_v24  ;;  %277 = vmatpush.msra.mxu2 %v5147_v25  ;;  %9863 = vst [vmem:[#allocation17_spill] sm:$0xff] %v5186_v38  ;;  %v5195_v41 = vld [vmem:[#allocation8 + $0xf0] sm:$0xff]  ;;  %v5198_v42 = vld [vmem:[#allocation8 + $0x80] sm:$0xff]  ;;  %v5200_v43 = vld [vmem:[#allocation8 + $0x88] sm:$0xff] }
  0x24   :  { %240 = vmatpush.msra.mxu0 %v5150_v26  ;;  %260 = vmatpush.msra.mxu1 %v5152_v27  ;;  %9864 = vst [vmem:[#allocation18_spill] sm:$0xff] %v5188_v39  ;;  %v5205_v44 = vld [vmem:[#allocation8 + $0x98] sm:$0xff]  ;;  %v5207_v45 = vld [vmem:[#allocation8 + $0xd0] sm:$0xff]  ;;  %v5210_v46 = vld [vmem:[#allocation8 + $0x60] sm:$0xff] }
  0x25   :  { %300 = vmatpush.msra.mxu3 %v5157_v28  ;;  %278 = vmatpush.msra.mxu2 %v5159_v29  ;;  %9865 = vst [vmem:[#allocation19_spill] sm:$0xff] %v5193_v40  ;;  %v5212_v47 = vld [vmem:[#allocation8 + $0x68] sm:$0xff]  ;;  %v5217_v48 = vld [vmem:[#allocation8 + $0x78] sm:$0xff]  ;;  %v5219_v49 = vld [vmem:[#allocation8 + $0xb0] sm:$0xff] }
  0x26   :  { %241 = vmatpush.msra.mxu0 %v5162_v30  ;;  %261 = vmatpush.msra.mxu1 %v5164_v31  ;;  %9866 = vst [vmem:[#allocation20_spill] sm:$0xff] %v5198_v42  ;;  %v5222_v50 = vld [vmem:[#allocation8 + $0x40] sm:$0xff]  ;;  %v5224_v51 = vld [vmem:[#allocation8 + $0x48] sm:$0xff]  ;;  %v5229_v52 = vld [vmem:[#allocation8 + $0x58] sm:$0xff] }
  0x27   :  { %301 = vmatpush.msra.mxu3 %v5169_v32  ;;  %279 = vmatpush.msra.mxu2 %v5171_v33  ;;  %9867 = vst [vmem:[#allocation21_spill] sm:$0xff] %v5200_v43  ;;  %v5231_v53 = vld [vmem:[#allocation8 + $0x90] sm:$0xff]  ;;  %v5234_v54 = vld [vmem:[#allocation8 + $0x20] sm:$0xff]  ;;  %v5236_v55 = vld [vmem:[#allocation8 + $0x28] sm:$0xff] }
  0x28   :  { %242 = vmatpush.msra.mxu0 %v5174_v34  ;;  %262 = vmatpush.msra.mxu1 %v5176_v35  ;;  %9868 = vst [vmem:[#allocation22_spill] sm:$0xff] %v5205_v44  ;;  %v5241_v56 = vld [vmem:[#allocation8 + $0x38] sm:$0xff]  ;;  %v5243_v57 = vld [vmem:[#allocation8 + $0x70] sm:$0xff]  ;;  %v5246_v58 = vld [vmem:[#allocation8] sm:$0xff] }
  0x29   :  { %302 = vmatpush.msra.mxu3 %v5181_v36  ;;  %280 = vmatpush.msra.mxu2 %v5183_v37  ;;  %9869 = vst [vmem:[#allocation23_spill] sm:$0xff] %v5207_v45  ;;  %v5248_v59 = vld [vmem:[#allocation8 + $0x8] sm:$0xff]  ;;  %v5253_v60 = vld [vmem:[#allocation8 + $0x18] sm:$0xff]  ;;  %v5255_v61 = vld [vmem:[#allocation6 + $0x1e0] sm:$0xff] }
  0x2a   :  { %243 = vmatpush.msra.mxu0 %v5186_v38  ;;  %263 = vmatpush.msra.mxu1 %v5188_v39  ;;  %9870 = vst [vmem:[#allocation24_spill] sm:$0xff] %v5210_v46  ;;  %v5258_v62 = vld [vmem:[#allocation6 + $0x1e8] sm:$0xff]  ;;  %v5260_v63 = vld [vmem:[#allocation6 + $0x1f8] sm:$0xff] }
  0x2b   :  { %303 = vmatpush.msra.mxu3 %v5193_v40  ;;  %9871 = vst [vmem:[#allocation25_spill] sm:$0xff] %v5212_v47  ;;  %281 = vmatpush.msra.mxu2 %v5195_v41 }
  0x2c   :  { %244 = vmatpush.msra.mxu0 %v5198_v42  ;;  %264 = vmatpush.msra.mxu1 %v5200_v43  ;;  %9872 = vst [vmem:[#allocation26_spill] sm:$0xff] %v5217_v48 }
  0x2d   :  { %9873 = vst [vmem:[#allocation27_spill] sm:$0xff] %v5219_v49  ;;  %304 = vmatpush.msra.mxu3 %v5205_v44  ;;  %282 = vmatpush.msra.mxu2 %v5207_v45 }
  0x2e   :  { %9874 = vst [vmem:[#allocation28_spill] sm:$0xff] %v5222_v50  ;;  %245 = vmatpush.msra.mxu0 %v5210_v46  ;;  %265 = vmatpush.msra.mxu1 %v5212_v47 }
  0x2f   :  { %9875 = vst [vmem:[#allocation29_spill] sm:$0xff] %v5224_v51  ;;  %305 = vmatpush.msra.mxu3 %v5217_v48  ;;  %283 = vmatpush.msra.mxu2 %v5219_v49  ;;  %v5351_v49 = vld [vmem:[#allocation6 + $0x170] sm:$0xff] }
  0x30   :  { %9876 = vst [vmem:[#allocation30_spill] sm:$0xff] %v5229_v52  ;;  %246 = vmatpush.msra.mxu0 %v5222_v50  ;;  %266 = vmatpush.msra.mxu1 %v5224_v51 }
  0x31   :  { %9877 = vst [vmem:[#allocation31_spill] sm:$0xff] %v5231_v53  ;;  %306 = vmatpush.msra.mxu3 %v5229_v52  ;;  %284 = vmatpush.msra.mxu2 %v5231_v53  ;;  %v5265_v53 = vld [vmem:[#allocation6 + $0x1c0] sm:$0xff] }
  0x32   :  { %9878 = vst [vmem:[#allocation32_spill] sm:$0xff] %v5234_v54  ;;  %247 = vmatpush.msra.mxu0 %v5234_v54  ;;  %267 = vmatpush.msra.mxu1 %v5236_v55  ;;  %v5267_v54 = vld [vmem:[#allocation8 + $0x50] sm:$0xff] }
  0x33   :  { %9879 = vst [vmem:[#allocation33_spill] sm:$0xff] %v5236_v55  ;;  %307 = vmatpush.msra.mxu3 %v5241_v56  ;;  %285 = vmatpush.msra.mxu2 %v5243_v57  ;;  %v5271_v55 = vld [vmem:[#allocation6 + $0x1c8] sm:$0xff] }
  0x34   :  { %9880 = vst [vmem:[#allocation34_spill] sm:$0xff] %v5241_v56  ;;  %248 = vmatpush.msra.mxu0 %v5246_v58  ;;  %268 = vmatpush.msra.mxu1 %v5248_v59  ;;  %v5273_v56 = vld [vmem:[#allocation6 + $0x1d8] sm:$0xff] }
  0x35   :  { %9881 = vst [vmem:[#allocation35_spill] sm:$0xff] %v5243_v57  ;;  %308 = vmatpush.msra.mxu3 %v5253_v60  ;;  %v5277_v57 = vld [vmem:[#allocation6 + $0x1a0] sm:$0xff]  ;;  %286 = vmatpush.msra.mxu2 %v5267_v54 }
  0x36   :  { %9882 = vst [vmem:[#allocation36_spill] sm:$0xff] %v5246_v58  ;;  %313 = vmatpush.msrb.mxu0 %v5255_v61  ;;  %333 = vmatpush.msrb.mxu1 %v5258_v62  ;;  %v5279_v58 = vld [vmem:[#allocation8 + $0x30] sm:$0xff] }
  0x37   :  { %9883 = vst [vmem:[#allocation37_spill] sm:$0xff] %v5248_v59  ;;  %373 = vmatpush.msrb.mxu3 %v5260_v63  ;;  %v5283_v59 = vld [vmem:[#allocation6 + $0x1a8] sm:$0xff]  ;;  %287 = vmatpush.msra.mxu2 %v5279_v58 }
  0x38   :  { %9884 = vst [vmem:[#allocation38_spill] sm:$0xff] %v5253_v60  ;;  %314 = vmatpush.msrb.mxu0 %v5265_v53  ;;  %v5285_v60 = vld [vmem:[#allocation6 + $0x1b8] sm:$0xff]  ;;  %334 = vmatpush.msrb.mxu1 %v5271_v55 }
  0x39   :  { %9885 = vst [vmem:[#allocation39_spill] sm:$0xff] %v5255_v61  ;;  %374 = vmatpush.msrb.mxu3 %v5273_v56  ;;  %v5289_v61 = vld [vmem:[#allocation6 + $0x180] sm:$0xff] }
  0x3a   :  { %9886 = vst [vmem:[#allocation40_spill] sm:$0xff] %v5258_v62  ;;  %v5291_v62 = vld [vmem:[#allocation8 + $0x10] sm:$0xff]  ;;  %315 = vmatpush.msrb.mxu0 %v5277_v57  ;;  %335 = vmatpush.msrb.mxu1 %v5283_v59 }
  0x3b   :  { %9887 = vst [vmem:[#allocation41_spill] sm:$0xff] %v5260_v63  ;;  %v5295_v63 = vld [vmem:[#allocation6 + $0x188] sm:$0xff]  ;;  %375 = vmatpush.msrb.mxu3 %v5285_v60  ;;  %288 = vmatpush.msra.mxu2 %v5291_v62 }
  0x3c   :  { %9888 = vst [vmem:[#allocation42_spill] sm:$0xff] %v5265_v53  ;;  %v5297_v53 = vld [vmem:[#allocation6 + $0x198] sm:$0xff]  ;;  %316 = vmatpush.msrb.mxu0 %v5289_v61  ;;  %336 = vmatpush.msrb.mxu1 %v5295_v63 }
  0x3d   :  { %9889 = vst [vmem:[#allocation43_spill] sm:$0xff] %v5267_v54  ;;  %v5301_v54 = vld [vmem:[#allocation6 + $0x160] sm:$0xff]  ;;  %376 = vmatpush.msrb.mxu3 %v5297_v53 }
  0x3e   :  { %9890 = vst [vmem:[#allocation44_spill] sm:$0xff] %v5271_v55  ;;  %v5303_v55 = vld [vmem:[#allocation6 + $0x1f0] sm:$0xff]  ;;  %317 = vmatpush.msrb.mxu0 %v5301_v54 }
  0x3f   :  { %9891 = vst [vmem:[#allocation45_spill] sm:$0xff] %v5273_v56  ;;  %v5307_v56 = vld [vmem:[#allocation6 + $0x168] sm:$0xff]  ;;  %353 = vmatpush.msrb.mxu2 %v5303_v55 }
  0x40   :  { %9892 = vst [vmem:[#allocation46_spill] sm:$0xff] %v5277_v57  ;;  %v5309_v57 = vld [vmem:[#allocation6 + $0x178] sm:$0xff]  ;;  %337 = vmatpush.msrb.mxu1 %v5307_v56 }
  0x41   :  { %9893 = vst [vmem:[#allocation47_spill] sm:$0xff] %v5279_v58  ;;  %v5313_v58 = vld [vmem:[#allocation6 + $0x140] sm:$0xff]  ;;  %377 = vmatpush.msrb.mxu3 %v5309_v57 }
  0x42   :  { %9894 = vst [vmem:[#allocation48_spill] sm:$0xff] %v5283_v59  ;;  %v5315_v59 = vld [vmem:[#allocation6 + $0x1d0] sm:$0xff]  ;;  %318 = vmatpush.msrb.mxu0 %v5313_v58 }
  0x43   :  { %9895 = vst [vmem:[#allocation49_spill] sm:$0xff] %v5285_v60  ;;  %v5319_v60 = vld [vmem:[#allocation6 + $0x148] sm:$0xff]  ;;  %354 = vmatpush.msrb.mxu2 %v5315_v59 }
  0x44   :  { %9896 = vst [vmem:[#allocation50_spill] sm:$0xff] %v5289_v61  ;;  %v5321_v61 = vld [vmem:[#allocation6 + $0x158] sm:$0xff]  ;;  %338 = vmatpush.msrb.mxu1 %v5319_v60 }
  0x45   :  { %9897 = vst [vmem:[#allocation51_spill] sm:$0xff] %v5291_v62  ;;  %v5325_v62 = vld [vmem:[#allocation6 + $0x120] sm:$0xff]  ;;  %378 = vmatpush.msrb.mxu3 %v5321_v61 }
  0x46   :  { %9898 = vst [vmem:[#allocation52_spill] sm:$0xff] %v5295_v63  ;;  %v5327_v63 = vld [vmem:[#allocation6 + $0x1b0] sm:$0xff]  ;;  %319 = vmatpush.msrb.mxu0 %v5325_v62 }
  0x47   :  { %9899 = vst [vmem:[#allocation53_spill] sm:$0xff] %v5297_v53  ;;  %v5331_v53 = vld [vmem:[#allocation6 + $0x128] sm:$0xff]  ;;  %355 = vmatpush.msrb.mxu2 %v5327_v63 }
  0x48   :  { %9900 = vst [vmem:[#allocation54_spill] sm:$0xff] %v5301_v54  ;;  %v5333_v54 = vld [vmem:[#allocation6 + $0x138] sm:$0xff]  ;;  %339 = vmatpush.msrb.mxu1 %v5331_v53 }
  0x49   :  { %9901 = vst [vmem:[#allocation55_spill] sm:$0xff] %v5303_v55  ;;  %v5335_v55 = vld [vmem:[#allocation6 + $0x100] sm:$0xff]  ;;  %379 = vmatpush.msrb.mxu3 %v5333_v54 }
  0x4a   :  { %9902 = vst [vmem:[#allocation56_spill] sm:$0xff] %v5307_v56  ;;  %v5339_v56 = vld [vmem:[#allocation6 + $0x190] sm:$0xff]  ;;  %320 = vmatpush.msrb.mxu0 %v5335_v55 }
  0x4b   :  { %9903 = vst [vmem:[#allocation57_spill] sm:$0xff] %v5309_v57  ;;  %v5343_v57 = vld [vmem:[#allocation6 + $0x108] sm:$0xff]  ;;  %356 = vmatpush.msrb.mxu2 %v5339_v56 }
  0x4c   :  { %9904 = vst [vmem:[#allocation58_spill] sm:$0xff] %v5313_v58  ;;  %v5345_v58 = vld [vmem:[#allocation6 + $0x118] sm:$0xff]  ;;  %340 = vmatpush.msrb.mxu1 %v5343_v57 }
  0x4d   :  { %9905 = vst [vmem:[#allocation59_spill] sm:$0xff] %v5315_v59  ;;  %v5349_v59 = vld [vmem:[#allocation6 + $0xe0] sm:$0xff]  ;;  %380 = vmatpush.msrb.mxu3 %v5345_v58  ;;  %357 = vmatpush.msrb.mxu2 %v5351_v49 }
  0x4e   :  { %9906 = vst [vmem:[#allocation60_spill] sm:$0xff] %v5319_v60  ;;  %v5361_v60 = vld [vmem:[#allocation6 + $0xc0] sm:$0xff]  ;;  %321 = vmatpush.msrb.mxu0 %v5349_v59 }
  0x4f   :  { %9907 = vst [vmem:[#allocation61_spill] sm:$0xff] %v5321_v61  ;;  %v5355_v61 = vld [vmem:[#allocation6 + $0xe8] sm:$0xff] }
  0x50   :  { %9908 = vst [vmem:[#allocation62_spill] sm:$0xff] %v5325_v62  ;;  %v5357_v62 = vld [vmem:[#allocation6 + $0xf8] sm:$0xff]  ;;  %341 = vmatpush.msrb.mxu1 %v5355_v61  ;;  %322 = vmatpush.msrb.mxu0 %v5361_v60 }
  0x51   :  { %9909 = vst [vmem:[#allocation63_spill] sm:$0xff] %v5327_v63  ;;  %381 = vmatpush.msrb.mxu3 %v5357_v62 }
  0x52   :  { %9910 = vst [vmem:[#allocation64_spill] sm:$0xff] %v5331_v53  ;;  %v5363_v53 = vld [vmem:[#allocation6 + $0x150] sm:$0xff] }
  0x53   :  { %9911 = vst [vmem:[#allocation65_spill] sm:$0xff] %v5333_v54  ;;  %v5367_v54 = vld [vmem:[#allocation6 + $0xc8] sm:$0xff]  ;;  %358 = vmatpush.msrb.mxu2 %v5363_v53 }
  0x54   :  { %9912 = vst [vmem:[#allocation66_spill] sm:$0xff] %v5335_v55  ;;  %v5369_v55 = vld [vmem:[#allocation6 + $0xd8] sm:$0xff]  ;;  %342 = vmatpush.msrb.mxu1 %v5367_v54 }
  0x55   :  { %9913 = vst [vmem:[#allocation67_spill] sm:$0xff] %v5339_v56  ;;  %v5373_v56 = vld [vmem:[#allocation6 + $0xa0] sm:$0xff]  ;;  %382 = vmatpush.msrb.mxu3 %v5369_v55 }
  0x56   :  { %9914 = vst [vmem:[#allocation68_spill] sm:$0xff] %v5343_v57  ;;  %v5375_v57 = vld [vmem:[#allocation6 + $0x130] sm:$0xff]  ;;  %323 = vmatpush.msrb.mxu0 %v5373_v56 }
  0x57   :  { %9915 = vst [vmem:[#allocation69_spill] sm:$0xff] %v5345_v58  ;;  %v5379_v58 = vld [vmem:[#allocation6 + $0xa8] sm:$0xff]  ;;  %359 = vmatpush.msrb.mxu2 %v5375_v57 }
  0x58   :  { %9916 = vst [vmem:[#allocation70_spill] sm:$0xff] %v5349_v59  ;;  %v5381_v59 = vld [vmem:[#allocation6 + $0xb8] sm:$0xff]  ;;  %343 = vmatpush.msrb.mxu1 %v5379_v58 }
  0x59   :  { %9917 = vst [vmem:[#allocation71_spill] sm:$0xff] %v5351_v49  ;;  %v5385_v49 = vld [vmem:[#allocation6 + $0x80] sm:$0xff]  ;;  %383 = vmatpush.msrb.mxu3 %v5381_v59 }
  0x5a   :  { %9918 = vst [vmem:[#allocation72_spill] sm:$0xff] %v5355_v61  ;;  %v5391_v61 = vld [vmem:[#allocation6 + $0x98] sm:$0xff]  ;;  %324 = vmatpush.msrb.mxu0 %v5385_v49 }
  0x5b   :  { %9919 = vst [vmem:[#allocation73_spill] sm:$0xff] %v5357_v62  ;;  %v5389_v62 = vld [vmem:[#allocation6 + $0x88] sm:$0xff]  ;;  %384 = vmatpush.msrb.mxu3 %v5391_v61 }
  0x5c   :  { %9920 = vst [vmem:[#allocation74_spill] sm:$0xff] %v5361_v60  ;;  %v9005_v60 = vmov 0.0   ;;  %344 = vmatpush.msrb.mxu1 %v5389_v62 }
  0x5d   :  { %9921 = vst [vmem:[#allocation75_spill] sm:$0xff] %v5363_v53  ;;  %269 = vmatmul.f32.vlgmr.msra.gmra.mxu1 %v9005_v60  ;;  %249 = vmatmul.f32.vlgmr.msra.gmra.mxu0 %v9005_v60  ;;  %v5423_v53 = vld [vmem:[#allocation6 + $0x20] sm:$0xff] }
  0x5e   :  { %9922 = vst [vmem:[#allocation76_spill] sm:$0xff] %v5367_v54  ;;  %v5399_v54 = vld [vmem:[#allocation6 + $0x60] sm:$0xff]  ;;  %309 = vmatmul.f32.vlgmr.msra.gmra.mxu3 %v9005_v60  ;;  %v5427_v60 = vld [vmem:[#allocation6 + $0x28] sm:$0xff] }
  0x5f   :  { %9923 = vst [vmem:[#allocation77_spill] sm:$0xff] %v5369_v55  ;;  %v5397_v55 = vld [vmem:[#allocation6 + $0x110] sm:$0xff]  ;;  %325 = vmatpush.msrb.mxu0 %v5399_v54 }
  0x60   :  { %9924 = vst [vmem:[#allocation78_spill] sm:$0xff] %v5373_v56  ;;  %v5403_v56 = vld [vmem:[#allocation6 + $0x68] sm:$0xff]  ;;  %360 = vmatpush.msrb.mxu2 %v5397_v55 }
  0x61   :  { %9925 = vst [vmem:[#allocation79_spill] sm:$0xff] %v5375_v57  ;;  %v5405_v57 = vld [vmem:[#allocation6 + $0x78] sm:$0xff]  ;;  %345 = vmatpush.msrb.mxu1 %v5403_v56 }
  0x62   :  { %9926 = vst [vmem:[#allocation80_spill] sm:$0xff] %v5379_v58  ;;  %v5415_v58 = vld [vmem:[#allocation6 + $0x48] sm:$0xff]  ;;  %385 = vmatpush.msrb.mxu3 %v5405_v57 }
  0x63   :  { %9927 = vst [vmem:[#allocation81_spill] sm:$0xff] %v5381_v59  ;;  %v5411_v59 = vld [vmem:[#allocation6 + $0x40] sm:$0xff]  ;;  %346 = vmatpush.msrb.mxu1 %v5415_v58 }
  0x64   :  { %9928 = vst [vmem:[#allocation82_spill] sm:$0xff] %v5385_v49  ;;  %v5409_v49 = vld [vmem:[#allocation6 + $0xf0] sm:$0xff]  ;;  %326 = vmatpush.msrb.mxu0 %v5411_v59 }
  0x65   :  { %9929 = vst [vmem:[#allocation83_spill] sm:$0xff] %v5389_v62  ;;  %v5417_v62 = vld [vmem:[#allocation6 + $0x58] sm:$0xff]  ;;  %361 = vmatpush.msrb.mxu2 %v5409_v49  ;;  %347 = vmatpush.msrb.mxu1 %v5427_v60 }
  0x66   :  { %9930 = vst [vmem:[#allocation84_spill] sm:$0xff] %v5391_v61  ;;  %v5421_v61 = vld [vmem:[#allocation6 + $0xd0] sm:$0xff]  ;;  %386 = vmatpush.msrb.mxu3 %v5417_v62  ;;  %327 = vmatpush.msrb.mxu0 %v5423_v53 }
  0x67   :  { %9931 = vst [vmem:[#allocation85_spill] sm:$0xff] %v5397_v55  ;;  %v5429_v55 = vld [vmem:[#allocation6 + $0x38] sm:$0xff]  ;;  %362 = vmatpush.msrb.mxu2 %v5421_v61 }
  0x68   :  { %9932 = vst [vmem:[#allocation86_spill] sm:$0xff] %v5399_v54  ;;  %v5433_v54 = vld [vmem:[#allocation6 + $0xb0] sm:$0xff]  ;;  %387 = vmatpush.msrb.mxu3 %v5429_v55 }
  0x69   :  { %9933 = vst [vmem:[#allocation87_spill] sm:$0xff] %v5403_v56  ;;  %v5435_v56 = vld [vmem:[#allocation6] sm:$0xff]  ;;  %363 = vmatpush.msrb.mxu2 %v5433_v54 }
  0x6a   :  { %9934 = vst [vmem:[#allocation88_spill] sm:$0xff] %v5405_v57  ;;  %v5439_v57 = vld [vmem:[#allocation6 + $0x8] sm:$0xff]  ;;  %328 = vmatpush.msrb.mxu0 %v5435_v56 }
  0x6b   :  { %9935 = vst [vmem:[#allocation89_spill] sm:$0xff] %v5409_v49  ;;  %v5441_v49 = vld [vmem:[#allocation6 + $0x18] sm:$0xff]  ;;  %348 = vmatpush.msrb.mxu1 %v5439_v57 }
  0x6c   :  { %9936 = vst [vmem:[#allocation90_spill] sm:$0xff] %v5411_v59  ;;  %v87_v59 = vld [vmem:[#allocation3] sm:$0xff]  ;;  %388 = vmatpush.msrb.mxu3 %v5441_v49  ;;  %472 = vmatpush.msra.mxu0 %v5077_v0 }
  0x6d   :  { %9937 = vst [vmem:[#allocation91_spill] sm:$0xff] %v5415_v58  ;;  %329 = vmatmul.f32.vlgmr.msrb.gmra.mxu0 %v87_v59  ;;  %349 = vmatmul.f32.vlgmr.msrb.gmra.mxu1 %v87_v59 }
  0x6e   :  { %9938 = vst [vmem:[#allocation92_spill] sm:$0xff] %v5417_v62  ;;  %v5447_v62 = vld [vmem:[#allocation6 + $0x90] sm:$0xff]  ;;  %389 = vmatmul.f32.vlgmr.msrb.gmra.mxu3 %v87_v59  ;;  %492 = vmatpush.msra.mxu1 %v5079_v1 }
  0x6f   :  { %9939 = vst [vmem:[#allocation93_spill] sm:$0xff] %v5421_v61  ;;  %364 = vmatpush.msrb.mxu2 %v5447_v62  ;;  %532 = vmatpush.msra.mxu3 %v5081_v2 }
  0x70   :  { %9940 = vst [vmem:[#allocation94_spill] sm:$0xff] %v5423_v53  ;;  %v5451_v53 = vld [vmem:[#allocation6 + $0x70] sm:$0xff]  ;;  %473 = vmatpush.msra.mxu0 %v5085_v3  ;;  %493 = vmatpush.msra.mxu1 %v5087_v4 }
  0x71   :  { %9941 = vst [vmem:[#allocation95_spill] sm:$0xff] %v5427_v60  ;;  %v9949_v60 = vmov 0.0   ;;  %365 = vmatpush.msrb.mxu2 %v5451_v53  ;;  %533 = vmatpush.msra.mxu3 %v5089_v5 }
  0x72   :  { %9942 = vst [vmem:[#allocation96_spill] sm:$0xff] %v5429_v55  ;;  %289 = vmatmul.f32.vlgmr.msra.gmra.mxu2 %v9949_v60  ;;  %v5455_v55 = vld [vmem:[#allocation6 + $0x50] sm:$0xff]  ;;  %474 = vmatpush.msra.mxu0 %v5092_v6 }
  0x73   :  { %9943 = vst [vmem:[#allocation97_spill] sm:$0xff] %v5433_v54  ;;  %366 = vmatpush.msrb.mxu2 %v5455_v55  ;;  %494 = vmatpush.msra.mxu1 %v5094_v7  ;;  %v9954_v60 = vld [vmem:[#allocation32_spill] sm:$0xff] }
  0x74   :  { %9944 = vst [vmem:[#allocation98_spill] sm:$0xff] %v5435_v56  ;;  %534 = vmatpush.msra.mxu3 %v5098_v8  ;;  %475 = vmatpush.msra.mxu0 %v5101_v9 }
  0x75   :  { %9945 = vst [vmem:[#allocation99_spill] sm:$0xff] %v5439_v57  ;;  %v5460_v57 = vld [vmem:[#allocation6 + $0x30] sm:$0xff]  ;;  %495 = vmatpush.msra.mxu1 %v5103_v10 }
  0x76   :  { %9946 = vst [vmem:[#allocation100_spill] sm:$0xff] %v5441_v49  ;;  %v5466_v49 = vld [vmem:[#allocation6 + $0x10] sm:$0xff]  ;;  %367 = vmatpush.msrb.mxu2 %v5460_v57  ;;  %535 = vmatpush.msra.mxu3 %v5107_v11 }
  0x77   :  { %9947 = vst [vmem:[#allocation101_spill] sm:$0xff] %v5447_v62  ;;  %476 = vmatpush.msra.mxu0 %v5112_v13  ;;  %496 = vmatpush.msra.mxu1 %v5114_v14 }
  0x78   :  { %9948 = vst [vmem:[#allocation102_spill] sm:$0xff] %v5451_v53  ;;  %368 = vmatpush.msrb.mxu2 %v5466_v49  ;;  %536 = vmatpush.msra.mxu3 %v5121_v16 }
  0x79   :  { %9950 = vst [vmem:[#allocation103_spill] sm:$0xff] %v5455_v55  ;;  %477 = vmatpush.msra.mxu0 %v5126_v18  ;;  %497 = vmatpush.msra.mxu1 %v5128_v19 }
  0x7a   :  { %9951 = vst [vmem:[#allocation104_spill] sm:$0xff] %v5460_v57  ;;  %369 = vmatmul.f32.vlgmr.msrb.gmra.mxu2 %v87_v59  ;;  %537 = vmatpush.msra.mxu3 %v5133_v20  ;;  %v9953_v59 = vld [vmem:[#allocation27_spill] sm:$0xff] }
  0x7b   :  { %9952 = vst [vmem:[#allocation105_spill] sm:$0xff] %v5466_v49  ;;  %512 = vmatpush.msra.mxu2 %v5109_v12  ;;  %478 = vmatpush.msra.mxu0 %v5138_v22 }
  0x7c   :  { %498 = vmatpush.msra.mxu1 %v5140_v23  ;;  %538 = vmatpush.msra.mxu3 %v5145_v24 }
  0x7d   :  { %513 = vmatpush.msra.mxu2 %v5117_v15  ;;  %479 = vmatpush.msra.mxu0 %v5150_v26 }
  0x7e   :  { %499 = vmatpush.msra.mxu1 %v5152_v27  ;;  %539 = vmatpush.msra.mxu3 %v5157_v28 }
  0x7f   :  { %514 = vmatpush.msra.mxu2 %v5123_v17  ;;  %480 = vmatpush.msra.mxu0 %v5162_v30 }
  0x80   :  { %500 = vmatpush.msra.mxu1 %v5164_v31  ;;  %540 = vmatpush.msra.mxu3 %v5169_v32 }
  0x81   :  { %515 = vmatpush.msra.mxu2 %v5135_v21  ;;  %481 = vmatpush.msra.mxu0 %v5174_v34 }
  0x82   :  { %501 = vmatpush.msra.mxu1 %v5176_v35  ;;  %541 = vmatpush.msra.mxu3 %v5181_v36 }
  0x83   :  { %516 = vmatpush.msra.mxu2 %v5147_v25  ;;  %482 = vmatpush.msra.mxu0 %v5186_v38 }
  0x84   :  { %502 = vmatpush.msra.mxu1 %v5188_v39  ;;  %542 = vmatpush.msra.mxu3 %v5193_v40  ;;  %v9964_v40 = vld [vmem:[#allocation41_spill] sm:$0xff] }
  0x85   :  { %517 = vmatpush.msra.mxu2 %v5159_v29  ;;  %483 = vmatpush.msra.mxu0 %v5198_v42  ;;  %v9960_v42 = vld [vmem:[#allocation38_spill] sm:$0xff] }
  0x86   :  { %503 = vmatpush.msra.mxu1 %v5200_v43  ;;  %543 = vmatpush.msra.mxu3 %v5205_v44  ;;  %v9955_v44 = vld [vmem:[#allocation33_spill] sm:$0xff]  ;;  %v9956_v43 = vld [vmem:[#allocation34_spill] sm:$0xff] }
  0x87   :  { %518 = vmatpush.msra.mxu2 %v5171_v33  ;;  %484 = vmatpush.msra.mxu0 %v5210_v46  ;;  %v9957_v46 = vld [vmem:[#allocation31_spill] sm:$0xff] }
  0x88   :  { %504 = vmatpush.msra.mxu1 %v5212_v47  ;;  %544 = vmatpush.msra.mxu3 %v5217_v48  ;;  %v9958_v47 = vld [vmem:[#allocation36_spill] sm:$0xff]  ;;  %v9959_v48 = vld [vmem:[#allocation37_spill] sm:$0xff] }
  0x89   :  { %519 = vmatpush.msra.mxu2 %v5183_v37  ;;  %485 = vmatpush.msra.mxu0 %v5222_v50  ;;  %v9961_v50 = vld [vmem:[#allocation35_spill] sm:$0xff] }
  0x8a   :  { %505 = vmatpush.msra.mxu1 %v5224_v51  ;;  %545 = vmatpush.msra.mxu3 %v5229_v52  ;;  %v9962_v51 = vld [vmem:[#allocation39_spill] sm:$0xff]  ;;  %v9963_v52 = vld [vmem:[#allocation40_spill] sm:$0xff] }
  0x8b   :  { %520 = vmatpush.msra.mxu2 %v5195_v41  ;;  %486 = vmatpush.msra.mxu0 %v9954_v60  ;;  %v9965_v60 = vld [vmem:[#allocation43_spill] sm:$0xff] }
  0x8c   :  { %506 = vmatpush.msra.mxu1 %v9955_v44  ;;  %546 = vmatpush.msra.mxu3 %v9956_v43  ;;  %v9966_v44 = vld [vmem:[#allocation42_spill] sm:$0xff]  ;;  %v9967_v43 = vld [vmem:[#allocation44_spill] sm:$0xff] }
  0x8d   :  { %521 = vmatpush.msra.mxu2 %v5207_v45  ;;  %487 = vmatpush.msra.mxu0 %v9958_v47  ;;  %v9969_v47 = vld [vmem:[#allocation47_spill] sm:$0xff] }
  0x8e   :  { %507 = vmatpush.msra.mxu1 %v9959_v48  ;;  %547 = vmatpush.msra.mxu3 %v9960_v42  ;;  %v9970_v48 = vld [vmem:[#allocation46_spill] sm:$0xff]  ;;  %v9971_v42 = vld [vmem:[#allocation48_spill] sm:$0xff] }
  0x8f   :  { %522 = vmatpush.msra.mxu2 %v9953_v59  ;;  %552 = vmatpush.msrb.mxu0 %v9962_v51  ;;  %v9973_v51 = vld [vmem:[#allocation51_spill] sm:$0xff] }
  0x90   :  { %572 = vmatpush.msrb.mxu1 %v9963_v52  ;;  %612 = vmatpush.msrb.mxu3 %v9964_v40  ;;  %v9974_v52 = vld [vmem:[#allocation50_spill] sm:$0xff]  ;;  %v9975_v40 = vld [vmem:[#allocation55_spill] sm:$0xff] }
  0x91   :  { %523 = vmatpush.msra.mxu2 %v9957_v46  ;;  %553 = vmatpush.msrb.mxu0 %v9966_v44  ;;  %v9968_v46 = vld [vmem:[#allocation45_spill] sm:$0xff] }
  0x92   :  { %573 = vmatpush.msrb.mxu1 %v9967_v43  ;;  %613 = vmatpush.msrb.mxu3 %v9968_v46  ;;  %v9977_v44 = vld [vmem:[#allocation53_spill] sm:$0xff]  ;;  %v9978_v43 = vld [vmem:[#allocation54_spill] sm:$0xff]  ;;  %v9979_v46 = vld [vmem:[#allocation59_spill] sm:$0xff] }
  0x93   :  { %524 = vmatpush.msra.mxu2 %v9961_v50  ;;  %554 = vmatpush.msrb.mxu0 %v9970_v48  ;;  %v9972_v50 = vld [vmem:[#allocation49_spill] sm:$0xff] }
  0x94   :  { %574 = vmatpush.msrb.mxu1 %v9971_v42  ;;  %614 = vmatpush.msrb.mxu3 %v9972_v50  ;;  %v9981_v48 = vld [vmem:[#allocation57_spill] sm:$0xff]  ;;  %v9982_v42 = vld [vmem:[#allocation58_spill] sm:$0xff]  ;;  %v9983_v50 = vld [vmem:[#allocation60_spill] sm:$0xff] }
  0x95   :  { %525 = vmatpush.msra.mxu2 %v9965_v60  ;;  %555 = vmatpush.msrb.mxu0 %v9974_v52  ;;  %v9976_v60 = vld [vmem:[#allocation52_spill] sm:$0xff]  ;;  %v9984_v52 = vld [vmem:[#allocation61_spill] sm:$0xff] }
  0x96   :  { %575 = vmatpush.msrb.mxu1 %v9976_v60  ;;  %615 = vmatpush.msrb.mxu3 %v9977_v44  ;;  %v9986_v60 = vld [vmem:[#allocation67_spill] sm:$0xff]  ;;  %v9987_v44 = vld [vmem:[#allocation64_spill] sm:$0xff] }
  0x97   :  { %526 = vmatpush.msra.mxu2 %v9969_v47  ;;  %556 = vmatpush.msrb.mxu0 %v9978_v43  ;;  %v9980_v47 = vld [vmem:[#allocation56_spill] sm:$0xff]  ;;  %v9988_v43 = vld [vmem:[#allocation65_spill] sm:$0xff] }
  0x98   :  { %576 = vmatpush.msrb.mxu1 %v9980_v47  ;;  %616 = vmatpush.msrb.mxu3 %v9981_v48  ;;  %v9990_v47 = vld [vmem:[#allocation71_spill] sm:$0xff]  ;;  %v9991_v48 = vld [vmem:[#allocation68_spill] sm:$0xff] }
  0x99   :  { %527 = vmatpush.msra.mxu2 %v9973_v51  ;;  %557 = vmatpush.msrb.mxu0 %v9982_v42  ;;  %v9992_v42 = vld [vmem:[#allocation69_spill] sm:$0xff] }
  0x9a   :  { %577 = vmatpush.msrb.mxu1 %v9983_v50  ;;  %617 = vmatpush.msrb.mxu3 %v9984_v52  ;;  %v9994_v50 = vld [vmem:[#allocation75_spill] sm:$0xff]  ;;  %v9995_v52 = vld [vmem:[#allocation72_spill] sm:$0xff] }
  0x9b   :  { %592 = vmatpush.msrb.mxu2 %v9975_v40  ;;  %v9985_v40 = vld [vmem:[#allocation62_spill] sm:$0xff] }
  0x9c   :  { %558 = vmatpush.msrb.mxu0 %v9985_v40  ;;  %578 = vmatpush.msrb.mxu1 %v9987_v44  ;;  %v9996_v40 = vld [vmem:[#allocation73_spill] sm:$0xff]  ;;  %v9998_v44 = vld [vmem:[#allocation79_spill] sm:$0xff] }
  0x9d   :  { %593 = vmatpush.msrb.mxu2 %v9979_v46  ;;  %618 = vmatpush.msrb.mxu3 %v9988_v43  ;;  %v9989_v46 = vld [vmem:[#allocation66_spill] sm:$0xff]  ;;  %v9999_v43 = vld [vmem:[#allocation76_spill] sm:$0xff] }
  0x9e   :  { %559 = vmatpush.msrb.mxu0 %v9989_v46  ;;  %579 = vmatpush.msrb.mxu1 %v9991_v48  ;;  %v10000_v46 = vld [vmem:[#allocation77_spill] sm:$0xff] }
  0x9f   :  { %594 = vmatpush.msrb.mxu2 %v5327_v63  ;;  %619 = vmatpush.msrb.mxu3 %v9992_v42  ;;  %v9993_v63 = vld [vmem:[#allocation70_spill] sm:$0xff]  ;;  %v10002_v48 = vld [vmem:[#allocation85_spill] sm:$0xff]  ;;  %v10003_v42 = vld [vmem:[#allocation80_spill] sm:$0xff] }
  0xa0   :  { %560 = vmatpush.msrb.mxu0 %v9993_v63  ;;  %580 = vmatpush.msrb.mxu1 %v9995_v52  ;;  %v10004_v63 = vld [vmem:[#allocation81_spill] sm:$0xff] }
  0xa1   :  { %595 = vmatpush.msrb.mxu2 %v9986_v60  ;;  %620 = vmatpush.msrb.mxu3 %v9996_v40  ;;  %v9997_v60 = vld [vmem:[#allocation74_spill] sm:$0xff]  ;;  %v10006_v52 = vld [vmem:[#allocation89_spill] sm:$0xff]  ;;  %v10007_v40 = vld [vmem:[#allocation83_spill] sm:$0xff] }
  0xa2   :  { %561 = vmatpush.msrb.mxu0 %v9997_v60  ;;  %581 = vmatpush.msrb.mxu1 %v9999_v43  ;;  %v10008_v60 = vld [vmem:[#allocation84_spill] sm:$0xff]  ;;  %v10012_v43 = vld [vmem:[#allocation90_spill] sm:$0xff] }
  0xa3   :  { %596 = vmatpush.msrb.mxu2 %v9990_v47  ;;  %621 = vmatpush.msrb.mxu3 %v10000_v46  ;;  %v10001_v47 = vld [vmem:[#allocation78_spill] sm:$0xff]  ;;  %v10010_v46 = vld [vmem:[#allocation87_spill] sm:$0xff] }
  0xa4   :  { %562 = vmatpush.msrb.mxu0 %v10001_v47  ;;  %582 = vmatpush.msrb.mxu1 %v10003_v42  ;;  %v10011_v47 = vld [vmem:[#allocation88_spill] sm:$0xff] }
  0xa5   :  { %597 = vmatpush.msrb.mxu2 %v9994_v50  ;;  %622 = vmatpush.msrb.mxu3 %v10004_v63  ;;  %v10005_v50 = vld [vmem:[#allocation82_spill] sm:$0xff] }
  0xa6   :  { %563 = vmatpush.msrb.mxu0 %v10005_v50  ;;  %583 = vmatpush.msrb.mxu1 %v10007_v40  ;;  %v10013_v50 = vld [vmem:[#allocation92_spill] sm:$0xff]  ;;  %v10014_v63 = vld [vmem:[#allocation94_spill] sm:$0xff] }
  0xa7   :  { %598 = vmatpush.msrb.mxu2 %v9998_v44  ;;  %623 = vmatpush.msrb.mxu3 %v10008_v60  ;;  %v10009_v44 = vld [vmem:[#allocation86_spill] sm:$0xff]  ;;  %v10015_v60 = vld [vmem:[#allocation95_spill] sm:$0xff] }
  0xa8   :  { %564 = vmatpush.msrb.mxu0 %v10009_v44  ;;  %584 = vmatpush.msrb.mxu1 %v10010_v46  ;;  %v10016_v44 = vld [vmem:[#allocation96_spill] sm:$0xff] }
  0xa9   :  { %599 = vmatpush.msrb.mxu2 %v10002_v48  ;;  %624 = vmatpush.msrb.mxu3 %v10011_v47  ;;  %v10017_v47 = vld [vmem:[#allocation99_spill] sm:$0xff] }
  0xaa   :  { %565 = vmatpush.msrb.mxu0 %v10012_v43  ;;  %585 = vmatpush.msrb.mxu1 %v5415_v58  ;;  %v10018_v43 = vld [vmem:[#allocation100_spill] sm:$0xff]  ;;  %v231_v58 = vld [vmem:[#allocation9] sm:$0xf] }
  0xab   :  { %600 = vmatpush.msrb.mxu2 %v10006_v52  ;;  %625 = vmatpush.msrb.mxu3 %v10013_v50  ;;  %v5593_v46 = vperm.slane %v231_v58, 0 }
  0xac   :  { %566 = vmatpush.msrb.mxu0 %v10014_v63  ;;  %586 = vmatpush.msrb.mxu1 %v10015_v60 }
  0xad   :  { %601 = vmatpush.msrb.mxu2 %v5421_v61  ;;  %626 = vmatpush.msrb.mxu3 %v10016_v44  ;;  %10019 = vst [vmem:[#allocation106_spill] sm:$0xff] %v5593_v46  ;;  %v5595_v44 = vperm.slane %v231_v58, 1 }
  0xae   :  { %567 = vmatpush.msrb.mxu0 %v5435_v56  ;;  %587 = vmatpush.msrb.mxu1 %v10017_v47 }
  0xaf   :  { %602 = vmatpush.msrb.mxu2 %v5433_v54  ;;  %627 = vmatpush.msrb.mxu3 %v10018_v43  ;;  %10020 = vst [vmem:[#allocation107_spill] sm:$0xff] %v5595_v44  ;;  %v5599_v54 = vperm.slane %v231_v58, 3 }
  0xb1   :  { %603 = vmatpush.msrb.mxu2 %v5447_v62  ;;  %10021 = vst [vmem:[#allocation108_spill] sm:$0xff] %v5599_v54 }
  0xb3   :  { %604 = vmatpush.msrb.mxu2 %v5451_v53 }
  0xb5   :  { %605 = vmatpush.msrb.mxu2 %v5455_v55 }
  0xb7   :  { %606 = vmatpush.msrb.mxu2 %v5460_v57 }
  0xb9   :  { %607 = vmatpush.msrb.mxu2 %v5466_v49 }
  0xda   :  { %v270_v63 = vpop.f32.mrf.mxu1  ;;  %v250_v50 = vpop.f32.mrf.mxu0 }
  0xe1   :  { %v310_v60 = vpop.f32.mrf.mxu3 }
  0xea   :  { %v330_v56 = vpop.f32.mrf.mxu0  ;;  %v350_v53 = vpop.f32.mrf.mxu1 }
  0xeb   :  { %v331_v62 = vadd.f32 %v330_v56, %v250_v50  ;;  %v351_v47 = vadd.f32 %v350_v53, %v270_v63 }
  0xed   :  { %v402_v43 = vadd.f32 %v5593_v46, %v331_v62  ;;  %v403_v55 = vadd.f32 %v5595_v44, %v351_v47 }
  0xef   :  { %v406_v40 = vsub.f32 0.0, %v402_v43  ;;  %v425_v57 = vsub.f32 0.0, %v403_v55 }
  0xf1   :  { %v407_v49 = vmul.f32 1.442695, %v406_v40  ;;  %v426_v42 = vmul.f32 1.442695, %v425_v57  ;;  %v390_v61 = vpop.f32.mrf.mxu3  ;;  %v5602_v40 = vperm.slane %v231_v58, 2 }
  0xf2   :  { %v391_v52 = vadd.f32 %v390_v61, %v310_v60 }
  0xf3   :  { %4117 = vpow2.f32 %v407_v49  ;;  %10022 = vst [vmem:[#allocation109_spill] sm:$0xff] %v5602_v40 }
  0xf4   :  { %4119 = vpow2.f32 %v426_v42  ;;  %v405_v51 = vadd.f32 %v5599_v54, %v391_v52 }
  0xf5   :  { %v290_v48 = vpop.f32.mrf.mxu2 }
  0xf6   :  { %v445_v59 = vsub.f32 0.0, %v405_v51 }
  0xf8   :  { %v446_v50 = vmul.f32 1.442695, %v445_v59 }
  0xf9   :  { %v4118_v53 = vpop.eup %4117 }
  0xfa   :  { %v4120_v56 = vpop.eup %4119  ;;  %v409_v62 = vadd.f32 1.0, %v4118_v53  ;;  %4121 = vpow2.f32 %v446_v50 }
  0xfb   :  { %v428_v47 = vadd.f32 1.0, %v4120_v56 }
  0xfc   :  { %4123 = vrcp.f32 %v409_v62  ;;  %v421_v53 = vand.u32 2147483648, %v409_v62  ;;  %v419_v54 = vand.u32 2147483647, %v409_v62  ;;  %vm415_vm2 = vweird.f32 %v409_v62 }
  0xfd   :  { %v370_v43 = vpop.f32.mrf.mxu2  ;;  %4125 = vrcp.f32 %v428_v47  ;;  %v440_v50 = vand.u32 2147483648, %v428_v47  ;;  %v438_v58 = vand.u32 2147483647, %v428_v47  ;;  %vm434_vm3 = vweird.f32 %v428_v47 }
  0xfe   :  { %v371_v55 = vadd.f32 %v370_v43, %v290_v48  ;;  %vm420_vm5 = vcmp.eq.f32.partialorder %v419_v54, 8.507059e+37 }
  0xff   :  { %vm439_vm7 = vcmp.eq.f32.partialorder %v438_v58, 8.507059e+37  ;;  %v10069_v58 = vld [vmem:[#allocation57_spill] sm:$0xff] }
 0x100   :  { %v4122_v57 = vpop.eup %4121  ;;  %v404_v42 = vadd.f32 %v5602_v40, %v371_v55  ;;  %v422_v40 = vor.u32 1.1754944e-38, %v421_v53 }
 0x101   :  { %v448_v60 = vadd.f32 1.0, %v4122_v57 }
 0x102   :  { %v4124_v61 = vpop.eup %4123 }
 0x103   :  { %v4126_v49 = vpop.eup %4125  ;;  %v411_v52 = vmul.f32 %v4124_v61, %v409_v62  ;;  %4127 = vrcp.f32 %v448_v60  ;;  %vm416_vm0 = vweird.f32 %v4124_v61  ;;  %vm454_vm9 = vweird.f32 %v448_v60 }
 0x104   :  { %v430_v51 = vmul.f32 %v4126_v49, %v428_v47  ;;  %4129 = vtanh.f32 %v404_v42  ;;  %vm435_vm1 = vweird.f32 %v4126_v49  ;;  %vm417_vm4 = vmor %vm415_vm2, %vm416_vm0  ;;  %v460_v47 = vand.u32 2147483648, %v448_v60 }
 0x105   :  { %v412_v63 = vsub.f32 1.0, %v411_v52  ;;  %vm436_vm6 = vmor %vm434_vm3, %vm435_vm1  ;;  %v441_v52 = vor.u32 1.1754944e-38, %v440_v50  ;;  %v458_v54 = vand.u32 2147483647, %v448_v60  ;;  %v10067_v50 = vld [vmem:[#allocation56_spill] sm:$0xff] }
 0x106   :  { %v431_v59 = vsub.f32 1.0, %v430_v51  ;;  %v461_v53 = vor.u32 1.1754944e-38, %v460_v47  ;;  %v10079_v47 = vld [vmem:[#allocation68_spill] sm:$0xff] }
 0x107   :  { %v413_v56 = vmul.f32 %v4124_v61, %v412_v63  ;;  %vm459_vm11 = vcmp.eq.f32.partialorder %v458_v54, 8.507059e+37  ;;  %v10080_v54 = vld [vmem:[#allocation85_spill] sm:$0xff] }
 0x108   :  { %v432_v48 = vmul.f32 %v4126_v49, %v431_v59 }
 0x109   :  { %v4128_v43 = vpop.eup %4127  ;;  %v414_v57 = vadd.f32 %v4124_v61, %v413_v56 }
 0x10a   :  { %v450_v55 = vmul.f32 %v4128_v43, %v448_v60  ;;  %v433_v44 = vadd.f32 %v4126_v49, %v432_v48  ;;  %v4130_v42 = vpop.eup %4129  ;;  %vm455_vm8 = vweird.f32 %v4128_v43  ;;  %v10065_v60 = vld [vmem:[#allocation53_spill] sm:$0xff]  ;;  %v10068_v48 = vld [vmem:[#allocation71_spill] sm:$0xff] }
 0x10b   :  { %v418_v46 = vsel %vm417_vm4, %v4124_v61, %v414_v57  ;;  %vm456_vm10 = vmor %vm454_vm9, %vm455_vm8  ;;  %v10071_v57 = vld [vmem:[#allocation60_spill] sm:$0xff] }
 0x10c   :  { %v451_v51 = vsub.f32 1.0, %v450_v55  ;;  %v423_v63 = vsel %vm420_vm5, %v422_v40, %v418_v46  ;;  %v437_v39 = vsel %vm436_vm6, %v4126_v49, %v433_v44  ;;  %v10066_v49 = vld [vmem:[#allocation54_spill] sm:$0xff]  ;;  %v10072_v55 = vld [vmem:[#allocation75_spill] sm:$0xff] }
 0x10d   :  { %v442_v59 = vsel %vm439_vm7, %v441_v52, %v437_v39  ;;  %v465_v38 = vmul.f32 %v4130_v42, %v423_v63  ;;  %v10062_v39 = vld [vmem:[#allocation50_spill] sm:$0xff]  ;;  %v10073_v52 = vld [vmem:[#allocation61_spill] sm:$0xff]  ;;  %v10076_v63 = vld [vmem:[#allocation79_spill] sm:$0xff] }
 0x10e   :  { %v452_v36 = vmul.f32 %v4128_v43, %v451_v51  ;;  %v464_v45 = vmul.f32 0.0, %v442_v59  ;;  %v10074_v42 = vld [vmem:[#allocation62_spill] sm:$0xff]  ;;  %v10075_v51 = vld [vmem:[#allocation64_spill] sm:$0xff]  ;;  %v10077_v59 = vld [vmem:[#allocation65_spill] sm:$0xff] }
 0x110   :  { %v5605_v56 = vadd.f32 %v465_v38, %v464_v45  ;;  %v453_v62 = vadd.f32 %v4128_v43, %v452_v36  ;;  %v88_v36 = vld [vmem:[#allocation3 + $0x8] sm:$0xff]  ;;  %v10061_v38 = vld [vmem:[#allocation49_spill] sm:$0xff] }
 0x111   :  { %v10064_v45 = vld [vmem:[#allocation67_spill] sm:$0xff] }
 0x112   :  { %4131 = vtanh.f32 %v5605_v56  ;;  %v457_v61 = vsel %vm456_vm10, %v4128_v43, %v453_v62  ;;  %v10070_v43 = vld [vmem:[#allocation58_spill] sm:$0xff] }
 0x113   :  { %v462_v44 = vsel %vm459_vm11, %v461_v53, %v457_v61  ;;  %v10078_v62 = vld [vmem:[#allocation66_spill] sm:$0xff]  ;;  %v10081_v61 = vld [vmem:[#allocation69_spill] sm:$0xff] }
 0x114   :  { %v10082_v53 = vld [vmem:[#allocation70_spill] sm:$0xff] }
 0x118   :  { %v4132_v46 = vpop.eup %4131 }
 0x119   :  { %v5608_v40 = vmul.f32 %v4132_v46, %v462_v44  ;;  %v10083_v46 = vld [vmem:[#allocation72_spill] sm:$0xff]  ;;  %v10084_v44 = vld [vmem:[#allocation89_spill] sm:$0xff] }
 0x11b   :  { %10023 = vst [vmem:[#allocation110_spill] sm:$0xff] %v5608_v40  ;;  %488 = vmatmul.f32.vlgmr.msra.gmra.mxu0 %v5608_v40  ;;  %508 = vmatmul.f32.vlgmr.msra.gmra.mxu1 %v5608_v40 }
 0x11c   :  { %528 = vmatmul.f32.vlgmr.msra.gmra.mxu2 %v5608_v40  ;;  %548 = vmatmul.f32.vlgmr.msra.gmra.mxu3 %v5608_v40  ;;  %v5930_v40 = vld [vmem:[#allocation8 + $0x30] sm:$0xff] }
 0x11d   :  { %702 = vmatpush.msra.mxu0 %v5077_v0  ;;  %722 = vmatpush.msra.mxu1 %v5079_v1  ;;  %v10024_v0 = vld [vmem:[#allocation23_spill] sm:$0xff]  ;;  %v10025_v1 = vld [vmem:[#allocation16_spill] sm:$0xff] }
 0x11e   :  { %742 = vmatpush.msra.mxu2 %v5109_v12  ;;  %762 = vmatpush.msra.mxu3 %v5081_v2  ;;  %v10026_v2 = vld [vmem:[#allocation17_spill] sm:$0xff]  ;;  %v10036_v12 = vld [vmem:[#allocation35_spill] sm:$0xff] }
 0x11f   :  { %703 = vmatpush.msra.mxu0 %v5085_v3  ;;  %723 = vmatpush.msra.mxu1 %v5087_v4  ;;  %v10027_v3 = vld [vmem:[#allocation18_spill] sm:$0xff]  ;;  %v10028_v4 = vld [vmem:[#allocation27_spill] sm:$0xff] }
 0x120   :  { %743 = vmatpush.msra.mxu2 %v5117_v15  ;;  %763 = vmatpush.msra.mxu3 %v5089_v5  ;;  %v10029_v5 = vld [vmem:[#allocation19_spill] sm:$0xff]  ;;  %v10039_v15 = vld [vmem:[#allocation29_spill] sm:$0xff] }
 0x121   :  { %704 = vmatpush.msra.mxu0 %v5092_v6  ;;  %724 = vmatpush.msra.mxu1 %v5094_v7  ;;  %v10030_v6 = vld [vmem:[#allocation20_spill] sm:$0xff]  ;;  %v10031_v7 = vld [vmem:[#allocation21_spill] sm:$0xff] }
 0x122   :  { %744 = vmatpush.msra.mxu2 %v5123_v17  ;;  %764 = vmatpush.msra.mxu3 %v5098_v8  ;;  %v10032_v8 = vld [vmem:[#allocation31_spill] sm:$0xff]  ;;  %v10041_v17 = vld [vmem:[#allocation30_spill] sm:$0xff] }
 0x123   :  { %568 = vmatmul.f32.vlgmr.msrb.gmra.mxu0 %v88_v36  ;;  %588 = vmatmul.f32.vlgmr.msrb.gmra.mxu1 %v88_v36 }
 0x124   :  { %608 = vmatmul.f32.vlgmr.msrb.gmra.mxu2 %v88_v36  ;;  %628 = vmatmul.f32.vlgmr.msrb.gmra.mxu3 %v88_v36  ;;  %v10085_v36 = vld [vmem:[#allocation73_spill] sm:$0xff] }
 0x125   :  { %705 = vmatpush.msra.mxu0 %v5101_v9  ;;  %725 = vmatpush.msra.mxu1 %v5103_v10  ;;  %v10033_v9 = vld [vmem:[#allocation22_spill] sm:$0xff]  ;;  %v10034_v10 = vld [vmem:[#allocation24_spill] sm:$0xff] }
 0x126   :  { %745 = vmatpush.msra.mxu2 %v5135_v21  ;;  %765 = vmatpush.msra.mxu3 %v5107_v11  ;;  %v10035_v11 = vld [vmem:[#allocation25_spill] sm:$0xff]  ;;  %v10045_v21 = vld [vmem:[#allocation34_spill] sm:$0xff] }
 0x127   :  { %706 = vmatpush.msra.mxu0 %v5112_v13  ;;  %726 = vmatpush.msra.mxu1 %v5114_v14  ;;  %v10037_v13 = vld [vmem:[#allocation26_spill] sm:$0xff]  ;;  %v10038_v14 = vld [vmem:[#allocation28_spill] sm:$0xff]  ;;  %10139 = vst [vmem:[#allocation34_spill] sm:$0xff] %v5930_v40 }
 0x128   :  { %746 = vmatpush.msra.mxu2 %v5147_v25  ;;  %766 = vmatpush.msra.mxu3 %v5121_v16  ;;  %v10040_v16 = vld [vmem:[#allocation43_spill] sm:$0xff]  ;;  %v10049_v25 = vld [vmem:[#allocation38_spill] sm:$0xff] }
 0x129   :  { %707 = vmatpush.msra.mxu0 %v5126_v18  ;;  %727 = vmatpush.msra.mxu1 %v5128_v19  ;;  %v10042_v18 = vld [vmem:[#allocation32_spill] sm:$0xff]  ;;  %v10043_v19 = vld [vmem:[#allocation33_spill] sm:$0xff] }
 0x12a   :  { %747 = vmatpush.msra.mxu2 %v5159_v29  ;;  %767 = vmatpush.msra.mxu3 %v5133_v20  ;;  %v10044_v20 = vld [vmem:[#allocation47_spill] sm:$0xff]  ;;  %v10053_v29 = vld [vmem:[#allocation41_spill] sm:$0xff] }
 0x12b   :  { %708 = vmatpush.msra.mxu0 %v5138_v22  ;;  %728 = vmatpush.msra.mxu1 %v5140_v23  ;;  %v10046_v22 = vld [vmem:[#allocation36_spill] sm:$0xff]  ;;  %v10047_v23 = vld [vmem:[#allocation37_spill] sm:$0xff] }
 0x12c   :  { %748 = vmatpush.msra.mxu2 %v5171_v33  ;;  %768 = vmatpush.msra.mxu3 %v5145_v24  ;;  %v10048_v24 = vld [vmem:[#allocation51_spill] sm:$0xff]  ;;  %v10057_v33 = vld [vmem:[#allocation45_spill] sm:$0xff] }
 0x12d   :  { %709 = vmatpush.msra.mxu0 %v5150_v26  ;;  %729 = vmatpush.msra.mxu1 %v5152_v27  ;;  %v10050_v26 = vld [vmem:[#allocation39_spill] sm:$0xff]  ;;  %v10051_v27 = vld [vmem:[#allocation40_spill] sm:$0xff] }
 0x12e   :  { %749 = vmatpush.msra.mxu2 %v5183_v37  ;;  %769 = vmatpush.msra.mxu3 %v5157_v28  ;;  %v10052_v28 = vld [vmem:[#allocation55_spill] sm:$0xff] }
 0x12f   :  { %710 = vmatpush.msra.mxu0 %v5162_v30  ;;  %730 = vmatpush.msra.mxu1 %v5164_v31  ;;  %v10054_v30 = vld [vmem:[#allocation42_spill] sm:$0xff]  ;;  %v10055_v31 = vld [vmem:[#allocation44_spill] sm:$0xff]  ;;  %v10060_v37 = vld [vmem:[#allocation63_spill] sm:$0xff] }
 0x130   :  { %750 = vmatpush.msra.mxu2 %v5195_v41  ;;  %770 = vmatpush.msra.mxu3 %v5169_v32  ;;  %v10056_v32 = vld [vmem:[#allocation59_spill] sm:$0xff]  ;;  %v10063_v41 = vld [vmem:[#allocation52_spill] sm:$0xff] }
 0x131   :  { %711 = vmatpush.msra.mxu0 %v5174_v34  ;;  %731 = vmatpush.msra.mxu1 %v5176_v35  ;;  %v10058_v34 = vld [vmem:[#allocation46_spill] sm:$0xff]  ;;  %v10059_v35 = vld [vmem:[#allocation48_spill] sm:$0xff] }
 0x132   :  { %751 = vmatpush.msra.mxu2 %v10024_v0  ;;  %771 = vmatpush.msra.mxu3 %v10025_v1  ;;  %v10086_v0 = vld [vmem:[#allocation74_spill] sm:$0xff]  ;;  %v10087_v1 = vld [vmem:[#allocation76_spill] sm:$0xff] }
 0x133   :  { %712 = vmatpush.msra.mxu0 %v10026_v2  ;;  %732 = vmatpush.msra.mxu1 %v10027_v3  ;;  %v10088_v2 = vld [vmem:[#allocation93_spill] sm:$0xff] }
 0x134   :  { %752 = vmatpush.msra.mxu2 %v10028_v4  ;;  %772 = vmatpush.msra.mxu3 %v10029_v5  ;;  %v10089_v3 = vld [vmem:[#allocation77_spill] sm:$0xff]  ;;  %v10090_v4 = vld [vmem:[#allocation78_spill] sm:$0xff]  ;;  %v10091_v5 = vld [vmem:[#allocation80_spill] sm:$0xff] }
 0x135   :  { %713 = vmatpush.msra.mxu0 %v10030_v6  ;;  %733 = vmatpush.msra.mxu1 %v10031_v7  ;;  %v10092_v6 = vld [vmem:[#allocation97_spill] sm:$0xff] }
 0x136   :  { %753 = vmatpush.msra.mxu2 %v10032_v8  ;;  %773 = vmatpush.msra.mxu3 %v10033_v9  ;;  %v10093_v7 = vld [vmem:[#allocation81_spill] sm:$0xff]  ;;  %v10094_v8 = vld [vmem:[#allocation82_spill] sm:$0xff]  ;;  %v10095_v9 = vld [vmem:[#allocation83_spill] sm:$0xff] }
 0x137   :  { %714 = vmatpush.msra.mxu0 %v10034_v10  ;;  %734 = vmatpush.msra.mxu1 %v10035_v11  ;;  %v10096_v10 = vld [vmem:[#allocation101_spill] sm:$0xff]  ;;  %v10097_v11 = vld [vmem:[#allocation84_spill] sm:$0xff] }
 0x138   :  { %754 = vmatpush.msra.mxu2 %v10036_v12  ;;  %774 = vmatpush.msra.mxu3 %v10037_v13  ;;  %v10098_v12 = vld [vmem:[#allocation86_spill] sm:$0xff]  ;;  %v10099_v13 = vld [vmem:[#allocation87_spill] sm:$0xff] }
 0x139   :  { %715 = vmatpush.msra.mxu0 %v10038_v14  ;;  %735 = vmatpush.msra.mxu1 %v10039_v15  ;;  %v10100_v14 = vld [vmem:[#allocation102_spill] sm:$0xff]  ;;  %v10101_v15 = vld [vmem:[#allocation88_spill] sm:$0xff] }
 0x13a   :  { %755 = vmatpush.msra.mxu2 %v10040_v16  ;;  %775 = vmatpush.msra.mxu3 %v10041_v17  ;;  %v10102_v16 = vld [vmem:[#allocation90_spill] sm:$0xff]  ;;  %v10103_v17 = vld [vmem:[#allocation91_spill] sm:$0xff] }
 0x13b   :  { %716 = vmatpush.msra.mxu0 %v10042_v18  ;;  %736 = vmatpush.msra.mxu1 %v10043_v19  ;;  %v10104_v18 = vld [vmem:[#allocation103_spill] sm:$0xff]  ;;  %v10105_v19 = vld [vmem:[#allocation92_spill] sm:$0xff] }
 0x13c   :  { %756 = vmatpush.msra.mxu2 %v10044_v20  ;;  %776 = vmatpush.msra.mxu3 %v10045_v21  ;;  %v10106_v20 = vld [vmem:[#allocation94_spill] sm:$0xff]  ;;  %v10107_v21 = vld [vmem:[#allocation95_spill] sm:$0xff] }
 0x13d   :  { %717 = vmatpush.msra.mxu0 %v10046_v22  ;;  %737 = vmatpush.msra.mxu1 %v10047_v23  ;;  %v10108_v22 = vld [vmem:[#allocation104_spill] sm:$0xff] }
 0x13e   :  { %757 = vmatpush.msra.mxu2 %v10048_v24  ;;  %777 = vmatpush.msra.mxu3 %v10049_v25  ;;  %v10109_v23 = vld [vmem:[#allocation96_spill] sm:$0xff]  ;;  %v10110_v24 = vld [vmem:[#allocation98_spill] sm:$0xff]  ;;  %v10111_v25 = vld [vmem:[#allocation99_spill] sm:$0xff] }
 0x13f   :  { %782 = vmatpush.msrb.mxu0 %v10050_v26  ;;  %802 = vmatpush.msrb.mxu1 %v10051_v27  ;;  %v10112_v26 = vld [vmem:[#allocation105_spill] sm:$0xff]  ;;  %v10113_v27 = vld [vmem:[#allocation100_spill] sm:$0xff] }
 0x140   :  { %822 = vmatpush.msrb.mxu2 %v10052_v28  ;;  %842 = vmatpush.msrb.mxu3 %v10053_v29 }
 0x141   :  { %783 = vmatpush.msrb.mxu0 %v10054_v30  ;;  %803 = vmatpush.msrb.mxu1 %v10055_v31 }
 0x142   :  { %823 = vmatpush.msrb.mxu2 %v10056_v32  ;;  %843 = vmatpush.msrb.mxu3 %v10057_v33 }
 0x143   :  { %784 = vmatpush.msrb.mxu0 %v10058_v34  ;;  %804 = vmatpush.msrb.mxu1 %v10059_v35  ;;  %v10114_v35 = vld [vmem:[#allocation106_spill] sm:$0xff] }
 0x144   :  { %824 = vmatpush.msrb.mxu2 %v10060_v37  ;;  %844 = vmatpush.msrb.mxu3 %v10061_v38  ;;  %v10115_v38 = vld [vmem:[#allocation107_spill] sm:$0xff] }
 0x145   :  { %785 = vmatpush.msrb.mxu0 %v10062_v39  ;;  %805 = vmatpush.msrb.mxu1 %v10063_v41 }
 0x146   :  { %825 = vmatpush.msrb.mxu2 %v10064_v45  ;;  %845 = vmatpush.msrb.mxu3 %v10065_v60 }
 0x147   :  { %786 = vmatpush.msrb.mxu0 %v10066_v49  ;;  %806 = vmatpush.msrb.mxu1 %v10067_v50 }
 0x148   :  { %826 = vmatpush.msrb.mxu2 %v10068_v48  ;;  %846 = vmatpush.msrb.mxu3 %v10069_v58 }
 0x149   :  { %787 = vmatpush.msrb.mxu0 %v10070_v43  ;;  %807 = vmatpush.msrb.mxu1 %v10071_v57  ;;  %v10116_v43 = vld [vmem:[#allocation108_spill] sm:$0xff] }
 0x14a   :  { %827 = vmatpush.msrb.mxu2 %v10072_v55  ;;  %847 = vmatpush.msrb.mxu3 %v10073_v52 }
 0x14b   :  { %788 = vmatpush.msrb.mxu0 %v10074_v42  ;;  %808 = vmatpush.msrb.mxu1 %v10075_v51 }
 0x14c   :  { %828 = vmatpush.msrb.mxu2 %v10076_v63  ;;  %848 = vmatpush.msrb.mxu3 %v10077_v59 }
 0x14d   :  { %789 = vmatpush.msrb.mxu0 %v10078_v62  ;;  %809 = vmatpush.msrb.mxu1 %v10079_v47 }
 0x14e   :  { %829 = vmatpush.msrb.mxu2 %v10080_v54  ;;  %849 = vmatpush.msrb.mxu3 %v10081_v61 }
 0x14f   :  { %790 = vmatpush.msrb.mxu0 %v10082_v53  ;;  %810 = vmatpush.msrb.mxu1 %v10083_v46  ;;  %v10117_v46 = vld [vmem:[#allocation109_spill] sm:$0xff] }
 0x150   :  { %830 = vmatpush.msrb.mxu2 %v10084_v44  ;;  %850 = vmatpush.msrb.mxu3 %v10085_v36 }
 0x151   :  { %791 = vmatpush.msrb.mxu0 %v10086_v0  ;;  %811 = vmatpush.msrb.mxu1 %v10087_v1 }
 0x152   :  { %831 = vmatpush.msrb.mxu2 %v10088_v2  ;;  %851 = vmatpush.msrb.mxu3 %v10089_v3 }
 0x153   :  { %792 = vmatpush.msrb.mxu0 %v10090_v4  ;;  %812 = vmatpush.msrb.mxu1 %v10091_v5 }
 0x154   :  { %832 = vmatpush.msrb.mxu2 %v10092_v6  ;;  %852 = vmatpush.msrb.mxu3 %v10093_v7 }
 0x155   :  { %793 = vmatpush.msrb.mxu0 %v10094_v8  ;;  %813 = vmatpush.msrb.mxu1 %v10095_v9 }
 0x156   :  { %833 = vmatpush.msrb.mxu2 %v10096_v10  ;;  %853 = vmatpush.msrb.mxu3 %v10097_v11 }
 0x157   :  { %794 = vmatpush.msrb.mxu0 %v10098_v12  ;;  %814 = vmatpush.msrb.mxu1 %v10099_v13 }
 0x158   :  { %834 = vmatpush.msrb.mxu2 %v10100_v14  ;;  %854 = vmatpush.msrb.mxu3 %v10101_v15 }
 0x159   :  { %795 = vmatpush.msrb.mxu0 %v10102_v16  ;;  %815 = vmatpush.msrb.mxu1 %v10103_v17 }
 0x15a   :  { %835 = vmatpush.msrb.mxu2 %v10104_v18  ;;  %855 = vmatpush.msrb.mxu3 %v10105_v19 }
 0x15b   :  { %796 = vmatpush.msrb.mxu0 %v10106_v20  ;;  %816 = vmatpush.msrb.mxu1 %v10107_v21 }
 0x15c   :  { %836 = vmatpush.msrb.mxu2 %v10108_v22  ;;  %856 = vmatpush.msrb.mxu3 %v10109_v23 }
 0x15d   :  { %797 = vmatpush.msrb.mxu0 %v10110_v24  ;;  %817 = vmatpush.msrb.mxu1 %v10111_v25 }
 0x15e   :  { %837 = vmatpush.msrb.mxu2 %v10112_v26  ;;  %857 = vmatpush.msrb.mxu3 %v10113_v27 }
 0x198   :  { %v489_v28 = vpop.f32.mrf.mxu0  ;;  %v509_v29 = vpop.f32.mrf.mxu1 }
 0x19f   :  { %v549_v30 = vpop.f32.mrf.mxu3  ;;  %v529_v60 = vpop.f32.mrf.mxu2 }
 0x1a0   :  { %v569_v31 = vpop.f32.mrf.mxu0  ;;  %v589_v32 = vpop.f32.mrf.mxu1 }
 0x1a1   :  { %v570_v33 = vadd.f32 %v569_v31, %v489_v28  ;;  %v590_v34 = vadd.f32 %v589_v32, %v509_v29 }
 0x1a3   :  { %v632_v37 = vadd.f32 %v570_v33, %v10114_v35  ;;  %v633_v39 = vadd.f32 %v590_v34, %v10115_v38  ;;  %v5759_v34 = vld [vmem:[#allocation8 + $0x1e8] sm:$0xff] }
 0x1a5   :  { %v636_v41 = vsub.f32 0.0, %v632_v37  ;;  %v655_v45 = vsub.f32 0.0, %v633_v39  ;;  %v5762_v37 = vld [vmem:[#allocation8 + $0x1f0] sm:$0xff]  ;;  %v5765_v39 = vld [vmem:[#allocation8 + $0x1f8] sm:$0xff] }
 0x1a7   :  { %v637_v49 = vmul.f32 1.442695, %v636_v41  ;;  %v656_v50 = vmul.f32 1.442695, %v655_v45  ;;  %v629_v48 = vpop.f32.mrf.mxu3  ;;  %v609_v62 = vpop.f32.mrf.mxu2  ;;  %v5768_v41 = vld [vmem:[#allocation8 + $0x1c0] sm:$0xff]  ;;  %v5771_v45 = vld [vmem:[#allocation8 + $0x1c8] sm:$0xff] }
 0x1a8   :  { %v630_v58 = vadd.f32 %v629_v48, %v549_v30  ;;  %v610_v47 = vadd.f32 %v609_v62, %v529_v60  ;;  %v89_v60 = vld [vmem:[#allocation3 + $0x10] sm:$0xff]  ;;  %v5780_v48 = vld [vmem:[#allocation8 + $0x1a0] sm:$0xff]  ;;  %v5807_v62 = vld [vmem:[#allocation8 + $0x168] sm:$0xff] }
 0x1a9   :  { %4133 = vpow2.f32 %v637_v49  ;;  %v5774_v49 = vld [vmem:[#allocation8 + $0x1d0] sm:$0xff] }
 0x1aa   :  { %4135 = vpow2.f32 %v656_v50  ;;  %v635_v57 = vadd.f32 %v630_v58, %v10116_v43  ;;  %v634_v44 = vadd.f32 %v610_v47, %v10117_v46  ;;  %v5777_v50 = vld [vmem:[#allocation8 + $0x1d8] sm:$0xff]  ;;  %v5783_v58 = vld [vmem:[#allocation8 + $0x1a8] sm:$0xff]  ;;  %v5810_v47 = vld [vmem:[#allocation8 + $0x170] sm:$0xff] }
 0x1ac   :  { %v675_v55 = vsub.f32 0.0, %v635_v57  ;;  %v5786_v57 = vld [vmem:[#allocation8 + $0x1b0] sm:$0xff] }
 0x1ae   :  { %v676_v52 = vmul.f32 1.442695, %v675_v55  ;;  %v5789_v55 = vld [vmem:[#allocation8 + $0x1b8] sm:$0xff] }
 0x1af   :  { %v4134_v42 = vpop.eup %4133 }
 0x1b0   :  { %v4136_v51 = vpop.eup %4135  ;;  %v639_v63 = vadd.f32 1.0, %v4134_v42  ;;  %4137 = vpow2.f32 %v676_v52  ;;  %v5792_v52 = vld [vmem:[#allocation8 + $0x180] sm:$0xff]  ;;  %v5795_v42 = vld [vmem:[#allocation8 + $0x188] sm:$0xff] }
 0x1b1   :  { %v658_v59 = vadd.f32 1.0, %v4136_v51  ;;  %v5798_v51 = vld [vmem:[#allocation8 + $0x190] sm:$0xff] }
 0x1b2   :  { %4139 = vrcp.f32 %v639_v63  ;;  %v651_v4 = vand.u32 2147483648, %v639_v63  ;;  %v649_v7 = vand.u32 2147483647, %v639_v63  ;;  %vm645_vm14 = vweird.f32 %v639_v63 }
 0x1b3   :  { %4141 = vrcp.f32 %v658_v59  ;;  %v670_v5 = vand.u32 2147483648, %v658_v59  ;;  %v668_v9 = vand.u32 2147483647, %v658_v59  ;;  %vm664_vm15 = vweird.f32 %v658_v59 }
 0x1b4   :  { %v652_v12 = vor.u32 1.1754944e-38, %v651_v4  ;;  %vm650_vm2 = vcmp.eq.f32.partialorder %v649_v7, 8.507059e+37  ;;  %v5840_v4 = vld [vmem:[#allocation8 + $0x100] sm:$0xff]  ;;  %v5849_v7 = vld [vmem:[#allocation8 + $0x118] sm:$0xff] }
 0x1b5   :  { %v671_v15 = vor.u32 1.1754944e-38, %v670_v5  ;;  %vm669_vm3 = vcmp.eq.f32.partialorder %v668_v9, 8.507059e+37  ;;  %v5843_v5 = vld [vmem:[#allocation8 + $0x108] sm:$0xff] }
 0x1b6   :  { %v4138_v54 = vpop.eup %4137  ;;  %v5855_v9 = vld [vmem:[#allocation8 + $0xe8] sm:$0xff] }
 0x1b7   :  { %v678_v61 = vadd.f32 1.0, %v4138_v54  ;;  %v5813_v54 = vld [vmem:[#allocation8 + $0x178] sm:$0xff] }
 0x1b8   :  { %v4140_v53 = vpop.eup %4139 }
 0x1b9   :  { %v4142_v36 = vpop.eup %4141  ;;  %v641_v0 = vmul.f32 %v4140_v53, %v639_v63  ;;  %4143 = vrcp.f32 %v678_v61  ;;  %vm646_vm12 = vweird.f32 %v4140_v53  ;;  %v690_v27 = vand.u32 2147483648, %v678_v61  ;;  %v5801_v63 = vld [vmem:[#allocation8 + $0x198] sm:$0xff] }
 0x1ba   :  { %v660_v1 = vmul.f32 %v4142_v36, %v658_v59  ;;  %4145 = vtanh.f32 %v634_v44  ;;  %vm665_vm13 = vweird.f32 %v4142_v36  ;;  %vm647_vm0 = vmor %vm645_vm14, %vm646_vm12  ;;  %vm684_vm5 = vweird.f32 %v678_v61  ;;  %v5804_v59 = vld [vmem:[#allocation8 + $0x160] sm:$0xff]  ;;  %v5822_v44 = vld [vmem:[#allocation8 + $0x150] sm:$0xff] }
 0x1bb   :  { %v642_v2 = vsub.f32 1.0, %v641_v0  ;;  %vm666_vm1 = vmor %vm664_vm15, %vm665_vm13  ;;  %v688_v28 = vand.u32 2147483647, %v678_v61  ;;  %v691_v30 = vor.u32 1.1754944e-38, %v690_v27  ;;  %v5828_v0 = vld [vmem:[#allocation8 + $0x120] sm:$0xff]  ;;  %v5906_v27 = vld [vmem:[#allocation8 + $0x70] sm:$0xff] }
 0x1bc   :  { %v661_v3 = vsub.f32 1.0, %v660_v1  ;;  %v5831_v1 = vld [vmem:[#allocation8 + $0x128] sm:$0xff]  ;;  %10131 = vst [vmem:[#allocation26_spill] sm:$0xff] %v5906_v27 }
 0x1bd   :  { %v643_v6 = vmul.f32 %v4140_v53, %v642_v2  ;;  %vm689_vm7 = vcmp.eq.f32.partialorder %v688_v28, 8.507059e+37  ;;  %v5834_v2 = vld [vmem:[#allocation8 + $0x130] sm:$0xff]  ;;  %v5909_v28 = vld [vmem:[#allocation8 + $0x78] sm:$0xff] }
 0x1be   :  { %v662_v8 = vmul.f32 %v4142_v36, %v661_v3  ;;  %v5837_v3 = vld [vmem:[#allocation8 + $0x138] sm:$0xff]  ;;  %10132 = vst [vmem:[#allocation28_spill] sm:$0xff] %v5909_v28 }
 0x1bf   :  { %v4144_v10 = vpop.eup %4143  ;;  %v644_v11 = vadd.f32 %v4140_v53, %v643_v6  ;;  %v5846_v6 = vld [vmem:[#allocation8 + $0x110] sm:$0xff] }
 0x1c0   :  { %v663_v13 = vadd.f32 %v4142_v36, %v662_v8  ;;  %v680_v14 = vmul.f32 %v4144_v10, %v678_v61  ;;  %v4146_v17 = vpop.eup %4145  ;;  %vm685_vm4 = vweird.f32 %v4144_v10  ;;  %v5816_v61 = vld [vmem:[#allocation8 + $0x140] sm:$0xff] }
 0x1c1   :  { %v648_v16 = vsel %vm647_vm0, %v4140_v53, %v644_v11  ;;  %vm686_vm6 = vmor %vm684_vm5, %vm685_vm4  ;;  %v5819_v53 = vld [vmem:[#allocation8 + $0x148] sm:$0xff]  ;;  %v5852_v8 = vld [vmem:[#allocation8 + $0xe0] sm:$0xff] }
 0x1c2   :  { %v653_v18 = vsel %vm650_vm2, %v652_v12, %v648_v16  ;;  %v667_v19 = vsel %vm666_vm1, %v4142_v36, %v663_v13  ;;  %v681_v20 = vsub.f32 1.0, %v680_v14  ;;  %v5825_v36 = vld [vmem:[#allocation8 + $0x158] sm:$0xff]  ;;  %v5864_v12 = vld [vmem:[#allocation8 + $0xc0] sm:$0xff]  ;;  %v5867_v13 = vld [vmem:[#allocation8 + $0xc8] sm:$0xff] }
 0x1c3   :  { %v672_v21 = vsel %vm669_vm3, %v671_v15, %v667_v19  ;;  %v695_v22 = vmul.f32 %v4146_v17, %v653_v18  ;;  %v5861_v11 = vld [vmem:[#allocation8 + $0xf8] sm:$0xff]  ;;  %v5870_v14 = vld [vmem:[#allocation8 + $0xd0] sm:$0xff]  ;;  %v5876_v16 = vld [vmem:[#allocation8 + $0xa0] sm:$0xff] }
 0x1c4   :  { %v694_v23 = vmul.f32 %v672_v21, %v5605_v56  ;;  %v682_v24 = vmul.f32 %v4144_v10, %v681_v20  ;;  %v5756_v56 = vld [vmem:[#allocation8 + $0x1e0] sm:$0xff]  ;;  %10119 = vst [vmem:[#allocation16_spill] sm:$0xff] %v5870_v14  ;;  %v5873_v15 = vld [vmem:[#allocation8 + $0xd8] sm:$0xff]  ;;  %v5879_v17 = vld [vmem:[#allocation8 + $0xa8] sm:$0xff] }
 0x1c5   :  { %10120 = vst [vmem:[#allocation17_spill] sm:$0xff] %v5873_v15  ;;  %v5882_v18 = vld [vmem:[#allocation8 + $0xb0] sm:$0xff]  ;;  %v5885_v19 = vld [vmem:[#allocation8 + $0xb8] sm:$0xff]  ;;  %v5888_v20 = vld [vmem:[#allocation8 + $0x80] sm:$0xff] }
 0x1c6   :  { %v5747_v25 = vadd.f32 %v695_v22, %v694_v23  ;;  %v683_v26 = vadd.f32 %v4144_v10, %v682_v24  ;;  %10121 = vst [vmem:[#allocation18_spill] sm:$0xff] %v5876_v16  ;;  %v5891_v21 = vld [vmem:[#allocation8 + $0x88] sm:$0xff]  ;;  %v5894_v22 = vld [vmem:[#allocation8 + $0x90] sm:$0xff]  ;;  %v5897_v23 = vld [vmem:[#allocation8 + $0x98] sm:$0xff] }
 0x1c7   :  { %10122 = vst [vmem:[#allocation27_spill] sm:$0xff] %v5879_v17  ;;  %v5900_v24 = vld [vmem:[#allocation8 + $0x60] sm:$0xff] }
 0x1c8   :  { %4147 = vtanh.f32 %v5747_v25  ;;  %v687_v29 = vsel %vm686_vm6, %v4144_v10, %v683_v26  ;;  %v5858_v10 = vld [vmem:[#allocation8 + $0xf0] sm:$0xff]  ;;  %10123 = vst [vmem:[#allocation19_spill] sm:$0xff] %v5882_v18  ;;  %v5903_v26 = vld [vmem:[#allocation8 + $0x68] sm:$0xff] }
 0x1c9   :  { %v692_v32 = vsel %vm689_vm7, %v691_v30, %v687_v29  ;;  %10124 = vst [vmem:[#allocation20_spill] sm:$0xff] %v5885_v19  ;;  %v5912_v29 = vld [vmem:[#allocation8 + $0x40] sm:$0xff]  ;;  %v5915_v30 = vld [vmem:[#allocation8 + $0x48] sm:$0xff] }
 0x1ca   :  { %10125 = vst [vmem:[#allocation21_spill] sm:$0xff] %v5888_v20 }
 0x1cb   :  { %10126 = vst [vmem:[#allocation31_spill] sm:$0xff] %v5891_v21 }
 0x1cc   :  { %10127 = vst [vmem:[#allocation22_spill] sm:$0xff] %v5894_v22 }
 0x1cd   :  { %10128 = vst [vmem:[#allocation24_spill] sm:$0xff] %v5897_v23 }
 0x1ce   :  { %v4148_v31 = vpop.eup %4147  ;;  %10129 = vst [vmem:[#allocation25_spill] sm:$0xff] %v5900_v24 }
 0x1cf   :  { %v5750_v33 = vmul.f32 %v4148_v31, %v692_v32  ;;  %10130 = vst [vmem:[#allocation35_spill] sm:$0xff] %v5903_v26  ;;  %v5918_v31 = vld [vmem:[#allocation8 + $0x50] sm:$0xff]  ;;  %v5921_v32 = vld [vmem:[#allocation8 + $0x58] sm:$0xff] }
 0x1d0   :  { %10133 = vst [vmem:[#allocation29_spill] sm:$0xff] %v5912_v29 }
 0x1d1   :  { %10118 = vst [vmem:[#allocation23_spill] sm:$0xff] %v5750_v33  ;;  %718 = vmatmul.f32.vlgmr.msra.gmra.mxu0 %v5750_v33  ;;  %738 = vmatmul.f32.vlgmr.msra.gmra.mxu1 %v5750_v33 }
 0x1d2   :  { %758 = vmatmul.f32.vlgmr.msra.gmra.mxu2 %v5750_v33  ;;  %778 = vmatmul.f32.vlgmr.msra.gmra.mxu3 %v5750_v33  ;;  %10134 = vst [vmem:[#allocation43_spill] sm:$0xff] %v5915_v30  ;;  %v5927_v33 = vld [vmem:[#allocation8 + $0x28] sm:$0xff] }
 0x1d3   :  { %932 = vmatpush.msra.mxu0 %v5756_v56  ;;  %952 = vmatpush.msra.mxu1 %v5759_v34  ;;  %10135 = vst [vmem:[#allocation30_spill] sm:$0xff] %v5918_v31 }
 0x1d4   :  { %972 = vmatpush.msra.mxu2 %v5762_v37  ;;  %992 = vmatpush.msra.mxu3 %v5765_v39  ;;  %10136 = vst [vmem:[#allocation32_spill] sm:$0xff] %v5921_v32 }
 0x1d5   :  { %933 = vmatpush.msra.mxu0 %v5768_v41  ;;  %953 = vmatpush.msra.mxu1 %v5771_v45  ;;  %10138 = vst [vmem:[#allocation47_spill] sm:$0xff] %v5927_v33 }
 0x1d6   :  { %973 = vmatpush.msra.mxu2 %v5774_v49  ;;  %993 = vmatpush.msra.mxu3 %v5777_v50 }
 0x1d7   :  { %934 = vmatpush.msra.mxu0 %v5780_v48  ;;  %954 = vmatpush.msra.mxu1 %v5783_v58 }
 0x1d8   :  { %974 = vmatpush.msra.mxu2 %v5786_v57  ;;  %994 = vmatpush.msra.mxu3 %v5789_v55 }
 0x1d9   :  { %798 = vmatmul.f32.vlgmr.msrb.gmra.mxu0 %v89_v60  ;;  %818 = vmatmul.f32.vlgmr.msrb.gmra.mxu1 %v89_v60 }
 0x1da   :  { %838 = vmatmul.f32.vlgmr.msrb.gmra.mxu2 %v89_v60  ;;  %858 = vmatmul.f32.vlgmr.msrb.gmra.mxu3 %v89_v60  ;;  %v5924_v60 = vld [vmem:[#allocation8 + $0x20] sm:$0xff] }
 0x1db   :  { %935 = vmatpush.msra.mxu0 %v5792_v52  ;;  %955 = vmatpush.msra.mxu1 %v5795_v42  ;;  %10137 = vst [vmem:[#allocation33_spill] sm:$0xff] %v5924_v60 }
 0x1dc   :  { %975 = vmatpush.msra.mxu2 %v5798_v51  ;;  %995 = vmatpush.msra.mxu3 %v5801_v63 }
 0x1dd   :  { %936 = vmatpush.msra.mxu0 %v5804_v59  ;;  %956 = vmatpush.msra.mxu1 %v5807_v62 }
 0x1de   :  { %976 = vmatpush.msra.mxu2 %v5810_v47  ;;  %996 = vmatpush.msra.mxu3 %v5813_v54 }
 0x1df   :  { %937 = vmatpush.msra.mxu0 %v5816_v61  ;;  %957 = vmatpush.msra.mxu1 %v5819_v53 }
 0x1e0   :  { %977 = vmatpush.msra.mxu2 %v5822_v44  ;;  %997 = vmatpush.msra.mxu3 %v5825_v36 }
 0x1e1   :  { %938 = vmatpush.msra.mxu0 %v5828_v0  ;;  %958 = vmatpush.msra.mxu1 %v5831_v1 }
 0x1e2   :  { %978 = vmatpush.msra.mxu2 %v5834_v2  ;;  %998 = vmatpush.msra.mxu3 %v5837_v3 }
 0x1e3   :  { %939 = vmatpush.msra.mxu0 %v5840_v4  ;;  %959 = vmatpush.msra.mxu1 %v5843_v5 }
 0x1e4   :  { %979 = vmatpush.msra.mxu2 %v5846_v6  ;;  %999 = vmatpush.msra.mxu3 %v5849_v7 }
 0x1e5   :  { %940 = vmatpush.msra.mxu0 %v5852_v8  ;;  %960 = vmatpush.msra.mxu1 %v5855_v9 }
 0x1e6   :  { %980 = vmatpush.msra.mxu2 %v5858_v10  ;;  %1000 = vmatpush.msra.mxu3 %v5861_v11 }
 0x1e7   :  { %941 = vmatpush.msra.mxu0 %v5864_v12  ;;  %961 = vmatpush.msra.mxu1 %v5867_v13 }
 0x1e8   :  { %981 = vmatpush.msra.mxu2 %v5870_v14  ;;  %1001 = vmatpush.msra.mxu3 %v5873_v15 }
 0x1e9   :  { %942 = vmatpush.msra.mxu0 %v5876_v16  ;;  %962 = vmatpush.msra.mxu1 %v5879_v17 }
 0x1ea   :  { %982 = vmatpush.msra.mxu2 %v5882_v18  ;;  %1002 = vmatpush.msra.mxu3 %v5885_v19 }
 0x1eb   :  { %943 = vmatpush.msra.mxu0 %v5888_v20  ;;  %963 = vmatpush.msra.mxu1 %v5891_v21 }
 0x1ec   :  { %983 = vmatpush.msra.mxu2 %v5894_v22  ;;  %1003 = vmatpush.msra.mxu3 %v5897_v23 }
 0x1ed   :  { %944 = vmatpush.msra.mxu0 %v5900_v24  ;;  %964 = vmatpush.msra.mxu1 %v5903_v26 }
 0x1ee   :  { %984 = vmatpush.msra.mxu2 %v5906_v27  ;;  %1004 = vmatpush.msra.mxu3 %v5909_v28 }
 0x1ef   :  { %945 = vmatpush.msra.mxu0 %v5912_v29  ;;  %965 = vmatpush.msra.mxu1 %v5915_v30  ;;  %v5933_v30 = vld [vmem:[#allocation8 + $0x38] sm:$0xff] }
 0x1f0   :  { %985 = vmatpush.msra.mxu2 %v5918_v31  ;;  %1005 = vmatpush.msra.mxu3 %v5921_v32  ;;  %10140 = vst [vmem:[#allocation36_spill] sm:$0xff] %v5933_v30  ;;  %v5936_v31 = vld [vmem:[#allocation8] sm:$0xff]  ;;  %v5939_v32 = vld [vmem:[#allocation8 + $0x8] sm:$0xff] }
 0x1f1   :  { %946 = vmatpush.msra.mxu0 %v5924_v60  ;;  %966 = vmatpush.msra.mxu1 %v5927_v33  ;;  %10141 = vst [vmem:[#allocation37_spill] sm:$0xff] %v5936_v31  ;;  %v5942_v60 = vld [vmem:[#allocation8 + $0x10] sm:$0xff]  ;;  %v5945_v33 = vld [vmem:[#allocation8 + $0x18] sm:$0xff] }
 0x1f2   :  { %986 = vmatpush.msra.mxu2 %v5930_v40  ;;  %1006 = vmatpush.msra.mxu3 %v5933_v30  ;;  %10142 = vst [vmem:[#allocation51_spill] sm:$0xff] %v5939_v32  ;;  %v5948_v40 = vld [vmem:[#allocation6 + $0x1e0] sm:$0xff]  ;;  %v5951_v30 = vld [vmem:[#allocation6 + $0x1e8] sm:$0xff] }
 0x1f3   :  { %947 = vmatpush.msra.mxu0 %v5936_v31  ;;  %967 = vmatpush.msra.mxu1 %v5939_v32  ;;  %10143 = vst [vmem:[#allocation38_spill] sm:$0xff] %v5942_v60  ;;  %v5954_v31 = vld [vmem:[#allocation6 + $0x1f0] sm:$0xff]  ;;  %v5957_v32 = vld [vmem:[#allocation6 + $0x1f8] sm:$0xff] }
 0x1f4   :  { %987 = vmatpush.msra.mxu2 %v5942_v60  ;;  %10144 = vst [vmem:[#allocation39_spill] sm:$0xff] %v5945_v33  ;;  %1007 = vmatpush.msra.mxu3 %v5945_v33  ;;  %v5960_v60 = vld [vmem:[#allocation6 + $0x1c0] sm:$0xff]  ;;  %v5963_v33 = vld [vmem:[#allocation6 + $0x1c8] sm:$0xff] }
 0x1f5   :  { %10145 = vst [vmem:[#allocation40_spill] sm:$0xff] %v5948_v40  ;;  %1012 = vmatpush.msrb.mxu0 %v5948_v40  ;;  %1032 = vmatpush.msrb.mxu1 %v5951_v30  ;;  %v5966_v40 = vld [vmem:[#allocation6 + $0x1d0] sm:$0xff] }
 0x1f6   :  { %10146 = vst [vmem:[#allocation55_spill] sm:$0xff] %v5951_v30  ;;  %1052 = vmatpush.msrb.mxu2 %v5954_v31  ;;  %1072 = vmatpush.msrb.mxu3 %v5957_v32  ;;  %v5969_v30 = vld [vmem:[#allocation6 + $0x1d8] sm:$0xff] }
 0x1f7   :  { %10147 = vst [vmem:[#allocation41_spill] sm:$0xff] %v5954_v31  ;;  %1013 = vmatpush.msrb.mxu0 %v5960_v60  ;;  %1033 = vmatpush.msrb.mxu1 %v5963_v33  ;;  %v5972_v31 = vld [vmem:[#allocation6 + $0x1a0] sm:$0xff] }
 0x1f8   :  { %10148 = vst [vmem:[#allocation42_spill] sm:$0xff] %v5957_v32  ;;  %1053 = vmatpush.msrb.mxu2 %v5966_v40  ;;  %1073 = vmatpush.msrb.mxu3 %v5969_v30  ;;  %v5975_v32 = vld [vmem:[#allocation6 + $0x1a8] sm:$0xff] }
 0x1f9   :  { %10149 = vst [vmem:[#allocation44_spill] sm:$0xff] %v5960_v60  ;;  %1014 = vmatpush.msrb.mxu0 %v5972_v31  ;;  %1034 = vmatpush.msrb.mxu1 %v5975_v32  ;;  %v5978_v60 = vld [vmem:[#allocation6 + $0x1b0] sm:$0xff] }
 0x1fa   :  { %10150 = vst [vmem:[#allocation59_spill] sm:$0xff] %v5963_v33  ;;  %1054 = vmatpush.msrb.mxu2 %v5978_v60  ;;  %v5981_v33 = vld [vmem:[#allocation6 + $0x1b8] sm:$0xff] }
 0x1fb   :  { %10151 = vst [vmem:[#allocation45_spill] sm:$0xff] %v5966_v40  ;;  %1074 = vmatpush.msrb.mxu3 %v5981_v33  ;;  %v5984_v40 = vld [vmem:[#allocation6 + $0x180] sm:$0xff] }
 0x1fc   :  { %10152 = vst [vmem:[#allocation46_spill] sm:$0xff] %v5969_v30  ;;  %1015 = vmatpush.msrb.mxu0 %v5984_v40  ;;  %v5987_v30 = vld [vmem:[#allocation6 + $0x188] sm:$0xff] }
 0x1fd   :  { %10153 = vst [vmem:[#allocation48_spill] sm:$0xff] %v5972_v31  ;;  %1035 = vmatpush.msrb.mxu1 %v5987_v30  ;;  %v5990_v31 = vld [vmem:[#allocation6 + $0x190] sm:$0xff] }
 0x1fe   :  { %10154 = vst [vmem:[#allocation63_spill] sm:$0xff] %v5975_v32  ;;  %1055 = vmatpush.msrb.mxu2 %v5990_v31  ;;  %v5993_v32 = vld [vmem:[#allocation6 + $0x198] sm:$0xff] }
 0x1ff   :  { %10155 = vst [vmem:[#allocation49_spill] sm:$0xff] %v5978_v60  ;;  %1075 = vmatpush.msrb.mxu3 %v5993_v32  ;;  %v5996_v60 = vld [vmem:[#allocation6 + $0x160] sm:$0xff] }
 0x200   :  { %10156 = vst [vmem:[#allocation50_spill] sm:$0xff] %v5981_v33  ;;  %1016 = vmatpush.msrb.mxu0 %v5996_v60  ;;  %v5999_v33 = vld [vmem:[#allocation6 + $0x168] sm:$0xff] }
 0x201   :  { %10157 = vst [vmem:[#allocation52_spill] sm:$0xff] %v5984_v40  ;;  %1036 = vmatpush.msrb.mxu1 %v5999_v33  ;;  %v6002_v40 = vld [vmem:[#allocation6 + $0x170] sm:$0xff] }
 0x202   :  { %10158 = vst [vmem:[#allocation67_spill] sm:$0xff] %v5987_v30  ;;  %1056 = vmatpush.msrb.mxu2 %v6002_v40  ;;  %v6005_v30 = vld [vmem:[#allocation6 + $0x178] sm:$0xff] }
 0x203   :  { %10159 = vst [vmem:[#allocation53_spill] sm:$0xff] %v5990_v31  ;;  %1076 = vmatpush.msrb.mxu3 %v6005_v30  ;;  %v6008_v31 = vld [vmem:[#allocation6 + $0x140] sm:$0xff] }
 0x204   :  { %10160 = vst [vmem:[#allocation54_spill] sm:$0xff] %v5993_v32  ;;  %1017 = vmatpush.msrb.mxu0 %v6008_v31  ;;  %v6011_v32 = vld [vmem:[#allocation6 + $0x148] sm:$0xff] }
 0x205   :  { %10161 = vst [vmem:[#allocation56_spill] sm:$0xff] %v5996_v60  ;;  %1037 = vmatpush.msrb.mxu1 %v6011_v32  ;;  %v6014_v60 = vld [vmem:[#allocation6 + $0x150] sm:$0xff] }
 0x206   :  { %10162 = vst [vmem:[#allocation71_spill] sm:$0xff] %v5999_v33  ;;  %1057 = vmatpush.msrb.mxu2 %v6014_v60  ;;  %v6017_v33 = vld [vmem:[#allocation6 + $0x158] sm:$0xff] }
 0x207   :  { %10163 = vst [vmem:[#allocation57_spill] sm:$0xff] %v6002_v40  ;;  %1077 = vmatpush.msrb.mxu3 %v6017_v33  ;;  %v6020_v40 = vld [vmem:[#allocation6 + $0x120] sm:$0xff] }
 0x208   :  { %10164 = vst [vmem:[#allocation58_spill] sm:$0xff] %v6005_v30  ;;  %1018 = vmatpush.msrb.mxu0 %v6020_v40  ;;  %v6023_v30 = vld [vmem:[#allocation6 + $0x128] sm:$0xff] }
 0x209   :  { %10165 = vst [vmem:[#allocation60_spill] sm:$0xff] %v6008_v31  ;;  %1038 = vmatpush.msrb.mxu1 %v6023_v30  ;;  %v6026_v31 = vld [vmem:[#allocation6 + $0x130] sm:$0xff] }
 0x20a   :  { %10166 = vst [vmem:[#allocation75_spill] sm:$0xff] %v6011_v32  ;;  %1058 = vmatpush.msrb.mxu2 %v6026_v31  ;;  %v6029_v32 = vld [vmem:[#allocation6 + $0x138] sm:$0xff] }
 0x20b   :  { %10167 = vst [vmem:[#allocation61_spill] sm:$0xff] %v6014_v60  ;;  %1078 = vmatpush.msrb.mxu3 %v6029_v32  ;;  %v6032_v60 = vld [vmem:[#allocation6 + $0x100] sm:$0xff] }
 0x20c   :  { %10168 = vst [vmem:[#allocation62_spill] sm:$0xff] %v6017_v33  ;;  %1019 = vmatpush.msrb.mxu0 %v6032_v60  ;;  %v6035_v33 = vld [vmem:[#allocation6 + $0x108] sm:$0xff] }
 0x20d   :  { %10169 = vst [vmem:[#allocation64_spill] sm:$0xff] %v6020_v40  ;;  %1039 = vmatpush.msrb.mxu1 %v6035_v33  ;;  %v6038_v40 = vld [vmem:[#allocation6 + $0x110] sm:$0xff] }
 0x20e   :  { %10170 = vst [vmem:[#allocation79_spill] sm:$0xff] %v6023_v30  ;;  %1059 = vmatpush.msrb.mxu2 %v6038_v40  ;;  %v6041_v30 = vld [vmem:[#allocation6 + $0x118] sm:$0xff] }
 0x20f   :  { %10171 = vst [vmem:[#allocation65_spill] sm:$0xff] %v6026_v31  ;;  %1079 = vmatpush.msrb.mxu3 %v6041_v30  ;;  %v6044_v31 = vld [vmem:[#allocation6 + $0xe0] sm:$0xff] }
 0x210   :  { %10172 = vst [vmem:[#allocation66_spill] sm:$0xff] %v6029_v32  ;;  %1020 = vmatpush.msrb.mxu0 %v6044_v31  ;;  %v6047_v32 = vld [vmem:[#allocation6 + $0xe8] sm:$0xff] }
 0x211   :  { %10173 = vst [vmem:[#allocation68_spill] sm:$0xff] %v6032_v60  ;;  %1040 = vmatpush.msrb.mxu1 %v6047_v32  ;;  %v6050_v60 = vld [vmem:[#allocation6 + $0xf0] sm:$0xff] }
 0x212   :  { %10174 = vst [vmem:[#allocation85_spill] sm:$0xff] %v6035_v33  ;;  %1060 = vmatpush.msrb.mxu2 %v6050_v60  ;;  %v6053_v33 = vld [vmem:[#allocation6 + $0xf8] sm:$0xff] }
 0x213   :  { %10175 = vst [vmem:[#allocation69_spill] sm:$0xff] %v6038_v40  ;;  %1080 = vmatpush.msrb.mxu3 %v6053_v33  ;;  %v6056_v40 = vld [vmem:[#allocation6 + $0xc0] sm:$0xff] }
 0x214   :  { %10176 = vst [vmem:[#allocation70_spill] sm:$0xff] %v6041_v30  ;;  %1021 = vmatpush.msrb.mxu0 %v6056_v40  ;;  %v6059_v30 = vld [vmem:[#allocation6 + $0xc8] sm:$0xff] }
 0x215   :  { %10177 = vst [vmem:[#allocation72_spill] sm:$0xff] %v6044_v31  ;;  %1041 = vmatpush.msrb.mxu1 %v6059_v30  ;;  %v6062_v31 = vld [vmem:[#allocation6 + $0xd0] sm:$0xff] }
 0x216   :  { %10178 = vst [vmem:[#allocation89_spill] sm:$0xff] %v6047_v32  ;;  %1061 = vmatpush.msrb.mxu2 %v6062_v31  ;;  %v6065_v32 = vld [vmem:[#allocation6 + $0xd8] sm:$0xff] }
 0x217   :  { %10179 = vst [vmem:[#allocation73_spill] sm:$0xff] %v6050_v60  ;;  %1081 = vmatpush.msrb.mxu3 %v6065_v32  ;;  %v6068_v60 = vld [vmem:[#allocation6 + $0xa0] sm:$0xff] }
 0x218   :  { %10180 = vst [vmem:[#allocation74_spill] sm:$0xff] %v6053_v33  ;;  %1022 = vmatpush.msrb.mxu0 %v6068_v60  ;;  %v6071_v33 = vld [vmem:[#allocation6 + $0xa8] sm:$0xff] }
 0x219   :  { %10181 = vst [vmem:[#allocation76_spill] sm:$0xff] %v6056_v40  ;;  %1042 = vmatpush.msrb.mxu1 %v6071_v33  ;;  %v6074_v40 = vld [vmem:[#allocation6 + $0xb0] sm:$0xff] }
 0x21a   :  { %10182 = vst [vmem:[#allocation93_spill] sm:$0xff] %v6059_v30  ;;  %1062 = vmatpush.msrb.mxu2 %v6074_v40  ;;  %v6077_v30 = vld [vmem:[#allocation6 + $0xb8] sm:$0xff] }
 0x21b   :  { %10183 = vst [vmem:[#allocation77_spill] sm:$0xff] %v6062_v31  ;;  %1082 = vmatpush.msrb.mxu3 %v6077_v30  ;;  %v6080_v31 = vld [vmem:[#allocation6 + $0x80] sm:$0xff] }
 0x21c   :  { %10184 = vst [vmem:[#allocation78_spill] sm:$0xff] %v6065_v32  ;;  %1023 = vmatpush.msrb.mxu0 %v6080_v31  ;;  %v6083_v32 = vld [vmem:[#allocation6 + $0x88] sm:$0xff] }
 0x21d   :  { %10185 = vst [vmem:[#allocation80_spill] sm:$0xff] %v6068_v60  ;;  %1043 = vmatpush.msrb.mxu1 %v6083_v32  ;;  %v6086_v60 = vld [vmem:[#allocation6 + $0x90] sm:$0xff] }
 0x21e   :  { %10186 = vst [vmem:[#allocation97_spill] sm:$0xff] %v6071_v33  ;;  %1063 = vmatpush.msrb.mxu2 %v6086_v60  ;;  %v6089_v33 = vld [vmem:[#allocation6 + $0x98] sm:$0xff] }
 0x21f   :  { %10187 = vst [vmem:[#allocation81_spill] sm:$0xff] %v6074_v40  ;;  %1083 = vmatpush.msrb.mxu3 %v6089_v33  ;;  %v6092_v40 = vld [vmem:[#allocation6 + $0x60] sm:$0xff] }
 0x220   :  { %10188 = vst [vmem:[#allocation82_spill] sm:$0xff] %v6077_v30  ;;  %1024 = vmatpush.msrb.mxu0 %v6092_v40  ;;  %v6095_v30 = vld [vmem:[#allocation6 + $0x68] sm:$0xff] }
 0x221   :  { %10189 = vst [vmem:[#allocation83_spill] sm:$0xff] %v6080_v31  ;;  %1044 = vmatpush.msrb.mxu1 %v6095_v30  ;;  %v6098_v31 = vld [vmem:[#allocation6 + $0x70] sm:$0xff] }
 0x222   :  { %10190 = vst [vmem:[#allocation101_spill] sm:$0xff] %v6083_v32  ;;  %1064 = vmatpush.msrb.mxu2 %v6098_v31  ;;  %v6101_v32 = vld [vmem:[#allocation6 + $0x78] sm:$0xff] }
 0x223   :  { %10191 = vst [vmem:[#allocation84_spill] sm:$0xff] %v6086_v60  ;;  %1084 = vmatpush.msrb.mxu3 %v6101_v32  ;;  %v6104_v60 = vld [vmem:[#allocation6 + $0x40] sm:$0xff] }
 0x224   :  { %10192 = vst [vmem:[#allocation86_spill] sm:$0xff] %v6089_v33  ;;  %1025 = vmatpush.msrb.mxu0 %v6104_v60  ;;  %v6107_v33 = vld [vmem:[#allocation6 + $0x48] sm:$0xff] }
 0x225   :  { %10193 = vst [vmem:[#allocation87_spill] sm:$0xff] %v6092_v40  ;;  %1045 = vmatpush.msrb.mxu1 %v6107_v33  ;;  %v6110_v40 = vld [vmem:[#allocation6 + $0x50] sm:$0xff] }
 0x226   :  { %10194 = vst [vmem:[#allocation102_spill] sm:$0xff] %v6095_v30  ;;  %1065 = vmatpush.msrb.mxu2 %v6110_v40  ;;  %v6113_v30 = vld [vmem:[#allocation6 + $0x58] sm:$0xff] }
 0x227   :  { %10195 = vst [vmem:[#allocation88_spill] sm:$0xff] %v6098_v31  ;;  %1085 = vmatpush.msrb.mxu3 %v6113_v30  ;;  %v6116_v31 = vld [vmem:[#allocation6 + $0x20] sm:$0xff] }
 0x228   :  { %10196 = vst [vmem:[#allocation90_spill] sm:$0xff] %v6101_v32  ;;  %1026 = vmatpush.msrb.mxu0 %v6116_v31  ;;  %v6119_v32 = vld [vmem:[#allocation6 + $0x28] sm:$0xff] }
 0x229   :  { %10197 = vst [vmem:[#allocation91_spill] sm:$0xff] %v6104_v60  ;;  %1046 = vmatpush.msrb.mxu1 %v6119_v32  ;;  %v6122_v60 = vld [vmem:[#allocation6 + $0x30] sm:$0xff] }
 0x22a   :  { %10198 = vst [vmem:[#allocation103_spill] sm:$0xff] %v6107_v33  ;;  %1066 = vmatpush.msrb.mxu2 %v6122_v60  ;;  %v6125_v33 = vld [vmem:[#allocation6 + $0x38] sm:$0xff] }
 0x22b   :  { %10199 = vst [vmem:[#allocation92_spill] sm:$0xff] %v6110_v40  ;;  %1086 = vmatpush.msrb.mxu3 %v6125_v33  ;;  %v6128_v40 = vld [vmem:[#allocation6] sm:$0xff] }
 0x22c   :  { %10200 = vst [vmem:[#allocation94_spill] sm:$0xff] %v6113_v30  ;;  %1027 = vmatpush.msrb.mxu0 %v6128_v40  ;;  %v6131_v30 = vld [vmem:[#allocation6 + $0x8] sm:$0xff] }
 0x22d   :  { %10201 = vst [vmem:[#allocation95_spill] sm:$0xff] %v6116_v31  ;;  %1047 = vmatpush.msrb.mxu1 %v6131_v30  ;;  %v6134_v31 = vld [vmem:[#allocation6 + $0x10] sm:$0xff] }
 0x22e   :  { %10202 = vst [vmem:[#allocation104_spill] sm:$0xff] %v6119_v32  ;;  %1067 = vmatpush.msrb.mxu2 %v6134_v31  ;;  %v6137_v32 = vld [vmem:[#allocation6 + $0x18] sm:$0xff] }
 0x22f   :  { %10203 = vst [vmem:[#allocation96_spill] sm:$0xff] %v6122_v60  ;;  %1087 = vmatpush.msrb.mxu3 %v6137_v32 }
 0x230   :  { %10204 = vst [vmem:[#allocation98_spill] sm:$0xff] %v6125_v33 }
 0x231   :  { %10205 = vst [vmem:[#allocation99_spill] sm:$0xff] %v6128_v40 }
 0x232   :  { %10206 = vst [vmem:[#allocation105_spill] sm:$0xff] %v6131_v30 }
 0x233   :  { %10207 = vst [vmem:[#allocation100_spill] sm:$0xff] %v6134_v31 }
 0x234   :  { %10208 = vst [vmem:[#allocation111_spill] sm:$0xff] %v6137_v32 }
 0x24e   :  { %v719_v60 = vpop.f32.mrf.mxu0  ;;  %v739_v29 = vpop.f32.mrf.mxu1 }
 0x255   :  { %v779_v28 = vpop.f32.mrf.mxu3  ;;  %v759_v21 = vpop.f32.mrf.mxu2 }
 0x256   :  { %v799_v33 = vpop.f32.mrf.mxu0  ;;  %v819_v27 = vpop.f32.mrf.mxu1 }
 0x257   :  { %v800_v26 = vadd.f32 %v799_v33, %v719_v60  ;;  %v820_v24 = vadd.f32 %v819_v27, %v739_v29 }
 0x259   :  { %v862_v40 = vadd.f32 %v800_v26, %v10114_v35  ;;  %v863_v23 = vadd.f32 %v820_v24, %v10115_v38 }
 0x25b   :  { %v866_v30 = vsub.f32 0.0, %v862_v40  ;;  %v885_v22 = vsub.f32 0.0, %v863_v23 }
 0x25d   :  { %v867_v20 = vmul.f32 1.442695, %v866_v30  ;;  %v886_v31 = vmul.f32 1.442695, %v885_v22  ;;  %v859_v19 = vpop.f32.mrf.mxu3  ;;  %v839_v29 = vpop.f32.mrf.mxu2 }
 0x25e   :  { %v860_v18 = vadd.f32 %v859_v19, %v779_v28  ;;  %v840_v40 = vadd.f32 %v839_v29, %v759_v21 }
 0x25f   :  { %4149 = vpow2.f32 %v867_v20 }
 0x260   :  { %4151 = vpow2.f32 %v886_v31  ;;  %v865_v32 = vadd.f32 %v860_v18, %v10116_v43  ;;  %v864_v19 = vadd.f32 %v840_v40, %v10117_v46 }
 0x262   :  { %v905_v17 = vsub.f32 0.0, %v865_v32 }
 0x264   :  { %v906_v16 = vmul.f32 1.442695, %v905_v17 }
 0x265   :  { %v4150_v15 = vpop.eup %4149 }
 0x266   :  { %v4152_v33 = vpop.eup %4151  ;;  %v869_v27 = vadd.f32 1.0, %v4150_v15  ;;  %4153 = vpow2.f32 %v906_v16 }
 0x267   :  { %v888_v26 = vadd.f32 1.0, %v4152_v33 }
 0x268   :  { %4155 = vrcp.f32 %v869_v27  ;;  %v881_v31 = vand.u32 2147483648, %v869_v27  ;;  %v879_v32 = vand.u32 2147483647, %v869_v27  ;;  %vm875_vm10 = vweird.f32 %v869_v27 }
 0x269   :  { %4157 = vrcp.f32 %v888_v26  ;;  %v900_v15 = vand.u32 2147483648, %v888_v26  ;;  %v898_v21 = vand.u32 2147483647, %v888_v26  ;;  %vm894_vm11 = vweird.f32 %v888_v26 }
 0x26a   :  { %v882_v40 = vor.u32 1.1754944e-38, %v881_v31  ;;  %vm880_vm14 = vcmp.eq.f32.partialorder %v879_v32, 8.507059e+37 }
 0x26b   :  { %vm899_vm15 = vcmp.eq.f32.partialorder %v898_v21, 8.507059e+37  ;;  %v10215_v21 = vld [vmem:[#allocation20_spill] sm:$0xff] }
 0x26c   :  { %v4154_v23 = vpop.eup %4153 }
 0x26d   :  { %v908_v24 = vadd.f32 1.0, %v4154_v23 }
 0x26e   :  { %v4156_v22 = vpop.eup %4155 }
 0x26f   :  { %v4158_v20 = vpop.eup %4157  ;;  %v871_v28 = vmul.f32 %v4156_v22, %v869_v27  ;;  %4159 = vrcp.f32 %v908_v24  ;;  %vm876_vm8 = vweird.f32 %v4156_v22  ;;  %v920_v31 = vand.u32 2147483648, %v908_v24 }
 0x270   :  { %v890_v18 = vmul.f32 %v4158_v20, %v888_v26  ;;  %4161 = vtanh.f32 %v864_v19  ;;  %vm895_vm9 = vweird.f32 %v4158_v20  ;;  %vm877_vm12 = vmor %vm875_vm10, %vm876_vm8  ;;  %vm914_vm1 = vweird.f32 %v908_v24 }
 0x271   :  { %v872_v30 = vsub.f32 1.0, %v871_v28  ;;  %vm896_vm13 = vmor %vm894_vm11, %vm895_vm9  ;;  %v901_v28 = vor.u32 1.1754944e-38, %v900_v15  ;;  %v921_v32 = vor.u32 1.1754944e-38, %v920_v31  ;;  %v10227_v31 = vld [vmem:[#allocation32_spill] sm:$0xff] }
 0x272   :  { %v891_v17 = vsub.f32 1.0, %v890_v18 }
 0x273   :  { %v873_v16 = vmul.f32 %v4156_v22, %v872_v30 }
 0x274   :  { %v892_v60 = vmul.f32 %v4158_v20, %v891_v17 }
 0x275   :  { %v4160_v33 = vpop.eup %4159  ;;  %v874_v29 = vadd.f32 %v4156_v22, %v873_v16 }
 0x276   :  { %v893_v23 = vadd.f32 %v4158_v20, %v892_v60  ;;  %v910_v46 = vmul.f32 %v4160_v33, %v908_v24  ;;  %v4162_v19 = vpop.eup %4161  ;;  %vm915_vm0 = vweird.f32 %v4160_v33 }
 0x277   :  { %v878_v18 = vsel %vm877_vm12, %v4156_v22, %v874_v29  ;;  %v918_v22 = vand.u32 2147483647, %v908_v24  ;;  %vm916_vm2 = vmor %vm914_vm1, %vm915_vm0  ;;  %v10214_v24 = vld [vmem:[#allocation19_spill] sm:$0xff] }
 0x278   :  { %v883_v43 = vsel %vm880_vm14, %v882_v40, %v878_v18  ;;  %v897_v30 = vsel %vm896_vm13, %v4158_v20, %v893_v23  ;;  %v911_v38 = vsub.f32 1.0, %v910_v46  ;;  %v10217_v29 = vld [vmem:[#allocation31_spill] sm:$0xff]  ;;  %v10218_v40 = vld [vmem:[#allocation22_spill] sm:$0xff]  ;;  %v10219_v23 = vld [vmem:[#allocation24_spill] sm:$0xff] }
 0x279   :  { %v902_v17 = vsel %vm899_vm15, %v901_v28, %v897_v30  ;;  %v925_v35 = vmul.f32 %v4162_v19, %v883_v43  ;;  %vm919_vm3 = vcmp.eq.f32.partialorder %v918_v22, 8.507059e+37  ;;  %v10211_v43 = vld [vmem:[#allocation17_spill] sm:$0xff]  ;;  %v10221_v18 = vld [vmem:[#allocation35_spill] sm:$0xff]  ;;  %v10222_v19 = vld [vmem:[#allocation26_spill] sm:$0xff] }
 0x27a   :  { %v924_v14 = vmul.f32 %v902_v17, %v5747_v25  ;;  %v912_v16 = vmul.f32 %v4160_v33, %v911_v38  ;;  %v10210_v38 = vld [vmem:[#allocation16_spill] sm:$0xff]  ;;  %v10212_v25 = vld [vmem:[#allocation18_spill] sm:$0xff]  ;;  %v10220_v28 = vld [vmem:[#allocation25_spill] sm:$0xff] }
 0x27b   :  { %v10223_v30 = vld [vmem:[#allocation28_spill] sm:$0xff]  ;;  %v10224_v17 = vld [vmem:[#allocation29_spill] sm:$0xff] }
 0x27c   :  { %v6145_v27 = vadd.f32 %v925_v35, %v924_v14  ;;  %v913_v26 = vadd.f32 %v4160_v33, %v912_v16  ;;  %v90_v35 = vld [vmem:[#allocation3 + $0x18] sm:$0xff]  ;;  %v10213_v14 = vld [vmem:[#allocation27_spill] sm:$0xff] }
 0x27d   :  { %v10225_v16 = vld [vmem:[#allocation43_spill] sm:$0xff]  ;;  %v10228_v22 = vld [vmem:[#allocation33_spill] sm:$0xff] }
 0x27e   :  { %4163 = vtanh.f32 %v6145_v27  ;;  %v917_v15 = vsel %vm916_vm2, %v4160_v33, %v913_v26  ;;  %v10216_v33 = vld [vmem:[#allocation21_spill] sm:$0xff]  ;;  %v10226_v26 = vld [vmem:[#allocation30_spill] sm:$0xff] }
 0x27f   :  { %v922_v46 = vsel %vm919_vm3, %v921_v32, %v917_v15  ;;  %v10229_v15 = vld [vmem:[#allocation47_spill] sm:$0xff]  ;;  %v10230_v32 = vld [vmem:[#allocation34_spill] sm:$0xff] }
 0x284   :  { %v4164_v20 = vpop.eup %4163 }
 0x285   :  { %v6148_v60 = vmul.f32 %v4164_v20, %v922_v46  ;;  %v10231_v20 = vld [vmem:[#allocation36_spill] sm:$0xff]  ;;  %v10232_v46 = vld [vmem:[#allocation37_spill] sm:$0xff] }
 0x287   :  { %10209 = vst [vmem:[#allocation112_spill] sm:$0xff] %v6148_v60  ;;  %948 = vmatmul.f32.vlgmr.msra.gmra.mxu0 %v6148_v60  ;;  %968 = vmatmul.f32.vlgmr.msra.gmra.mxu1 %v6148_v60 }
 0x288   :  { %988 = vmatmul.f32.vlgmr.msra.gmra.mxu2 %v6148_v60  ;;  %1008 = vmatmul.f32.vlgmr.msra.gmra.mxu3 %v6148_v60  ;;  %v10234_v60 = vld [vmem:[#allocation38_spill] sm:$0xff] }
 0x289   :  { %1162 = vmatpush.msra.mxu0 %v5756_v56  ;;  %1182 = vmatpush.msra.mxu1 %v5759_v34 }
 0x28a   :  { %1202 = vmatpush.msra.mxu2 %v5762_v37  ;;  %1222 = vmatpush.msra.mxu3 %v5765_v39 }
 0x28b   :  { %1163 = vmatpush.msra.mxu0 %v5768_v41  ;;  %1183 = vmatpush.msra.mxu1 %v5771_v45 }
 0x28c   :  { %1203 = vmatpush.msra.mxu2 %v5774_v49  ;;  %1223 = vmatpush.msra.mxu3 %v5777_v50 }
 0x28d   :  { %1164 = vmatpush.msra.mxu0 %v5780_v48  ;;  %1184 = vmatpush.msra.mxu1 %v5783_v58 }
 0x28e   :  { %1204 = vmatpush.msra.mxu2 %v5786_v57  ;;  %1224 = vmatpush.msra.mxu3 %v5789_v55 }
 0x28f   :  { %1028 = vmatmul.f32.vlgmr.msrb.gmra.mxu0 %v90_v35  ;;  %1048 = vmatmul.f32.vlgmr.msrb.gmra.mxu1 %v90_v35 }
 0x290   :  { %1068 = vmatmul.f32.vlgmr.msrb.gmra.mxu2 %v90_v35  ;;  %1088 = vmatmul.f32.vlgmr.msrb.gmra.mxu3 %v90_v35  ;;  %v10233_v35 = vld [vmem:[#allocation51_spill] sm:$0xff] }
 0x291   :  { %1165 = vmatpush.msra.mxu0 %v5792_v52  ;;  %1185 = vmatpush.msra.mxu1 %v5795_v42 }
 0x292   :  { %1205 = vmatpush.msra.mxu2 %v5798_v51  ;;  %1225 = vmatpush.msra.mxu3 %v5801_v63 }
 0x293   :  { %1166 = vmatpush.msra.mxu0 %v5804_v59  ;;  %1186 = vmatpush.msra.mxu1 %v5807_v62 }
 0x294   :  { %1206 = vmatpush.msra.mxu2 %v5810_v47  ;;  %1226 = vmatpush.msra.mxu3 %v5813_v54 }
 0x295   :  { %1167 = vmatpush.msra.mxu0 %v5816_v61  ;;  %1187 = vmatpush.msra.mxu1 %v5819_v53 }
 0x296   :  { %1207 = vmatpush.msra.mxu2 %v5822_v44  ;;  %1227 = vmatpush.msra.mxu3 %v5825_v36 }
 0x297   :  { %1168 = vmatpush.msra.mxu0 %v5828_v0  ;;  %1188 = vmatpush.msra.mxu1 %v5831_v1 }
 0x298   :  { %1208 = vmatpush.msra.mxu2 %v5834_v2  ;;  %1228 = vmatpush.msra.mxu3 %v5837_v3 }
 0x299   :  { %1169 = vmatpush.msra.mxu0 %v5840_v4  ;;  %1189 = vmatpush.msra.mxu1 %v5843_v5 }
 0x29a   :  { %1209 = vmatpush.msra.mxu2 %v5846_v6  ;;  %1229 = vmatpush.msra.mxu3 %v5849_v7 }
 0x29b   :  { %1170 = vmatpush.msra.mxu0 %v5852_v8  ;;  %1190 = vmatpush.msra.mxu1 %v5855_v9 }
 0x29c   :  { %1210 = vmatpush.msra.mxu2 %v5858_v10  ;;  %1230 = vmatpush.msra.mxu3 %v5861_v11 }
 0x29d   :  { %1171 = vmatpush.msra.mxu0 %v5864_v12  ;;  %1191 = vmatpush.msra.mxu1 %v5867_v13 }
 0x29e   :  { %1211 = vmatpush.msra.mxu2 %v10210_v38  ;;  %1231 = vmatpush.msra.mxu3 %v10211_v43 }
 0x29f   :  { %1172 = vmatpush.msra.mxu0 %v10212_v25  ;;  %1192 = vmatpush.msra.mxu1 %v10213_v14 }
 0x2a0   :  { %1212 = vmatpush.msra.mxu2 %v10214_v24  ;;  %1232 = vmatpush.msra.mxu3 %v10215_v21 }
 0x2a1   :  { %1173 = vmatpush.msra.mxu0 %v10216_v33  ;;  %1193 = vmatpush.msra.mxu1 %v10217_v29 }
 0x2a2   :  { %1213 = vmatpush.msra.mxu2 %v10218_v40  ;;  %1233 = vmatpush.msra.mxu3 %v10219_v23 }
 0x2a3   :  { %1174 = vmatpush.msra.mxu0 %v10220_v28  ;;  %1194 = vmatpush.msra.mxu1 %v10221_v18 }
 0x2a4   :  { %1214 = vmatpush.msra.mxu2 %v10222_v19  ;;  %1234 = vmatpush.msra.mxu3 %v10223_v30 }
 0x2a5   :  { %1175 = vmatpush.msra.mxu0 %v10224_v17  ;;  %1195 = vmatpush.msra.mxu1 %v10225_v16  ;;  %v10235_v17 = vld [vmem:[#allocation39_spill] sm:$0xff]  ;;  %v10236_v16 = vld [vmem:[#allocation40_spill] sm:$0xff] }
 0x2a6   :  { %1215 = vmatpush.msra.mxu2 %v10226_v26  ;;  %1235 = vmatpush.msra.mxu3 %v10227_v31  ;;  %v10237_v26 = vld [vmem:[#allocation55_spill] sm:$0xff]  ;;  %v10238_v31 = vld [vmem:[#allocation41_spill] sm:$0xff] }
 0x2a7   :  { %1176 = vmatpush.msra.mxu0 %v10228_v22  ;;  %1196 = vmatpush.msra.mxu1 %v10229_v15  ;;  %v10239_v22 = vld [vmem:[#allocation42_spill] sm:$0xff]  ;;  %v10240_v15 = vld [vmem:[#allocation44_spill] sm:$0xff] }
 0x2a8   :  { %1216 = vmatpush.msra.mxu2 %v10230_v32  ;;  %1236 = vmatpush.msra.mxu3 %v10231_v20  ;;  %v10241_v32 = vld [vmem:[#allocation59_spill] sm:$0xff]  ;;  %v10242_v20 = vld [vmem:[#allocation45_spill] sm:$0xff] }
 0x2a9   :  { %1177 = vmatpush.msra.mxu0 %v10232_v46  ;;  %1197 = vmatpush.msra.mxu1 %v10233_v35  ;;  %v10243_v46 = vld [vmem:[#allocation46_spill] sm:$0xff]  ;;  %v10244_v35 = vld [vmem:[#allocation48_spill] sm:$0xff] }
 0x2aa   :  { %1217 = vmatpush.msra.mxu2 %v10234_v60  ;;  %1237 = vmatpush.msra.mxu3 %v10235_v17  ;;  %v10245_v60 = vld [vmem:[#allocation63_spill] sm:$0xff]  ;;  %v10246_v17 = vld [vmem:[#allocation49_spill] sm:$0xff] }
 0x2ab   :  { %1242 = vmatpush.msrb.mxu0 %v10236_v16  ;;  %1262 = vmatpush.msrb.mxu1 %v10237_v26  ;;  %v10247_v16 = vld [vmem:[#allocation50_spill] sm:$0xff]  ;;  %v10248_v26 = vld [vmem:[#allocation52_spill] sm:$0xff] }
 0x2ac   :  { %1282 = vmatpush.msrb.mxu2 %v10238_v31  ;;  %1302 = vmatpush.msrb.mxu3 %v10239_v22  ;;  %v10249_v31 = vld [vmem:[#allocation67_spill] sm:$0xff]  ;;  %v10250_v22 = vld [vmem:[#allocation53_spill] sm:$0xff] }
 0x2ad   :  { %1243 = vmatpush.msrb.mxu0 %v10240_v15  ;;  %1263 = vmatpush.msrb.mxu1 %v10241_v32  ;;  %v10251_v15 = vld [vmem:[#allocation54_spill] sm:$0xff]  ;;  %v10252_v32 = vld [vmem:[#allocation56_spill] sm:$0xff] }
 0x2ae   :  { %1283 = vmatpush.msrb.mxu2 %v10242_v20  ;;  %1303 = vmatpush.msrb.mxu3 %v10243_v46  ;;  %v10253_v20 = vld [vmem:[#allocation71_spill] sm:$0xff]  ;;  %v10254_v46 = vld [vmem:[#allocation57_spill] sm:$0xff] }
 0x2af   :  { %1244 = vmatpush.msrb.mxu0 %v10244_v35  ;;  %1264 = vmatpush.msrb.mxu1 %v10245_v60  ;;  %v10255_v35 = vld [vmem:[#allocation58_spill] sm:$0xff]  ;;  %v10256_v60 = vld [vmem:[#allocation60_spill] sm:$0xff] }
 0x2b0   :  { %1284 = vmatpush.msrb.mxu2 %v10246_v17  ;;  %1304 = vmatpush.msrb.mxu3 %v10247_v16  ;;  %v10257_v17 = vld [vmem:[#allocation75_spill] sm:$0xff]  ;;  %v10258_v16 = vld [vmem:[#allocation61_spill] sm:$0xff] }
 0x2b1   :  { %1245 = vmatpush.msrb.mxu0 %v10248_v26  ;;  %1265 = vmatpush.msrb.mxu1 %v10249_v31  ;;  %v10259_v26 = vld [vmem:[#allocation62_spill] sm:$0xff]  ;;  %v10260_v31 = vld [vmem:[#allocation64_spill] sm:$0xff] }
 0x2b2   :  { %1285 = vmatpush.msrb.mxu2 %v10250_v22  ;;  %1305 = vmatpush.msrb.mxu3 %v10251_v15  ;;  %v10261_v22 = vld [vmem:[#allocation79_spill] sm:$0xff]  ;;  %v10262_v15 = vld [vmem:[#allocation65_spill] sm:$0xff] }
 0x2b3   :  { %1246 = vmatpush.msrb.mxu0 %v10252_v32  ;;  %1266 = vmatpush.msrb.mxu1 %v10253_v20  ;;  %v10263_v32 = vld [vmem:[#allocation66_spill] sm:$0xff]  ;;  %v10264_v20 = vld [vmem:[#allocation68_spill] sm:$0xff] }
 0x2b4   :  { %1286 = vmatpush.msrb.mxu2 %v10254_v46  ;;  %1306 = vmatpush.msrb.mxu3 %v10255_v35  ;;  %v10265_v46 = vld [vmem:[#allocation85_spill] sm:$0xff] }
 0x2b5   :  { %1247 = vmatpush.msrb.mxu0 %v10256_v60  ;;  %1267 = vmatpush.msrb.mxu1 %v10257_v17  ;;  %v10266_v35 = vld [vmem:[#allocation69_spill] sm:$0xff]  ;;  %v10267_v60 = vld [vmem:[#allocation70_spill] sm:$0xff]  ;;  %v10268_v17 = vld [vmem:[#allocation72_spill] sm:$0xff] }
 0x2b6   :  { %1287 = vmatpush.msrb.mxu2 %v10258_v16  ;;  %1307 = vmatpush.msrb.mxu3 %v10259_v26  ;;  %v10269_v16 = vld [vmem:[#allocation89_spill] sm:$0xff] }
 0x2b7   :  { %1248 = vmatpush.msrb.mxu0 %v10260_v31  ;;  %1268 = vmatpush.msrb.mxu1 %v10261_v22  ;;  %v10270_v26 = vld [vmem:[#allocation73_spill] sm:$0xff]  ;;  %v10271_v31 = vld [vmem:[#allocation74_spill] sm:$0xff]  ;;  %v10272_v22 = vld [vmem:[#allocation76_spill] sm:$0xff] }
 0x2b8   :  { %1288 = vmatpush.msrb.mxu2 %v10262_v15  ;;  %1308 = vmatpush.msrb.mxu3 %v10263_v32  ;;  %v10273_v15 = vld [vmem:[#allocation93_spill] sm:$0xff] }
 0x2b9   :  { %1249 = vmatpush.msrb.mxu0 %v10264_v20  ;;  %1269 = vmatpush.msrb.mxu1 %v10265_v46  ;;  %v10274_v32 = vld [vmem:[#allocation77_spill] sm:$0xff]  ;;  %v10275_v20 = vld [vmem:[#allocation78_spill] sm:$0xff]  ;;  %v10276_v46 = vld [vmem:[#allocation80_spill] sm:$0xff] }
 0x2ba   :  { %1289 = vmatpush.msrb.mxu2 %v10266_v35  ;;  %1309 = vmatpush.msrb.mxu3 %v10267_v60  ;;  %v10277_v35 = vld [vmem:[#allocation97_spill] sm:$0xff] }
 0x2bb   :  { %1250 = vmatpush.msrb.mxu0 %v10268_v17  ;;  %1270 = vmatpush.msrb.mxu1 %v10269_v16  ;;  %v10278_v60 = vld [vmem:[#allocation81_spill] sm:$0xff]  ;;  %v10279_v17 = vld [vmem:[#allocation82_spill] sm:$0xff]  ;;  %v10280_v16 = vld [vmem:[#allocation83_spill] sm:$0xff] }
 0x2bc   :  { %1290 = vmatpush.msrb.mxu2 %v10270_v26  ;;  %1310 = vmatpush.msrb.mxu3 %v10271_v31  ;;  %v10281_v26 = vld [vmem:[#allocation101_spill] sm:$0xff]  ;;  %v10282_v31 = vld [vmem:[#allocation84_spill] sm:$0xff] }
 0x2bd   :  { %1251 = vmatpush.msrb.mxu0 %v10272_v22  ;;  %1271 = vmatpush.msrb.mxu1 %v10273_v15  ;;  %v10283_v22 = vld [vmem:[#allocation86_spill] sm:$0xff]  ;;  %v10284_v15 = vld [vmem:[#allocation87_spill] sm:$0xff] }
 0x2be   :  { %1291 = vmatpush.msrb.mxu2 %v10274_v32  ;;  %1311 = vmatpush.msrb.mxu3 %v10275_v20  ;;  %v10285_v32 = vld [vmem:[#allocation102_spill] sm:$0xff]  ;;  %v10286_v20 = vld [vmem:[#allocation88_spill] sm:$0xff] }
 0x2bf   :  { %1252 = vmatpush.msrb.mxu0 %v10276_v46  ;;  %1272 = vmatpush.msrb.mxu1 %v10277_v35  ;;  %v10287_v46 = vld [vmem:[#allocation90_spill] sm:$0xff]  ;;  %v10288_v35 = vld [vmem:[#allocation91_spill] sm:$0xff] }
 0x2c0   :  { %1292 = vmatpush.msrb.mxu2 %v10278_v60  ;;  %1312 = vmatpush.msrb.mxu3 %v10279_v17  ;;  %v10289_v60 = vld [vmem:[#allocation103_spill] sm:$0xff]  ;;  %v10290_v17 = vld [vmem:[#allocation92_spill] sm:$0xff] }
 0x2c1   :  { %1253 = vmatpush.msrb.mxu0 %v10280_v16  ;;  %1273 = vmatpush.msrb.mxu1 %v10281_v26  ;;  %v10291_v16 = vld [vmem:[#allocation94_spill] sm:$0xff]  ;;  %v10292_v26 = vld [vmem:[#allocation95_spill] sm:$0xff] }
 0x2c2   :  { %1293 = vmatpush.msrb.mxu2 %v10282_v31  ;;  %1313 = vmatpush.msrb.mxu3 %v10283_v22  ;;  %v10293_v31 = vld [vmem:[#allocation104_spill] sm:$0xff] }
 0x2c3   :  { %1254 = vmatpush.msrb.mxu0 %v10284_v15  ;;  %1274 = vmatpush.msrb.mxu1 %v10285_v32  ;;  %v10294_v22 = vld [vmem:[#allocation96_spill] sm:$0xff]  ;;  %v10295_v15 = vld [vmem:[#allocation98_spill] sm:$0xff]  ;;  %v10296_v32 = vld [vmem:[#allocation99_spill] sm:$0xff] }
 0x2c4   :  { %1294 = vmatpush.msrb.mxu2 %v10286_v20  ;;  %1314 = vmatpush.msrb.mxu3 %v10287_v46  ;;  %v10297_v20 = vld [vmem:[#allocation105_spill] sm:$0xff]  ;;  %v10298_v46 = vld [vmem:[#allocation100_spill] sm:$0xff] }
 0x2c5   :  { %1255 = vmatpush.msrb.mxu0 %v10288_v35  ;;  %1275 = vmatpush.msrb.mxu1 %v10289_v60  ;;  %v10299_v35 = vld [vmem:[#allocation111_spill] sm:$0xff] }
 0x2c6   :  { %1295 = vmatpush.msrb.mxu2 %v10290_v17  ;;  %1315 = vmatpush.msrb.mxu3 %v10291_v16 }
 0x2c7   :  { %1256 = vmatpush.msrb.mxu0 %v10292_v26  ;;  %1276 = vmatpush.msrb.mxu1 %v10293_v31  ;;  %v10300_v31 = vld [vmem:[#allocation106_spill] sm:$0xff] }
 0x2c8   :  { %1296 = vmatpush.msrb.mxu2 %v10294_v22  ;;  %1316 = vmatpush.msrb.mxu3 %v10295_v15  ;;  %v10301_v22 = vld [vmem:[#allocation107_spill] sm:$0xff] }
 0x2c9   :  { %1257 = vmatpush.msrb.mxu0 %v10296_v32  ;;  %1277 = vmatpush.msrb.mxu1 %v10297_v20 }
 0x2ca   :  { %1297 = vmatpush.msrb.mxu2 %v10298_v46  ;;  %1317 = vmatpush.msrb.mxu3 %v10299_v35  ;;  %v10302_v35 = vld [vmem:[#allocation108_spill] sm:$0xff] }
 0x304   :  { %v949_v60 = vpop.f32.mrf.mxu0  ;;  %v969_v17 = vpop.f32.mrf.mxu1 }
 0x30b   :  { %v1009_v30 = vpop.f32.mrf.mxu3  ;;  %v989_v32 = vpop.f32.mrf.mxu2 }
 0x30c   :  { %v1029_v16 = vpop.f32.mrf.mxu0  ;;  %v1049_v19 = vpop.f32.mrf.mxu1 }
 0x30d   :  { %v1030_v26 = vadd.f32 %v1029_v16, %v949_v60  ;;  %v1050_v18 = vadd.f32 %v1049_v19, %v969_v17 }
 0x30f   :  { %v1092_v28 = vadd.f32 %v1030_v26, %v10300_v31  ;;  %v1093_v23 = vadd.f32 %v1050_v18, %v10301_v22  ;;  %v10303_v26 = vld [vmem:[#allocation109_spill] sm:$0xff] }
 0x311   :  { %v1096_v15 = vsub.f32 0.0, %v1092_v28  ;;  %v1115_v40 = vsub.f32 0.0, %v1093_v23 }
 0x313   :  { %v1097_v29 = vmul.f32 1.442695, %v1096_v15  ;;  %v1116_v20 = vmul.f32 1.442695, %v1115_v40  ;;  %v1089_v33 = vpop.f32.mrf.mxu3  ;;  %v1069_v16 = vpop.f32.mrf.mxu2 }
 0x314   :  { %v1090_v46 = vadd.f32 %v1089_v33, %v1009_v30  ;;  %v1070_v23 = vadd.f32 %v1069_v16, %v989_v32 }
 0x315   :  { %4165 = vpow2.f32 %v1097_v29 }
 0x316   :  { %4167 = vpow2.f32 %v1116_v20  ;;  %v1095_v21 = vadd.f32 %v1090_v46, %v10302_v35  ;;  %v1094_v33 = vadd.f32 %v1070_v23, %v10303_v26 }
 0x318   :  { %v1135_v24 = vsub.f32 0.0, %v1095_v21 }
 0x31a   :  { %v1136_v14 = vmul.f32 1.442695, %v1135_v24 }
 0x31b   :  { %v4166_v25 = vpop.eup %4165 }
 0x31c   :  { %v4168_v60 = vpop.eup %4167  ;;  %v1099_v19 = vadd.f32 1.0, %v4166_v25  ;;  %4169 = vpow2.f32 %v1136_v14 }
 0x31d   :  { %v1118_v17 = vadd.f32 1.0, %v4168_v60 }
 0x31e   :  { %4171 = vrcp.f32 %v1099_v19  ;;  %v1111_v20 = vand.u32 2147483648, %v1099_v19  ;;  %v1109_v46 = vand.u32 2147483647, %v1099_v19  ;;  %vm1105_vm6 = vweird.f32 %v1099_v19 }
 0x31f   :  { %4173 = vrcp.f32 %v1118_v17  ;;  %v1130_v25 = vand.u32 2147483648, %v1118_v17  ;;  %v1128_v32 = vand.u32 2147483647, %v1118_v17  ;;  %vm1124_vm7 = vweird.f32 %v1118_v17 }
 0x320   :  { %v1112_v23 = vor.u32 1.1754944e-38, %v1111_v20  ;;  %vm1110_vm10 = vcmp.eq.f32.partialorder %v1109_v46, 8.507059e+37 }
 0x321   :  { %vm1129_vm11 = vcmp.eq.f32.partialorder %v1128_v32, 8.507059e+37  ;;  %v10349_v32 = vld [vmem:[#allocation57_spill] sm:$0xff] }
 0x322   :  { %v4170_v28 = vpop.eup %4169 }
 0x323   :  { %v1138_v18 = vadd.f32 1.0, %v4170_v28 }
 0x324   :  { %v4172_v40 = vpop.eup %4171 }
 0x325   :  { %v4174_v29 = vpop.eup %4173  ;;  %v1101_v30 = vmul.f32 %v4172_v40, %v1099_v19  ;;  %4175 = vrcp.f32 %v1138_v18  ;;  %vm1106_vm4 = vweird.f32 %v4172_v40  ;;  %v1150_v20 = vand.u32 2147483648, %v1138_v18 }
 0x326   :  { %v1120_v15 = vmul.f32 %v4174_v29, %v1118_v17  ;;  %4177 = vtanh.f32 %v1094_v33  ;;  %vm1125_vm5 = vweird.f32 %v4174_v29  ;;  %vm1107_vm8 = vmor %vm1105_vm6, %vm1106_vm4  ;;  %vm1144_vm13 = vweird.f32 %v1138_v18 }
 0x327   :  { %v1102_v21 = vsub.f32 1.0, %v1101_v30  ;;  %vm1126_vm9 = vmor %vm1124_vm7, %vm1125_vm5  ;;  %v1131_v30 = vor.u32 1.1754944e-38, %v1130_v25  ;;  %v1151_v46 = vor.u32 1.1754944e-38, %v1150_v20  ;;  %v10360_v20 = vld [vmem:[#allocation85_spill] sm:$0xff] }
 0x328   :  { %v1121_v24 = vsub.f32 1.0, %v1120_v15 }
 0x329   :  { %v1103_v14 = vmul.f32 %v4172_v40, %v1102_v21 }
 0x32a   :  { %v1122_v60 = vmul.f32 %v4174_v29, %v1121_v24 }
 0x32b   :  { %v4176_v16 = vpop.eup %4175  ;;  %v1104_v28 = vadd.f32 %v4172_v40, %v1103_v14 }
 0x32c   :  { %v1123_v26 = vadd.f32 %v4174_v29, %v1122_v60  ;;  %v1140_v35 = vmul.f32 %v4176_v16, %v1138_v18  ;;  %v4178_v33 = vpop.eup %4177  ;;  %vm1145_vm12 = vweird.f32 %v4176_v16  ;;  %v10348_v60 = vld [vmem:[#allocation71_spill] sm:$0xff] }
 0x32d   :  { %v1108_v15 = vsel %vm1107_vm8, %v4172_v40, %v1104_v28  ;;  %v1148_v40 = vand.u32 2147483647, %v1138_v18  ;;  %vm1146_vm14 = vmor %vm1144_vm13, %vm1145_vm12  ;;  %v10347_v18 = vld [vmem:[#allocation56_spill] sm:$0xff] }
 0x32e   :  { %v1113_v22 = vsel %vm1110_vm10, %v1112_v23, %v1108_v15  ;;  %v1127_v21 = vsel %vm1126_vm9, %v4174_v29, %v1123_v26  ;;  %v1141_v31 = vsub.f32 1.0, %v1140_v35  ;;  %v10351_v28 = vld [vmem:[#allocation60_spill] sm:$0xff]  ;;  %v10352_v23 = vld [vmem:[#allocation75_spill] sm:$0xff]  ;;  %v10354_v15 = vld [vmem:[#allocation62_spill] sm:$0xff] }
 0x32f   :  { %v1132_v24 = vsel %vm1129_vm11, %v1131_v30, %v1127_v21  ;;  %v1155_v43 = vmul.f32 %v4178_v33, %v1113_v22  ;;  %vm1149_vm15 = vcmp.eq.f32.partialorder %v1148_v40, 8.507059e+37  ;;  %v10346_v22 = vld [vmem:[#allocation54_spill] sm:$0xff]  ;;  %v10353_v30 = vld [vmem:[#allocation61_spill] sm:$0xff]  ;;  %v10355_v33 = vld [vmem:[#allocation64_spill] sm:$0xff] }
 0x330   :  { %v1154_v38 = vmul.f32 %v1132_v24, %v6145_v27  ;;  %v1142_v14 = vmul.f32 %v4176_v16, %v1141_v31  ;;  %v91_v27 = vld [vmem:[#allocation3 + $0x20] sm:$0xff]  ;;  %v10345_v31 = vld [vmem:[#allocation53_spill] sm:$0xff]  ;;  %v10356_v21 = vld [vmem:[#allocation79_spill] sm:$0xff] }
 0x331   :  { %v10357_v24 = vld [vmem:[#allocation65_spill] sm:$0xff] }
 0x332   :  { %v6287_v19 = vadd.f32 %v1155_v43, %v1154_v38  ;;  %v1143_v17 = vadd.f32 %v4176_v16, %v1142_v14  ;;  %v10343_v38 = vld [vmem:[#allocation52_spill] sm:$0xff]  ;;  %v10344_v43 = vld [vmem:[#allocation67_spill] sm:$0xff]  ;;  %v10358_v14 = vld [vmem:[#allocation66_spill] sm:$0xff] }
 0x333   :  { %v10361_v40 = vld [vmem:[#allocation69_spill] sm:$0xff] }
 0x334   :  { %4179 = vtanh.f32 %v6287_v19  ;;  %v1147_v25 = vsel %vm1146_vm14, %v4176_v16, %v1143_v17  ;;  %v10350_v16 = vld [vmem:[#allocation58_spill] sm:$0xff]  ;;  %v10359_v17 = vld [vmem:[#allocation68_spill] sm:$0xff] }
 0x335   :  { %v1152_v35 = vsel %vm1149_vm15, %v1151_v46, %v1147_v25  ;;  %v10362_v25 = vld [vmem:[#allocation70_spill] sm:$0xff]  ;;  %v10363_v46 = vld [vmem:[#allocation72_spill] sm:$0xff] }
 0x33a   :  { %v4180_v26 = vpop.eup %4179 }
 0x33b   :  { %v6290_v29 = vmul.f32 %v4180_v26, %v1152_v35  ;;  %v10364_v26 = vld [vmem:[#allocation89_spill] sm:$0xff] }
 0x33c   :  { %v10365_v35 = vld [vmem:[#allocation73_spill] sm:$0xff] }
 0x33d   :  { %10304 = vst [vmem:[#allocation113_spill] sm:$0xff] %v6290_v29  ;;  %1178 = vmatmul.f32.vlgmr.msra.gmra.mxu0 %v6290_v29  ;;  %1198 = vmatmul.f32.vlgmr.msra.gmra.mxu1 %v6290_v29 }
 0x33e   :  { %1218 = vmatmul.f32.vlgmr.msra.gmra.mxu2 %v6290_v29  ;;  %1238 = vmatmul.f32.vlgmr.msra.gmra.mxu3 %v6290_v29  ;;  %v6612_v29 = vld [vmem:[#allocation8 + $0x30] sm:$0xff] }
 0x33f   :  { %1392 = vmatpush.msra.mxu0 %v5756_v56  ;;  %1412 = vmatpush.msra.mxu1 %v5759_v34  ;;  %v10305_v56 = vld [vmem:[#allocation16_spill] sm:$0xff]  ;;  %v10306_v34 = vld [vmem:[#allocation17_spill] sm:$0xff] }
 0x340   :  { %1432 = vmatpush.msra.mxu2 %v5762_v37  ;;  %1452 = vmatpush.msra.mxu3 %v5765_v39  ;;  %v10307_v37 = vld [vmem:[#allocation18_spill] sm:$0xff]  ;;  %v10308_v39 = vld [vmem:[#allocation27_spill] sm:$0xff] }
 0x341   :  { %1393 = vmatpush.msra.mxu0 %v5768_v41  ;;  %1413 = vmatpush.msra.mxu1 %v5771_v45  ;;  %v10309_v41 = vld [vmem:[#allocation19_spill] sm:$0xff]  ;;  %v10310_v45 = vld [vmem:[#allocation20_spill] sm:$0xff] }
 0x342   :  { %1433 = vmatpush.msra.mxu2 %v5774_v49  ;;  %1453 = vmatpush.msra.mxu3 %v5777_v50  ;;  %v10311_v49 = vld [vmem:[#allocation21_spill] sm:$0xff]  ;;  %v10312_v50 = vld [vmem:[#allocation31_spill] sm:$0xff] }
 0x343   :  { %1394 = vmatpush.msra.mxu0 %v5780_v48  ;;  %1414 = vmatpush.msra.mxu1 %v5783_v58  ;;  %v10313_v48 = vld [vmem:[#allocation22_spill] sm:$0xff]  ;;  %v10314_v58 = vld [vmem:[#allocation24_spill] sm:$0xff] }
 0x344   :  { %1434 = vmatpush.msra.mxu2 %v5786_v57  ;;  %1454 = vmatpush.msra.mxu3 %v5789_v55  ;;  %v10315_v57 = vld [vmem:[#allocation25_spill] sm:$0xff]  ;;  %v10316_v55 = vld [vmem:[#allocation35_spill] sm:$0xff] }
 0x345   :  { %1258 = vmatmul.f32.vlgmr.msrb.gmra.mxu0 %v91_v27  ;;  %1278 = vmatmul.f32.vlgmr.msrb.gmra.mxu1 %v91_v27 }
 0x346   :  { %1298 = vmatmul.f32.vlgmr.msrb.gmra.mxu2 %v91_v27  ;;  %1318 = vmatmul.f32.vlgmr.msrb.gmra.mxu3 %v91_v27  ;;  %v10366_v27 = vld [vmem:[#allocation74_spill] sm:$0xff] }
 0x347   :  { %1395 = vmatpush.msra.mxu0 %v5792_v52  ;;  %1415 = vmatpush.msra.mxu1 %v5795_v42  ;;  %v10317_v52 = vld [vmem:[#allocation26_spill] sm:$0xff]  ;;  %v10318_v42 = vld [vmem:[#allocation28_spill] sm:$0xff] }
 0x348   :  { %1435 = vmatpush.msra.mxu2 %v5798_v51  ;;  %1455 = vmatpush.msra.mxu3 %v5801_v63  ;;  %v10319_v51 = vld [vmem:[#allocation29_spill] sm:$0xff]  ;;  %v10320_v63 = vld [vmem:[#allocation43_spill] sm:$0xff] }
 0x349   :  { %1396 = vmatpush.msra.mxu0 %v5804_v59  ;;  %1416 = vmatpush.msra.mxu1 %v5807_v62  ;;  %v10321_v59 = vld [vmem:[#allocation30_spill] sm:$0xff]  ;;  %v10322_v62 = vld [vmem:[#allocation32_spill] sm:$0xff] }
 0x34a   :  { %1436 = vmatpush.msra.mxu2 %v5810_v47  ;;  %1456 = vmatpush.msra.mxu3 %v5813_v54  ;;  %v10323_v47 = vld [vmem:[#allocation33_spill] sm:$0xff]  ;;  %v10324_v54 = vld [vmem:[#allocation47_spill] sm:$0xff] }
 0x34b   :  { %1397 = vmatpush.msra.mxu0 %v5816_v61  ;;  %1417 = vmatpush.msra.mxu1 %v5819_v53  ;;  %v10325_v61 = vld [vmem:[#allocation34_spill] sm:$0xff]  ;;  %v10326_v53 = vld [vmem:[#allocation36_spill] sm:$0xff] }
 0x34c   :  { %1437 = vmatpush.msra.mxu2 %v5822_v44  ;;  %1457 = vmatpush.msra.mxu3 %v5825_v36  ;;  %v10327_v44 = vld [vmem:[#allocation37_spill] sm:$0xff]  ;;  %v10328_v36 = vld [vmem:[#allocation51_spill] sm:$0xff]  ;;  %10420 = vst [vmem:[#allocation36_spill] sm:$0xff] %v6612_v29 }
 0x34d   :  { %1398 = vmatpush.msra.mxu0 %v5828_v0  ;;  %1418 = vmatpush.msra.mxu1 %v5831_v1  ;;  %v10329_v0 = vld [vmem:[#allocation38_spill] sm:$0xff]  ;;  %v10330_v1 = vld [vmem:[#allocation39_spill] sm:$0xff] }
 0x34e   :  { %1438 = vmatpush.msra.mxu2 %v5834_v2  ;;  %1458 = vmatpush.msra.mxu3 %v5837_v3  ;;  %v10331_v2 = vld [vmem:[#allocation40_spill] sm:$0xff]  ;;  %v10332_v3 = vld [vmem:[#allocation55_spill] sm:$0xff] }
 0x34f   :  { %1399 = vmatpush.msra.mxu0 %v5840_v4  ;;  %1419 = vmatpush.msra.mxu1 %v5843_v5  ;;  %v10333_v4 = vld [vmem:[#allocation41_spill] sm:$0xff]  ;;  %v10334_v5 = vld [vmem:[#allocation42_spill] sm:$0xff] }
 0x350   :  { %1439 = vmatpush.msra.mxu2 %v5846_v6  ;;  %1459 = vmatpush.msra.mxu3 %v5849_v7  ;;  %v10335_v6 = vld [vmem:[#allocation44_spill] sm:$0xff]  ;;  %v10336_v7 = vld [vmem:[#allocation59_spill] sm:$0xff] }
 0x351   :  { %1400 = vmatpush.msra.mxu0 %v5852_v8  ;;  %1420 = vmatpush.msra.mxu1 %v5855_v9  ;;  %v10337_v8 = vld [vmem:[#allocation45_spill] sm:$0xff]  ;;  %v10338_v9 = vld [vmem:[#allocation46_spill] sm:$0xff] }
 0x352   :  { %1440 = vmatpush.msra.mxu2 %v5858_v10  ;;  %1460 = vmatpush.msra.mxu3 %v5861_v11  ;;  %v10339_v10 = vld [vmem:[#allocation48_spill] sm:$0xff]  ;;  %v10340_v11 = vld [vmem:[#allocation63_spill] sm:$0xff] }
 0x353   :  { %1401 = vmatpush.msra.mxu0 %v5864_v12  ;;  %1421 = vmatpush.msra.mxu1 %v5867_v13  ;;  %v10341_v12 = vld [vmem:[#allocation49_spill] sm:$0xff]  ;;  %v10342_v13 = vld [vmem:[#allocation50_spill] sm:$0xff] }
 0x354   :  { %1441 = vmatpush.msra.mxu2 %v10305_v56  ;;  %1461 = vmatpush.msra.mxu3 %v10306_v34  ;;  %v10367_v56 = vld [vmem:[#allocation76_spill] sm:$0xff]  ;;  %v10368_v34 = vld [vmem:[#allocation93_spill] sm:$0xff] }
 0x355   :  { %1402 = vmatpush.msra.mxu0 %v10307_v37  ;;  %1422 = vmatpush.msra.mxu1 %v10308_v39  ;;  %v10369_v37 = vld [vmem:[#allocation77_spill] sm:$0xff]  ;;  %v10370_v39 = vld [vmem:[#allocation78_spill] sm:$0xff] }
 0x356   :  { %1442 = vmatpush.msra.mxu2 %v10309_v41  ;;  %1462 = vmatpush.msra.mxu3 %v10310_v45  ;;  %v10371_v41 = vld [vmem:[#allocation80_spill] sm:$0xff]  ;;  %v10372_v45 = vld [vmem:[#allocation97_spill] sm:$0xff] }
 0x357   :  { %1403 = vmatpush.msra.mxu0 %v10311_v49  ;;  %1423 = vmatpush.msra.mxu1 %v10312_v50  ;;  %v10373_v49 = vld [vmem:[#allocation81_spill] sm:$0xff]  ;;  %v10374_v50 = vld [vmem:[#allocation82_spill] sm:$0xff] }
 0x358   :  { %1443 = vmatpush.msra.mxu2 %v10313_v48  ;;  %1463 = vmatpush.msra.mxu3 %v10314_v58  ;;  %v10375_v48 = vld [vmem:[#allocation83_spill] sm:$0xff]  ;;  %v10376_v58 = vld [vmem:[#allocation101_spill] sm:$0xff] }
 0x359   :  { %1404 = vmatpush.msra.mxu0 %v10315_v57  ;;  %1424 = vmatpush.msra.mxu1 %v10316_v55  ;;  %v10377_v57 = vld [vmem:[#allocation84_spill] sm:$0xff]  ;;  %v10378_v55 = vld [vmem:[#allocation86_spill] sm:$0xff] }
 0x35a   :  { %1444 = vmatpush.msra.mxu2 %v10317_v52  ;;  %1464 = vmatpush.msra.mxu3 %v10318_v42  ;;  %v10379_v52 = vld [vmem:[#allocation87_spill] sm:$0xff]  ;;  %v10380_v42 = vld [vmem:[#allocation102_spill] sm:$0xff] }
 0x35b   :  { %1405 = vmatpush.msra.mxu0 %v10319_v51  ;;  %1425 = vmatpush.msra.mxu1 %v10320_v63  ;;  %v10381_v51 = vld [vmem:[#allocation88_spill] sm:$0xff]  ;;  %v10382_v63 = vld [vmem:[#allocation90_spill] sm:$0xff] }
 0x35c   :  { %1445 = vmatpush.msra.mxu2 %v10321_v59  ;;  %1465 = vmatpush.msra.mxu3 %v10322_v62  ;;  %v10383_v59 = vld [vmem:[#allocation91_spill] sm:$0xff] }
 0x35d   :  { %1406 = vmatpush.msra.mxu0 %v10323_v47  ;;  %1426 = vmatpush.msra.mxu1 %v10324_v54  ;;  %v10384_v62 = vld [vmem:[#allocation103_spill] sm:$0xff]  ;;  %v10385_v47 = vld [vmem:[#allocation92_spill] sm:$0xff]  ;;  %v10386_v54 = vld [vmem:[#allocation94_spill] sm:$0xff] }
 0x35e   :  { %1446 = vmatpush.msra.mxu2 %v10325_v61  ;;  %1466 = vmatpush.msra.mxu3 %v10326_v53  ;;  %v10387_v61 = vld [vmem:[#allocation95_spill] sm:$0xff]  ;;  %v10388_v53 = vld [vmem:[#allocation104_spill] sm:$0xff] }
 0x35f   :  { %1407 = vmatpush.msra.mxu0 %v10327_v44  ;;  %1427 = vmatpush.msra.mxu1 %v10328_v36  ;;  %v10389_v44 = vld [vmem:[#allocation96_spill] sm:$0xff]  ;;  %v10390_v36 = vld [vmem:[#allocation98_spill] sm:$0xff] }
 0x360   :  { %1447 = vmatpush.msra.mxu2 %v10329_v0  ;;  %1467 = vmatpush.msra.mxu3 %v10330_v1  ;;  %v10391_v0 = vld [vmem:[#allocation99_spill] sm:$0xff]  ;;  %v10392_v1 = vld [vmem:[#allocation105_spill] sm:$0xff] }
 0x361   :  { %1472 = vmatpush.msrb.mxu0 %v10331_v2  ;;  %1492 = vmatpush.msrb.mxu1 %v10332_v3  ;;  %v10393_v2 = vld [vmem:[#allocation100_spill] sm:$0xff]  ;;  %v10394_v3 = vld [vmem:[#allocation111_spill] sm:$0xff] }
 0x362   :  { %1512 = vmatpush.msrb.mxu2 %v10333_v4  ;;  %1532 = vmatpush.msrb.mxu3 %v10334_v5 }
 0x363   :  { %1473 = vmatpush.msrb.mxu0 %v10335_v6  ;;  %1493 = vmatpush.msrb.mxu1 %v10336_v7 }
 0x364   :  { %1513 = vmatpush.msrb.mxu2 %v10337_v8  ;;  %1533 = vmatpush.msrb.mxu3 %v10338_v9 }
 0x365   :  { %1474 = vmatpush.msrb.mxu0 %v10339_v10  ;;  %1494 = vmatpush.msrb.mxu1 %v10340_v11  ;;  %v10395_v11 = vld [vmem:[#allocation106_spill] sm:$0xff] }
 0x366   :  { %1514 = vmatpush.msrb.mxu2 %v10341_v12  ;;  %1534 = vmatpush.msrb.mxu3 %v10342_v13  ;;  %v10396_v13 = vld [vmem:[#allocation107_spill] sm:$0xff] }
 0x367   :  { %1475 = vmatpush.msrb.mxu0 %v10343_v38  ;;  %1495 = vmatpush.msrb.mxu1 %v10344_v43 }
 0x368   :  { %1515 = vmatpush.msrb.mxu2 %v10345_v31  ;;  %1535 = vmatpush.msrb.mxu3 %v10346_v22 }
 0x369   :  { %1476 = vmatpush.msrb.mxu0 %v10347_v18  ;;  %1496 = vmatpush.msrb.mxu1 %v10348_v60 }
 0x36a   :  { %1516 = vmatpush.msrb.mxu2 %v10349_v32  ;;  %1536 = vmatpush.msrb.mxu3 %v10350_v16 }
 0x36b   :  { %1477 = vmatpush.msrb.mxu0 %v10351_v28  ;;  %1497 = vmatpush.msrb.mxu1 %v10352_v23  ;;  %v10397_v28 = vld [vmem:[#allocation108_spill] sm:$0xff] }
 0x36c   :  { %1517 = vmatpush.msrb.mxu2 %v10353_v30  ;;  %1537 = vmatpush.msrb.mxu3 %v10354_v15 }
 0x36d   :  { %1478 = vmatpush.msrb.mxu0 %v10355_v33  ;;  %1498 = vmatpush.msrb.mxu1 %v10356_v21 }
 0x36e   :  { %1518 = vmatpush.msrb.mxu2 %v10357_v24  ;;  %1538 = vmatpush.msrb.mxu3 %v10358_v14 }
 0x36f   :  { %1479 = vmatpush.msrb.mxu0 %v10359_v17  ;;  %1499 = vmatpush.msrb.mxu1 %v10360_v20 }
 0x370   :  { %1519 = vmatpush.msrb.mxu2 %v10361_v40  ;;  %1539 = vmatpush.msrb.mxu3 %v10362_v25 }
 0x371   :  { %1480 = vmatpush.msrb.mxu0 %v10363_v46  ;;  %1500 = vmatpush.msrb.mxu1 %v10364_v26  ;;  %v10398_v26 = vld [vmem:[#allocation109_spill] sm:$0xff] }
 0x372   :  { %1520 = vmatpush.msrb.mxu2 %v10365_v35  ;;  %1540 = vmatpush.msrb.mxu3 %v10366_v27 }
 0x373   :  { %1481 = vmatpush.msrb.mxu0 %v10367_v56  ;;  %1501 = vmatpush.msrb.mxu1 %v10368_v34 }
 0x374   :  { %1521 = vmatpush.msrb.mxu2 %v10369_v37  ;;  %1541 = vmatpush.msrb.mxu3 %v10370_v39 }
 0x375   :  { %1482 = vmatpush.msrb.mxu0 %v10371_v41  ;;  %1502 = vmatpush.msrb.mxu1 %v10372_v45 }
 0x376   :  { %1522 = vmatpush.msrb.mxu2 %v10373_v49  ;;  %1542 = vmatpush.msrb.mxu3 %v10374_v50 }
 0x377   :  { %1483 = vmatpush.msrb.mxu0 %v10375_v48  ;;  %1503 = vmatpush.msrb.mxu1 %v10376_v58 }
 0x378   :  { %1523 = vmatpush.msrb.mxu2 %v10377_v57  ;;  %1543 = vmatpush.msrb.mxu3 %v10378_v55 }
 0x379   :  { %1484 = vmatpush.msrb.mxu0 %v10379_v52  ;;  %1504 = vmatpush.msrb.mxu1 %v10380_v42 }
 0x37a   :  { %1524 = vmatpush.msrb.mxu2 %v10381_v51  ;;  %1544 = vmatpush.msrb.mxu3 %v10382_v63 }
 0x37b   :  { %1485 = vmatpush.msrb.mxu0 %v10383_v59  ;;  %1505 = vmatpush.msrb.mxu1 %v10384_v62 }
 0x37c   :  { %1525 = vmatpush.msrb.mxu2 %v10385_v47  ;;  %1545 = vmatpush.msrb.mxu3 %v10386_v54 }
 0x37d   :  { %1486 = vmatpush.msrb.mxu0 %v10387_v61  ;;  %1506 = vmatpush.msrb.mxu1 %v10388_v53 }
 0x37e   :  { %1526 = vmatpush.msrb.mxu2 %v10389_v44  ;;  %1546 = vmatpush.msrb.mxu3 %v10390_v36 }
 0x37f   :  { %1487 = vmatpush.msrb.mxu0 %v10391_v0  ;;  %1507 = vmatpush.msrb.mxu1 %v10392_v1 }
 0x380   :  { %1527 = vmatpush.msrb.mxu2 %v10393_v2  ;;  %1547 = vmatpush.msrb.mxu3 %v10394_v3 }
 0x3ba   :  { %v1179_v4 = vpop.f32.mrf.mxu0  ;;  %v1199_v5 = vpop.f32.mrf.mxu1 }
 0x3c1   :  { %v1239_v6 = vpop.f32.mrf.mxu3  ;;  %v1219_v22 = vpop.f32.mrf.mxu2 }
 0x3c2   :  { %v1259_v7 = vpop.f32.mrf.mxu0  ;;  %v1279_v8 = vpop.f32.mrf.mxu1 }
 0x3c3   :  { %v1260_v9 = vadd.f32 %v1259_v7, %v1179_v4  ;;  %v1280_v10 = vadd.f32 %v1279_v8, %v1199_v5 }
 0x3c5   :  { %v1322_v12 = vadd.f32 %v1260_v9, %v10395_v11  ;;  %v1323_v38 = vadd.f32 %v1280_v10, %v10396_v13  ;;  %v6441_v10 = vld [vmem:[#allocation8 + $0x1e8] sm:$0xff] }
 0x3c7   :  { %v1326_v43 = vsub.f32 0.0, %v1322_v12  ;;  %v1345_v31 = vsub.f32 0.0, %v1323_v38  ;;  %v6444_v12 = vld [vmem:[#allocation8 + $0x1f0] sm:$0xff]  ;;  %v6447_v38 = vld [vmem:[#allocation8 + $0x1f8] sm:$0xff] }
 0x3c9   :  { %v1327_v18 = vmul.f32 1.442695, %v1326_v43  ;;  %v1346_v60 = vmul.f32 1.442695, %v1345_v31  ;;  %v1319_v32 = vpop.f32.mrf.mxu3  ;;  %v1299_v17 = vpop.f32.mrf.mxu2  ;;  %v6450_v43 = vld [vmem:[#allocation8 + $0x1c0] sm:$0xff]  ;;  %v6453_v31 = vld [vmem:[#allocation8 + $0x1c8] sm:$0xff] }
 0x3ca   :  { %v1320_v16 = vadd.f32 %v1319_v32, %v1239_v6  ;;  %v1300_v20 = vadd.f32 %v1299_v17, %v1219_v22  ;;  %v92_v22 = vld [vmem:[#allocation3 + $0x28] sm:$0xff]  ;;  %v6462_v32 = vld [vmem:[#allocation8 + $0x1a0] sm:$0xff] }
 0x3cb   :  { %4181 = vpow2.f32 %v1327_v18  ;;  %v6456_v18 = vld [vmem:[#allocation8 + $0x1d0] sm:$0xff]  ;;  %v6489_v17 = vld [vmem:[#allocation8 + $0x168] sm:$0xff] }
 0x3cc   :  { %4183 = vpow2.f32 %v1346_v60  ;;  %v1325_v23 = vadd.f32 %v1320_v16, %v10397_v28  ;;  %v1324_v35 = vadd.f32 %v1300_v20, %v10398_v26  ;;  %v6459_v60 = vld [vmem:[#allocation8 + $0x1d8] sm:$0xff]  ;;  %v6465_v16 = vld [vmem:[#allocation8 + $0x1a8] sm:$0xff]  ;;  %v6492_v20 = vld [vmem:[#allocation8 + $0x170] sm:$0xff] }
 0x3ce   :  { %v1365_v30 = vsub.f32 0.0, %v1325_v23  ;;  %v6468_v23 = vld [vmem:[#allocation8 + $0x1b0] sm:$0xff] }
 0x3d0   :  { %v1366_v15 = vmul.f32 1.442695, %v1365_v30  ;;  %v6471_v30 = vld [vmem:[#allocation8 + $0x1b8] sm:$0xff] }
 0x3d1   :  { %v4182_v33 = vpop.eup %4181 }
 0x3d2   :  { %v4184_v21 = vpop.eup %4183  ;;  %v1329_v24 = vadd.f32 1.0, %v4182_v33  ;;  %4185 = vpow2.f32 %v1366_v15  ;;  %v6474_v15 = vld [vmem:[#allocation8 + $0x180] sm:$0xff]  ;;  %v6477_v33 = vld [vmem:[#allocation8 + $0x188] sm:$0xff] }
 0x3d3   :  { %v1348_v14 = vadd.f32 1.0, %v4184_v21  ;;  %v6480_v21 = vld [vmem:[#allocation8 + $0x190] sm:$0xff] }
 0x3d4   :  { %4187 = vrcp.f32 %v1329_v24  ;;  %v1341_v41 = vand.u32 2147483648, %v1329_v24  ;;  %v1339_v50 = vand.u32 2147483647, %v1329_v24  ;;  %vm1335_vm2 = vweird.f32 %v1329_v24 }
 0x3d5   :  { %4189 = vrcp.f32 %v1348_v14  ;;  %v1360_v45 = vand.u32 2147483648, %v1348_v14  ;;  %v1358_v58 = vand.u32 2147483647, %v1348_v14  ;;  %vm1354_vm3 = vweird.f32 %v1348_v14 }
 0x3d6   :  { %v1342_v52 = vor.u32 1.1754944e-38, %v1341_v41  ;;  %vm1340_vm6 = vcmp.eq.f32.partialorder %v1339_v50, 8.507059e+37  ;;  %v6522_v41 = vld [vmem:[#allocation8 + $0x100] sm:$0xff]  ;;  %v6531_v50 = vld [vmem:[#allocation8 + $0x118] sm:$0xff] }
 0x3d7   :  { %v1361_v63 = vor.u32 1.1754944e-38, %v1360_v45  ;;  %vm1359_vm7 = vcmp.eq.f32.partialorder %v1358_v58, 8.507059e+37  ;;  %v6525_v45 = vld [vmem:[#allocation8 + $0x108] sm:$0xff] }
 0x3d8   :  { %v4186_v40 = vpop.eup %4185  ;;  %v6537_v58 = vld [vmem:[#allocation8 + $0xe8] sm:$0xff] }
 0x3d9   :  { %v1368_v25 = vadd.f32 1.0, %v4186_v40  ;;  %v6495_v40 = vld [vmem:[#allocation8 + $0x178] sm:$0xff] }
 0x3da   :  { %v4188_v46 = vpop.eup %4187 }
 0x3db   :  { %v4190_v27 = vpop.eup %4189  ;;  %v1331_v56 = vmul.f32 %v4188_v46, %v1329_v24  ;;  %4191 = vrcp.f32 %v1368_v25  ;;  %vm1336_vm0 = vweird.f32 %v4188_v46  ;;  %v1380_v3 = vand.u32 2147483648, %v1368_v25  ;;  %v6483_v24 = vld [vmem:[#allocation8 + $0x198] sm:$0xff] }
 0x3dc   :  { %v1350_v34 = vmul.f32 %v4190_v27, %v1348_v14  ;;  %4193 = vtanh.f32 %v1324_v35  ;;  %vm1355_vm1 = vweird.f32 %v4190_v27  ;;  %vm1337_vm4 = vmor %vm1335_vm2, %vm1336_vm0  ;;  %vm1374_vm9 = vweird.f32 %v1368_v25  ;;  %v6486_v14 = vld [vmem:[#allocation8 + $0x160] sm:$0xff]  ;;  %v6504_v35 = vld [vmem:[#allocation8 + $0x150] sm:$0xff] }
 0x3dd   :  { %v1332_v37 = vsub.f32 1.0, %v1331_v56  ;;  %vm1356_vm5 = vmor %vm1354_vm3, %vm1355_vm1  ;;  %v1378_v4 = vand.u32 2147483647, %v1368_v25  ;;  %v1381_v6 = vor.u32 1.1754944e-38, %v1380_v3  ;;  %v6510_v56 = vld [vmem:[#allocation8 + $0x120] sm:$0xff]  ;;  %v6588_v3 = vld [vmem:[#allocation8 + $0x70] sm:$0xff] }
 0x3de   :  { %v1351_v39 = vsub.f32 1.0, %v1350_v34  ;;  %v6513_v34 = vld [vmem:[#allocation8 + $0x128] sm:$0xff]  ;;  %10412 = vst [vmem:[#allocation28_spill] sm:$0xff] %v6588_v3 }
 0x3df   :  { %v1333_v49 = vmul.f32 %v4188_v46, %v1332_v37  ;;  %vm1379_vm11 = vcmp.eq.f32.partialorder %v1378_v4, 8.507059e+37  ;;  %v6516_v37 = vld [vmem:[#allocation8 + $0x130] sm:$0xff]  ;;  %v6591_v4 = vld [vmem:[#allocation8 + $0x78] sm:$0xff] }
 0x3e0   :  { %v1352_v48 = vmul.f32 %v4190_v27, %v1351_v39  ;;  %v6519_v39 = vld [vmem:[#allocation8 + $0x138] sm:$0xff]  ;;  %10413 = vst [vmem:[#allocation29_spill] sm:$0xff] %v6591_v4 }
 0x3e1   :  { %v4192_v57 = vpop.eup %4191  ;;  %v1334_v55 = vadd.f32 %v4188_v46, %v1333_v49  ;;  %v6528_v49 = vld [vmem:[#allocation8 + $0x110] sm:$0xff] }
 0x3e2   :  { %v1353_v42 = vadd.f32 %v4190_v27, %v1352_v48  ;;  %v1370_v51 = vmul.f32 %v4192_v57, %v1368_v25  ;;  %v4194_v62 = vpop.eup %4193  ;;  %vm1375_vm8 = vweird.f32 %v4192_v57  ;;  %v6498_v25 = vld [vmem:[#allocation8 + $0x140] sm:$0xff] }
 0x3e3   :  { %v1338_v59 = vsel %vm1337_vm4, %v4188_v46, %v1334_v55  ;;  %vm1376_vm10 = vmor %vm1374_vm9, %vm1375_vm8  ;;  %v6501_v46 = vld [vmem:[#allocation8 + $0x148] sm:$0xff]  ;;  %v6534_v48 = vld [vmem:[#allocation8 + $0xe0] sm:$0xff] }
 0x3e4   :  { %v1343_v47 = vsel %vm1340_vm6, %v1342_v52, %v1338_v59  ;;  %v1357_v54 = vsel %vm1356_vm5, %v4190_v27, %v1353_v42  ;;  %v1371_v61 = vsub.f32 1.0, %v1370_v51  ;;  %v6507_v27 = vld [vmem:[#allocation8 + $0x158] sm:$0xff]  ;;  %v6546_v52 = vld [vmem:[#allocation8 + $0xc0] sm:$0xff]  ;;  %v6549_v42 = vld [vmem:[#allocation8 + $0xc8] sm:$0xff] }
 0x3e5   :  { %v1362_v53 = vsel %vm1359_vm7, %v1361_v63, %v1357_v54  ;;  %v1385_v44 = vmul.f32 %v4194_v62, %v1343_v47  ;;  %v6543_v55 = vld [vmem:[#allocation8 + $0xf8] sm:$0xff]  ;;  %v6552_v51 = vld [vmem:[#allocation8 + $0xd0] sm:$0xff]  ;;  %v6558_v59 = vld [vmem:[#allocation8 + $0xa0] sm:$0xff] }
 0x3e6   :  { %v1384_v36 = vmul.f32 %v1362_v53, %v6287_v19  ;;  %v1372_v0 = vmul.f32 %v4192_v57, %v1371_v61  ;;  %v6438_v19 = vld [vmem:[#allocation8 + $0x1e0] sm:$0xff]  ;;  %10400 = vst [vmem:[#allocation17_spill] sm:$0xff] %v6552_v51  ;;  %v6555_v63 = vld [vmem:[#allocation8 + $0xd8] sm:$0xff]  ;;  %v6561_v62 = vld [vmem:[#allocation8 + $0xa8] sm:$0xff] }
 0x3e7   :  { %10401 = vst [vmem:[#allocation18_spill] sm:$0xff] %v6555_v63  ;;  %v6564_v47 = vld [vmem:[#allocation8 + $0xb0] sm:$0xff]  ;;  %v6567_v54 = vld [vmem:[#allocation8 + $0xb8] sm:$0xff]  ;;  %v6570_v61 = vld [vmem:[#allocation8 + $0x80] sm:$0xff] }
 0x3e8   :  { %v6429_v1 = vadd.f32 %v1385_v44, %v1384_v36  ;;  %v1373_v2 = vadd.f32 %v4192_v57, %v1372_v0  ;;  %10402 = vst [vmem:[#allocation27_spill] sm:$0xff] %v6558_v59  ;;  %v6573_v53 = vld [vmem:[#allocation8 + $0x88] sm:$0xff]  ;;  %v6576_v44 = vld [vmem:[#allocation8 + $0x90] sm:$0xff]  ;;  %v6579_v36 = vld [vmem:[#allocation8 + $0x98] sm:$0xff] }
 0x3e9   :  { %10403 = vst [vmem:[#allocation19_spill] sm:$0xff] %v6561_v62  ;;  %v6582_v0 = vld [vmem:[#allocation8 + $0x60] sm:$0xff] }
 0x3ea   :  { %4195 = vtanh.f32 %v6429_v1  ;;  %v1377_v5 = vsel %vm1376_vm10, %v4192_v57, %v1373_v2  ;;  %v6540_v57 = vld [vmem:[#allocation8 + $0xf0] sm:$0xff]  ;;  %10404 = vst [vmem:[#allocation20_spill] sm:$0xff] %v6564_v47  ;;  %v6585_v2 = vld [vmem:[#allocation8 + $0x68] sm:$0xff] }
 0x3eb   :  { %v1382_v8 = vsel %vm1379_vm11, %v1381_v6, %v1377_v5  ;;  %10405 = vst [vmem:[#allocation21_spill] sm:$0xff] %v6567_v54  ;;  %v6594_v5 = vld [vmem:[#allocation8 + $0x40] sm:$0xff]  ;;  %v6597_v6 = vld [vmem:[#allocation8 + $0x48] sm:$0xff] }
 0x3ec   :  { %10406 = vst [vmem:[#allocation31_spill] sm:$0xff] %v6570_v61 }
 0x3ed   :  { %10407 = vst [vmem:[#allocation22_spill] sm:$0xff] %v6573_v53 }
 0x3ee   :  { %10408 = vst [vmem:[#allocation24_spill] sm:$0xff] %v6576_v44 }
 0x3ef   :  { %10409 = vst [vmem:[#allocation25_spill] sm:$0xff] %v6579_v36 }
 0x3f0   :  { %v4196_v7 = vpop.eup %4195  ;;  %10410 = vst [vmem:[#allocation35_spill] sm:$0xff] %v6582_v0 }
 0x3f1   :  { %v6432_v9 = vmul.f32 %v4196_v7, %v1382_v8  ;;  %10411 = vst [vmem:[#allocation26_spill] sm:$0xff] %v6585_v2  ;;  %v6600_v7 = vld [vmem:[#allocation8 + $0x50] sm:$0xff]  ;;  %v6603_v8 = vld [vmem:[#allocation8 + $0x58] sm:$0xff] }
 0x3f2   :  { %10414 = vst [vmem:[#allocation43_spill] sm:$0xff] %v6594_v5 }
 0x3f3   :  { %10399 = vst [vmem:[#allocation16_spill] sm:$0xff] %v6432_v9  ;;  %1408 = vmatmul.f32.vlgmr.msra.gmra.mxu0 %v6432_v9  ;;  %1428 = vmatmul.f32.vlgmr.msra.gmra.mxu1 %v6432_v9 }
 0x3f4   :  { %1448 = vmatmul.f32.vlgmr.msra.gmra.mxu2 %v6432_v9  ;;  %1468 = vmatmul.f32.vlgmr.msra.gmra.mxu3 %v6432_v9  ;;  %10415 = vst [vmem:[#allocation30_spill] sm:$0xff] %v6597_v6  ;;  %v6609_v9 = vld [vmem:[#allocation8 + $0x28] sm:$0xff] }
 0x3f5   :  { %1622 = vmatpush.msra.mxu0 %v6438_v19  ;;  %1642 = vmatpush.msra.mxu1 %v6441_v10  ;;  %10416 = vst [vmem:[#allocation32_spill] sm:$0xff] %v6600_v7 }
 0x3f6   :  { %1662 = vmatpush.msra.mxu2 %v6444_v12  ;;  %1682 = vmatpush.msra.mxu3 %v6447_v38  ;;  %10417 = vst [vmem:[#allocation33_spill] sm:$0xff] %v6603_v8 }
 0x3f7   :  { %1623 = vmatpush.msra.mxu0 %v6450_v43  ;;  %1643 = vmatpush.msra.mxu1 %v6453_v31  ;;  %10419 = vst [vmem:[#allocation34_spill] sm:$0xff] %v6609_v9 }
 0x3f8   :  { %1663 = vmatpush.msra.mxu2 %v6456_v18  ;;  %1683 = vmatpush.msra.mxu3 %v6459_v60 }
 0x3f9   :  { %1624 = vmatpush.msra.mxu0 %v6462_v32  ;;  %1644 = vmatpush.msra.mxu1 %v6465_v16 }
 0x3fa   :  { %1664 = vmatpush.msra.mxu2 %v6468_v23  ;;  %1684 = vmatpush.msra.mxu3 %v6471_v30 }
 0x3fb   :  { %1488 = vmatmul.f32.vlgmr.msrb.gmra.mxu0 %v92_v22  ;;  %1508 = vmatmul.f32.vlgmr.msrb.gmra.mxu1 %v92_v22 }
 0x3fc   :  { %1528 = vmatmul.f32.vlgmr.msrb.gmra.mxu2 %v92_v22  ;;  %1548 = vmatmul.f32.vlgmr.msrb.gmra.mxu3 %v92_v22  ;;  %v6606_v22 = vld [vmem:[#allocation8 + $0x20] sm:$0xff] }
 0x3fd   :  { %1625 = vmatpush.msra.mxu0 %v6474_v15  ;;  %1645 = vmatpush.msra.mxu1 %v6477_v33  ;;  %10418 = vst [vmem:[#allocation47_spill] sm:$0xff] %v6606_v22 }
 0x3fe   :  { %1665 = vmatpush.msra.mxu2 %v6480_v21  ;;  %1685 = vmatpush.msra.mxu3 %v6483_v24 }
 0x3ff   :  { %1626 = vmatpush.msra.mxu0 %v6486_v14  ;;  %1646 = vmatpush.msra.mxu1 %v6489_v17 }
 0x400   :  { %1666 = vmatpush.msra.mxu2 %v6492_v20  ;;  %1686 = vmatpush.msra.mxu3 %v6495_v40 }
 0x401   :  { %1627 = vmatpush.msra.mxu0 %v6498_v25  ;;  %1647 = vmatpush.msra.mxu1 %v6501_v46 }
 0x402   :  { %1667 = vmatpush.msra.mxu2 %v6504_v35  ;;  %1687 = vmatpush.msra.mxu3 %v6507_v27 }
 0x403   :  { %1628 = vmatpush.msra.mxu0 %v6510_v56  ;;  %1648 = vmatpush.msra.mxu1 %v6513_v34 }
 0x404   :  { %1668 = vmatpush.msra.mxu2 %v6516_v37  ;;  %1688 = vmatpush.msra.mxu3 %v6519_v39 }
 0x405   :  { %1629 = vmatpush.msra.mxu0 %v6522_v41  ;;  %1649 = vmatpush.msra.mxu1 %v6525_v45 }
 0x406   :  { %1669 = vmatpush.msra.mxu2 %v6528_v49  ;;  %1689 = vmatpush.msra.mxu3 %v6531_v50 }
 0x407   :  { %1630 = vmatpush.msra.mxu0 %v6534_v48  ;;  %1650 = vmatpush.msra.mxu1 %v6537_v58 }
 0x408   :  { %1670 = vmatpush.msra.mxu2 %v6540_v57  ;;  %1690 = vmatpush.msra.mxu3 %v6543_v55 }
 0x409   :  { %1631 = vmatpush.msra.mxu0 %v6546_v52  ;;  %1651 = vmatpush.msra.mxu1 %v6549_v42 }
 0x40a   :  { %1671 = vmatpush.msra.mxu2 %v6552_v51  ;;  %1691 = vmatpush.msra.mxu3 %v6555_v63 }
 0x40b   :  { %1632 = vmatpush.msra.mxu0 %v6558_v59  ;;  %1652 = vmatpush.msra.mxu1 %v6561_v62 }
 0x40c   :  { %1672 = vmatpush.msra.mxu2 %v6564_v47  ;;  %1692 = vmatpush.msra.mxu3 %v6567_v54 }
 0x40d   :  { %1633 = vmatpush.msra.mxu0 %v6570_v61  ;;  %1653 = vmatpush.msra.mxu1 %v6573_v53 }
 0x40e   :  { %1673 = vmatpush.msra.mxu2 %v6576_v44  ;;  %1693 = vmatpush.msra.mxu3 %v6579_v36 }
 0x40f   :  { %1634 = vmatpush.msra.mxu0 %v6582_v0  ;;  %1654 = vmatpush.msra.mxu1 %v6585_v2 }
 0x410   :  { %1674 = vmatpush.msra.mxu2 %v6588_v3  ;;  %1694 = vmatpush.msra.mxu3 %v6591_v4 }
 0x411   :  { %1635 = vmatpush.msra.mxu0 %v6594_v5  ;;  %1655 = vmatpush.msra.mxu1 %v6597_v6  ;;  %v6615_v6 = vld [vmem:[#allocation8 + $0x38] sm:$0xff] }
 0x412   :  { %1675 = vmatpush.msra.mxu2 %v6600_v7  ;;  %1695 = vmatpush.msra.mxu3 %v6603_v8  ;;  %10421 = vst [vmem:[#allocation37_spill] sm:$0xff] %v6615_v6  ;;  %v6618_v7 = vld [vmem:[#allocation8] sm:$0xff]  ;;  %v6621_v8 = vld [vmem:[#allocation8 + $0x8] sm:$0xff] }
 0x413   :  { %1636 = vmatpush.msra.mxu0 %v6606_v22  ;;  %1656 = vmatpush.msra.mxu1 %v6609_v9  ;;  %10422 = vst [vmem:[#allocation51_spill] sm:$0xff] %v6618_v7  ;;  %v6624_v22 = vld [vmem:[#allocation8 + $0x10] sm:$0xff]  ;;  %v6627_v9 = vld [vmem:[#allocation8 + $0x18] sm:$0xff] }
 0x414   :  { %1676 = vmatpush.msra.mxu2 %v6612_v29  ;;  %1696 = vmatpush.msra.mxu3 %v6615_v6  ;;  %10423 = vst [vmem:[#allocation38_spill] sm:$0xff] %v6621_v8  ;;  %v6630_v29 = vld [vmem:[#allocation6 + $0x1e0] sm:$0xff]  ;;  %v6633_v6 = vld [vmem:[#allocation6 + $0x1e8] sm:$0xff] }
 0x415   :  { %1637 = vmatpush.msra.mxu0 %v6618_v7  ;;  %1657 = vmatpush.msra.mxu1 %v6621_v8  ;;  %10424 = vst [vmem:[#allocation39_spill] sm:$0xff] %v6624_v22  ;;  %v6636_v7 = vld [vmem:[#allocation6 + $0x1f0] sm:$0xff]  ;;  %v6639_v8 = vld [vmem:[#allocation6 + $0x1f8] sm:$0xff] }
 0x416   :  { %1677 = vmatpush.msra.mxu2 %v6624_v22  ;;  %10425 = vst [vmem:[#allocation40_spill] sm:$0xff] %v6627_v9  ;;  %1697 = vmatpush.msra.mxu3 %v6627_v9  ;;  %v6642_v22 = vld [vmem:[#allocation6 + $0x1c0] sm:$0xff]  ;;  %v6645_v9 = vld [vmem:[#allocation6 + $0x1c8] sm:$0xff] }
 0x417   :  { %10426 = vst [vmem:[#allocation55_spill] sm:$0xff] %v6630_v29  ;;  %1702 = vmatpush.msrb.mxu0 %v6630_v29  ;;  %1722 = vmatpush.msrb.mxu1 %v6633_v6  ;;  %v6648_v29 = vld [vmem:[#allocation6 + $0x1d0] sm:$0xff] }
 0x418   :  { %10427 = vst [vmem:[#allocation41_spill] sm:$0xff] %v6633_v6  ;;  %1742 = vmatpush.msrb.mxu2 %v6636_v7  ;;  %1762 = vmatpush.msrb.mxu3 %v6639_v8  ;;  %v6651_v6 = vld [vmem:[#allocation6 + $0x1d8] sm:$0xff] }
 0x419   :  { %10428 = vst [vmem:[#allocation42_spill] sm:$0xff] %v6636_v7  ;;  %1703 = vmatpush.msrb.mxu0 %v6642_v22  ;;  %1723 = vmatpush.msrb.mxu1 %v6645_v9  ;;  %v6654_v7 = vld [vmem:[#allocation6 + $0x1a0] sm:$0xff] }
 0x41a   :  { %10429 = vst [vmem:[#allocation44_spill] sm:$0xff] %v6639_v8  ;;  %1743 = vmatpush.msrb.mxu2 %v6648_v29  ;;  %1763 = vmatpush.msrb.mxu3 %v6651_v6  ;;  %v6657_v8 = vld [vmem:[#allocation6 + $0x1a8] sm:$0xff] }
 0x41b   :  { %10430 = vst [vmem:[#allocation59_spill] sm:$0xff] %v6642_v22  ;;  %1704 = vmatpush.msrb.mxu0 %v6654_v7  ;;  %1724 = vmatpush.msrb.mxu1 %v6657_v8  ;;  %v6660_v22 = vld [vmem:[#allocation6 + $0x1b0] sm:$0xff] }
 0x41c   :  { %10431 = vst [vmem:[#allocation45_spill] sm:$0xff] %v6645_v9  ;;  %1744 = vmatpush.msrb.mxu2 %v6660_v22  ;;  %v6663_v9 = vld [vmem:[#allocation6 + $0x1b8] sm:$0xff] }
 0x41d   :  { %10432 = vst [vmem:[#allocation46_spill] sm:$0xff] %v6648_v29  ;;  %1764 = vmatpush.msrb.mxu3 %v6663_v9  ;;  %v6666_v29 = vld [vmem:[#allocation6 + $0x180] sm:$0xff] }
 0x41e   :  { %10433 = vst [vmem:[#allocation48_spill] sm:$0xff] %v6651_v6  ;;  %1705 = vmatpush.msrb.mxu0 %v6666_v29  ;;  %v6669_v6 = vld [vmem:[#allocation6 + $0x188] sm:$0xff] }
 0x41f   :  { %10434 = vst [vmem:[#allocation63_spill] sm:$0xff] %v6654_v7  ;;  %1725 = vmatpush.msrb.mxu1 %v6669_v6  ;;  %v6672_v7 = vld [vmem:[#allocation6 + $0x190] sm:$0xff] }
 0x420   :  { %10435 = vst [vmem:[#allocation49_spill] sm:$0xff] %v6657_v8  ;;  %1745 = vmatpush.msrb.mxu2 %v6672_v7  ;;  %v6675_v8 = vld [vmem:[#allocation6 + $0x198] sm:$0xff] }
 0x421   :  { %10436 = vst [vmem:[#allocation50_spill] sm:$0xff] %v6660_v22  ;;  %1765 = vmatpush.msrb.mxu3 %v6675_v8  ;;  %v6678_v22 = vld [vmem:[#allocation6 + $0x160] sm:$0xff] }
 0x422   :  { %10437 = vst [vmem:[#allocation52_spill] sm:$0xff] %v6663_v9  ;;  %1706 = vmatpush.msrb.mxu0 %v6678_v22  ;;  %v6681_v9 = vld [vmem:[#allocation6 + $0x168] sm:$0xff] }
 0x423   :  { %10438 = vst [vmem:[#allocation67_spill] sm:$0xff] %v6666_v29  ;;  %1726 = vmatpush.msrb.mxu1 %v6681_v9  ;;  %v6684_v29 = vld [vmem:[#allocation6 + $0x170] sm:$0xff] }
 0x424   :  { %10439 = vst [vmem:[#allocation53_spill] sm:$0xff] %v6669_v6  ;;  %1746 = vmatpush.msrb.mxu2 %v6684_v29  ;;  %v6687_v6 = vld [vmem:[#allocation6 + $0x178] sm:$0xff] }
 0x425   :  { %10440 = vst [vmem:[#allocation54_spill] sm:$0xff] %v6672_v7  ;;  %1766 = vmatpush.msrb.mxu3 %v6687_v6  ;;  %v6690_v7 = vld [vmem:[#allocation6 + $0x140] sm:$0xff] }
 0x426   :  { %10441 = vst [vmem:[#allocation56_spill] sm:$0xff] %v6675_v8  ;;  %1707 = vmatpush.msrb.mxu0 %v6690_v7  ;;  %v6693_v8 = vld [vmem:[#allocation6 + $0x148] sm:$0xff] }
 0x427   :  { %10442 = vst [vmem:[#allocation71_spill] sm:$0xff] %v6678_v22  ;;  %1727 = vmatpush.msrb.mxu1 %v6693_v8  ;;  %v6696_v22 = vld [vmem:[#allocation6 + $0x150] sm:$0xff] }
 0x428   :  { %10443 = vst [vmem:[#allocation57_spill] sm:$0xff] %v6681_v9  ;;  %1747 = vmatpush.msrb.mxu2 %v6696_v22  ;;  %v6699_v9 = vld [vmem:[#allocation6 + $0x158] sm:$0xff] }
 0x429   :  { %10444 = vst [vmem:[#allocation58_spill] sm:$0xff] %v6684_v29  ;;  %1767 = vmatpush.msrb.mxu3 %v6699_v9  ;;  %v6702_v29 = vld [vmem:[#allocation6 + $0x120] sm:$0xff] }
 0x42a   :  { %10445 = vst [vmem:[#allocation60_spill] sm:$0xff] %v6687_v6  ;;  %1708 = vmatpush.msrb.mxu0 %v6702_v29  ;;  %v6705_v6 = vld [vmem:[#allocation6 + $0x128] sm:$0xff] }
 0x42b   :  { %10446 = vst [vmem:[#allocation75_spill] sm:$0xff] %v6690_v7  ;;  %1728 = vmatpush.msrb.mxu1 %v6705_v6  ;;  %v6708_v7 = vld [vmem:[#allocation6 + $0x130] sm:$0xff] }
 0x42c   :  { %10447 = vst [vmem:[#allocation61_spill] sm:$0xff] %v6693_v8  ;;  %1748 = vmatpush.msrb.mxu2 %v6708_v7  ;;  %v6711_v8 = vld [vmem:[#allocation6 + $0x138] sm:$0xff] }
 0x42d   :  { %10448 = vst [vmem:[#allocation62_spill] sm:$0xff] %v6696_v22  ;;  %1768 = vmatpush.msrb.mxu3 %v6711_v8  ;;  %v6714_v22 = vld [vmem:[#allocation6 + $0x100] sm:$0xff] }
 0x42e   :  { %10449 = vst [vmem:[#allocation64_spill] sm:$0xff] %v6699_v9  ;;  %1709 = vmatpush.msrb.mxu0 %v6714_v22  ;;  %v6717_v9 = vld [vmem:[#allocation6 + $0x108] sm:$0xff] }
 0x42f   :  { %10450 = vst [vmem:[#allocation79_spill] sm:$0xff] %v6702_v29  ;;  %1729 = vmatpush.msrb.mxu1 %v6717_v9  ;;  %v6720_v29 = vld [vmem:[#allocation6 + $0x110] sm:$0xff] }
 0x430   :  { %10451 = vst [vmem:[#allocation65_spill] sm:$0xff] %v6705_v6  ;;  %1749 = vmatpush.msrb.mxu2 %v6720_v29  ;;  %v6723_v6 = vld [vmem:[#allocation6 + $0x118] sm:$0xff] }
 0x431   :  { %10452 = vst [vmem:[#allocation66_spill] sm:$0xff] %v6708_v7  ;;  %1769 = vmatpush.msrb.mxu3 %v6723_v6  ;;  %v6726_v7 = vld [vmem:[#allocation6 + $0xe0] sm:$0xff] }
 0x432   :  { %10453 = vst [vmem:[#allocation68_spill] sm:$0xff] %v6711_v8  ;;  %1710 = vmatpush.msrb.mxu0 %v6726_v7  ;;  %v6729_v8 = vld [vmem:[#allocation6 + $0xe8] sm:$0xff] }
 0x433   :  { %10454 = vst [vmem:[#allocation85_spill] sm:$0xff] %v6714_v22  ;;  %1730 = vmatpush.msrb.mxu1 %v6729_v8  ;;  %v6732_v22 = vld [vmem:[#allocation6 + $0xf0] sm:$0xff] }
 0x434   :  { %10455 = vst [vmem:[#allocation69_spill] sm:$0xff] %v6717_v9  ;;  %1750 = vmatpush.msrb.mxu2 %v6732_v22  ;;  %v6735_v9 = vld [vmem:[#allocation6 + $0xf8] sm:$0xff] }
 0x435   :  { %10456 = vst [vmem:[#allocation70_spill] sm:$0xff] %v6720_v29  ;;  %1770 = vmatpush.msrb.mxu3 %v6735_v9  ;;  %v6738_v29 = vld [vmem:[#allocation6 + $0xc0] sm:$0xff] }
 0x436   :  { %10457 = vst [vmem:[#allocation72_spill] sm:$0xff] %v6723_v6  ;;  %1711 = vmatpush.msrb.mxu0 %v6738_v29  ;;  %v6741_v6 = vld [vmem:[#allocation6 + $0xc8] sm:$0xff] }
 0x437   :  { %10458 = vst [vmem:[#allocation89_spill] sm:$0xff] %v6726_v7  ;;  %1731 = vmatpush.msrb.mxu1 %v6741_v6  ;;  %v6744_v7 = vld [vmem:[#allocation6 + $0xd0] sm:$0xff] }
 0x438   :  { %10459 = vst [vmem:[#allocation73_spill] sm:$0xff] %v6729_v8  ;;  %1751 = vmatpush.msrb.mxu2 %v6744_v7  ;;  %v6747_v8 = vld [vmem:[#allocation6 + $0xd8] sm:$0xff] }
 0x439   :  { %10460 = vst [vmem:[#allocation74_spill] sm:$0xff] %v6732_v22  ;;  %1771 = vmatpush.msrb.mxu3 %v6747_v8  ;;  %v6750_v22 = vld [vmem:[#allocation6 + $0xa0] sm:$0xff] }
 0x43a   :  { %10461 = vst [vmem:[#allocation76_spill] sm:$0xff] %v6735_v9  ;;  %1712 = vmatpush.msrb.mxu0 %v6750_v22  ;;  %v6753_v9 = vld [vmem:[#allocation6 + $0xa8] sm:$0xff] }
 0x43b   :  { %10462 = vst [vmem:[#allocation93_spill] sm:$0xff] %v6738_v29  ;;  %1732 = vmatpush.msrb.mxu1 %v6753_v9  ;;  %v6756_v29 = vld [vmem:[#allocation6 + $0xb0] sm:$0xff] }
 0x43c   :  { %10463 = vst [vmem:[#allocation77_spill] sm:$0xff] %v6741_v6  ;;  %1752 = vmatpush.msrb.mxu2 %v6756_v29  ;;  %v6759_v6 = vld [vmem:[#allocation6 + $0xb8] sm:$0xff] }
 0x43d   :  { %10464 = vst [vmem:[#allocation78_spill] sm:$0xff] %v6744_v7  ;;  %1772 = vmatpush.msrb.mxu3 %v6759_v6  ;;  %v6762_v7 = vld [vmem:[#allocation6 + $0x80] sm:$0xff] }
 0x43e   :  { %10465 = vst [vmem:[#allocation80_spill] sm:$0xff] %v6747_v8  ;;  %1713 = vmatpush.msrb.mxu0 %v6762_v7  ;;  %v6765_v8 = vld [vmem:[#allocation6 + $0x88] sm:$0xff] }
 0x43f   :  { %10466 = vst [vmem:[#allocation97_spill] sm:$0xff] %v6750_v22  ;;  %1733 = vmatpush.msrb.mxu1 %v6765_v8  ;;  %v6768_v22 = vld [vmem:[#allocation6 + $0x90] sm:$0xff] }
 0x440   :  { %10467 = vst [vmem:[#allocation81_spill] sm:$0xff] %v6753_v9  ;;  %1753 = vmatpush.msrb.mxu2 %v6768_v22  ;;  %v6771_v9 = vld [vmem:[#allocation6 + $0x98] sm:$0xff] }
 0x441   :  { %10468 = vst [vmem:[#allocation82_spill] sm:$0xff] %v6756_v29  ;;  %1773 = vmatpush.msrb.mxu3 %v6771_v9  ;;  %v6774_v29 = vld [vmem:[#allocation6 + $0x60] sm:$0xff] }
 0x442   :  { %10469 = vst [vmem:[#allocation83_spill] sm:$0xff] %v6759_v6  ;;  %1714 = vmatpush.msrb.mxu0 %v6774_v29  ;;  %v6777_v6 = vld [vmem:[#allocation6 + $0x68] sm:$0xff] }
 0x443   :  { %10470 = vst [vmem:[#allocation101_spill] sm:$0xff] %v6762_v7  ;;  %1734 = vmatpush.msrb.mxu1 %v6777_v6  ;;  %v6780_v7 = vld [vmem:[#allocation6 + $0x70] sm:$0xff] }
 0x444   :  { %10471 = vst [vmem:[#allocation84_spill] sm:$0xff] %v6765_v8  ;;  %1754 = vmatpush.msrb.mxu2 %v6780_v7  ;;  %v6783_v8 = vld [vmem:[#allocation6 + $0x78] sm:$0xff] }
 0x445   :  { %10472 = vst [vmem:[#allocation86_spill] sm:$0xff] %v6768_v22  ;;  %1774 = vmatpush.msrb.mxu3 %v6783_v8  ;;  %v6786_v22 = vld [vmem:[#allocation6 + $0x40] sm:$0xff] }
 0x446   :  { %10473 = vst [vmem:[#allocation87_spill] sm:$0xff] %v6771_v9  ;;  %1715 = vmatpush.msrb.mxu0 %v6786_v22  ;;  %v6789_v9 = vld [vmem:[#allocation6 + $0x48] sm:$0xff] }
 0x447   :  { %10474 = vst [vmem:[#allocation102_spill] sm:$0xff] %v6774_v29  ;;  %1735 = vmatpush.msrb.mxu1 %v6789_v9  ;;  %v6792_v29 = vld [vmem:[#allocation6 + $0x50] sm:$0xff] }
 0x448   :  { %10475 = vst [vmem:[#allocation88_spill] sm:$0xff] %v6777_v6  ;;  %1755 = vmatpush.msrb.mxu2 %v6792_v29  ;;  %v6795_v6 = vld [vmem:[#allocation6 + $0x58] sm:$0xff] }
 0x449   :  { %10476 = vst [vmem:[#allocation90_spill] sm:$0xff] %v6780_v7  ;;  %1775 = vmatpush.msrb.mxu3 %v6795_v6  ;;  %v6798_v7 = vld [vmem:[#allocation6 + $0x20] sm:$0xff] }
 0x44a   :  { %10477 = vst [vmem:[#allocation91_spill] sm:$0xff] %v6783_v8  ;;  %1716 = vmatpush.msrb.mxu0 %v6798_v7  ;;  %v6801_v8 = vld [vmem:[#allocation6 + $0x28] sm:$0xff] }
 0x44b   :  { %10478 = vst [vmem:[#allocation103_spill] sm:$0xff] %v6786_v22  ;;  %1736 = vmatpush.msrb.mxu1 %v6801_v8  ;;  %v6804_v22 = vld [vmem:[#allocation6 + $0x30] sm:$0xff] }
 0x44c   :  { %10479 = vst [vmem:[#allocation92_spill] sm:$0xff] %v6789_v9  ;;  %1756 = vmatpush.msrb.mxu2 %v6804_v22  ;;  %v6807_v9 = vld [vmem:[#allocation6 + $0x38] sm:$0xff] }
 0x44d   :  { %10480 = vst [vmem:[#allocation94_spill] sm:$0xff] %v6792_v29  ;;  %1776 = vmatpush.msrb.mxu3 %v6807_v9  ;;  %v6810_v29 = vld [vmem:[#allocation6] sm:$0xff] }
 0x44e   :  { %10481 = vst [vmem:[#allocation95_spill] sm:$0xff] %v6795_v6  ;;  %1717 = vmatpush.msrb.mxu0 %v6810_v29  ;;  %v6813_v6 = vld [vmem:[#allocation6 + $0x8] sm:$0xff] }
 0x44f   :  { %10482 = vst [vmem:[#allocation104_spill] sm:$0xff] %v6798_v7  ;;  %1737 = vmatpush.msrb.mxu1 %v6813_v6  ;;  %v6816_v7 = vld [vmem:[#allocation6 + $0x10] sm:$0xff] }
 0x450   :  { %10483 = vst [vmem:[#allocation96_spill] sm:$0xff] %v6801_v8  ;;  %1757 = vmatpush.msrb.mxu2 %v6816_v7  ;;  %v6819_v8 = vld [vmem:[#allocation6 + $0x18] sm:$0xff] }
 0x451   :  { %10484 = vst [vmem:[#allocation98_spill] sm:$0xff] %v6804_v22  ;;  %1777 = vmatpush.msrb.mxu3 %v6819_v8 }
 0x452   :  { %10485 = vst [vmem:[#allocation99_spill] sm:$0xff] %v6807_v9 }
 0x453   :  { %10486 = vst [vmem:[#allocation105_spill] sm:$0xff] %v6810_v29 }
 0x454   :  { %10487 = vst [vmem:[#allocation100_spill] sm:$0xff] %v6813_v6 }
 0x455   :  { %10488 = vst [vmem:[#allocation111_spill] sm:$0xff] %v6816_v7 }
 0x456   :  { %10489 = vst [vmem:[#allocation114_spill] sm:$0xff] %v6819_v8 }
 0x470   :  { %v1409_v22 = vpop.f32.mrf.mxu0  ;;  %v1429_v5 = vpop.f32.mrf.mxu1 }
 0x477   :  { %v1469_v4 = vpop.f32.mrf.mxu3  ;;  %v1449_v53 = vpop.f32.mrf.mxu2 }
 0x478   :  { %v1489_v9 = vpop.f32.mrf.mxu0  ;;  %v1509_v3 = vpop.f32.mrf.mxu1 }
 0x479   :  { %v1490_v2 = vadd.f32 %v1489_v9, %v1409_v22  ;;  %v1510_v0 = vadd.f32 %v1509_v3, %v1429_v5 }
 0x47b   :  { %v1552_v29 = vadd.f32 %v1490_v2, %v10395_v11  ;;  %v1553_v36 = vadd.f32 %v1510_v0, %v10396_v13 }
 0x47d   :  { %v1556_v6 = vsub.f32 0.0, %v1552_v29  ;;  %v1575_v44 = vsub.f32 0.0, %v1553_v36 }
 0x47f   :  { %v1557_v61 = vmul.f32 1.442695, %v1556_v6  ;;  %v1576_v7 = vmul.f32 1.442695, %v1575_v44  ;;  %v1549_v54 = vpop.f32.mrf.mxu3  ;;  %v1529_v5 = vpop.f32.mrf.mxu2 }
 0x480   :  { %v1550_v47 = vadd.f32 %v1549_v54, %v1469_v4  ;;  %v1530_v29 = vadd.f32 %v1529_v5, %v1449_v53 }
 0x481   :  { %4197 = vpow2.f32 %v1557_v61 }
 0x482   :  { %4199 = vpow2.f32 %v1576_v7  ;;  %v1555_v8 = vadd.f32 %v1550_v47, %v10397_v28  ;;  %v1554_v54 = vadd.f32 %v1530_v29, %v10398_v26 }
 0x484   :  { %v1595_v62 = vsub.f32 0.0, %v1555_v8 }
 0x486   :  { %v1596_v59 = vmul.f32 1.442695, %v1595_v62 }
 0x487   :  { %v4198_v63 = vpop.eup %4197 }
 0x488   :  { %v4200_v9 = vpop.eup %4199  ;;  %v1559_v3 = vadd.f32 1.0, %v4198_v63  ;;  %4201 = vpow2.f32 %v1596_v59 }
 0x489   :  { %v1578_v2 = vadd.f32 1.0, %v4200_v9 }
 0x48a   :  { %4203 = vrcp.f32 %v1559_v3  ;;  %v1571_v7 = vand.u32 2147483648, %v1559_v3  ;;  %v1569_v8 = vand.u32 2147483647, %v1559_v3  ;;  %vm1565_vm14 = vweird.f32 %v1559_v3 }
 0x48b   :  { %4205 = vrcp.f32 %v1578_v2  ;;  %v1590_v63 = vand.u32 2147483648, %v1578_v2  ;;  %v1588_v53 = vand.u32 2147483647, %v1578_v2  ;;  %vm1584_vm15 = vweird.f32 %v1578_v2 }
 0x48c   :  { %v1572_v29 = vor.u32 1.1754944e-38, %v1571_v7  ;;  %vm1570_vm2 = vcmp.eq.f32.partialorder %v1569_v8, 8.507059e+37 }
 0x48d   :  { %vm1589_vm3 = vcmp.eq.f32.partialorder %v1588_v53, 8.507059e+37  ;;  %v10534_v53 = vld [vmem:[#allocation57_spill] sm:$0xff] }
 0x48e   :  { %v4202_v36 = vpop.eup %4201 }
 0x48f   :  { %v1598_v0 = vadd.f32 1.0, %v4202_v36 }
 0x490   :  { %v4204_v44 = vpop.eup %4203 }
 0x491   :  { %v4206_v61 = vpop.eup %4205  ;;  %v1561_v4 = vmul.f32 %v4204_v44, %v1559_v3  ;;  %4207 = vrcp.f32 %v1598_v0  ;;  %vm1566_vm12 = vweird.f32 %v4204_v44  ;;  %v1610_v7 = vand.u32 2147483648, %v1598_v0 }
 0x492   :  { %v1580_v47 = vmul.f32 %v4206_v61, %v1578_v2  ;;  %4209 = vtanh.f32 %v1554_v54  ;;  %vm1585_vm13 = vweird.f32 %v4206_v61  ;;  %vm1567_vm0 = vmor %vm1565_vm14, %vm1566_vm12  ;;  %vm1604_vm5 = vweird.f32 %v1598_v0 }
 0x493   :  { %v1562_v6 = vsub.f32 1.0, %v1561_v4  ;;  %vm1586_vm1 = vmor %vm1584_vm15, %vm1585_vm13  ;;  %v1591_v4 = vor.u32 1.1754944e-38, %v1590_v63  ;;  %v1611_v8 = vor.u32 1.1754944e-38, %v1610_v7  ;;  %v10546_v7 = vld [vmem:[#allocation69_spill] sm:$0xff] }
 0x494   :  { %v1581_v62 = vsub.f32 1.0, %v1580_v47 }
 0x495   :  { %v1563_v59 = vmul.f32 %v4204_v44, %v1562_v6 }
 0x496   :  { %v1582_v22 = vmul.f32 %v4206_v61, %v1581_v62 }
 0x497   :  { %v4208_v9 = vpop.eup %4207  ;;  %v1564_v5 = vadd.f32 %v4204_v44, %v1563_v59 }
 0x498   :  { %v1583_v36 = vadd.f32 %v4206_v61, %v1582_v22  ;;  %v1600_v26 = vmul.f32 %v4208_v9, %v1598_v0  ;;  %v4210_v54 = vpop.eup %4209  ;;  %vm1605_vm4 = vweird.f32 %v4208_v9 }
 0x499   :  { %v1568_v47 = vsel %vm1567_vm0, %v4204_v44, %v1564_v5  ;;  %v1608_v44 = vand.u32 2147483647, %v1598_v0  ;;  %vm1606_vm6 = vmor %vm1604_vm5, %vm1605_vm4  ;;  %v10533_v0 = vld [vmem:[#allocation71_spill] sm:$0xff]  ;;  %v10536_v5 = vld [vmem:[#allocation60_spill] sm:$0xff] }
 0x49a   :  { %v1573_v28 = vsel %vm1570_vm2, %v1572_v29, %v1568_v47  ;;  %v1587_v6 = vsel %vm1586_vm1, %v4206_v61, %v1583_v36  ;;  %v1601_v13 = vsub.f32 1.0, %v1600_v26  ;;  %v10537_v29 = vld [vmem:[#allocation75_spill] sm:$0xff]  ;;  %v10538_v36 = vld [vmem:[#allocation61_spill] sm:$0xff]  ;;  %v10540_v47 = vld [vmem:[#allocation64_spill] sm:$0xff] }
 0x49b   :  { %v1592_v62 = vsel %vm1589_vm3, %v1591_v4, %v1587_v6  ;;  %v1615_v11 = vmul.f32 %v4210_v54, %v1573_v28  ;;  %vm1609_vm7 = vcmp.eq.f32.partialorder %v1608_v44, 8.507059e+37  ;;  %v10492_v28 = vld [vmem:[#allocation18_spill] sm:$0xff]  ;;  %v10541_v54 = vld [vmem:[#allocation79_spill] sm:$0xff]  ;;  %v10542_v6 = vld [vmem:[#allocation65_spill] sm:$0xff] }
 0x49c   :  { %v1614_v51 = vmul.f32 %v1592_v62, %v6429_v1  ;;  %v1602_v59 = vmul.f32 %v4208_v9, %v1601_v13  ;;  %v10491_v13 = vld [vmem:[#allocation17_spill] sm:$0xff]  ;;  %v10493_v1 = vld [vmem:[#allocation27_spill] sm:$0xff]  ;;  %v10539_v4 = vld [vmem:[#allocation62_spill] sm:$0xff] }
 0x49d   :  { %v10543_v62 = vld [vmem:[#allocation66_spill] sm:$0xff] }
 0x49e   :  { %v6827_v3 = vadd.f32 %v1615_v11, %v1614_v51  ;;  %v1603_v2 = vadd.f32 %v4208_v9, %v1602_v59  ;;  %v93_v11 = vld [vmem:[#allocation3 + $0x30] sm:$0xff]  ;;  %v10547_v44 = vld [vmem:[#allocation70_spill] sm:$0xff] }
 0x49f   :  { %v10532_v51 = vld [vmem:[#allocation56_spill] sm:$0xff] }
 0x4a0   :  { %4211 = vtanh.f32 %v6827_v3  ;;  %v1607_v63 = vsel %vm1606_vm6, %v4208_v9, %v1603_v2  ;;  %v10535_v9 = vld [vmem:[#allocation58_spill] sm:$0xff]  ;;  %v10544_v59 = vld [vmem:[#allocation68_spill] sm:$0xff]  ;;  %v10545_v2 = vld [vmem:[#allocation85_spill] sm:$0xff] }
 0x4a1   :  { %v1612_v26 = vsel %vm1609_vm7, %v1611_v8, %v1607_v63  ;;  %v10548_v63 = vld [vmem:[#allocation72_spill] sm:$0xff]  ;;  %v10549_v8 = vld [vmem:[#allocation89_spill] sm:$0xff] }
 0x4a6   :  { %v4212_v61 = vpop.eup %4211 }
 0x4a7   :  { %v6830_v22 = vmul.f32 %v4212_v61, %v1612_v26  ;;  %v10550_v61 = vld [vmem:[#allocation73_spill] sm:$0xff]  ;;  %v10551_v26 = vld [vmem:[#allocation74_spill] sm:$0xff] }
 0x4a9   :  { %10490 = vst [vmem:[#allocation115_spill] sm:$0xff] %v6830_v22  ;;  %1638 = vmatmul.f32.vlgmr.msra.gmra.mxu0 %v6830_v22  ;;  %1658 = vmatmul.f32.vlgmr.msra.gmra.mxu1 %v6830_v22 }
 0x4aa   :  { %1678 = vmatmul.f32.vlgmr.msra.gmra.mxu2 %v6830_v22  ;;  %1698 = vmatmul.f32.vlgmr.msra.gmra.mxu3 %v6830_v22  ;;  %v7148_v22 = vld [vmem:[#allocation8 + $0x230] sm:$0xff] }
 0x4ab   :  { %1852 = vmatpush.msra.mxu0 %v6438_v19  ;;  %1872 = vmatpush.msra.mxu1 %v6441_v10  ;;  %v10494_v19 = vld [vmem:[#allocation19_spill] sm:$0xff]  ;;  %v10495_v10 = vld [vmem:[#allocation20_spill] sm:$0xff] }
 0x4ac   :  { %1892 = vmatpush.msra.mxu2 %v6444_v12  ;;  %1912 = vmatpush.msra.mxu3 %v6447_v38  ;;  %v10496_v12 = vld [vmem:[#allocation21_spill] sm:$0xff]  ;;  %v10497_v38 = vld [vmem:[#allocation31_spill] sm:$0xff] }
 0x4ad   :  { %1853 = vmatpush.msra.mxu0 %v6450_v43  ;;  %1873 = vmatpush.msra.mxu1 %v6453_v31  ;;  %v10498_v43 = vld [vmem:[#allocation22_spill] sm:$0xff]  ;;  %v10499_v31 = vld [vmem:[#allocation24_spill] sm:$0xff] }
 0x4ae   :  { %1893 = vmatpush.msra.mxu2 %v6456_v18  ;;  %1913 = vmatpush.msra.mxu3 %v6459_v60  ;;  %v10500_v18 = vld [vmem:[#allocation25_spill] sm:$0xff]  ;;  %v10501_v60 = vld [vmem:[#allocation35_spill] sm:$0xff]  ;;  %10592 = vst [vmem:[#allocation22_spill] sm:$0xff] %v7148_v22 }
 0x4af   :  { %1854 = vmatpush.msra.mxu0 %v6462_v32  ;;  %1874 = vmatpush.msra.mxu1 %v6465_v16  ;;  %v10502_v32 = vld [vmem:[#allocation26_spill] sm:$0xff]  ;;  %v10503_v16 = vld [vmem:[#allocation28_spill] sm:$0xff] }
 0x4b0   :  { %1894 = vmatpush.msra.mxu2 %v6468_v23  ;;  %1914 = vmatpush.msra.mxu3 %v6471_v30  ;;  %v10504_v23 = vld [vmem:[#allocation29_spill] sm:$0xff]  ;;  %v10505_v30 = vld [vmem:[#allocation43_spill] sm:$0xff] }
 0x4b1   :  { %1718 = vmatmul.f32.vlgmr.msrb.gmra.mxu0 %v93_v11  ;;  %1738 = vmatmul.f32.vlgmr.msrb.gmra.mxu1 %v93_v11 }
 0x4b2   :  { %1758 = vmatmul.f32.vlgmr.msrb.gmra.mxu2 %v93_v11  ;;  %1778 = vmatmul.f32.vlgmr.msrb.gmra.mxu3 %v93_v11  ;;  %v10552_v11 = vld [vmem:[#allocation76_spill] sm:$0xff] }
 0x4b3   :  { %1855 = vmatpush.msra.mxu0 %v6474_v15  ;;  %1875 = vmatpush.msra.mxu1 %v6477_v33  ;;  %v10506_v15 = vld [vmem:[#allocation30_spill] sm:$0xff]  ;;  %v10507_v33 = vld [vmem:[#allocation32_spill] sm:$0xff] }
 0x4b4   :  { %1895 = vmatpush.msra.mxu2 %v6480_v21  ;;  %1915 = vmatpush.msra.mxu3 %v6483_v24  ;;  %v10508_v21 = vld [vmem:[#allocation33_spill] sm:$0xff]  ;;  %v10509_v24 = vld [vmem:[#allocation47_spill] sm:$0xff] }
 0x4b5   :  { %1856 = vmatpush.msra.mxu0 %v6486_v14  ;;  %1876 = vmatpush.msra.mxu1 %v6489_v17  ;;  %v10510_v14 = vld [vmem:[#allocation34_spill] sm:$0xff]  ;;  %v10511_v17 = vld [vmem:[#allocation36_spill] sm:$0xff] }
 0x4b6   :  { %1896 = vmatpush.msra.mxu2 %v6492_v20  ;;  %1916 = vmatpush.msra.mxu3 %v6495_v40  ;;  %v10512_v20 = vld [vmem:[#allocation37_spill] sm:$0xff]  ;;  %v10513_v40 = vld [vmem:[#allocation51_spill] sm:$0xff] }
 0x4b7   :  { %1857 = vmatpush.msra.mxu0 %v6498_v25  ;;  %1877 = vmatpush.msra.mxu1 %v6501_v46  ;;  %v10514_v25 = vld [vmem:[#allocation38_spill] sm:$0xff]  ;;  %v10515_v46 = vld [vmem:[#allocation39_spill] sm:$0xff] }
 0x4b8   :  { %1897 = vmatpush.msra.mxu2 %v6504_v35  ;;  %1917 = vmatpush.msra.mxu3 %v6507_v27  ;;  %v10516_v35 = vld [vmem:[#allocation40_spill] sm:$0xff]  ;;  %v10517_v27 = vld [vmem:[#allocation55_spill] sm:$0xff] }
 0x4b9   :  { %1858 = vmatpush.msra.mxu0 %v6510_v56  ;;  %1878 = vmatpush.msra.mxu1 %v6513_v34  ;;  %v10518_v56 = vld [vmem:[#allocation41_spill] sm:$0xff]  ;;  %v10519_v34 = vld [vmem:[#allocation42_spill] sm:$0xff] }
 0x4ba   :  { %1898 = vmatpush.msra.mxu2 %v6516_v37  ;;  %1918 = vmatpush.msra.mxu3 %v6519_v39  ;;  %v10520_v37 = vld [vmem:[#allocation44_spill] sm:$0xff]  ;;  %v10521_v39 = vld [vmem:[#allocation59_spill] sm:$0xff] }
 0x4bb   :  { %1859 = vmatpush.msra.mxu0 %v6522_v41  ;;  %1879 = vmatpush.msra.mxu1 %v6525_v45  ;;  %v10522_v41 = vld [vmem:[#allocation45_spill] sm:$0xff]  ;;  %v10523_v45 = vld [vmem:[#allocation46_spill] sm:$0xff] }
 0x4bc   :  { %1899 = vmatpush.msra.mxu2 %v6528_v49  ;;  %1919 = vmatpush.msra.mxu3 %v6531_v50  ;;  %v10524_v49 = vld [vmem:[#allocation48_spill] sm:$0xff]  ;;  %v10525_v50 = vld [vmem:[#allocation63_spill] sm:$0xff] }
 0x4bd   :  { %1860 = vmatpush.msra.mxu0 %v6534_v48  ;;  %1880 = vmatpush.msra.mxu1 %v6537_v58  ;;  %v10526_v48 = vld [vmem:[#allocation49_spill] sm:$0xff]  ;;  %v10527_v58 = vld [vmem:[#allocation50_spill] sm:$0xff] }
 0x4be   :  { %1900 = vmatpush.msra.mxu2 %v6540_v57  ;;  %1920 = vmatpush.msra.mxu3 %v6543_v55  ;;  %v10528_v57 = vld [vmem:[#allocation52_spill] sm:$0xff]  ;;  %v10529_v55 = vld [vmem:[#allocation67_spill] sm:$0xff] }
 0x4bf   :  { %1861 = vmatpush.msra.mxu0 %v6546_v52  ;;  %1881 = vmatpush.msra.mxu1 %v6549_v42  ;;  %v10530_v52 = vld [vmem:[#allocation53_spill] sm:$0xff]  ;;  %v10531_v42 = vld [vmem:[#allocation54_spill] sm:$0xff] }
 0x4c0   :  { %1901 = vmatpush.msra.mxu2 %v10491_v13  ;;  %1921 = vmatpush.msra.mxu3 %v10492_v28  ;;  %v10553_v13 = vld [vmem:[#allocation93_spill] sm:$0xff] }
 0x4c1   :  { %1862 = vmatpush.msra.mxu0 %v10493_v1  ;;  %1882 = vmatpush.msra.mxu1 %v10494_v19  ;;  %v10554_v28 = vld [vmem:[#allocation77_spill] sm:$0xff]  ;;  %v10555_v1 = vld [vmem:[#allocation78_spill] sm:$0xff]  ;;  %v10556_v19 = vld [vmem:[#allocation80_spill] sm:$0xff] }
 0x4c2   :  { %1902 = vmatpush.msra.mxu2 %v10495_v10  ;;  %1922 = vmatpush.msra.mxu3 %v10496_v12  ;;  %v10557_v10 = vld [vmem:[#allocation97_spill] sm:$0xff] }
 0x4c3   :  { %1863 = vmatpush.msra.mxu0 %v10497_v38  ;;  %1883 = vmatpush.msra.mxu1 %v10498_v43  ;;  %v10558_v12 = vld [vmem:[#allocation81_spill] sm:$0xff]  ;;  %v10559_v38 = vld [vmem:[#allocation82_spill] sm:$0xff]  ;;  %v10560_v43 = vld [vmem:[#allocation83_spill] sm:$0xff] }
 0x4c4   :  { %1903 = vmatpush.msra.mxu2 %v10499_v31  ;;  %1923 = vmatpush.msra.mxu3 %v10500_v18  ;;  %v10561_v31 = vld [vmem:[#allocation101_spill] sm:$0xff]  ;;  %v10562_v18 = vld [vmem:[#allocation84_spill] sm:$0xff] }
 0x4c5   :  { %1864 = vmatpush.msra.mxu0 %v10501_v60  ;;  %1884 = vmatpush.msra.mxu1 %v10502_v32  ;;  %v10563_v60 = vld [vmem:[#allocation86_spill] sm:$0xff]  ;;  %v10564_v32 = vld [vmem:[#allocation87_spill] sm:$0xff] }
 0x4c6   :  { %1904 = vmatpush.msra.mxu2 %v10503_v16  ;;  %1924 = vmatpush.msra.mxu3 %v10504_v23  ;;  %v10565_v16 = vld [vmem:[#allocation102_spill] sm:$0xff]  ;;  %v10566_v23 = vld [vmem:[#allocation88_spill] sm:$0xff] }
 0x4c7   :  { %1865 = vmatpush.msra.mxu0 %v10505_v30  ;;  %1885 = vmatpush.msra.mxu1 %v10506_v15  ;;  %v10567_v30 = vld [vmem:[#allocation90_spill] sm:$0xff]  ;;  %v10568_v15 = vld [vmem:[#allocation91_spill] sm:$0xff] }
 0x4c8   :  { %1905 = vmatpush.msra.mxu2 %v10507_v33  ;;  %1925 = vmatpush.msra.mxu3 %v10508_v21  ;;  %v10569_v33 = vld [vmem:[#allocation103_spill] sm:$0xff]  ;;  %v10570_v21 = vld [vmem:[#allocation92_spill] sm:$0xff] }
 0x4c9   :  { %1866 = vmatpush.msra.mxu0 %v10509_v24  ;;  %1886 = vmatpush.msra.mxu1 %v10510_v14  ;;  %v10571_v24 = vld [vmem:[#allocation94_spill] sm:$0xff]  ;;  %v10572_v14 = vld [vmem:[#allocation95_spill] sm:$0xff] }
 0x4ca   :  { %1906 = vmatpush.msra.mxu2 %v10511_v17  ;;  %1926 = vmatpush.msra.mxu3 %v10512_v20  ;;  %v10573_v17 = vld [vmem:[#allocation104_spill] sm:$0xff] }
 0x4cb   :  { %1867 = vmatpush.msra.mxu0 %v10513_v40  ;;  %1887 = vmatpush.msra.mxu1 %v10514_v25  ;;  %v10574_v20 = vld [vmem:[#allocation96_spill] sm:$0xff]  ;;  %v10575_v40 = vld [vmem:[#allocation98_spill] sm:$0xff]  ;;  %v10576_v25 = vld [vmem:[#allocation99_spill] sm:$0xff] }
 0x4cc   :  { %1907 = vmatpush.msra.mxu2 %v10515_v46  ;;  %1927 = vmatpush.msra.mxu3 %v10516_v35  ;;  %v10577_v46 = vld [vmem:[#allocation105_spill] sm:$0xff]  ;;  %v10578_v35 = vld [vmem:[#allocation100_spill] sm:$0xff] }
 0x4cd   :  { %1932 = vmatpush.msrb.mxu0 %v10517_v27  ;;  %1952 = vmatpush.msrb.mxu1 %v10518_v56  ;;  %v10579_v27 = vld [vmem:[#allocation111_spill] sm:$0xff]  ;;  %v10580_v56 = vld [vmem:[#allocation114_spill] sm:$0xff] }
 0x4ce   :  { %1972 = vmatpush.msrb.mxu2 %v10519_v34  ;;  %1992 = vmatpush.msrb.mxu3 %v10520_v37 }
 0x4cf   :  { %1933 = vmatpush.msrb.mxu0 %v10521_v39  ;;  %1953 = vmatpush.msrb.mxu1 %v10522_v41 }
 0x4d0   :  { %1973 = vmatpush.msrb.mxu2 %v10523_v45  ;;  %1993 = vmatpush.msrb.mxu3 %v10524_v49 }
 0x4d1   :  { %1934 = vmatpush.msrb.mxu0 %v10525_v50  ;;  %1954 = vmatpush.msrb.mxu1 %v10526_v48  ;;  %v10581_v48 = vld [vmem:[#allocation106_spill] sm:$0xff] }
 0x4d2   :  { %1974 = vmatpush.msrb.mxu2 %v10527_v58  ;;  %1994 = vmatpush.msrb.mxu3 %v10528_v57  ;;  %v10582_v57 = vld [vmem:[#allocation107_spill] sm:$0xff] }
 0x4d3   :  { %1935 = vmatpush.msrb.mxu0 %v10529_v55  ;;  %1955 = vmatpush.msrb.mxu1 %v10530_v52 }
 0x4d4   :  { %1975 = vmatpush.msrb.mxu2 %v10531_v42  ;;  %1995 = vmatpush.msrb.mxu3 %v10532_v51 }
 0x4d5   :  { %1936 = vmatpush.msrb.mxu0 %v10533_v0  ;;  %1956 = vmatpush.msrb.mxu1 %v10534_v53 }
 0x4d6   :  { %1976 = vmatpush.msrb.mxu2 %v10535_v9  ;;  %1996 = vmatpush.msrb.mxu3 %v10536_v5 }
 0x4d7   :  { %1937 = vmatpush.msrb.mxu0 %v10537_v29  ;;  %1957 = vmatpush.msrb.mxu1 %v10538_v36  ;;  %v10583_v29 = vld [vmem:[#allocation108_spill] sm:$0xff] }
 0x4d8   :  { %1977 = vmatpush.msrb.mxu2 %v10539_v4  ;;  %1997 = vmatpush.msrb.mxu3 %v10540_v47 }
 0x4d9   :  { %1938 = vmatpush.msrb.mxu0 %v10541_v54  ;;  %1958 = vmatpush.msrb.mxu1 %v10542_v6 }
 0x4da   :  { %1978 = vmatpush.msrb.mxu2 %v10543_v62  ;;  %1998 = vmatpush.msrb.mxu3 %v10544_v59 }
 0x4db   :  { %1939 = vmatpush.msrb.mxu0 %v10545_v2  ;;  %1959 = vmatpush.msrb.mxu1 %v10546_v7 }
 0x4dc   :  { %1979 = vmatpush.msrb.mxu2 %v10547_v44  ;;  %1999 = vmatpush.msrb.mxu3 %v10548_v63 }
 0x4dd   :  { %1940 = vmatpush.msrb.mxu0 %v10549_v8  ;;  %1960 = vmatpush.msrb.mxu1 %v10550_v61  ;;  %v10584_v61 = vld [vmem:[#allocation109_spill] sm:$0xff] }
 0x4de   :  { %1980 = vmatpush.msrb.mxu2 %v10551_v26  ;;  %2000 = vmatpush.msrb.mxu3 %v10552_v11 }
 0x4df   :  { %1941 = vmatpush.msrb.mxu0 %v10553_v13  ;;  %1961 = vmatpush.msrb.mxu1 %v10554_v28 }
 0x4e0   :  { %1981 = vmatpush.msrb.mxu2 %v10555_v1  ;;  %2001 = vmatpush.msrb.mxu3 %v10556_v19 }
 0x4e1   :  { %1942 = vmatpush.msrb.mxu0 %v10557_v10  ;;  %1962 = vmatpush.msrb.mxu1 %v10558_v12 }
 0x4e2   :  { %1982 = vmatpush.msrb.mxu2 %v10559_v38  ;;  %2002 = vmatpush.msrb.mxu3 %v10560_v43 }
 0x4e3   :  { %1943 = vmatpush.msrb.mxu0 %v10561_v31  ;;  %1963 = vmatpush.msrb.mxu1 %v10562_v18 }
 0x4e4   :  { %1983 = vmatpush.msrb.mxu2 %v10563_v60  ;;  %2003 = vmatpush.msrb.mxu3 %v10564_v32 }
 0x4e5   :  { %1944 = vmatpush.msrb.mxu0 %v10565_v16  ;;  %1964 = vmatpush.msrb.mxu1 %v10566_v23 }
 0x4e6   :  { %1984 = vmatpush.msrb.mxu2 %v10567_v30  ;;  %2004 = vmatpush.msrb.mxu3 %v10568_v15 }
 0x4e7   :  { %1945 = vmatpush.msrb.mxu0 %v10569_v33  ;;  %1965 = vmatpush.msrb.mxu1 %v10570_v21 }
 0x4e8   :  { %1985 = vmatpush.msrb.mxu2 %v10571_v24  ;;  %2005 = vmatpush.msrb.mxu3 %v10572_v14 }
 0x4e9   :  { %1946 = vmatpush.msrb.mxu0 %v10573_v17  ;;  %1966 = vmatpush.msrb.mxu1 %v10574_v20 }
 0x4ea   :  { %1986 = vmatpush.msrb.mxu2 %v10575_v40  ;;  %2006 = vmatpush.msrb.mxu3 %v10576_v25 }
 0x4eb   :  { %1947 = vmatpush.msrb.mxu0 %v10577_v46  ;;  %1967 = vmatpush.msrb.mxu1 %v10578_v35 }
 0x4ec   :  { %1987 = vmatpush.msrb.mxu2 %v10579_v27  ;;  %2007 = vmatpush.msrb.mxu3 %v10580_v56 }
 0x526   :  { %v1639_v34 = vpop.f32.mrf.mxu0  ;;  %v1659_v37 = vpop.f32.mrf.mxu1 }
 0x52d   :  { %v1699_v39 = vpop.f32.mrf.mxu3  ;;  %v1679_v51 = vpop.f32.mrf.mxu2 }
 0x52e   :  { %v1719_v41 = vpop.f32.mrf.mxu0  ;;  %v1739_v45 = vpop.f32.mrf.mxu1 }
 0x52f   :  { %v1720_v49 = vadd.f32 %v1719_v41, %v1639_v34  ;;  %v1740_v50 = vadd.f32 %v1739_v45, %v1659_v37 }
 0x531   :  { %v1782_v58 = vadd.f32 %v1720_v49, %v10581_v48  ;;  %v1783_v55 = vadd.f32 %v1740_v50, %v10582_v57  ;;  %v6974_v50 = vld [vmem:[#allocation8 + $0x3e0] sm:$0xff]  ;;  %v7160_v57 = vld [vmem:[#allocation8 + $0x210] sm:$0xff]  ;;  %v7162_v48 = vld [vmem:[#allocation8 + $0x218] sm:$0xff] }
 0x532   :  { %10596 = vst [vmem:[#allocation26_spill] sm:$0xff] %v7160_v57 }
 0x533   :  { %v1786_v52 = vsub.f32 0.0, %v1782_v58  ;;  %v1805_v42 = vsub.f32 0.0, %v1783_v55  ;;  %v6980_v58 = vld [vmem:[#allocation8 + $0x3f0] sm:$0xff]  ;;  %v6982_v55 = vld [vmem:[#allocation8 + $0x3f8] sm:$0xff]  ;;  %10597 = vst [vmem:[#allocation28_spill] sm:$0xff] %v7162_v48 }
 0x535   :  { %v1787_v0 = vmul.f32 1.442695, %v1786_v52  ;;  %v1806_v53 = vmul.f32 1.442695, %v1805_v42  ;;  %v1779_v9 = vpop.f32.mrf.mxu3  ;;  %v1759_v2 = vpop.f32.mrf.mxu2  ;;  %v6986_v52 = vld [vmem:[#allocation8 + $0x3c0] sm:$0xff]  ;;  %v6988_v42 = vld [vmem:[#allocation8 + $0x3c8] sm:$0xff] }
 0x536   :  { %v1780_v5 = vadd.f32 %v1779_v9, %v1699_v39  ;;  %v1760_v7 = vadd.f32 %v1759_v2, %v1679_v51  ;;  %v6992_v51 = vld [vmem:[#allocation8 + $0x3d0] sm:$0xff]  ;;  %v7000_v9 = vld [vmem:[#allocation8 + $0x3a8] sm:$0xff] }
 0x537   :  { %4213 = vpow2.f32 %v1787_v0  ;;  %v6994_v0 = vld [vmem:[#allocation8 + $0x3d8] sm:$0xff]  ;;  %v7028_v2 = vld [vmem:[#allocation8 + $0x368] sm:$0xff] }
 0x538   :  { %4215 = vpow2.f32 %v1806_v53  ;;  %v1785_v36 = vadd.f32 %v1780_v5, %v10583_v29  ;;  %v1784_v26 = vadd.f32 %v1760_v7, %v10584_v61  ;;  %v6998_v53 = vld [vmem:[#allocation8 + $0x3a0] sm:$0xff]  ;;  %v7004_v5 = vld [vmem:[#allocation8 + $0x3b0] sm:$0xff]  ;;  %v7156_v29 = vld [vmem:[#allocation8 + $0x208] sm:$0xff] }
 0x539   :  { %v7030_v7 = vld [vmem:[#allocation8 + $0x370] sm:$0xff]  ;;  %v7154_v61 = vld [vmem:[#allocation8 + $0x200] sm:$0xff]  ;;  %10595 = vst [vmem:[#allocation35_spill] sm:$0xff] %v7156_v29 }
 0x53a   :  { %v1825_v4 = vsub.f32 0.0, %v1785_v36  ;;  %v7006_v36 = vld [vmem:[#allocation8 + $0x3b8] sm:$0xff]  ;;  %10594 = vst [vmem:[#allocation25_spill] sm:$0xff] %v7154_v61 }
 0x53c   :  { %v1826_v47 = vmul.f32 1.442695, %v1825_v4  ;;  %v7010_v4 = vld [vmem:[#allocation8 + $0x380] sm:$0xff] }
 0x53d   :  { %v4214_v54 = vpop.eup %4213 }
 0x53e   :  { %v4216_v6 = vpop.eup %4215  ;;  %v1789_v62 = vadd.f32 1.0, %v4214_v54  ;;  %4217 = vpow2.f32 %v1826_v47  ;;  %v7012_v47 = vld [vmem:[#allocation8 + $0x388] sm:$0xff]  ;;  %v7016_v54 = vld [vmem:[#allocation8 + $0x390] sm:$0xff] }
 0x53f   :  { %v1808_v59 = vadd.f32 1.0, %v4216_v6  ;;  %v7018_v6 = vld [vmem:[#allocation8 + $0x398] sm:$0xff] }
 0x540   :  { %4219 = vrcp.f32 %v1789_v62  ;;  %v1801_v10 = vand.u32 2147483648, %v1789_v62  ;;  %v1799_v43 = vand.u32 2147483647, %v1789_v62  ;;  %vm1795_vm10 = vweird.f32 %v1789_v62 }
 0x541   :  { %4221 = vrcp.f32 %v1808_v59  ;;  %v1820_v12 = vand.u32 2147483648, %v1808_v59  ;;  %v1818_v18 = vand.u32 2147483647, %v1808_v59  ;;  %vm1814_vm11 = vweird.f32 %v1808_v59 }
 0x542   :  { %v1802_v16 = vor.u32 1.1754944e-38, %v1801_v10  ;;  %vm1800_vm14 = vcmp.eq.f32.partialorder %v1799_v43, 8.507059e+37  ;;  %v7058_v10 = vld [vmem:[#allocation8 + $0x300] sm:$0xff]  ;;  %v7066_v43 = vld [vmem:[#allocation8 + $0x318] sm:$0xff] }
 0x543   :  { %v1821_v15 = vor.u32 1.1754944e-38, %v1820_v12  ;;  %vm1819_vm15 = vcmp.eq.f32.partialorder %v1818_v18, 8.507059e+37  ;;  %v7060_v12 = vld [vmem:[#allocation8 + $0x308] sm:$0xff] }
 0x544   :  { %v4218_v44 = vpop.eup %4217  ;;  %v7072_v18 = vld [vmem:[#allocation8 + $0x2e8] sm:$0xff] }
 0x545   :  { %v1828_v63 = vadd.f32 1.0, %v4218_v44  ;;  %v7032_v44 = vld [vmem:[#allocation8 + $0x378] sm:$0xff] }
 0x546   :  { %v4220_v8 = vpop.eup %4219 }
 0x547   :  { %v4222_v11 = vpop.eup %4221  ;;  %v1791_v13 = vmul.f32 %v4220_v8, %v1789_v62  ;;  %4223 = vrcp.f32 %v1828_v63  ;;  %vm1796_vm8 = vweird.f32 %v4220_v8  ;;  %v1840_v56 = vand.u32 2147483648, %v1828_v63  ;;  %v94_v62 = vld [vmem:[#allocation3 + $0x38] sm:$0xff] }
 0x548   :  { %v1810_v28 = vmul.f32 %v4222_v11, %v1808_v59  ;;  %4225 = vtanh.f32 %v1784_v26  ;;  %vm1815_vm9 = vweird.f32 %v4222_v11  ;;  %vm1797_vm12 = vmor %vm1795_vm10, %vm1796_vm8  ;;  %vm1834_vm1 = vweird.f32 %v1828_v63  ;;  %v7026_v59 = vld [vmem:[#allocation8 + $0x360] sm:$0xff]  ;;  %v7040_v26 = vld [vmem:[#allocation8 + $0x350] sm:$0xff] }
 0x549   :  { %v1792_v1 = vsub.f32 1.0, %v1791_v13  ;;  %vm1816_vm13 = vmor %vm1814_vm11, %vm1815_vm9  ;;  %v1838_v34 = vand.u32 2147483647, %v1828_v63  ;;  %v1841_v39 = vor.u32 1.1754944e-38, %v1840_v56  ;;  %v7046_v13 = vld [vmem:[#allocation8 + $0x320] sm:$0xff]  ;;  %v7124_v56 = vld [vmem:[#allocation8 + $0x270] sm:$0xff] }
 0x54a   :  { %v1811_v19 = vsub.f32 1.0, %v1810_v28  ;;  %v7048_v28 = vld [vmem:[#allocation8 + $0x328] sm:$0xff] }
 0x54b   :  { %v1793_v38 = vmul.f32 %v4220_v8, %v1792_v1  ;;  %vm1839_vm3 = vcmp.eq.f32.partialorder %v1838_v34, 8.507059e+37  ;;  %v7052_v1 = vld [vmem:[#allocation8 + $0x330] sm:$0xff]  ;;  %v7126_v34 = vld [vmem:[#allocation8 + $0x278] sm:$0xff] }
 0x54c   :  { %v1812_v31 = vmul.f32 %v4222_v11, %v1811_v19  ;;  %v7054_v19 = vld [vmem:[#allocation8 + $0x338] sm:$0xff] }
 0x54d   :  { %v4224_v60 = vpop.eup %4223  ;;  %v1794_v32 = vadd.f32 %v4220_v8, %v1793_v38  ;;  %v7064_v38 = vld [vmem:[#allocation8 + $0x310] sm:$0xff] }
 0x54e   :  { %v1813_v23 = vadd.f32 %v4222_v11, %v1812_v31  ;;  %v1830_v30 = vmul.f32 %v4224_v60, %v1828_v63  ;;  %v4226_v21 = vpop.eup %4225  ;;  %vm1835_vm0 = vweird.f32 %v4224_v60  ;;  %v7034_v63 = vld [vmem:[#allocation8 + $0x340] sm:$0xff] }
 0x54f   :  { %v1798_v33 = vsel %vm1797_vm12, %v4220_v8, %v1794_v32  ;;  %vm1836_vm2 = vmor %vm1834_vm1, %vm1835_vm0  ;;  %v7036_v8 = vld [vmem:[#allocation8 + $0x348] sm:$0xff]  ;;  %v7070_v31 = vld [vmem:[#allocation8 + $0x2e0] sm:$0xff] }
 0x550   :  { %v1803_v24 = vsel %vm1800_vm14, %v1802_v16, %v1798_v33  ;;  %v1817_v14 = vsel %vm1816_vm13, %v4222_v11, %v1813_v23  ;;  %v1831_v17 = vsub.f32 1.0, %v1830_v30  ;;  %v7042_v11 = vld [vmem:[#allocation8 + $0x358] sm:$0xff]  ;;  %v7082_v16 = vld [vmem:[#allocation8 + $0x2c0] sm:$0xff]  ;;  %v7084_v23 = vld [vmem:[#allocation8 + $0x2c8] sm:$0xff] }
 0x551   :  { %v1822_v20 = vsel %vm1819_vm15, %v1821_v15, %v1817_v14  ;;  %v1845_v40 = vmul.f32 %v4226_v21, %v1803_v24  ;;  %v7078_v32 = vld [vmem:[#allocation8 + $0x2f8] sm:$0xff]  ;;  %v7088_v30 = vld [vmem:[#allocation8 + $0x2d0] sm:$0xff]  ;;  %v7094_v33 = vld [vmem:[#allocation8 + $0x2a0] sm:$0xff] }
 0x552   :  { %v1844_v25 = vmul.f32 %v1822_v20, %v6827_v3  ;;  %v1832_v46 = vmul.f32 %v4224_v60, %v1831_v17  ;;  %v6976_v3 = vld [vmem:[#allocation8 + $0x3e8] sm:$0xff]  ;;  %v7090_v15 = vld [vmem:[#allocation8 + $0x2d8] sm:$0xff]  ;;  %v7100_v24 = vld [vmem:[#allocation8 + $0x2b0] sm:$0xff] }
 0x553   :  { %v7096_v21 = vld [vmem:[#allocation8 + $0x2a8] sm:$0xff]  ;;  %v7102_v14 = vld [vmem:[#allocation8 + $0x2b8] sm:$0xff]  ;;  %v7106_v17 = vld [vmem:[#allocation8 + $0x280] sm:$0xff] }
 0x554   :  { %v6969_v35 = vadd.f32 %v1845_v40, %v1844_v25  ;;  %v1833_v27 = vadd.f32 %v4224_v60, %v1832_v46  ;;  %v7108_v20 = vld [vmem:[#allocation8 + $0x288] sm:$0xff]  ;;  %v7112_v40 = vld [vmem:[#allocation8 + $0x290] sm:$0xff]  ;;  %v7114_v25 = vld [vmem:[#allocation8 + $0x298] sm:$0xff] }
 0x555   :  { %v7118_v46 = vld [vmem:[#allocation8 + $0x260] sm:$0xff] }
 0x556   :  { %10585 = vst [vmem:[#allocation17_spill] sm:$0xff] %v6969_v35  ;;  %4227 = vtanh.f32 %v6969_v35  ;;  %v1837_v37 = vsel %vm1836_vm2, %v4224_v60, %v1833_v27  ;;  %v7076_v60 = vld [vmem:[#allocation8 + $0x2f0] sm:$0xff]  ;;  %v7120_v27 = vld [vmem:[#allocation8 + $0x268] sm:$0xff]  ;;  %v7150_v35 = vld [vmem:[#allocation8 + $0x238] sm:$0xff] }
 0x557   :  { %v1842_v45 = vsel %vm1839_vm3, %v1841_v39, %v1837_v37  ;;  %v7130_v37 = vld [vmem:[#allocation8 + $0x240] sm:$0xff]  ;;  %v7132_v39 = vld [vmem:[#allocation8 + $0x248] sm:$0xff]  ;;  %10593 = vst [vmem:[#allocation24_spill] sm:$0xff] %v7150_v35 }
 0x558   :  { %10587 = vst [vmem:[#allocation27_spill] sm:$0xff] %v7132_v39 }
 0x55c   :  { %v4228_v41 = vpop.eup %4227 }
 0x55d   :  { %v6972_v49 = vmul.f32 %v4228_v41, %v1842_v45  ;;  %v7136_v41 = vld [vmem:[#allocation8 + $0x250] sm:$0xff]  ;;  %v7138_v45 = vld [vmem:[#allocation8 + $0x258] sm:$0xff] }
 0x55e   :  { %10588 = vst [vmem:[#allocation19_spill] sm:$0xff] %v7136_v41 }
 0x55f   :  { %10586 = vst [vmem:[#allocation18_spill] sm:$0xff] %v6972_v49  ;;  %1868 = vmatmul.f32.vlgmr.msra.gmra.mxu0 %v6972_v49  ;;  %1888 = vmatmul.f32.vlgmr.msra.gmra.mxu1 %v6972_v49 }
 0x560   :  { %1908 = vmatmul.f32.vlgmr.msra.gmra.mxu2 %v6972_v49  ;;  %1928 = vmatmul.f32.vlgmr.msra.gmra.mxu3 %v6972_v49  ;;  %10589 = vst [vmem:[#allocation20_spill] sm:$0xff] %v7138_v45  ;;  %v7144_v49 = vld [vmem:[#allocation8 + $0x228] sm:$0xff] }
 0x561   :  { %2213 = vmatpush.msra.mxu0 %v6974_v50  ;;  %2233 = vmatpush.msra.mxu1 %v6976_v3  ;;  %10591 = vst [vmem:[#allocation31_spill] sm:$0xff] %v7144_v49 }
 0x562   :  { %2253 = vmatpush.msra.mxu2 %v6980_v58  ;;  %2273 = vmatpush.msra.mxu3 %v6982_v55 }
 0x563   :  { %2214 = vmatpush.msra.mxu0 %v6986_v52  ;;  %2234 = vmatpush.msra.mxu1 %v6988_v42 }
 0x564   :  { %2254 = vmatpush.msra.mxu2 %v6992_v51  ;;  %2274 = vmatpush.msra.mxu3 %v6994_v0 }
 0x565   :  { %2215 = vmatpush.msra.mxu0 %v6998_v53  ;;  %2235 = vmatpush.msra.mxu1 %v7000_v9 }
 0x566   :  { %2255 = vmatpush.msra.mxu2 %v7004_v5  ;;  %2275 = vmatpush.msra.mxu3 %v7006_v36 }
 0x567   :  { %2216 = vmatpush.msra.mxu0 %v7010_v4  ;;  %2236 = vmatpush.msra.mxu1 %v7012_v47 }
 0x568   :  { %2256 = vmatpush.msra.mxu2 %v7016_v54  ;;  %2276 = vmatpush.msra.mxu3 %v7018_v6 }
 0x569   :  { %1948 = vmatmul.f32.vlgmr.msrb.gmra.mxu0 %v94_v62  ;;  %1968 = vmatmul.f32.vlgmr.msrb.gmra.mxu1 %v94_v62 }
 0x56a   :  { %1988 = vmatmul.f32.vlgmr.msrb.gmra.mxu2 %v94_v62  ;;  %2008 = vmatmul.f32.vlgmr.msrb.gmra.mxu3 %v94_v62  ;;  %v7142_v62 = vld [vmem:[#allocation8 + $0x220] sm:$0xff] }
 0x56b   :  { %2217 = vmatpush.msra.mxu0 %v7026_v59  ;;  %2237 = vmatpush.msra.mxu1 %v7028_v2  ;;  %10590 = vst [vmem:[#allocation21_spill] sm:$0xff] %v7142_v62 }
 0x56c   :  { %2257 = vmatpush.msra.mxu2 %v7030_v7  ;;  %2277 = vmatpush.msra.mxu3 %v7032_v44 }
 0x56d   :  { %2218 = vmatpush.msra.mxu0 %v7034_v63  ;;  %2238 = vmatpush.msra.mxu1 %v7036_v8 }
 0x56e   :  { %2258 = vmatpush.msra.mxu2 %v7040_v26  ;;  %2278 = vmatpush.msra.mxu3 %v7042_v11 }
 0x56f   :  { %2219 = vmatpush.msra.mxu0 %v7046_v13  ;;  %2239 = vmatpush.msra.mxu1 %v7048_v28 }
 0x570   :  { %2259 = vmatpush.msra.mxu2 %v7052_v1  ;;  %2279 = vmatpush.msra.mxu3 %v7054_v19 }
 0x571   :  { %2220 = vmatpush.msra.mxu0 %v7058_v10  ;;  %2240 = vmatpush.msra.mxu1 %v7060_v12 }
 0x572   :  { %2260 = vmatpush.msra.mxu2 %v7064_v38  ;;  %2280 = vmatpush.msra.mxu3 %v7066_v43 }
 0x573   :  { %2221 = vmatpush.msra.mxu0 %v7070_v31  ;;  %2241 = vmatpush.msra.mxu1 %v7072_v18 }
 0x574   :  { %2261 = vmatpush.msra.mxu2 %v7076_v60  ;;  %2281 = vmatpush.msra.mxu3 %v7078_v32 }
 0x575   :  { %2222 = vmatpush.msra.mxu0 %v7082_v16  ;;  %2242 = vmatpush.msra.mxu1 %v7084_v23 }
 0x576   :  { %2262 = vmatpush.msra.mxu2 %v7088_v30  ;;  %2282 = vmatpush.msra.mxu3 %v7090_v15 }
 0x577   :  { %2223 = vmatpush.msra.mxu0 %v7094_v33  ;;  %2243 = vmatpush.msra.mxu1 %v7096_v21 }
 0x578   :  { %2263 = vmatpush.msra.mxu2 %v7100_v24  ;;  %2283 = vmatpush.msra.mxu3 %v7102_v14 }
 0x579   :  { %2224 = vmatpush.msra.mxu0 %v7106_v17  ;;  %2244 = vmatpush.msra.mxu1 %v7108_v20 }
 0x57a   :  { %2264 = vmatpush.msra.mxu2 %v7112_v40  ;;  %2284 = vmatpush.msra.mxu3 %v7114_v25 }
 0x57b   :  { %2225 = vmatpush.msra.mxu0 %v7118_v46  ;;  %2245 = vmatpush.msra.mxu1 %v7120_v27 }
 0x57c   :  { %2265 = vmatpush.msra.mxu2 %v7124_v56  ;;  %2285 = vmatpush.msra.mxu3 %v7126_v34 }
 0x57d   :  { %2226 = vmatpush.msra.mxu0 %v7130_v37  ;;  %2246 = vmatpush.msra.mxu1 %v7132_v39  ;;  %v7166_v39 = vld [vmem:[#allocation6 + $0x3e0] sm:$0xff] }
 0x57e   :  { %2266 = vmatpush.msra.mxu2 %v7136_v41  ;;  %2286 = vmatpush.msra.mxu3 %v7138_v45  ;;  %10598 = vst [vmem:[#allocation29_spill] sm:$0xff] %v7166_v39  ;;  %v7168_v41 = vld [vmem:[#allocation6 + $0x3e8] sm:$0xff]  ;;  %v7172_v45 = vld [vmem:[#allocation6 + $0x3f0] sm:$0xff] }
 0x57f   :  { %2227 = vmatpush.msra.mxu0 %v7142_v62  ;;  %2247 = vmatpush.msra.mxu1 %v7144_v49  ;;  %10599 = vst [vmem:[#allocation43_spill] sm:$0xff] %v7168_v41  ;;  %v7174_v62 = vld [vmem:[#allocation6 + $0x3f8] sm:$0xff]  ;;  %v7178_v49 = vld [vmem:[#allocation6 + $0x3c0] sm:$0xff] }
 0x580   :  { %2267 = vmatpush.msra.mxu2 %v7148_v22  ;;  %2287 = vmatpush.msra.mxu3 %v7150_v35  ;;  %10600 = vst [vmem:[#allocation30_spill] sm:$0xff] %v7172_v45  ;;  %v7180_v22 = vld [vmem:[#allocation6 + $0x3c8] sm:$0xff]  ;;  %v7184_v35 = vld [vmem:[#allocation6 + $0x3d0] sm:$0xff] }
 0x581   :  { %2228 = vmatpush.msra.mxu0 %v7154_v61  ;;  %2248 = vmatpush.msra.mxu1 %v7156_v29  ;;  %10601 = vst [vmem:[#allocation32_spill] sm:$0xff] %v7174_v62  ;;  %v7186_v61 = vld [vmem:[#allocation6 + $0x3d8] sm:$0xff]  ;;  %v7190_v29 = vld [vmem:[#allocation6 + $0x3a0] sm:$0xff] }
 0x582   :  { %2268 = vmatpush.msra.mxu2 %v7160_v57  ;;  %2288 = vmatpush.msra.mxu3 %v7162_v48  ;;  %10602 = vst [vmem:[#allocation33_spill] sm:$0xff] %v7178_v49  ;;  %v7192_v57 = vld [vmem:[#allocation6 + $0x3a8] sm:$0xff]  ;;  %v7196_v48 = vld [vmem:[#allocation6 + $0x3b0] sm:$0xff] }
 0x583   :  { %10603 = vst [vmem:[#allocation47_spill] sm:$0xff] %v7180_v22  ;;  %2293 = vmatpush.msrb.mxu0 %v7166_v39  ;;  %2313 = vmatpush.msrb.mxu1 %v7168_v41  ;;  %v7198_v39 = vld [vmem:[#allocation6 + $0x3b8] sm:$0xff]  ;;  %v7202_v41 = vld [vmem:[#allocation6 + $0x380] sm:$0xff] }
 0x584   :  { %10604 = vst [vmem:[#allocation34_spill] sm:$0xff] %v7184_v35  ;;  %2333 = vmatpush.msrb.mxu2 %v7172_v45  ;;  %2353 = vmatpush.msrb.mxu3 %v7174_v62  ;;  %v7204_v45 = vld [vmem:[#allocation6 + $0x388] sm:$0xff]  ;;  %v7208_v62 = vld [vmem:[#allocation6 + $0x390] sm:$0xff] }
 0x585   :  { %10605 = vst [vmem:[#allocation36_spill] sm:$0xff] %v7186_v61  ;;  %2294 = vmatpush.msrb.mxu0 %v7178_v49  ;;  %2314 = vmatpush.msrb.mxu1 %v7180_v22  ;;  %v7210_v49 = vld [vmem:[#allocation6 + $0x398] sm:$0xff]  ;;  %v7214_v22 = vld [vmem:[#allocation6 + $0x360] sm:$0xff] }
 0x586   :  { %10606 = vst [vmem:[#allocation37_spill] sm:$0xff] %v7190_v29  ;;  %2334 = vmatpush.msrb.mxu2 %v7184_v35  ;;  %2354 = vmatpush.msrb.mxu3 %v7186_v61  ;;  %v7216_v35 = vld [vmem:[#allocation6 + $0x368] sm:$0xff]  ;;  %v7220_v61 = vld [vmem:[#allocation6 + $0x370] sm:$0xff] }
 0x587   :  { %10607 = vst [vmem:[#allocation51_spill] sm:$0xff] %v7192_v57  ;;  %2295 = vmatpush.msrb.mxu0 %v7190_v29  ;;  %2315 = vmatpush.msrb.mxu1 %v7192_v57  ;;  %v7222_v29 = vld [vmem:[#allocation6 + $0x378] sm:$0xff]  ;;  %v7226_v57 = vld [vmem:[#allocation6 + $0x340] sm:$0xff] }
 0x588   :  { %10608 = vst [vmem:[#allocation38_spill] sm:$0xff] %v7196_v48  ;;  %2335 = vmatpush.msrb.mxu2 %v7196_v48  ;;  %2355 = vmatpush.msrb.mxu3 %v7198_v39  ;;  %v7228_v48 = vld [vmem:[#allocation6 + $0x348] sm:$0xff] }
 0x589   :  { %10609 = vst [vmem:[#allocation39_spill] sm:$0xff] %v7198_v39  ;;  %2296 = vmatpush.msrb.mxu0 %v7202_v41  ;;  %2316 = vmatpush.msrb.mxu1 %v7204_v45  ;;  %v7232_v39 = vld [vmem:[#allocation6 + $0x350] sm:$0xff] }
 0x58a   :  { %10610 = vst [vmem:[#allocation40_spill] sm:$0xff] %v7202_v41  ;;  %2336 = vmatpush.msrb.mxu2 %v7208_v62  ;;  %2356 = vmatpush.msrb.mxu3 %v7210_v49  ;;  %v7234_v41 = vld [vmem:[#allocation6 + $0x358] sm:$0xff] }
 0x58b   :  { %10611 = vst [vmem:[#allocation55_spill] sm:$0xff] %v7204_v45  ;;  %2297 = vmatpush.msrb.mxu0 %v7214_v22  ;;  %2317 = vmatpush.msrb.mxu1 %v7216_v35  ;;  %v7238_v45 = vld [vmem:[#allocation6 + $0x320] sm:$0xff] }
 0x58c   :  { %10612 = vst [vmem:[#allocation41_spill] sm:$0xff] %v7208_v62  ;;  %2337 = vmatpush.msrb.mxu2 %v7220_v61  ;;  %2357 = vmatpush.msrb.mxu3 %v7222_v29  ;;  %v7240_v62 = vld [vmem:[#allocation6 + $0x328] sm:$0xff] }
 0x58d   :  { %10613 = vst [vmem:[#allocation42_spill] sm:$0xff] %v7210_v49  ;;  %2298 = vmatpush.msrb.mxu0 %v7226_v57  ;;  %2318 = vmatpush.msrb.mxu1 %v7228_v48  ;;  %v7244_v49 = vld [vmem:[#allocation6 + $0x330] sm:$0xff] }
 0x58e   :  { %10614 = vst [vmem:[#allocation44_spill] sm:$0xff] %v7214_v22  ;;  %v7246_v22 = vld [vmem:[#allocation6 + $0x338] sm:$0xff]  ;;  %2338 = vmatpush.msrb.mxu2 %v7232_v39  ;;  %2358 = vmatpush.msrb.mxu3 %v7234_v41 }
 0x58f   :  { %10615 = vst [vmem:[#allocation59_spill] sm:$0xff] %v7216_v35  ;;  %v7250_v35 = vld [vmem:[#allocation6 + $0x300] sm:$0xff]  ;;  %2299 = vmatpush.msrb.mxu0 %v7238_v45  ;;  %2319 = vmatpush.msrb.mxu1 %v7240_v62 }
 0x590   :  { %10616 = vst [vmem:[#allocation45_spill] sm:$0xff] %v7220_v61  ;;  %v7252_v61 = vld [vmem:[#allocation6 + $0x308] sm:$0xff]  ;;  %2339 = vmatpush.msrb.mxu2 %v7244_v49  ;;  %2359 = vmatpush.msrb.mxu3 %v7246_v22 }
 0x591   :  { %10617 = vst [vmem:[#allocation46_spill] sm:$0xff] %v7222_v29  ;;  %v7256_v29 = vld [vmem:[#allocation6 + $0x310] sm:$0xff]  ;;  %2300 = vmatpush.msrb.mxu0 %v7250_v35  ;;  %2320 = vmatpush.msrb.mxu1 %v7252_v61 }
 0x592   :  { %10618 = vst [vmem:[#allocation48_spill] sm:$0xff] %v7226_v57  ;;  %v7258_v57 = vld [vmem:[#allocation6 + $0x318] sm:$0xff]  ;;  %2340 = vmatpush.msrb.mxu2 %v7256_v29 }
 0x593   :  { %10619 = vst [vmem:[#allocation63_spill] sm:$0xff] %v7228_v48  ;;  %v7262_v48 = vld [vmem:[#allocation6 + $0x2e0] sm:$0xff]  ;;  %2360 = vmatpush.msrb.mxu3 %v7258_v57 }
 0x594   :  { %10620 = vst [vmem:[#allocation49_spill] sm:$0xff] %v7232_v39  ;;  %v7264_v39 = vld [vmem:[#allocation6 + $0x2e8] sm:$0xff]  ;;  %2301 = vmatpush.msrb.mxu0 %v7262_v48 }
 0x595   :  { %10621 = vst [vmem:[#allocation50_spill] sm:$0xff] %v7234_v41  ;;  %v7268_v41 = vld [vmem:[#allocation6 + $0x2f0] sm:$0xff]  ;;  %2321 = vmatpush.msrb.mxu1 %v7264_v39 }
 0x596   :  { %10622 = vst [vmem:[#allocation52_spill] sm:$0xff] %v7238_v45  ;;  %v7270_v45 = vld [vmem:[#allocation6 + $0x2f8] sm:$0xff]  ;;  %2341 = vmatpush.msrb.mxu2 %v7268_v41 }
 0x597   :  { %10623 = vst [vmem:[#allocation67_spill] sm:$0xff] %v7240_v62  ;;  %v7274_v62 = vld [vmem:[#allocation6 + $0x2c0] sm:$0xff]  ;;  %2361 = vmatpush.msrb.mxu3 %v7270_v45 }
 0x598   :  { %10624 = vst [vmem:[#allocation53_spill] sm:$0xff] %v7244_v49  ;;  %v7276_v49 = vld [vmem:[#allocation6 + $0x2c8] sm:$0xff]  ;;  %2302 = vmatpush.msrb.mxu0 %v7274_v62 }
 0x599   :  { %10625 = vst [vmem:[#allocation54_spill] sm:$0xff] %v7246_v22  ;;  %v7280_v22 = vld [vmem:[#allocation6 + $0x2d0] sm:$0xff]  ;;  %2322 = vmatpush.msrb.mxu1 %v7276_v49 }
 0x59a   :  { %10626 = vst [vmem:[#allocation56_spill] sm:$0xff] %v7250_v35  ;;  %v7282_v35 = vld [vmem:[#allocation6 + $0x2d8] sm:$0xff]  ;;  %2342 = vmatpush.msrb.mxu2 %v7280_v22 }
 0x59b   :  { %10627 = vst [vmem:[#allocation71_spill] sm:$0xff] %v7252_v61  ;;  %v7286_v61 = vld [vmem:[#allocation6 + $0x2a0] sm:$0xff]  ;;  %2362 = vmatpush.msrb.mxu3 %v7282_v35 }
 0x59c   :  { %10628 = vst [vmem:[#allocation57_spill] sm:$0xff] %v7256_v29  ;;  %v7288_v29 = vld [vmem:[#allocation6 + $0x2a8] sm:$0xff]  ;;  %2303 = vmatpush.msrb.mxu0 %v7286_v61 }
 0x59d   :  { %10629 = vst [vmem:[#allocation58_spill] sm:$0xff] %v7258_v57  ;;  %v7292_v57 = vld [vmem:[#allocation6 + $0x2b0] sm:$0xff]  ;;  %2323 = vmatpush.msrb.mxu1 %v7288_v29 }
 0x59e   :  { %10630 = vst [vmem:[#allocation60_spill] sm:$0xff] %v7262_v48  ;;  %v7294_v48 = vld [vmem:[#allocation6 + $0x2b8] sm:$0xff]  ;;  %2343 = vmatpush.msrb.mxu2 %v7292_v57 }
 0x59f   :  { %10631 = vst [vmem:[#allocation75_spill] sm:$0xff] %v7264_v39  ;;  %v7298_v39 = vld [vmem:[#allocation6 + $0x280] sm:$0xff]  ;;  %2363 = vmatpush.msrb.mxu3 %v7294_v48 }
 0x5a0   :  { %10632 = vst [vmem:[#allocation61_spill] sm:$0xff] %v7268_v41  ;;  %v7300_v41 = vld [vmem:[#allocation6 + $0x288] sm:$0xff]  ;;  %2304 = vmatpush.msrb.mxu0 %v7298_v39 }
 0x5a1   :  { %10633 = vst [vmem:[#allocation62_spill] sm:$0xff] %v7270_v45  ;;  %v7304_v45 = vld [vmem:[#allocation6 + $0x290] sm:$0xff]  ;;  %2324 = vmatpush.msrb.mxu1 %v7300_v41 }
 0x5a2   :  { %10634 = vst [vmem:[#allocation64_spill] sm:$0xff] %v7274_v62  ;;  %v7306_v62 = vld [vmem:[#allocation6 + $0x298] sm:$0xff]  ;;  %2344 = vmatpush.msrb.mxu2 %v7304_v45 }
 0x5a3   :  { %10635 = vst [vmem:[#allocation79_spill] sm:$0xff] %v7276_v49  ;;  %2364 = vmatpush.msrb.mxu3 %v7306_v62  ;;  %v7340_v49 = vld [vmem:[#allocation6 + $0x228] sm:$0xff] }
 0x5a4   :  { %10636 = vst [vmem:[#allocation65_spill] sm:$0xff] %v7280_v22  ;;  %v7320_v22 = vld [vmem:[#allocation6 + $0x270] sm:$0xff] }
 0x5a5   :  { %10637 = vst [vmem:[#allocation66_spill] sm:$0xff] %v7282_v35  ;;  %v7314_v35 = vld [vmem:[#allocation6 + $0x260] sm:$0xff]  ;;  %2345 = vmatpush.msrb.mxu2 %v7320_v22 }
 0x5a6   :  { %10638 = vst [vmem:[#allocation68_spill] sm:$0xff] %v7286_v61  ;;  %v7316_v61 = vld [vmem:[#allocation6 + $0x268] sm:$0xff]  ;;  %2305 = vmatpush.msrb.mxu0 %v7314_v35 }
 0x5a7   :  { %10639 = vst [vmem:[#allocation85_spill] sm:$0xff] %v7288_v29  ;;  %v10648_v29 = vmov 0.0   ;;  %2325 = vmatpush.msrb.mxu1 %v7316_v61 }
 0x5a8   :  { %10640 = vst [vmem:[#allocation69_spill] sm:$0xff] %v7292_v57  ;;  %2229 = vmatmul.f32.vlgmr.msra.gmra.mxu0 %v10648_v29  ;;  %2249 = vmatmul.f32.vlgmr.msra.gmra.mxu1 %v10648_v29  ;;  %v7322_v57 = vld [vmem:[#allocation6 + $0x278] sm:$0xff] }
 0x5a9   :  { %10641 = vst [vmem:[#allocation70_spill] sm:$0xff] %v7294_v48  ;;  %2269 = vmatmul.f32.vlgmr.msra.gmra.mxu2 %v10648_v29  ;;  %2289 = vmatmul.f32.vlgmr.msra.gmra.mxu3 %v10648_v29  ;;  %v7338_v48 = vld [vmem:[#allocation6 + $0x220] sm:$0xff]  ;;  %v7344_v29 = vld [vmem:[#allocation6 + $0x230] sm:$0xff] }
 0x5aa   :  { %10642 = vst [vmem:[#allocation72_spill] sm:$0xff] %v7298_v39  ;;  %v7334_v39 = vld [vmem:[#allocation6 + $0x258] sm:$0xff]  ;;  %2365 = vmatpush.msrb.mxu3 %v7322_v57 }
 0x5ab   :  { %10643 = vst [vmem:[#allocation89_spill] sm:$0xff] %v7300_v41  ;;  %v7326_v41 = vld [vmem:[#allocation6 + $0x240] sm:$0xff] }
 0x5ac   :  { %10644 = vst [vmem:[#allocation73_spill] sm:$0xff] %v7304_v45  ;;  %v7328_v45 = vld [vmem:[#allocation6 + $0x248] sm:$0xff]  ;;  %2306 = vmatpush.msrb.mxu0 %v7326_v41  ;;  %2366 = vmatpush.msrb.mxu3 %v7334_v39 }
 0x5ad   :  { %10645 = vst [vmem:[#allocation74_spill] sm:$0xff] %v7306_v62  ;;  %v7332_v62 = vld [vmem:[#allocation6 + $0x250] sm:$0xff]  ;;  %2326 = vmatpush.msrb.mxu1 %v7328_v45 }
 0x5ae   :  { %10646 = vst [vmem:[#allocation76_spill] sm:$0xff] %v7314_v35  ;;  %v7346_v35 = vld [vmem:[#allocation6 + $0x238] sm:$0xff]  ;;  %2346 = vmatpush.msrb.mxu2 %v7332_v62  ;;  %2307 = vmatpush.msrb.mxu0 %v7338_v48 }
 0x5af   :  { %10647 = vst [vmem:[#allocation93_spill] sm:$0xff] %v7316_v61  ;;  %v7350_v61 = vld [vmem:[#allocation6 + $0x200] sm:$0xff]  ;;  %2327 = vmatpush.msrb.mxu1 %v7340_v49  ;;  %2367 = vmatpush.msrb.mxu3 %v7346_v35 }
 0x5b0   :  { %10649 = vst [vmem:[#allocation77_spill] sm:$0xff] %v7320_v22  ;;  %v7352_v22 = vld [vmem:[#allocation6 + $0x208] sm:$0xff]  ;;  %2347 = vmatpush.msrb.mxu2 %v7344_v29  ;;  %2308 = vmatpush.msrb.mxu0 %v7350_v61 }
 0x5b1   :  { %10650 = vst [vmem:[#allocation78_spill] sm:$0xff] %v7322_v57  ;;  %v7356_v57 = vld [vmem:[#allocation6 + $0x210] sm:$0xff]  ;;  %2328 = vmatpush.msrb.mxu1 %v7352_v22 }
 0x5b2   :  { %10651 = vst [vmem:[#allocation80_spill] sm:$0xff] %v7326_v41  ;;  %v7358_v41 = vld [vmem:[#allocation6 + $0x218] sm:$0xff]  ;;  %2348 = vmatpush.msrb.mxu2 %v7356_v57  ;;  %2450 = vmatpush.msra.mxu0 %v6974_v50  ;;  %v10664_v50 = vld [vmem:[#allocation27_spill] sm:$0xff] }
 0x5b3   :  { %10652 = vst [vmem:[#allocation97_spill] sm:$0xff] %v7328_v45  ;;  %2368 = vmatpush.msrb.mxu3 %v7358_v41  ;;  %2470 = vmatpush.msra.mxu1 %v6976_v3  ;;  %v10665_v3 = vld [vmem:[#allocation19_spill] sm:$0xff] }
 0x5b4   :  { %10653 = vst [vmem:[#allocation81_spill] sm:$0xff] %v7332_v62  ;;  %2490 = vmatpush.msra.mxu2 %v6980_v58  ;;  %2451 = vmatpush.msra.mxu0 %v6986_v52  ;;  %v10666_v58 = vld [vmem:[#allocation20_spill] sm:$0xff]  ;;  %v10668_v52 = vld [vmem:[#allocation31_spill] sm:$0xff] }
 0x5b5   :  { %10654 = vst [vmem:[#allocation82_spill] sm:$0xff] %v7334_v39  ;;  %v10663_v39 = vld [vmem:[#allocation110_spill] sm:$0xff]  ;;  %2510 = vmatpush.msra.mxu3 %v6982_v55  ;;  %2471 = vmatpush.msra.mxu1 %v6988_v42  ;;  %v10667_v55 = vld [vmem:[#allocation21_spill] sm:$0xff] }
 0x5b6   :  { %10655 = vst [vmem:[#allocation83_spill] sm:$0xff] %v7338_v48  ;;  %2309 = vmatmul.f32.vlgmr.msrb.gmra.mxu0 %v10663_v39  ;;  %2329 = vmatmul.f32.vlgmr.msrb.gmra.mxu1 %v10663_v39  ;;  %v10669_v42 = vld [vmem:[#allocation22_spill] sm:$0xff] }
 0x5b7   :  { %10656 = vst [vmem:[#allocation101_spill] sm:$0xff] %v7340_v49  ;;  %2349 = vmatmul.f32.vlgmr.msrb.gmra.mxu2 %v10663_v39  ;;  %2369 = vmatmul.f32.vlgmr.msrb.gmra.mxu3 %v10663_v39 }
 0x5b8   :  { %10657 = vst [vmem:[#allocation84_spill] sm:$0xff] %v7344_v29  ;;  %2491 = vmatpush.msra.mxu2 %v6992_v51  ;;  %2511 = vmatpush.msra.mxu3 %v6994_v0  ;;  %v10670_v51 = vld [vmem:[#allocation24_spill] sm:$0xff]  ;;  %v10671_v0 = vld [vmem:[#allocation25_spill] sm:$0xff] }
 0x5b9   :  { %10658 = vst [vmem:[#allocation86_spill] sm:$0xff] %v7346_v35  ;;  %2452 = vmatpush.msra.mxu0 %v6998_v53  ;;  %2472 = vmatpush.msra.mxu1 %v7000_v9  ;;  %v10672_v53 = vld [vmem:[#allocation35_spill] sm:$0xff]  ;;  %v10673_v9 = vld [vmem:[#allocation26_spill] sm:$0xff] }
 0x5ba   :  { %10659 = vst [vmem:[#allocation87_spill] sm:$0xff] %v7350_v61  ;;  %2492 = vmatpush.msra.mxu2 %v7004_v5  ;;  %2512 = vmatpush.msra.mxu3 %v7006_v36  ;;  %v10674_v5 = vld [vmem:[#allocation28_spill] sm:$0xff]  ;;  %v10675_v36 = vld [vmem:[#allocation29_spill] sm:$0xff] }
 0x5bb   :  { %10660 = vst [vmem:[#allocation102_spill] sm:$0xff] %v7352_v22  ;;  %2453 = vmatpush.msra.mxu0 %v7010_v4  ;;  %2473 = vmatpush.msra.mxu1 %v7012_v47  ;;  %v10676_v4 = vld [vmem:[#allocation43_spill] sm:$0xff]  ;;  %v10677_v47 = vld [vmem:[#allocation30_spill] sm:$0xff] }
 0x5bc   :  { %10661 = vst [vmem:[#allocation88_spill] sm:$0xff] %v7356_v57  ;;  %2493 = vmatpush.msra.mxu2 %v7016_v54  ;;  %2513 = vmatpush.msra.mxu3 %v7018_v6  ;;  %v10678_v54 = vld [vmem:[#allocation32_spill] sm:$0xff]  ;;  %v10679_v6 = vld [vmem:[#allocation33_spill] sm:$0xff] }
 0x5bd   :  { %10662 = vst [vmem:[#allocation90_spill] sm:$0xff] %v7358_v41  ;;  %2454 = vmatpush.msra.mxu0 %v7026_v59  ;;  %2474 = vmatpush.msra.mxu1 %v7028_v2  ;;  %v10680_v59 = vld [vmem:[#allocation47_spill] sm:$0xff]  ;;  %v10681_v2 = vld [vmem:[#allocation34_spill] sm:$0xff] }
 0x5be   :  { %2494 = vmatpush.msra.mxu2 %v7030_v7  ;;  %2514 = vmatpush.msra.mxu3 %v7032_v44  ;;  %v10682_v7 = vld [vmem:[#allocation36_spill] sm:$0xff]  ;;  %v10683_v44 = vld [vmem:[#allocation37_spill] sm:$0xff] }
 0x5bf   :  { %2455 = vmatpush.msra.mxu0 %v7034_v63  ;;  %2475 = vmatpush.msra.mxu1 %v7036_v8  ;;  %v10684_v63 = vld [vmem:[#allocation51_spill] sm:$0xff]  ;;  %v10685_v8 = vld [vmem:[#allocation38_spill] sm:$0xff] }
 0x5c0   :  { %2495 = vmatpush.msra.mxu2 %v7040_v26  ;;  %2515 = vmatpush.msra.mxu3 %v7042_v11  ;;  %v10686_v26 = vld [vmem:[#allocation39_spill] sm:$0xff]  ;;  %v10687_v11 = vld [vmem:[#allocation40_spill] sm:$0xff] }
 0x5c1   :  { %2456 = vmatpush.msra.mxu0 %v7046_v13  ;;  %2476 = vmatpush.msra.mxu1 %v7048_v28  ;;  %v10688_v13 = vld [vmem:[#allocation55_spill] sm:$0xff]  ;;  %v10689_v28 = vld [vmem:[#allocation41_spill] sm:$0xff] }
 0x5c2   :  { %2496 = vmatpush.msra.mxu2 %v7052_v1  ;;  %2516 = vmatpush.msra.mxu3 %v7054_v19  ;;  %v10690_v1 = vld [vmem:[#allocation42_spill] sm:$0xff]  ;;  %v10691_v19 = vld [vmem:[#allocation44_spill] sm:$0xff] }
 0x5c3   :  { %2457 = vmatpush.msra.mxu0 %v7058_v10  ;;  %2477 = vmatpush.msra.mxu1 %v7060_v12  ;;  %v10692_v10 = vld [vmem:[#allocation59_spill] sm:$0xff]  ;;  %v10693_v12 = vld [vmem:[#allocation45_spill] sm:$0xff] }
 0x5c4   :  { %2497 = vmatpush.msra.mxu2 %v7064_v38  ;;  %2517 = vmatpush.msra.mxu3 %v7066_v43  ;;  %v10694_v38 = vld [vmem:[#allocation46_spill] sm:$0xff]  ;;  %v10695_v43 = vld [vmem:[#allocation48_spill] sm:$0xff] }
 0x5c5   :  { %2458 = vmatpush.msra.mxu0 %v7070_v31  ;;  %2478 = vmatpush.msra.mxu1 %v7072_v18  ;;  %v10696_v31 = vld [vmem:[#allocation63_spill] sm:$0xff]  ;;  %v10697_v18 = vld [vmem:[#allocation49_spill] sm:$0xff] }
 0x5c6   :  { %2498 = vmatpush.msra.mxu2 %v7076_v60  ;;  %2518 = vmatpush.msra.mxu3 %v7078_v32  ;;  %v10698_v60 = vld [vmem:[#allocation50_spill] sm:$0xff]  ;;  %v10699_v32 = vld [vmem:[#allocation52_spill] sm:$0xff] }
 0x5c7   :  { %2459 = vmatpush.msra.mxu0 %v7082_v16  ;;  %2479 = vmatpush.msra.mxu1 %v7084_v23  ;;  %v10700_v16 = vld [vmem:[#allocation67_spill] sm:$0xff]  ;;  %v10701_v23 = vld [vmem:[#allocation53_spill] sm:$0xff] }
 0x5c8   :  { %2499 = vmatpush.msra.mxu2 %v7088_v30  ;;  %2519 = vmatpush.msra.mxu3 %v7090_v15  ;;  %v10702_v30 = vld [vmem:[#allocation54_spill] sm:$0xff]  ;;  %v10703_v15 = vld [vmem:[#allocation56_spill] sm:$0xff] }
 0x5c9   :  { %2460 = vmatpush.msra.mxu0 %v7094_v33  ;;  %2480 = vmatpush.msra.mxu1 %v7096_v21  ;;  %v10704_v33 = vld [vmem:[#allocation71_spill] sm:$0xff]  ;;  %v10705_v21 = vld [vmem:[#allocation57_spill] sm:$0xff] }
 0x5ca   :  { %2500 = vmatpush.msra.mxu2 %v7100_v24  ;;  %2520 = vmatpush.msra.mxu3 %v7102_v14  ;;  %v10706_v24 = vld [vmem:[#allocation58_spill] sm:$0xff]  ;;  %v10707_v14 = vld [vmem:[#allocation60_spill] sm:$0xff] }
 0x5cb   :  { %2461 = vmatpush.msra.mxu0 %v7106_v17  ;;  %2481 = vmatpush.msra.mxu1 %v7108_v20  ;;  %v10708_v17 = vld [vmem:[#allocation75_spill] sm:$0xff]  ;;  %v10709_v20 = vld [vmem:[#allocation61_spill] sm:$0xff] }
 0x5cc   :  { %2501 = vmatpush.msra.mxu2 %v7112_v40  ;;  %2521 = vmatpush.msra.mxu3 %v7114_v25  ;;  %v10710_v40 = vld [vmem:[#allocation62_spill] sm:$0xff]  ;;  %v10711_v25 = vld [vmem:[#allocation64_spill] sm:$0xff] }
 0x5cd   :  { %2462 = vmatpush.msra.mxu0 %v7118_v46  ;;  %2482 = vmatpush.msra.mxu1 %v7120_v27  ;;  %v10712_v46 = vld [vmem:[#allocation79_spill] sm:$0xff]  ;;  %v10713_v27 = vld [vmem:[#allocation65_spill] sm:$0xff] }
 0x5ce   :  { %2502 = vmatpush.msra.mxu2 %v7124_v56  ;;  %2522 = vmatpush.msra.mxu3 %v7126_v34  ;;  %v10714_v56 = vld [vmem:[#allocation66_spill] sm:$0xff]  ;;  %v10715_v34 = vld [vmem:[#allocation68_spill] sm:$0xff] }
 0x5cf   :  { %2463 = vmatpush.msra.mxu0 %v7130_v37  ;;  %2483 = vmatpush.msra.mxu1 %v10664_v50  ;;  %v10716_v37 = vld [vmem:[#allocation85_spill] sm:$0xff] }
 0x5d0   :  { %2503 = vmatpush.msra.mxu2 %v10665_v3  ;;  %2523 = vmatpush.msra.mxu3 %v10666_v58  ;;  %v10717_v3 = vld [vmem:[#allocation69_spill] sm:$0xff]  ;;  %v10718_v58 = vld [vmem:[#allocation70_spill] sm:$0xff] }
 0x5d1   :  { %2464 = vmatpush.msra.mxu0 %v10667_v55  ;;  %2484 = vmatpush.msra.mxu1 %v10668_v52  ;;  %v10719_v55 = vld [vmem:[#allocation72_spill] sm:$0xff]  ;;  %v10720_v52 = vld [vmem:[#allocation89_spill] sm:$0xff] }
 0x5d2   :  { %2504 = vmatpush.msra.mxu2 %v10669_v42  ;;  %2524 = vmatpush.msra.mxu3 %v10670_v51  ;;  %v10721_v42 = vld [vmem:[#allocation73_spill] sm:$0xff]  ;;  %v10722_v51 = vld [vmem:[#allocation74_spill] sm:$0xff] }
 0x5d3   :  { %2465 = vmatpush.msra.mxu0 %v10671_v0  ;;  %2485 = vmatpush.msra.mxu1 %v10672_v53  ;;  %v10723_v0 = vld [vmem:[#allocation76_spill] sm:$0xff]  ;;  %v10724_v53 = vld [vmem:[#allocation93_spill] sm:$0xff] }
 0x5d4   :  { %2505 = vmatpush.msra.mxu2 %v10673_v9  ;;  %2525 = vmatpush.msra.mxu3 %v10674_v5  ;;  %v10725_v9 = vld [vmem:[#allocation77_spill] sm:$0xff]  ;;  %v10726_v5 = vld [vmem:[#allocation78_spill] sm:$0xff] }
 0x5d5   :  { %2530 = vmatpush.msrb.mxu0 %v10675_v36  ;;  %2550 = vmatpush.msrb.mxu1 %v10676_v4  ;;  %v10727_v36 = vld [vmem:[#allocation80_spill] sm:$0xff]  ;;  %v10728_v4 = vld [vmem:[#allocation82_spill] sm:$0xff] }
 0x5d6   :  { %2570 = vmatpush.msrb.mxu2 %v10677_v47  ;;  %2590 = vmatpush.msrb.mxu3 %v10678_v54 }
 0x5d7   :  { %2531 = vmatpush.msrb.mxu0 %v10679_v6  ;;  %2551 = vmatpush.msrb.mxu1 %v10680_v59 }
 0x5d8   :  { %2571 = vmatpush.msrb.mxu2 %v10681_v2  ;;  %2591 = vmatpush.msrb.mxu3 %v10682_v7 }
 0x5d9   :  { %2532 = vmatpush.msrb.mxu0 %v10683_v44  ;;  %2552 = vmatpush.msrb.mxu1 %v10684_v63 }
 0x5da   :  { %2572 = vmatpush.msrb.mxu2 %v10685_v8  ;;  %2592 = vmatpush.msrb.mxu3 %v10686_v26 }
 0x5db   :  { %2533 = vmatpush.msrb.mxu0 %v10687_v11  ;;  %2553 = vmatpush.msrb.mxu1 %v10688_v13 }
 0x5dc   :  { %2573 = vmatpush.msrb.mxu2 %v10689_v28  ;;  %2593 = vmatpush.msrb.mxu3 %v10690_v1  ;;  %v1869_v39 = vpop.f32.mrf.mxu0  ;;  %v1889_v50 = vpop.f32.mrf.mxu1 }
 0x5dd   :  { %2534 = vmatpush.msrb.mxu0 %v10691_v19  ;;  %2554 = vmatpush.msrb.mxu1 %v10692_v10 }
 0x5de   :  { %2574 = vmatpush.msrb.mxu2 %v10693_v12  ;;  %2594 = vmatpush.msrb.mxu3 %v10694_v38 }
 0x5df   :  { %2535 = vmatpush.msrb.mxu0 %v10695_v43  ;;  %2555 = vmatpush.msrb.mxu1 %v10696_v31 }
 0x5e0   :  { %2575 = vmatpush.msrb.mxu2 %v10697_v18  ;;  %2595 = vmatpush.msrb.mxu3 %v10698_v60 }
 0x5e1   :  { %2536 = vmatpush.msrb.mxu0 %v10699_v32  ;;  %2556 = vmatpush.msrb.mxu1 %v10700_v16 }
 0x5e2   :  { %2576 = vmatpush.msrb.mxu2 %v10701_v23  ;;  %2596 = vmatpush.msrb.mxu3 %v10702_v30 }
 0x5e3   :  { %2537 = vmatpush.msrb.mxu0 %v10703_v15  ;;  %2557 = vmatpush.msrb.mxu1 %v10704_v33 }
 0x5e4   :  { %2577 = vmatpush.msrb.mxu2 %v10705_v21  ;;  %2597 = vmatpush.msrb.mxu3 %v10706_v24 }
 0x5e5   :  { %2538 = vmatpush.msrb.mxu0 %v10707_v14  ;;  %2558 = vmatpush.msrb.mxu1 %v10708_v17 }
 0x5e6   :  { %2578 = vmatpush.msrb.mxu2 %v10709_v20  ;;  %2598 = vmatpush.msrb.mxu3 %v10710_v40 }
 0x5e7   :  { %2539 = vmatpush.msrb.mxu0 %v10711_v25  ;;  %2559 = vmatpush.msrb.mxu1 %v10712_v46 }
 0x5e8   :  { %2579 = vmatpush.msrb.mxu2 %v10713_v27  ;;  %2599 = vmatpush.msrb.mxu3 %v10714_v56 }
 0x5e9   :  { %2540 = vmatpush.msrb.mxu0 %v10715_v34  ;;  %2560 = vmatpush.msrb.mxu1 %v10716_v37  ;;  %v10733_v37 = vld [vmem:[#allocation17_spill] sm:$0xff] }
 0x5ea   :  { %2580 = vmatpush.msrb.mxu2 %v10717_v3  ;;  %2600 = vmatpush.msrb.mxu3 %v10718_v58  ;;  %v10731_v58 = vld [vmem:[#allocation108_spill] sm:$0xff] }
 0x5eb   :  { %2541 = vmatpush.msrb.mxu0 %v10719_v55  ;;  %2561 = vmatpush.msrb.mxu1 %v10720_v52  ;;  %v1909_v52 = vpop.f32.mrf.mxu2 }
 0x5ec   :  { %2581 = vmatpush.msrb.mxu2 %v10721_v42  ;;  %2601 = vmatpush.msrb.mxu3 %v10722_v51  ;;  %v1929_v42 = vpop.f32.mrf.mxu3 }
 0x5ed   :  { %2542 = vmatpush.msrb.mxu0 %v10723_v0  ;;  %2562 = vmatpush.msrb.mxu1 %v10724_v53 }
 0x5ee   :  { %2582 = vmatpush.msrb.mxu2 %v10725_v9  ;;  %2602 = vmatpush.msrb.mxu3 %v10726_v5  ;;  %v10729_v5 = vld [vmem:[#allocation106_spill] sm:$0xff]  ;;  %v10730_v9 = vld [vmem:[#allocation107_spill] sm:$0xff] }
 0x5ef   :  { %2543 = vmatpush.msrb.mxu0 %v10727_v36  ;;  %2563 = vmatpush.msrb.mxu1 %v7328_v45  ;;  %v1949_v36 = vpop.f32.mrf.mxu0  ;;  %v1969_v45 = vpop.f32.mrf.mxu1 }
 0x5f0   :  { %2583 = vmatpush.msrb.mxu2 %v7332_v62  ;;  %2603 = vmatpush.msrb.mxu3 %v10728_v4  ;;  %v1950_v4 = vadd.f32 %v1949_v36, %v1869_v39  ;;  %v1970_v62 = vadd.f32 %v1969_v45, %v1889_v50 }
 0x5f1   :  { %2544 = vmatpush.msrb.mxu0 %v7338_v48  ;;  %2564 = vmatpush.msrb.mxu1 %v7340_v49 }
 0x5f2   :  { %2584 = vmatpush.msrb.mxu2 %v7344_v29  ;;  %2604 = vmatpush.msrb.mxu3 %v7346_v35  ;;  %v2012_v48 = vadd.f32 %v1950_v4, %v10729_v5  ;;  %v2013_v49 = vadd.f32 %v1970_v62, %v10730_v9 }
 0x5f3   :  { %2545 = vmatpush.msrb.mxu0 %v7350_v61  ;;  %2565 = vmatpush.msrb.mxu1 %v7352_v22  ;;  %v1989_v51 = vpop.f32.mrf.mxu2 }
 0x5f4   :  { %2585 = vmatpush.msrb.mxu2 %v7356_v57  ;;  %2605 = vmatpush.msrb.mxu3 %v7358_v41  ;;  %v2016_v53 = vsub.f32 0.0, %v2012_v48  ;;  %v2035_v29 = vsub.f32 0.0, %v2013_v49  ;;  %v2009_v61 = vpop.f32.mrf.mxu3  ;;  %v1990_v55 = vadd.f32 %v1989_v51, %v1909_v52 }
 0x5f5   :  { %v2010_v22 = vadd.f32 %v2009_v61, %v1929_v42 }
 0x5f6   :  { %v2017_v0 = vmul.f32 1.442695, %v2016_v53  ;;  %v2036_v35 = vmul.f32 1.442695, %v2035_v29  ;;  %v10732_v29 = vld [vmem:[#allocation109_spill] sm:$0xff] }
 0x5f7   :  { %v2015_v57 = vadd.f32 %v2010_v22, %v10731_v58  ;;  %v2014_v53 = vadd.f32 %v1990_v55, %v10732_v29 }
 0x5f8   :  { %4229 = vpow2.f32 %v2017_v0 }
 0x5f9   :  { %4231 = vpow2.f32 %v2036_v35  ;;  %v2055_v3 = vsub.f32 0.0, %v2015_v57 }
 0x5fb   :  { %v2056_v41 = vmul.f32 1.442695, %v2055_v3 }
 0x5fd   :  { %4233 = vpow2.f32 %v2056_v41 }
 0x5fe   :  { %v4230_v39 = vpop.eup %4229 }
 0x5ff   :  { %v4232_v45 = vpop.eup %4231  ;;  %v2019_v50 = vadd.f32 1.0, %v4230_v39 }
 0x600   :  { %v2038_v5 = vadd.f32 1.0, %v4232_v45 }
 0x601   :  { %4235 = vrcp.f32 %v2019_v50  ;;  %v2031_v57 = vand.u32 2147483648, %v2019_v50  ;;  %v2029_v41 = vand.u32 2147483647, %v2019_v50  ;;  %vm2025_vm6 = vweird.f32 %v2019_v50 }
 0x602   :  { %4237 = vrcp.f32 %v2038_v5  ;;  %v2050_v3 = vand.u32 2147483648, %v2038_v5  ;;  %v2048_v0 = vand.u32 2147483647, %v2038_v5  ;;  %vm2044_vm7 = vweird.f32 %v2038_v5 }
 0x603   :  { %v4234_v48 = vpop.eup %4233  ;;  %v2032_v55 = vor.u32 1.1754944e-38, %v2031_v57  ;;  %vm2030_vm10 = vcmp.eq.f32.partialorder %v2029_v41, 8.507059e+37 }
 0x604   :  { %v2058_v49 = vadd.f32 1.0, %v4234_v48  ;;  %v2051_v45 = vor.u32 1.1754944e-38, %v2050_v3  ;;  %vm2049_vm11 = vcmp.eq.f32.partialorder %v2048_v0, 8.507059e+37 }
 0x606   :  { %4239 = vrcp.f32 %v2058_v49  ;;  %v2070_v57 = vand.u32 2147483648, %v2058_v49  ;;  %vm2064_vm13 = vweird.f32 %v2058_v49 }
 0x607   :  { %v4236_v62 = vpop.eup %4235  ;;  %4241 = vtanh.f32 %v2014_v53 }
 0x608   :  { %v4238_v52 = vpop.eup %4237  ;;  %v2021_v61 = vmul.f32 %v4236_v62, %v2019_v50  ;;  %vm2026_vm4 = vweird.f32 %v4236_v62  ;;  %v2071_v3 = vor.u32 1.1754944e-38, %v2070_v57 }
 0x609   :  { %v2040_v35 = vmul.f32 %v4238_v52, %v2038_v5  ;;  %vm2045_vm5 = vweird.f32 %v4238_v52  ;;  %vm2027_vm8 = vmor %vm2025_vm6, %vm2026_vm4 }
 0x60a   :  { %v2022_v42 = vsub.f32 1.0, %v2021_v61  ;;  %vm2046_vm9 = vmor %vm2044_vm7, %vm2045_vm5 }
 0x60b   :  { %v2041_v22 = vsub.f32 1.0, %v2040_v35 }
 0x60c   :  { %v2023_v58 = vmul.f32 %v4236_v62, %v2022_v42  ;;  %v4240_v9 = vpop.eup %4239 }
 0x60d   :  { %v2042_v51 = vmul.f32 %v4238_v52, %v2041_v22  ;;  %v2060_v39 = vmul.f32 %v4240_v9, %v2058_v49  ;;  %v4242_v29 = vpop.eup %4241  ;;  %vm2065_vm12 = vweird.f32 %v4240_v9 }
 0x60e   :  { %v2024_v36 = vadd.f32 %v4236_v62, %v2023_v58  ;;  %vm2066_vm14 = vmor %vm2064_vm13, %vm2065_vm12 }
 0x60f   :  { %v2043_v4 = vadd.f32 %v4238_v52, %v2042_v51  ;;  %v2061_v35 = vsub.f32 1.0, %v2060_v39  ;;  %v2068_v51 = vand.u32 2147483647, %v2058_v49 }
 0x610   :  { %v2028_v48 = vsel %vm2027_vm8, %v4236_v62, %v2024_v36 }
 0x611   :  { %v2033_v53 = vsel %vm2030_vm10, %v2032_v55, %v2028_v48  ;;  %v2047_v61 = vsel %vm2046_vm9, %v4238_v52, %v2043_v4  ;;  %v2062_v58 = vmul.f32 %v4240_v9, %v2061_v35  ;;  %vm2069_vm15 = vcmp.eq.f32.partialorder %v2068_v51, 8.507059e+37  ;;  %v2211_v4 = vld [vmem:[#allocation9 + $0x4] sm:$0xf] }
 0x612   :  { %v2052_v42 = vsel %vm2049_vm11, %v2051_v45, %v2047_v61  ;;  %v2075_v22 = vmul.f32 %v4242_v29, %v2033_v53  ;;  %v7505_v39 = vperm.slane %v2211_v4, 0 }
 0x613   :  { %v2074_v34 = vmul.f32 %v2052_v42, %v10733_v37  ;;  %v2063_v5 = vadd.f32 %v4240_v9, %v2062_v58  ;;  %v7511_v42 = vperm.slane %v2211_v4, 3 }
 0x614   :  { %10735 = vst [vmem:[#allocation103_spill] sm:$0xff] %v7505_v39 }
 0x615   :  { %v2076_v50 = vadd.f32 %v2075_v22, %v2074_v34  ;;  %v2067_v62 = vsel %vm2066_vm14, %v4240_v9, %v2063_v5  ;;  %v7507_v34 = vperm.slane %v2211_v4, 1  ;;  %10737 = vst [vmem:[#allocation94_spill] sm:$0xff] %v7511_v42 }
 0x616   :  { %v2072_v52 = vsel %vm2069_vm15, %v2071_v3, %v2067_v62 }
 0x617   :  { %4243 = vtanh.f32 %v2076_v50  ;;  %10736 = vst [vmem:[#allocation92_spill] sm:$0xff] %v7507_v34 }
 0x61d   :  { %v4244_v41 = vpop.eup %4243 }
 0x61e   :  { %v7503_v0 = vmul.f32 %v4244_v41, %v2072_v52 }
 0x620   :  { %10734 = vst [vmem:[#allocation91_spill] sm:$0xff] %v7503_v0 }
 0x625   :  { %v2230_v36 = vpop.f32.mrf.mxu0  ;;  %v2250_v55 = vpop.f32.mrf.mxu1 }
 0x62c   :  { %v2290_v37 = vpop.f32.mrf.mxu3  ;;  %v2270_v22 = vpop.f32.mrf.mxu2 }
 0x633   :  { %v2310_v45 = vpop.f32.mrf.mxu0  ;;  %v2330_v48 = vpop.f32.mrf.mxu1 }
 0x634   :  { %v2311_v29 = vadd.f32 %v2310_v45, %v2230_v36  ;;  %v2331_v49 = vadd.f32 %v2330_v48, %v2250_v55 }
 0x636   :  { %v2382_v9 = vadd.f32 %v7505_v39, %v2311_v29  ;;  %v2383_v53 = vadd.f32 %v7507_v34, %v2331_v49  ;;  %v7514_v29 = vperm.slane %v2211_v4, 2 }
 0x638   :  { %v2386_v61 = vsub.f32 0.0, %v2382_v9  ;;  %v2405_v35 = vsub.f32 0.0, %v2383_v53  ;;  %10738 = vst [vmem:[#allocation95_spill] sm:$0xff] %v7514_v29 }
 0x63a   :  { %v2387_v58 = vmul.f32 1.442695, %v2386_v61  ;;  %v2406_v50 = vmul.f32 1.442695, %v2405_v35  ;;  %v2370_v5 = vpop.f32.mrf.mxu3  ;;  %v2350_v45 = vpop.f32.mrf.mxu2 }
 0x63b   :  { %v2371_v57 = vadd.f32 %v2370_v5, %v2290_v37  ;;  %v2351_v48 = vadd.f32 %v2350_v45, %v2270_v22 }
 0x63c   :  { %4245 = vpow2.f32 %v2387_v58 }
 0x63d   :  { %4247 = vpow2.f32 %v2406_v50  ;;  %v2385_v51 = vadd.f32 %v7511_v42, %v2371_v57  ;;  %v2384_v53 = vadd.f32 %v7514_v29, %v2351_v48 }
 0x63f   :  { %v2425_v62 = vsub.f32 0.0, %v2385_v51 }
 0x641   :  { %v2426_v3 = vmul.f32 1.442695, %v2425_v62 }
 0x642   :  { %v4246_v41 = vpop.eup %4245 }
 0x643   :  { %v4248_v52 = vpop.eup %4247  ;;  %v2389_v36 = vadd.f32 1.0, %v4246_v41  ;;  %4249 = vpow2.f32 %v2426_v3 }
 0x644   :  { %v2408_v55 = vadd.f32 1.0, %v4248_v52 }
 0x645   :  { %4251 = vrcp.f32 %v2389_v36  ;;  %v2401_v57 = vand.u32 2147483648, %v2389_v36  ;;  %v2399_v3 = vand.u32 2147483647, %v2389_v36  ;;  %vm2395_vm2 = vweird.f32 %v2389_v36 }
 0x646   :  { %4253 = vrcp.f32 %v2408_v55  ;;  %v2420_v51 = vand.u32 2147483648, %v2408_v55  ;;  %v2418_v4 = vand.u32 2147483647, %v2408_v55  ;;  %vm2414_vm3 = vweird.f32 %v2408_v55 }
 0x647   :  { %v2402_v45 = vor.u32 1.1754944e-38, %v2401_v57  ;;  %vm2400_vm5 = vcmp.eq.f32.partialorder %v2399_v3, 8.507059e+37 }
 0x648   :  { %vm2419_vm7 = vcmp.eq.f32.partialorder %v2418_v4, 8.507059e+37  ;;  %v7538_v4 = vld [vmem:[#allocation8 + $0x3d0] sm:$0xff] }
 0x649   :  { %v4250_v49 = vpop.eup %4249 }
 0x64a   :  { %v2428_v9 = vadd.f32 1.0, %v4250_v49 }
 0x64b   :  { %v4252_v37 = vpop.eup %4251 }
 0x64c   :  { %v4254_v61 = vpop.eup %4253  ;;  %v2391_v35 = vmul.f32 %v4252_v37, %v2389_v36  ;;  %4255 = vrcp.f32 %v2428_v9  ;;  %vm2396_vm0 = vweird.f32 %v4252_v37  ;;  %vm2434_vm9 = vweird.f32 %v2428_v9 }
 0x64d   :  { %v2410_v58 = vmul.f32 %v4254_v61, %v2408_v55  ;;  %4257 = vtanh.f32 %v2384_v53  ;;  %vm2415_vm1 = vweird.f32 %v4254_v61  ;;  %vm2397_vm4 = vmor %vm2395_vm2, %vm2396_vm0  ;;  %v2440_v55 = vand.u32 2147483648, %v2428_v9 }
 0x64e   :  { %v2392_v50 = vsub.f32 1.0, %v2391_v35  ;;  %vm2416_vm6 = vmor %vm2414_vm3, %vm2415_vm1  ;;  %v2421_v35 = vor.u32 1.1754944e-38, %v2420_v51 }
 0x64f   :  { %v2411_v5 = vsub.f32 1.0, %v2410_v58  ;;  %v2441_v51 = vor.u32 1.1754944e-38, %v2440_v55  ;;  %v7575_v55 = vld [vmem:[#allocation8 + $0x368] sm:$0xff] }
 0x650   :  { %v2393_v62 = vmul.f32 %v4252_v37, %v2392_v50 }
 0x651   :  { %v2412_v22 = vmul.f32 %v4254_v61, %v2411_v5 }
 0x652   :  { %v4256_v41 = vpop.eup %4255  ;;  %v2394_v52 = vadd.f32 %v4252_v37, %v2393_v62 }
 0x653   :  { %v2413_v48 = vadd.f32 %v4254_v61, %v2412_v22  ;;  %v2430_v49 = vmul.f32 %v4256_v41, %v2428_v9  ;;  %v4258_v53 = vpop.eup %4257  ;;  %vm2435_vm8 = vweird.f32 %v4256_v41  ;;  %v7535_v22 = vld [vmem:[#allocation8 + $0x3c8] sm:$0xff] }
 0x654   :  { %v2398_v0 = vsel %vm2397_vm4, %v4252_v37, %v2394_v52  ;;  %v2438_v37 = vand.u32 2147483647, %v2428_v9  ;;  %vm2436_vm10 = vmor %vm2434_vm9, %vm2435_vm8  ;;  %v7532_v9 = vld [vmem:[#allocation8 + $0x3c0] sm:$0xff] }
 0x655   :  { %v2403_v58 = vsel %vm2400_vm5, %v2402_v45, %v2398_v0  ;;  %v2417_v50 = vsel %vm2416_vm6, %v4254_v61, %v2413_v48  ;;  %v2431_v29 = vsub.f32 1.0, %v2430_v49  ;;  %v7544_v52 = vld [vmem:[#allocation8 + $0x3a0] sm:$0xff]  ;;  %v7547_v45 = vld [vmem:[#allocation8 + $0x3a8] sm:$0xff]  ;;  %v7550_v48 = vld [vmem:[#allocation8 + $0x3b0] sm:$0xff] }
 0x656   :  { %v2422_v5 = vsel %vm2419_vm7, %v2421_v35, %v2417_v50  ;;  %v2445_v42 = vmul.f32 %v4258_v53, %v2403_v58  ;;  %vm2439_vm11 = vcmp.eq.f32.partialorder %v2438_v37, 8.507059e+37  ;;  %v7553_v49 = vld [vmem:[#allocation8 + $0x3b8] sm:$0xff]  ;;  %v10739_v35 = vld [vmem:[#allocation23_spill] sm:$0xff]  ;;  %v7560_v53 = vld [vmem:[#allocation8 + $0x380] sm:$0xff] }
 0x657   :  { %v2444_v34 = vmul.f32 0.0, %v2422_v5  ;;  %v2432_v39 = vmul.f32 %v4256_v41, %v2431_v29  ;;  %v7529_v29 = vld [vmem:[#allocation8 + $0x3f8] sm:$0xff]  ;;  %v7563_v58 = vld [vmem:[#allocation8 + $0x388] sm:$0xff]  ;;  %v7566_v50 = vld [vmem:[#allocation8 + $0x390] sm:$0xff] }
 0x658   :  { %v7569_v5 = vld [vmem:[#allocation8 + $0x398] sm:$0xff]  ;;  %v7578_v37 = vld [vmem:[#allocation8 + $0x370] sm:$0xff] }
 0x659   :  { %v7517_v62 = vadd.f32 %v2445_v42, %v2444_v34  ;;  %v2433_v36 = vadd.f32 %v4256_v41, %v2432_v39  ;;  %v7520_v34 = vld [vmem:[#allocation8 + $0x3e0] sm:$0xff]  ;;  %v7523_v39 = vld [vmem:[#allocation8 + $0x3e8] sm:$0xff]  ;;  %v7526_v42 = vld [vmem:[#allocation8 + $0x3f0] sm:$0xff] }
 0x65b   :  { %4259 = vtanh.f32 %v7517_v62  ;;  %v2437_v57 = vsel %vm2436_vm10, %v4256_v41, %v2433_v36  ;;  %v7541_v41 = vld [vmem:[#allocation8 + $0x3d8] sm:$0xff]  ;;  %v7572_v36 = vld [vmem:[#allocation8 + $0x360] sm:$0xff] }
 0x65c   :  { %v2442_v61 = vsel %vm2439_vm11, %v2441_v51, %v2437_v57  ;;  %v7581_v57 = vld [vmem:[#allocation8 + $0x378] sm:$0xff]  ;;  %v7584_v51 = vld [vmem:[#allocation8 + $0x340] sm:$0xff] }
 0x65d   :  { %10740 = vst [vmem:[#allocation104_spill] sm:$0xff] %v7581_v57 }
 0x65e   :  { %10741 = vst [vmem:[#allocation96_spill] sm:$0xff] %v7584_v51 }
 0x661   :  { %v4260_v0 = vpop.eup %4259 }
 0x662   :  { %v2448_v3 = vmul.f32 %v4260_v0, %v2442_v61  ;;  %v7587_v0 = vld [vmem:[#allocation8 + $0x348] sm:$0xff]  ;;  %v7590_v61 = vld [vmem:[#allocation8 + $0x350] sm:$0xff] }
 0x663   :  { %10742 = vst [vmem:[#allocation98_spill] sm:$0xff] %v7587_v0 }
 0x664   :  { %2466 = vmatmul.f32.vlgmr.msra.gmra.mxu0 %v2448_v3  ;;  %2486 = vmatmul.f32.vlgmr.msra.gmra.mxu1 %v2448_v3  ;;  %10743 = vst [vmem:[#allocation99_spill] sm:$0xff] %v7590_v61 }
 0x665   :  { %2506 = vmatmul.f32.vlgmr.msra.gmra.mxu2 %v2448_v3  ;;  %2526 = vmatmul.f32.vlgmr.msra.gmra.mxu3 %v2448_v3  ;;  %v7593_v3 = vld [vmem:[#allocation8 + $0x358] sm:$0xff] }
 0x666   :  { %2678 = vmatpush.msra.mxu0 %v7520_v34  ;;  %2698 = vmatpush.msra.mxu1 %v7523_v39  ;;  %10744 = vst [vmem:[#allocation105_spill] sm:$0xff] %v7593_v3 }
 0x667   :  { %2718 = vmatpush.msra.mxu2 %v7526_v42  ;;  %2738 = vmatpush.msra.mxu3 %v7529_v29 }
 0x668   :  { %2679 = vmatpush.msra.mxu0 %v7532_v9  ;;  %2699 = vmatpush.msra.mxu1 %v7535_v22 }
 0x669   :  { %2719 = vmatpush.msra.mxu2 %v7538_v4  ;;  %2739 = vmatpush.msra.mxu3 %v7541_v41 }
 0x66a   :  { %2680 = vmatpush.msra.mxu0 %v7544_v52  ;;  %2700 = vmatpush.msra.mxu1 %v7547_v45 }
 0x66b   :  { %2720 = vmatpush.msra.mxu2 %v7550_v48  ;;  %2740 = vmatpush.msra.mxu3 %v7553_v49 }
 0x66c   :  { %2546 = vmatmul.f32.vlgmr.msrb.gmra.mxu0 %v10739_v35  ;;  %2566 = vmatmul.f32.vlgmr.msrb.gmra.mxu1 %v10739_v35 }
 0x66d   :  { %2586 = vmatmul.f32.vlgmr.msrb.gmra.mxu2 %v10739_v35  ;;  %2606 = vmatmul.f32.vlgmr.msrb.gmra.mxu3 %v10739_v35  ;;  %v7596_v35 = vld [vmem:[#allocation8 + $0x320] sm:$0xff] }
 0x66e   :  { %2681 = vmatpush.msra.mxu0 %v7560_v53  ;;  %2701 = vmatpush.msra.mxu1 %v7563_v58  ;;  %10745 = vst [vmem:[#allocation100_spill] sm:$0xff] %v7596_v35 }
 0x66f   :  { %2721 = vmatpush.msra.mxu2 %v7566_v50  ;;  %2741 = vmatpush.msra.mxu3 %v7569_v5 }
 0x670   :  { %2682 = vmatpush.msra.mxu0 %v7572_v36  ;;  %2702 = vmatpush.msra.mxu1 %v7575_v55 }
 0x671   :  { %2722 = vmatpush.msra.mxu2 %v7578_v37  ;;  %2742 = vmatpush.msra.mxu3 %v7581_v57  ;;  %v7599_v57 = vld [vmem:[#allocation8 + $0x328] sm:$0xff] }
 0x672   :  { %2683 = vmatpush.msra.mxu0 %v7584_v51  ;;  %2703 = vmatpush.msra.mxu1 %v7587_v0  ;;  %10746 = vst [vmem:[#allocation111_spill] sm:$0xff] %v7599_v57  ;;  %v7602_v51 = vld [vmem:[#allocation8 + $0x330] sm:$0xff]  ;;  %v7605_v0 = vld [vmem:[#allocation8 + $0x338] sm:$0xff] }
 0x673   :  { %2723 = vmatpush.msra.mxu2 %v7590_v61  ;;  %2743 = vmatpush.msra.mxu3 %v7593_v3  ;;  %10747 = vst [vmem:[#allocation114_spill] sm:$0xff] %v7602_v51  ;;  %v7608_v61 = vld [vmem:[#allocation8 + $0x300] sm:$0xff]  ;;  %v7611_v3 = vld [vmem:[#allocation8 + $0x308] sm:$0xff] }
 0x674   :  { %2684 = vmatpush.msra.mxu0 %v7596_v35  ;;  %2704 = vmatpush.msra.mxu1 %v7599_v57  ;;  %10748 = vst [vmem:[#allocation110_spill] sm:$0xff] %v7605_v0  ;;  %v7614_v35 = vld [vmem:[#allocation8 + $0x310] sm:$0xff]  ;;  %v7617_v57 = vld [vmem:[#allocation8 + $0x318] sm:$0xff] }
 0x675   :  { %2724 = vmatpush.msra.mxu2 %v7602_v51  ;;  %2744 = vmatpush.msra.mxu3 %v7605_v0  ;;  %10749 = vst [vmem:[#allocation27_spill] sm:$0xff] %v7608_v61  ;;  %v7620_v51 = vld [vmem:[#allocation8 + $0x2e0] sm:$0xff]  ;;  %v7623_v0 = vld [vmem:[#allocation8 + $0x2e8] sm:$0xff] }
 0x676   :  { %2685 = vmatpush.msra.mxu0 %v7608_v61  ;;  %10750 = vst [vmem:[#allocation19_spill] sm:$0xff] %v7611_v3  ;;  %2705 = vmatpush.msra.mxu1 %v7611_v3  ;;  %v7626_v61 = vld [vmem:[#allocation8 + $0x2f0] sm:$0xff]  ;;  %v7629_v3 = vld [vmem:[#allocation8 + $0x2f8] sm:$0xff] }
 0x677   :  { %10751 = vst [vmem:[#allocation20_spill] sm:$0xff] %v7614_v35  ;;  %2725 = vmatpush.msra.mxu2 %v7614_v35  ;;  %2745 = vmatpush.msra.mxu3 %v7617_v57  ;;  %v7632_v35 = vld [vmem:[#allocation8 + $0x2c0] sm:$0xff] }
 0x678   :  { %10752 = vst [vmem:[#allocation21_spill] sm:$0xff] %v7617_v57  ;;  %2686 = vmatpush.msra.mxu0 %v7620_v51  ;;  %2706 = vmatpush.msra.mxu1 %v7623_v0  ;;  %v7635_v57 = vld [vmem:[#allocation8 + $0x2c8] sm:$0xff] }
 0x679   :  { %10753 = vst [vmem:[#allocation31_spill] sm:$0xff] %v7620_v51  ;;  %2726 = vmatpush.msra.mxu2 %v7626_v61  ;;  %2746 = vmatpush.msra.mxu3 %v7629_v3  ;;  %v7638_v51 = vld [vmem:[#allocation8 + $0x2d0] sm:$0xff] }
 0x67a   :  { %10754 = vst [vmem:[#allocation22_spill] sm:$0xff] %v7623_v0  ;;  %2687 = vmatpush.msra.mxu0 %v7632_v35  ;;  %2707 = vmatpush.msra.mxu1 %v7635_v57  ;;  %v7641_v0 = vld [vmem:[#allocation8 + $0x2d8] sm:$0xff] }
 0x67b   :  { %10755 = vst [vmem:[#allocation24_spill] sm:$0xff] %v7626_v61  ;;  %2727 = vmatpush.msra.mxu2 %v7638_v51  ;;  %2747 = vmatpush.msra.mxu3 %v7641_v0  ;;  %v7644_v61 = vld [vmem:[#allocation8 + $0x2a0] sm:$0xff] }
 0x67c   :  { %10756 = vst [vmem:[#allocation25_spill] sm:$0xff] %v7629_v3  ;;  %2688 = vmatpush.msra.mxu0 %v7644_v61  ;;  %v7647_v3 = vld [vmem:[#allocation8 + $0x2a8] sm:$0xff] }
 0x67d   :  { %10757 = vst [vmem:[#allocation35_spill] sm:$0xff] %v7632_v35  ;;  %2708 = vmatpush.msra.mxu1 %v7647_v3  ;;  %v7650_v35 = vld [vmem:[#allocation8 + $0x2b0] sm:$0xff] }
 0x67e   :  { %10758 = vst [vmem:[#allocation26_spill] sm:$0xff] %v7635_v57  ;;  %2728 = vmatpush.msra.mxu2 %v7650_v35  ;;  %v7653_v57 = vld [vmem:[#allocation8 + $0x2b8] sm:$0xff] }
 0x67f   :  { %10759 = vst [vmem:[#allocation28_spill] sm:$0xff] %v7638_v51  ;;  %2748 = vmatpush.msra.mxu3 %v7653_v57  ;;  %v7656_v51 = vld [vmem:[#allocation8 + $0x280] sm:$0xff] }
 0x680   :  { %10760 = vst [vmem:[#allocation29_spill] sm:$0xff] %v7641_v0  ;;  %2689 = vmatpush.msra.mxu0 %v7656_v51  ;;  %v7659_v0 = vld [vmem:[#allocation8 + $0x288] sm:$0xff] }
 0x681   :  { %10761 = vst [vmem:[#allocation43_spill] sm:$0xff] %v7644_v61  ;;  %2709 = vmatpush.msra.mxu1 %v7659_v0  ;;  %v7662_v61 = vld [vmem:[#allocation8 + $0x290] sm:$0xff] }
 0x682   :  { %10762 = vst [vmem:[#allocation30_spill] sm:$0xff] %v7647_v3  ;;  %2729 = vmatpush.msra.mxu2 %v7662_v61  ;;  %v7665_v3 = vld [vmem:[#allocation8 + $0x298] sm:$0xff] }
 0x683   :  { %10763 = vst [vmem:[#allocation32_spill] sm:$0xff] %v7650_v35  ;;  %2749 = vmatpush.msra.mxu3 %v7665_v3  ;;  %v7668_v35 = vld [vmem:[#allocation8 + $0x260] sm:$0xff] }
 0x684   :  { %10764 = vst [vmem:[#allocation33_spill] sm:$0xff] %v7653_v57  ;;  %2690 = vmatpush.msra.mxu0 %v7668_v35  ;;  %v7671_v57 = vld [vmem:[#allocation8 + $0x268] sm:$0xff] }
 0x685   :  { %10765 = vst [vmem:[#allocation47_spill] sm:$0xff] %v7656_v51  ;;  %2710 = vmatpush.msra.mxu1 %v7671_v57  ;;  %v7674_v51 = vld [vmem:[#allocation8 + $0x270] sm:$0xff] }
 0x686   :  { %10766 = vst [vmem:[#allocation34_spill] sm:$0xff] %v7659_v0  ;;  %2730 = vmatpush.msra.mxu2 %v7674_v51  ;;  %v7677_v0 = vld [vmem:[#allocation8 + $0x278] sm:$0xff] }
 0x687   :  { %10767 = vst [vmem:[#allocation36_spill] sm:$0xff] %v7662_v61  ;;  %2750 = vmatpush.msra.mxu3 %v7677_v0  ;;  %v7680_v61 = vld [vmem:[#allocation8 + $0x240] sm:$0xff] }
 0x688   :  { %10768 = vst [vmem:[#allocation37_spill] sm:$0xff] %v7665_v3  ;;  %2691 = vmatpush.msra.mxu0 %v7680_v61  ;;  %v7683_v3 = vld [vmem:[#allocation8 + $0x248] sm:$0xff] }
 0x689   :  { %10769 = vst [vmem:[#allocation51_spill] sm:$0xff] %v7668_v35  ;;  %2711 = vmatpush.msra.mxu1 %v7683_v3  ;;  %v7686_v35 = vld [vmem:[#allocation8 + $0x250] sm:$0xff] }
 0x68a   :  { %10770 = vst [vmem:[#allocation38_spill] sm:$0xff] %v7671_v57  ;;  %2731 = vmatpush.msra.mxu2 %v7686_v35  ;;  %v7689_v57 = vld [vmem:[#allocation8 + $0x258] sm:$0xff] }
 0x68b   :  { %10771 = vst [vmem:[#allocation39_spill] sm:$0xff] %v7674_v51  ;;  %2751 = vmatpush.msra.mxu3 %v7689_v57  ;;  %v7692_v51 = vld [vmem:[#allocation8 + $0x220] sm:$0xff] }
 0x68c   :  { %10772 = vst [vmem:[#allocation40_spill] sm:$0xff] %v7677_v0  ;;  %2692 = vmatpush.msra.mxu0 %v7692_v51  ;;  %v7695_v0 = vld [vmem:[#allocation8 + $0x228] sm:$0xff] }
 0x68d   :  { %10773 = vst [vmem:[#allocation55_spill] sm:$0xff] %v7680_v61  ;;  %2712 = vmatpush.msra.mxu1 %v7695_v0  ;;  %v7698_v61 = vld [vmem:[#allocation8 + $0x230] sm:$0xff] }
 0x68e   :  { %10774 = vst [vmem:[#allocation41_spill] sm:$0xff] %v7683_v3  ;;  %2732 = vmatpush.msra.mxu2 %v7698_v61  ;;  %v7701_v3 = vld [vmem:[#allocation8 + $0x238] sm:$0xff] }
 0x68f   :  { %10775 = vst [vmem:[#allocation42_spill] sm:$0xff] %v7686_v35  ;;  %2752 = vmatpush.msra.mxu3 %v7701_v3  ;;  %v7704_v35 = vld [vmem:[#allocation8 + $0x200] sm:$0xff] }
 0x690   :  { %10776 = vst [vmem:[#allocation44_spill] sm:$0xff] %v7689_v57  ;;  %2693 = vmatpush.msra.mxu0 %v7704_v35  ;;  %v7707_v57 = vld [vmem:[#allocation8 + $0x208] sm:$0xff] }
 0x691   :  { %10777 = vst [vmem:[#allocation59_spill] sm:$0xff] %v7692_v51  ;;  %2713 = vmatpush.msra.mxu1 %v7707_v57  ;;  %v7710_v51 = vld [vmem:[#allocation8 + $0x210] sm:$0xff] }
 0x692   :  { %10778 = vst [vmem:[#allocation45_spill] sm:$0xff] %v7695_v0  ;;  %2733 = vmatpush.msra.mxu2 %v7710_v51  ;;  %v7713_v0 = vld [vmem:[#allocation8 + $0x218] sm:$0xff] }
 0x693   :  { %10779 = vst [vmem:[#allocation46_spill] sm:$0xff] %v7698_v61  ;;  %2753 = vmatpush.msra.mxu3 %v7713_v0  ;;  %v7716_v61 = vld [vmem:[#allocation6 + $0x3e0] sm:$0xff] }
 0x694   :  { %10780 = vst [vmem:[#allocation48_spill] sm:$0xff] %v7701_v3  ;;  %2758 = vmatpush.msrb.mxu0 %v7716_v61  ;;  %v7719_v3 = vld [vmem:[#allocation6 + $0x3e8] sm:$0xff]  ;;  %2798 = vmatpush.msrb.mxu2 %v10677_v47  ;;  %v10787_v47 = vld [vmem:[#allocation68_spill] sm:$0xff] }
 0x695   :  { %10781 = vst [vmem:[#allocation63_spill] sm:$0xff] %v7704_v35  ;;  %2778 = vmatpush.msrb.mxu1 %v7719_v3  ;;  %2818 = vmatpush.msrb.mxu3 %v10678_v54  ;;  %v10788_v54 = vld [vmem:[#allocation85_spill] sm:$0xff] }
 0x696   :  { %10782 = vst [vmem:[#allocation49_spill] sm:$0xff] %v7707_v57  ;;  %2759 = vmatpush.msrb.mxu0 %v10679_v6  ;;  %2799 = vmatpush.msrb.mxu2 %v10681_v2  ;;  %v10789_v6 = vld [vmem:[#allocation69_spill] sm:$0xff]  ;;  %v10791_v2 = vld [vmem:[#allocation72_spill] sm:$0xff] }
 0x697   :  { %10783 = vst [vmem:[#allocation50_spill] sm:$0xff] %v7710_v51  ;;  %2779 = vmatpush.msrb.mxu1 %v10680_v59  ;;  %2819 = vmatpush.msrb.mxu3 %v10682_v7  ;;  %v10790_v59 = vld [vmem:[#allocation70_spill] sm:$0xff]  ;;  %v10792_v7 = vld [vmem:[#allocation89_spill] sm:$0xff] }
 0x698   :  { %10784 = vst [vmem:[#allocation52_spill] sm:$0xff] %v7713_v0  ;;  %2760 = vmatpush.msrb.mxu0 %v10683_v44  ;;  %2800 = vmatpush.msrb.mxu2 %v10685_v8  ;;  %v10793_v44 = vld [vmem:[#allocation73_spill] sm:$0xff]  ;;  %v10795_v8 = vld [vmem:[#allocation76_spill] sm:$0xff] }
 0x699   :  { %10785 = vst [vmem:[#allocation67_spill] sm:$0xff] %v7716_v61  ;;  %2780 = vmatpush.msrb.mxu1 %v10684_v63  ;;  %2820 = vmatpush.msrb.mxu3 %v10686_v26  ;;  %v10794_v63 = vld [vmem:[#allocation74_spill] sm:$0xff]  ;;  %v10796_v26 = vld [vmem:[#allocation93_spill] sm:$0xff] }
 0x69a   :  { %10786 = vst [vmem:[#allocation53_spill] sm:$0xff] %v7719_v3  ;;  %2761 = vmatpush.msrb.mxu0 %v10687_v11  ;;  %2801 = vmatpush.msrb.mxu2 %v10689_v28  ;;  %v10797_v11 = vld [vmem:[#allocation77_spill] sm:$0xff]  ;;  %v10799_v28 = vld [vmem:[#allocation80_spill] sm:$0xff] }
 0x69b   :  { %2781 = vmatpush.msrb.mxu1 %v10688_v13  ;;  %2821 = vmatpush.msrb.mxu3 %v10690_v1  ;;  %v10798_v13 = vld [vmem:[#allocation78_spill] sm:$0xff]  ;;  %v10800_v1 = vld [vmem:[#allocation97_spill] sm:$0xff] }
 0x69c   :  { %2762 = vmatpush.msrb.mxu0 %v10691_v19  ;;  %2802 = vmatpush.msrb.mxu2 %v10693_v12  ;;  %v10801_v19 = vld [vmem:[#allocation81_spill] sm:$0xff]  ;;  %v10803_v12 = vld [vmem:[#allocation83_spill] sm:$0xff] }
 0x69d   :  { %2782 = vmatpush.msrb.mxu1 %v10692_v10  ;;  %2822 = vmatpush.msrb.mxu3 %v10694_v38  ;;  %v10802_v10 = vld [vmem:[#allocation82_spill] sm:$0xff]  ;;  %v10804_v38 = vld [vmem:[#allocation101_spill] sm:$0xff] }
 0x69e   :  { %2763 = vmatpush.msrb.mxu0 %v10695_v43  ;;  %2803 = vmatpush.msrb.mxu2 %v10697_v18  ;;  %v10805_v43 = vld [vmem:[#allocation84_spill] sm:$0xff]  ;;  %v10807_v18 = vld [vmem:[#allocation87_spill] sm:$0xff] }
 0x69f   :  { %2783 = vmatpush.msrb.mxu1 %v10696_v31  ;;  %2823 = vmatpush.msrb.mxu3 %v10698_v60  ;;  %v10806_v31 = vld [vmem:[#allocation86_spill] sm:$0xff] }
 0x6a0   :  { %2764 = vmatpush.msrb.mxu0 %v10699_v32  ;;  %2804 = vmatpush.msrb.mxu2 %v10701_v23  ;;  %v10808_v60 = vld [vmem:[#allocation102_spill] sm:$0xff]  ;;  %v10809_v32 = vld [vmem:[#allocation88_spill] sm:$0xff] }
 0x6a1   :  { %2784 = vmatpush.msrb.mxu1 %v10700_v16  ;;  %2824 = vmatpush.msrb.mxu3 %v10702_v30  ;;  %v10810_v16 = vld [vmem:[#allocation90_spill] sm:$0xff] }
 0x6a2   :  { %2765 = vmatpush.msrb.mxu0 %v10703_v15  ;;  %2805 = vmatpush.msrb.mxu2 %v10705_v21 }
 0x6a3   :  { %2785 = vmatpush.msrb.mxu1 %v10704_v33  ;;  %2825 = vmatpush.msrb.mxu3 %v10706_v24 }
 0x6a4   :  { %2766 = vmatpush.msrb.mxu0 %v10707_v14  ;;  %2806 = vmatpush.msrb.mxu2 %v10709_v20 }
 0x6a5   :  { %2786 = vmatpush.msrb.mxu1 %v10708_v17  ;;  %2826 = vmatpush.msrb.mxu3 %v10710_v40  ;;  %v10811_v17 = vld [vmem:[#allocation103_spill] sm:$0xff]  ;;  %v10812_v40 = vld [vmem:[#allocation92_spill] sm:$0xff] }
 0x6a6   :  { %2767 = vmatpush.msrb.mxu0 %v10711_v25  ;;  %2807 = vmatpush.msrb.mxu2 %v10713_v27 }
 0x6a7   :  { %2787 = vmatpush.msrb.mxu1 %v10712_v46  ;;  %2827 = vmatpush.msrb.mxu3 %v10714_v56 }
 0x6a8   :  { %2768 = vmatpush.msrb.mxu0 %v10787_v47  ;;  %2808 = vmatpush.msrb.mxu2 %v10789_v6 }
 0x6a9   :  { %2788 = vmatpush.msrb.mxu1 %v10788_v54  ;;  %2828 = vmatpush.msrb.mxu3 %v10790_v59 }
 0x6aa   :  { %2769 = vmatpush.msrb.mxu0 %v10791_v2  ;;  %2809 = vmatpush.msrb.mxu2 %v10793_v44  ;;  %v10813_v2 = vld [vmem:[#allocation94_spill] sm:$0xff] }
 0x6ab   :  { %2789 = vmatpush.msrb.mxu1 %v10792_v7  ;;  %2829 = vmatpush.msrb.mxu3 %v10794_v63 }
 0x6ac   :  { %2770 = vmatpush.msrb.mxu0 %v10795_v8  ;;  %2810 = vmatpush.msrb.mxu2 %v10797_v11 }
 0x6ad   :  { %2790 = vmatpush.msrb.mxu1 %v10796_v26  ;;  %2830 = vmatpush.msrb.mxu3 %v10798_v13 }
 0x6ae   :  { %2771 = vmatpush.msrb.mxu0 %v10799_v28  ;;  %2811 = vmatpush.msrb.mxu2 %v10801_v19 }
 0x6af   :  { %2791 = vmatpush.msrb.mxu1 %v10800_v1  ;;  %2831 = vmatpush.msrb.mxu3 %v10802_v10 }
 0x6b0   :  { %2772 = vmatpush.msrb.mxu0 %v10803_v12  ;;  %2812 = vmatpush.msrb.mxu2 %v10805_v43 }
 0x6b1   :  { %2792 = vmatpush.msrb.mxu1 %v10804_v38  ;;  %2832 = vmatpush.msrb.mxu3 %v10806_v31  ;;  %v10814_v38 = vld [vmem:[#allocation95_spill] sm:$0xff] }
 0x6b2   :  { %2773 = vmatpush.msrb.mxu0 %v10807_v18  ;;  %2813 = vmatpush.msrb.mxu2 %v10809_v32 }
 0x6b3   :  { %2793 = vmatpush.msrb.mxu1 %v10808_v60  ;;  %2833 = vmatpush.msrb.mxu3 %v10810_v16 }
 0x6e1   :  { %v2467_v23 = vpop.f32.mrf.mxu0  ;;  %v2487_v30 = vpop.f32.mrf.mxu1 }
 0x6e8   :  { %v2527_v15 = vpop.f32.mrf.mxu3  ;;  %v2507_v56 = vpop.f32.mrf.mxu2 }
 0x6e9   :  { %v2547_v33 = vpop.f32.mrf.mxu0  ;;  %v2567_v21 = vpop.f32.mrf.mxu1 }
 0x6ea   :  { %v2548_v24 = vadd.f32 %v2547_v33, %v2467_v23  ;;  %v2568_v14 = vadd.f32 %v2567_v21, %v2487_v30 }
 0x6ec   :  { %v2610_v20 = vadd.f32 %v2548_v24, %v10811_v17  ;;  %v2611_v25 = vadd.f32 %v2568_v14, %v10812_v40 }
 0x6ee   :  { %v2614_v46 = vsub.f32 0.0, %v2610_v20  ;;  %v2633_v27 = vsub.f32 0.0, %v2611_v25 }
 0x6f0   :  { %v2615_v47 = vmul.f32 1.442695, %v2614_v46  ;;  %v2634_v54 = vmul.f32 1.442695, %v2633_v27  ;;  %v2607_v6 = vpop.f32.mrf.mxu3  ;;  %v2587_v28 = vpop.f32.mrf.mxu2 }
 0x6f1   :  { %v2608_v59 = vadd.f32 %v2607_v6, %v2527_v15  ;;  %v2588_v1 = vadd.f32 %v2587_v28, %v2507_v56 }
 0x6f2   :  { %4261 = vpow2.f32 %v2615_v47 }
 0x6f3   :  { %4263 = vpow2.f32 %v2634_v54  ;;  %v2613_v7 = vadd.f32 %v2608_v59, %v10813_v2  ;;  %v2612_v43 = vadd.f32 %v2588_v1, %v10814_v38 }
 0x6f5   :  { %v2653_v44 = vsub.f32 0.0, %v2613_v7 }
 0x6f7   :  { %v2654_v63 = vmul.f32 1.442695, %v2653_v44 }
 0x6f8   :  { %v4262_v8 = vpop.eup %4261 }
 0x6f9   :  { %v4264_v26 = vpop.eup %4263  ;;  %v2617_v11 = vadd.f32 1.0, %v4262_v8  ;;  %4265 = vpow2.f32 %v2654_v63 }
 0x6fa   :  { %v2636_v13 = vadd.f32 1.0, %v4264_v26 }
 0x6fb   :  { %4267 = vrcp.f32 %v2617_v11  ;;  %v2629_v23 = vand.u32 2147483648, %v2617_v11  ;;  %v2627_v33 = vand.u32 2147483647, %v2617_v11  ;;  %vm2623_vm14 = vweird.f32 %v2617_v11 }
 0x6fc   :  { %4269 = vrcp.f32 %v2636_v13  ;;  %v2648_v30 = vand.u32 2147483648, %v2636_v13  ;;  %v2646_v24 = vand.u32 2147483647, %v2636_v13  ;;  %vm2642_vm15 = vweird.f32 %v2636_v13 }
 0x6fd   :  { %v2630_v25 = vor.u32 1.1754944e-38, %v2629_v23  ;;  %vm2628_vm2 = vcmp.eq.f32.partialorder %v2627_v33, 8.507059e+37  ;;  %v10820_v23 = vld [vmem:[#allocation105_spill] sm:$0xff]  ;;  %v10823_v33 = vld [vmem:[#allocation114_spill] sm:$0xff] }
 0x6fe   :  { %v2649_v56 = vor.u32 1.1754944e-38, %v2648_v30  ;;  %vm2647_vm3 = vcmp.eq.f32.partialorder %v2646_v24, 8.507059e+37  ;;  %v10821_v30 = vld [vmem:[#allocation100_spill] sm:$0xff]  ;;  %v10825_v24 = vld [vmem:[#allocation27_spill] sm:$0xff] }
 0x6ff   :  { %v4266_v19 = vpop.eup %4265 }
 0x700   :  { %v2656_v10 = vadd.f32 1.0, %v4266_v19 }
 0x701   :  { %v4268_v12 = vpop.eup %4267 }
 0x702   :  { %v4270_v31 = vpop.eup %4269  ;;  %v2619_v18 = vmul.f32 %v4268_v12, %v2617_v11  ;;  %4271 = vrcp.f32 %v2656_v10  ;;  %vm2624_vm12 = vweird.f32 %v4268_v12  ;;  %v2668_v28 = vand.u32 2147483648, %v2656_v10 }
 0x703   :  { %v2638_v60 = vmul.f32 %v4270_v31, %v2636_v13  ;;  %4273 = vtanh.f32 %v2612_v43  ;;  %vm2643_vm13 = vweird.f32 %v4270_v31  ;;  %vm2625_vm0 = vmor %vm2623_vm14, %vm2624_vm12  ;;  %vm2662_vm5 = vweird.f32 %v2656_v10 }
 0x704   :  { %v2620_v32 = vsub.f32 1.0, %v2619_v18  ;;  %vm2644_vm1 = vmor %vm2642_vm15, %vm2643_vm13  ;;  %v2666_v1 = vand.u32 2147483647, %v2656_v10 }
 0x705   :  { %v2639_v16 = vsub.f32 1.0, %v2638_v60  ;;  %v10817_v60 = vld [vmem:[#allocation96_spill] sm:$0xff] }
 0x706   :  { %v2621_v15 = vmul.f32 %v4268_v12, %v2620_v32  ;;  %vm2667_vm7 = vcmp.eq.f32.partialorder %v2666_v1, 8.507059e+37  ;;  %v10818_v32 = vld [vmem:[#allocation98_spill] sm:$0xff]  ;;  %v10843_v1 = vld [vmem:[#allocation36_spill] sm:$0xff] }
 0x707   :  { %v2640_v21 = vmul.f32 %v4270_v31, %v2639_v16  ;;  %v10819_v16 = vld [vmem:[#allocation99_spill] sm:$0xff] }
 0x708   :  { %v4272_v14 = vpop.eup %4271  ;;  %v2622_v20 = vadd.f32 %v4268_v12, %v2621_v15  ;;  %v10822_v15 = vld [vmem:[#allocation111_spill] sm:$0xff] }
 0x709   :  { %v2641_v46 = vadd.f32 %v4270_v31, %v2640_v21  ;;  %v2658_v27 = vmul.f32 %v4272_v14, %v2656_v10  ;;  %v4274_v54 = vpop.eup %4273  ;;  %vm2663_vm4 = vweird.f32 %v4272_v14  ;;  %v10816_v10 = vld [vmem:[#allocation104_spill] sm:$0xff]  ;;  %v10824_v21 = vld [vmem:[#allocation110_spill] sm:$0xff] }
 0x70a   :  { %v2626_v47 = vsel %vm2625_vm0, %v4268_v12, %v2622_v20  ;;  %vm2664_vm6 = vmor %vm2662_vm5, %vm2663_vm4  ;;  %v2669_v12 = vor.u32 1.1754944e-38, %v2668_v28  ;;  %v10827_v20 = vld [vmem:[#allocation20_spill] sm:$0xff]  ;;  %v10842_v28 = vld [vmem:[#allocation34_spill] sm:$0xff] }
 0x70b   :  { %v2631_v6 = vsel %vm2628_vm2, %v2630_v25, %v2626_v47  ;;  %v2645_v59 = vsel %vm2644_vm1, %v4270_v31, %v2641_v46  ;;  %v2659_v7 = vsub.f32 1.0, %v2658_v27  ;;  %v10828_v25 = vld [vmem:[#allocation21_spill] sm:$0xff]  ;;  %v10829_v46 = vld [vmem:[#allocation31_spill] sm:$0xff]  ;;  %v10830_v27 = vld [vmem:[#allocation22_spill] sm:$0xff] }
 0x70c   :  { %v2650_v44 = vsel %vm2647_vm3, %v2649_v56, %v2645_v59  ;;  %v2673_v63 = vmul.f32 %v4274_v54, %v2631_v6  ;;  %v10831_v56 = vld [vmem:[#allocation24_spill] sm:$0xff]  ;;  %v10832_v47 = vld [vmem:[#allocation25_spill] sm:$0xff]  ;;  %v10833_v54 = vld [vmem:[#allocation35_spill] sm:$0xff] }
 0x70d   :  { %v2672_v8 = vmul.f32 %v2650_v44, %v7517_v62  ;;  %v2660_v26 = vmul.f32 %v4272_v14, %v2659_v7  ;;  %v10815_v62 = vld [vmem:[#allocation112_spill] sm:$0xff]  ;;  %v10834_v6 = vld [vmem:[#allocation26_spill] sm:$0xff]  ;;  %v10836_v7 = vld [vmem:[#allocation29_spill] sm:$0xff] }
 0x70e   :  { %v10835_v59 = vld [vmem:[#allocation28_spill] sm:$0xff]  ;;  %v10837_v44 = vld [vmem:[#allocation43_spill] sm:$0xff] }
 0x70f   :  { %v7789_v11 = vadd.f32 %v2673_v63, %v2672_v8  ;;  %v2661_v13 = vadd.f32 %v4272_v14, %v2660_v26  ;;  %v10838_v63 = vld [vmem:[#allocation30_spill] sm:$0xff]  ;;  %v10839_v8 = vld [vmem:[#allocation32_spill] sm:$0xff]  ;;  %v10840_v26 = vld [vmem:[#allocation33_spill] sm:$0xff] }
 0x711   :  { %4275 = vtanh.f32 %v7789_v11  ;;  %v2665_v19 = vsel %vm2664_vm6, %v4272_v14, %v2661_v13  ;;  %v10826_v14 = vld [vmem:[#allocation19_spill] sm:$0xff] }
 0x712   :  { %v2670_v31 = vsel %vm2667_vm7, %v2669_v12, %v2665_v19  ;;  %v10841_v13 = vld [vmem:[#allocation47_spill] sm:$0xff]  ;;  %v10844_v19 = vld [vmem:[#allocation37_spill] sm:$0xff] }
 0x713   :  { %v10845_v12 = vld [vmem:[#allocation51_spill] sm:$0xff] }
 0x717   :  { %v4276_v43 = vpop.eup %4275 }
 0x718   :  { %v2676_v18 = vmul.f32 %v4276_v43, %v2670_v31  ;;  %v10846_v43 = vld [vmem:[#allocation38_spill] sm:$0xff]  ;;  %v10847_v31 = vld [vmem:[#allocation39_spill] sm:$0xff] }
 0x71a   :  { %2694 = vmatmul.f32.vlgmr.msra.gmra.mxu0 %v2676_v18  ;;  %2714 = vmatmul.f32.vlgmr.msra.gmra.mxu1 %v2676_v18 }
 0x71b   :  { %2734 = vmatmul.f32.vlgmr.msra.gmra.mxu2 %v2676_v18  ;;  %2754 = vmatmul.f32.vlgmr.msra.gmra.mxu3 %v2676_v18  ;;  %v10848_v18 = vld [vmem:[#allocation40_spill] sm:$0xff] }
 0x71c   :  { %2906 = vmatpush.msra.mxu0 %v7520_v34  ;;  %2926 = vmatpush.msra.mxu1 %v7523_v39 }
 0x71d   :  { %2946 = vmatpush.msra.mxu2 %v7526_v42  ;;  %2966 = vmatpush.msra.mxu3 %v7529_v29 }
 0x71e   :  { %2907 = vmatpush.msra.mxu0 %v7532_v9  ;;  %2927 = vmatpush.msra.mxu1 %v7535_v22 }
 0x71f   :  { %2947 = vmatpush.msra.mxu2 %v7538_v4  ;;  %2967 = vmatpush.msra.mxu3 %v7541_v41 }
 0x720   :  { %2908 = vmatpush.msra.mxu0 %v7544_v52  ;;  %2928 = vmatpush.msra.mxu1 %v7547_v45 }
 0x721   :  { %2948 = vmatpush.msra.mxu2 %v7550_v48  ;;  %2968 = vmatpush.msra.mxu3 %v7553_v49 }
 0x722   :  { %2774 = vmatmul.f32.vlgmr.msrb.gmra.mxu0 %v10815_v62  ;;  %2794 = vmatmul.f32.vlgmr.msrb.gmra.mxu1 %v10815_v62 }
 0x723   :  { %2814 = vmatmul.f32.vlgmr.msrb.gmra.mxu2 %v10815_v62  ;;  %2834 = vmatmul.f32.vlgmr.msrb.gmra.mxu3 %v10815_v62  ;;  %v10849_v62 = vld [vmem:[#allocation55_spill] sm:$0xff] }
 0x724   :  { %2909 = vmatpush.msra.mxu0 %v7560_v53  ;;  %2929 = vmatpush.msra.mxu1 %v7563_v58 }
 0x725   :  { %2949 = vmatpush.msra.mxu2 %v7566_v50  ;;  %2969 = vmatpush.msra.mxu3 %v7569_v5 }
 0x726   :  { %2910 = vmatpush.msra.mxu0 %v7572_v36  ;;  %2930 = vmatpush.msra.mxu1 %v7575_v55 }
 0x727   :  { %2950 = vmatpush.msra.mxu2 %v7578_v37  ;;  %2970 = vmatpush.msra.mxu3 %v10816_v10 }
 0x728   :  { %2911 = vmatpush.msra.mxu0 %v10817_v60  ;;  %2931 = vmatpush.msra.mxu1 %v10818_v32 }
 0x729   :  { %2951 = vmatpush.msra.mxu2 %v10819_v16  ;;  %2971 = vmatpush.msra.mxu3 %v10820_v23 }
 0x72a   :  { %2912 = vmatpush.msra.mxu0 %v10821_v30  ;;  %2932 = vmatpush.msra.mxu1 %v10822_v15 }
 0x72b   :  { %2952 = vmatpush.msra.mxu2 %v10823_v33  ;;  %2972 = vmatpush.msra.mxu3 %v10824_v21 }
 0x72c   :  { %2913 = vmatpush.msra.mxu0 %v10825_v24  ;;  %2933 = vmatpush.msra.mxu1 %v10826_v14 }
 0x72d   :  { %2953 = vmatpush.msra.mxu2 %v10827_v20  ;;  %2973 = vmatpush.msra.mxu3 %v10828_v25 }
 0x72e   :  { %2914 = vmatpush.msra.mxu0 %v10829_v46  ;;  %2934 = vmatpush.msra.mxu1 %v10830_v27 }
 0x72f   :  { %2954 = vmatpush.msra.mxu2 %v10831_v56  ;;  %2974 = vmatpush.msra.mxu3 %v10832_v47 }
 0x730   :  { %2915 = vmatpush.msra.mxu0 %v10833_v54  ;;  %2935 = vmatpush.msra.mxu1 %v10834_v6 }
 0x731   :  { %2955 = vmatpush.msra.mxu2 %v10835_v59  ;;  %2975 = vmatpush.msra.mxu3 %v10836_v7 }
 0x732   :  { %2916 = vmatpush.msra.mxu0 %v10837_v44  ;;  %2936 = vmatpush.msra.mxu1 %v10838_v63 }
 0x733   :  { %2956 = vmatpush.msra.mxu2 %v10839_v8  ;;  %2976 = vmatpush.msra.mxu3 %v10840_v26  ;;  %v10850_v8 = vld [vmem:[#allocation41_spill] sm:$0xff]  ;;  %v10851_v26 = vld [vmem:[#allocation42_spill] sm:$0xff] }
 0x734   :  { %2917 = vmatpush.msra.mxu0 %v10841_v13  ;;  %2937 = vmatpush.msra.mxu1 %v10842_v28  ;;  %v10852_v13 = vld [vmem:[#allocation44_spill] sm:$0xff]  ;;  %v10853_v28 = vld [vmem:[#allocation59_spill] sm:$0xff] }
 0x735   :  { %2957 = vmatpush.msra.mxu2 %v10843_v1  ;;  %2977 = vmatpush.msra.mxu3 %v10844_v19  ;;  %v10854_v1 = vld [vmem:[#allocation45_spill] sm:$0xff]  ;;  %v10855_v19 = vld [vmem:[#allocation46_spill] sm:$0xff] }
 0x736   :  { %2918 = vmatpush.msra.mxu0 %v10845_v12  ;;  %2938 = vmatpush.msra.mxu1 %v10846_v43  ;;  %v10856_v12 = vld [vmem:[#allocation48_spill] sm:$0xff] }
 0x737   :  { %2958 = vmatpush.msra.mxu2 %v10847_v31  ;;  %2978 = vmatpush.msra.mxu3 %v10848_v18 }
 0x738   :  { %2919 = vmatpush.msra.mxu0 %v10849_v62  ;;  %2939 = vmatpush.msra.mxu1 %v10850_v8 }
 0x739   :  { %2959 = vmatpush.msra.mxu2 %v10851_v26  ;;  %2979 = vmatpush.msra.mxu3 %v10852_v13  ;;  %v7862_v13 = vld [vmem:[#allocation6 + $0x3f0] sm:$0xff] }
 0x73a   :  { %2920 = vmatpush.msra.mxu0 %v10853_v28  ;;  %2940 = vmatpush.msra.mxu1 %v10854_v1  ;;  %10857 = vst [vmem:[#allocation54_spill] sm:$0xff] %v7862_v13  ;;  %v7865_v1 = vld [vmem:[#allocation6 + $0x3f8] sm:$0xff] }
 0x73b   :  { %2960 = vmatpush.msra.mxu2 %v10855_v19  ;;  %2980 = vmatpush.msra.mxu3 %v10856_v12  ;;  %10858 = vst [vmem:[#allocation56_spill] sm:$0xff] %v7865_v1  ;;  %v7868_v12 = vld [vmem:[#allocation6 + $0x3c0] sm:$0xff] }
 0x73c   :  { %2921 = vmatpush.msra.mxu0 %v7704_v35  ;;  %2941 = vmatpush.msra.mxu1 %v7707_v57  ;;  %10859 = vst [vmem:[#allocation71_spill] sm:$0xff] %v7868_v12  ;;  %v7871_v57 = vld [vmem:[#allocation6 + $0x3c8] sm:$0xff] }
 0x73d   :  { %2961 = vmatpush.msra.mxu2 %v7710_v51  ;;  %2981 = vmatpush.msra.mxu3 %v7713_v0  ;;  %10860 = vst [vmem:[#allocation57_spill] sm:$0xff] %v7871_v57  ;;  %v7874_v0 = vld [vmem:[#allocation6 + $0x3d0] sm:$0xff] }
 0x73e   :  { %2986 = vmatpush.msrb.mxu0 %v7716_v61  ;;  %3006 = vmatpush.msrb.mxu1 %v7719_v3  ;;  %10861 = vst [vmem:[#allocation58_spill] sm:$0xff] %v7874_v0  ;;  %v7877_v3 = vld [vmem:[#allocation6 + $0x3d8] sm:$0xff] }
 0x73f   :  { %3026 = vmatpush.msrb.mxu2 %v7862_v13  ;;  %3046 = vmatpush.msrb.mxu3 %v7865_v1  ;;  %10862 = vst [vmem:[#allocation60_spill] sm:$0xff] %v7877_v3  ;;  %v7880_v13 = vld [vmem:[#allocation6 + $0x3a0] sm:$0xff]  ;;  %v7883_v1 = vld [vmem:[#allocation6 + $0x3a8] sm:$0xff] }
 0x740   :  { %2987 = vmatpush.msrb.mxu0 %v7868_v12  ;;  %3007 = vmatpush.msrb.mxu1 %v7871_v57  ;;  %10863 = vst [vmem:[#allocation75_spill] sm:$0xff] %v7880_v13  ;;  %v7886_v12 = vld [vmem:[#allocation6 + $0x3b0] sm:$0xff]  ;;  %v7889_v57 = vld [vmem:[#allocation6 + $0x3b8] sm:$0xff] }
 0x741   :  { %3027 = vmatpush.msrb.mxu2 %v7874_v0  ;;  %3047 = vmatpush.msrb.mxu3 %v7877_v3  ;;  %10864 = vst [vmem:[#allocation61_spill] sm:$0xff] %v7883_v1  ;;  %v7892_v0 = vld [vmem:[#allocation6 + $0x380] sm:$0xff]  ;;  %v7895_v3 = vld [vmem:[#allocation6 + $0x388] sm:$0xff] }
 0x742   :  { %2988 = vmatpush.msrb.mxu0 %v7880_v13  ;;  %3008 = vmatpush.msrb.mxu1 %v7883_v1  ;;  %10865 = vst [vmem:[#allocation62_spill] sm:$0xff] %v7886_v12  ;;  %v7898_v13 = vld [vmem:[#allocation6 + $0x390] sm:$0xff]  ;;  %v7901_v1 = vld [vmem:[#allocation6 + $0x398] sm:$0xff] }
 0x743   :  { %3028 = vmatpush.msrb.mxu2 %v7886_v12  ;;  %10866 = vst [vmem:[#allocation64_spill] sm:$0xff] %v7889_v57  ;;  %3048 = vmatpush.msrb.mxu3 %v7889_v57  ;;  %v7904_v12 = vld [vmem:[#allocation6 + $0x360] sm:$0xff]  ;;  %v7907_v57 = vld [vmem:[#allocation6 + $0x368] sm:$0xff] }
 0x744   :  { %10867 = vst [vmem:[#allocation79_spill] sm:$0xff] %v7892_v0  ;;  %2989 = vmatpush.msrb.mxu0 %v7892_v0  ;;  %3009 = vmatpush.msrb.mxu1 %v7895_v3  ;;  %v7910_v0 = vld [vmem:[#allocation6 + $0x370] sm:$0xff] }
 0x745   :  { %10868 = vst [vmem:[#allocation65_spill] sm:$0xff] %v7895_v3  ;;  %3029 = vmatpush.msrb.mxu2 %v7898_v13  ;;  %3049 = vmatpush.msrb.mxu3 %v7901_v1  ;;  %v7913_v3 = vld [vmem:[#allocation6 + $0x378] sm:$0xff] }
 0x746   :  { %10869 = vst [vmem:[#allocation66_spill] sm:$0xff] %v7898_v13  ;;  %2990 = vmatpush.msrb.mxu0 %v7904_v12  ;;  %3010 = vmatpush.msrb.mxu1 %v7907_v57  ;;  %v7916_v13 = vld [vmem:[#allocation6 + $0x340] sm:$0xff] }
 0x747   :  { %10870 = vst [vmem:[#allocation106_spill] sm:$0xff] %v7901_v1  ;;  %3030 = vmatpush.msrb.mxu2 %v7910_v0  ;;  %3050 = vmatpush.msrb.mxu3 %v7913_v3  ;;  %v7919_v1 = vld [vmem:[#allocation6 + $0x348] sm:$0xff] }
 0x748   :  { %10871 = vst [vmem:[#allocation107_spill] sm:$0xff] %v7904_v12  ;;  %2991 = vmatpush.msrb.mxu0 %v7916_v13  ;;  %3011 = vmatpush.msrb.mxu1 %v7919_v1  ;;  %v7922_v12 = vld [vmem:[#allocation6 + $0x350] sm:$0xff] }
 0x749   :  { %10872 = vst [vmem:[#allocation108_spill] sm:$0xff] %v7907_v57  ;;  %3031 = vmatpush.msrb.mxu2 %v7922_v12  ;;  %v7925_v57 = vld [vmem:[#allocation6 + $0x358] sm:$0xff] }
 0x74a   :  { %10873 = vst [vmem:[#allocation109_spill] sm:$0xff] %v7910_v0  ;;  %3051 = vmatpush.msrb.mxu3 %v7925_v57  ;;  %v7928_v0 = vld [vmem:[#allocation6 + $0x320] sm:$0xff] }
 0x74b   :  { %10874 = vst [vmem:[#allocation17_spill] sm:$0xff] %v7913_v3  ;;  %2992 = vmatpush.msrb.mxu0 %v7928_v0  ;;  %v7931_v3 = vld [vmem:[#allocation6 + $0x328] sm:$0xff] }
 0x74c   :  { %10875 = vst [vmem:[#allocation23_spill] sm:$0xff] %v7916_v13  ;;  %3012 = vmatpush.msrb.mxu1 %v7931_v3  ;;  %v7934_v13 = vld [vmem:[#allocation6 + $0x330] sm:$0xff] }
 0x74d   :  { %10876 = vst [vmem:[#allocation68_spill] sm:$0xff] %v7919_v1  ;;  %3032 = vmatpush.msrb.mxu2 %v7934_v13  ;;  %v7937_v1 = vld [vmem:[#allocation6 + $0x338] sm:$0xff] }
 0x74e   :  { %10877 = vst [vmem:[#allocation85_spill] sm:$0xff] %v7922_v12  ;;  %3052 = vmatpush.msrb.mxu3 %v7937_v1  ;;  %v7940_v12 = vld [vmem:[#allocation6 + $0x300] sm:$0xff] }
 0x74f   :  { %10878 = vst [vmem:[#allocation69_spill] sm:$0xff] %v7925_v57  ;;  %2993 = vmatpush.msrb.mxu0 %v7940_v12  ;;  %v7943_v57 = vld [vmem:[#allocation6 + $0x308] sm:$0xff] }
 0x750   :  { %10879 = vst [vmem:[#allocation70_spill] sm:$0xff] %v7928_v0  ;;  %3013 = vmatpush.msrb.mxu1 %v7943_v57  ;;  %v7946_v0 = vld [vmem:[#allocation6 + $0x310] sm:$0xff] }
 0x751   :  { %10880 = vst [vmem:[#allocation72_spill] sm:$0xff] %v7931_v3  ;;  %3033 = vmatpush.msrb.mxu2 %v7946_v0  ;;  %v7949_v3 = vld [vmem:[#allocation6 + $0x318] sm:$0xff] }
 0x752   :  { %10881 = vst [vmem:[#allocation89_spill] sm:$0xff] %v7934_v13  ;;  %3053 = vmatpush.msrb.mxu3 %v7949_v3  ;;  %v7952_v13 = vld [vmem:[#allocation6 + $0x2e0] sm:$0xff] }
 0x753   :  { %10882 = vst [vmem:[#allocation73_spill] sm:$0xff] %v7937_v1  ;;  %2994 = vmatpush.msrb.mxu0 %v7952_v13  ;;  %v7955_v1 = vld [vmem:[#allocation6 + $0x2e8] sm:$0xff] }
 0x754   :  { %10883 = vst [vmem:[#allocation74_spill] sm:$0xff] %v7940_v12  ;;  %3014 = vmatpush.msrb.mxu1 %v7955_v1  ;;  %v7958_v12 = vld [vmem:[#allocation6 + $0x2f0] sm:$0xff] }
 0x755   :  { %10884 = vst [vmem:[#allocation76_spill] sm:$0xff] %v7943_v57  ;;  %3034 = vmatpush.msrb.mxu2 %v7958_v12  ;;  %v7961_v57 = vld [vmem:[#allocation6 + $0x2f8] sm:$0xff] }
 0x756   :  { %10885 = vst [vmem:[#allocation93_spill] sm:$0xff] %v7946_v0  ;;  %3054 = vmatpush.msrb.mxu3 %v7961_v57  ;;  %v7964_v0 = vld [vmem:[#allocation6 + $0x2c0] sm:$0xff] }
 0x757   :  { %10886 = vst [vmem:[#allocation77_spill] sm:$0xff] %v7949_v3  ;;  %2995 = vmatpush.msrb.mxu0 %v7964_v0  ;;  %v7967_v3 = vld [vmem:[#allocation6 + $0x2c8] sm:$0xff] }
 0x758   :  { %10887 = vst [vmem:[#allocation78_spill] sm:$0xff] %v7952_v13  ;;  %3015 = vmatpush.msrb.mxu1 %v7967_v3  ;;  %v7970_v13 = vld [vmem:[#allocation6 + $0x2d0] sm:$0xff] }
 0x759   :  { %10888 = vst [vmem:[#allocation80_spill] sm:$0xff] %v7955_v1  ;;  %3035 = vmatpush.msrb.mxu2 %v7970_v13  ;;  %v7973_v1 = vld [vmem:[#allocation6 + $0x2d8] sm:$0xff] }
 0x75a   :  { %10889 = vst [vmem:[#allocation97_spill] sm:$0xff] %v7958_v12  ;;  %3055 = vmatpush.msrb.mxu3 %v7973_v1  ;;  %v7976_v12 = vld [vmem:[#allocation6 + $0x2a0] sm:$0xff] }
 0x75b   :  { %10890 = vst [vmem:[#allocation81_spill] sm:$0xff] %v7961_v57  ;;  %2996 = vmatpush.msrb.mxu0 %v7976_v12  ;;  %v7979_v57 = vld [vmem:[#allocation6 + $0x2a8] sm:$0xff] }
 0x75c   :  { %10891 = vst [vmem:[#allocation82_spill] sm:$0xff] %v7964_v0  ;;  %3016 = vmatpush.msrb.mxu1 %v7979_v57  ;;  %v7982_v0 = vld [vmem:[#allocation6 + $0x2b0] sm:$0xff] }
 0x75d   :  { %10892 = vst [vmem:[#allocation83_spill] sm:$0xff] %v7967_v3  ;;  %3036 = vmatpush.msrb.mxu2 %v7982_v0  ;;  %v7985_v3 = vld [vmem:[#allocation6 + $0x2b8] sm:$0xff] }
 0x75e   :  { %10893 = vst [vmem:[#allocation101_spill] sm:$0xff] %v7970_v13  ;;  %3056 = vmatpush.msrb.mxu3 %v7985_v3  ;;  %v7988_v13 = vld [vmem:[#allocation6 + $0x280] sm:$0xff] }
 0x75f   :  { %10894 = vst [vmem:[#allocation84_spill] sm:$0xff] %v7973_v1  ;;  %2997 = vmatpush.msrb.mxu0 %v7988_v13  ;;  %v7991_v1 = vld [vmem:[#allocation6 + $0x288] sm:$0xff] }
 0x760   :  { %10895 = vst [vmem:[#allocation86_spill] sm:$0xff] %v7976_v12  ;;  %3017 = vmatpush.msrb.mxu1 %v7991_v1  ;;  %v7994_v12 = vld [vmem:[#allocation6 + $0x290] sm:$0xff] }
 0x761   :  { %10896 = vst [vmem:[#allocation87_spill] sm:$0xff] %v7979_v57  ;;  %3037 = vmatpush.msrb.mxu2 %v7994_v12  ;;  %v7997_v57 = vld [vmem:[#allocation6 + $0x298] sm:$0xff] }
 0x762   :  { %10897 = vst [vmem:[#allocation102_spill] sm:$0xff] %v7982_v0  ;;  %3057 = vmatpush.msrb.mxu3 %v7997_v57  ;;  %v8000_v0 = vld [vmem:[#allocation6 + $0x260] sm:$0xff] }
 0x763   :  { %10898 = vst [vmem:[#allocation88_spill] sm:$0xff] %v7985_v3  ;;  %2998 = vmatpush.msrb.mxu0 %v8000_v0  ;;  %v8003_v3 = vld [vmem:[#allocation6 + $0x268] sm:$0xff] }
 0x764   :  { %10899 = vst [vmem:[#allocation90_spill] sm:$0xff] %v7988_v13  ;;  %3018 = vmatpush.msrb.mxu1 %v8003_v3  ;;  %v8006_v13 = vld [vmem:[#allocation6 + $0x270] sm:$0xff] }
 0x765   :  { %10900 = vst [vmem:[#allocation112_spill] sm:$0xff] %v7991_v1  ;;  %3038 = vmatpush.msrb.mxu2 %v8006_v13  ;;  %v8009_v1 = vld [vmem:[#allocation6 + $0x278] sm:$0xff] }
 0x766   :  { %10901 = vst [vmem:[#allocation104_spill] sm:$0xff] %v7994_v12  ;;  %3058 = vmatpush.msrb.mxu3 %v8009_v1  ;;  %v8012_v12 = vld [vmem:[#allocation6 + $0x240] sm:$0xff] }
 0x767   :  { %10902 = vst [vmem:[#allocation96_spill] sm:$0xff] %v7997_v57  ;;  %2999 = vmatpush.msrb.mxu0 %v8012_v12  ;;  %v8015_v57 = vld [vmem:[#allocation6 + $0x248] sm:$0xff] }
 0x768   :  { %10903 = vst [vmem:[#allocation98_spill] sm:$0xff] %v8000_v0  ;;  %3019 = vmatpush.msrb.mxu1 %v8015_v57  ;;  %v8018_v0 = vld [vmem:[#allocation6 + $0x250] sm:$0xff] }
 0x769   :  { %10904 = vst [vmem:[#allocation99_spill] sm:$0xff] %v8003_v3  ;;  %3039 = vmatpush.msrb.mxu2 %v8018_v0  ;;  %v8021_v3 = vld [vmem:[#allocation6 + $0x258] sm:$0xff] }
 0x76a   :  { %10905 = vst [vmem:[#allocation105_spill] sm:$0xff] %v8006_v13  ;;  %3059 = vmatpush.msrb.mxu3 %v8021_v3  ;;  %v8024_v13 = vld [vmem:[#allocation6 + $0x220] sm:$0xff] }
 0x76b   :  { %10906 = vst [vmem:[#allocation100_spill] sm:$0xff] %v8009_v1  ;;  %3000 = vmatpush.msrb.mxu0 %v8024_v13  ;;  %v8027_v1 = vld [vmem:[#allocation6 + $0x228] sm:$0xff] }
 0x76c   :  { %10907 = vst [vmem:[#allocation111_spill] sm:$0xff] %v8012_v12  ;;  %3020 = vmatpush.msrb.mxu1 %v8027_v1  ;;  %v8030_v12 = vld [vmem:[#allocation6 + $0x230] sm:$0xff] }
 0x76d   :  { %10908 = vst [vmem:[#allocation114_spill] sm:$0xff] %v8015_v57  ;;  %3040 = vmatpush.msrb.mxu2 %v8030_v12  ;;  %v8033_v57 = vld [vmem:[#allocation6 + $0x238] sm:$0xff] }
 0x76e   :  { %10909 = vst [vmem:[#allocation110_spill] sm:$0xff] %v8018_v0  ;;  %3060 = vmatpush.msrb.mxu3 %v8033_v57  ;;  %v8036_v0 = vld [vmem:[#allocation6 + $0x200] sm:$0xff] }
 0x76f   :  { %10910 = vst [vmem:[#allocation27_spill] sm:$0xff] %v8021_v3  ;;  %3001 = vmatpush.msrb.mxu0 %v8036_v0  ;;  %v8039_v3 = vld [vmem:[#allocation6 + $0x208] sm:$0xff] }
 0x770   :  { %10911 = vst [vmem:[#allocation19_spill] sm:$0xff] %v8024_v13  ;;  %3021 = vmatpush.msrb.mxu1 %v8039_v3  ;;  %v8042_v13 = vld [vmem:[#allocation6 + $0x210] sm:$0xff] }
 0x771   :  { %10912 = vst [vmem:[#allocation20_spill] sm:$0xff] %v8027_v1  ;;  %3041 = vmatpush.msrb.mxu2 %v8042_v13  ;;  %v8045_v1 = vld [vmem:[#allocation6 + $0x218] sm:$0xff] }
 0x772   :  { %10913 = vst [vmem:[#allocation21_spill] sm:$0xff] %v8030_v12  ;;  %3061 = vmatpush.msrb.mxu3 %v8045_v1 }
 0x773   :  { %10914 = vst [vmem:[#allocation31_spill] sm:$0xff] %v8033_v57 }
 0x774   :  { %10915 = vst [vmem:[#allocation22_spill] sm:$0xff] %v8036_v0 }
 0x775   :  { %10916 = vst [vmem:[#allocation24_spill] sm:$0xff] %v8039_v3 }
 0x776   :  { %10917 = vst [vmem:[#allocation25_spill] sm:$0xff] %v8042_v13 }
 0x777   :  { %10918 = vst [vmem:[#allocation35_spill] sm:$0xff] %v8045_v1 }
 0x797   :  { %v2695_v12 = vpop.f32.mrf.mxu0  ;;  %v2715_v61 = vpop.f32.mrf.mxu1 }
 0x79e   :  { %v2755_v51 = vpop.f32.mrf.mxu3  ;;  %v2735_v62 = vpop.f32.mrf.mxu2 }
 0x79f   :  { %v2775_v57 = vpop.f32.mrf.mxu0  ;;  %v2795_v35 = vpop.f32.mrf.mxu1 }
 0x7a0   :  { %v2776_v19 = vadd.f32 %v2775_v57, %v2695_v12  ;;  %v2796_v28 = vadd.f32 %v2795_v35, %v2715_v61 }
 0x7a2   :  { %v2838_v0 = vadd.f32 %v2776_v19, %v10811_v17  ;;  %v2839_v26 = vadd.f32 %v2796_v28, %v10812_v40 }
 0x7a4   :  { %v2842_v3 = vsub.f32 0.0, %v2838_v0  ;;  %v2861_v8 = vsub.f32 0.0, %v2839_v26 }
 0x7a6   :  { %v2843_v18 = vmul.f32 1.442695, %v2842_v3  ;;  %v2862_v13 = vmul.f32 1.442695, %v2861_v8  ;;  %v2835_v31 = vpop.f32.mrf.mxu3  ;;  %v2815_v19 = vpop.f32.mrf.mxu2 }
 0x7a7   :  { %v2836_v43 = vadd.f32 %v2835_v31, %v2755_v51  ;;  %v2816_v0 = vadd.f32 %v2815_v19, %v2735_v62 }
 0x7a8   :  { %4277 = vpow2.f32 %v2843_v18 }
 0x7a9   :  { %4279 = vpow2.f32 %v2862_v13  ;;  %v2841_v1 = vadd.f32 %v2836_v43, %v10813_v2  ;;  %v2840_v51 = vadd.f32 %v2816_v0, %v10814_v38 }
 0x7ab   :  { %v2881_v63 = vsub.f32 0.0, %v2841_v1 }
 0x7ad   :  { %v2882_v44 = vmul.f32 1.442695, %v2881_v63 }
 0x7ae   :  { %v4278_v7 = vpop.eup %4277 }
 0x7af   :  { %v4280_v57 = vpop.eup %4279  ;;  %v2845_v61 = vadd.f32 1.0, %v4278_v7  ;;  %4281 = vpow2.f32 %v2882_v44 }
 0x7b0   :  { %v2864_v35 = vadd.f32 1.0, %v4280_v57 }
 0x7b1   :  { %4283 = vrcp.f32 %v2845_v61  ;;  %v2857_v43 = vand.u32 2147483648, %v2845_v61  ;;  %v2855_v31 = vand.u32 2147483647, %v2845_v61  ;;  %vm2851_vm10 = vweird.f32 %v2845_v61 }
 0x7b2   :  { %4285 = vrcp.f32 %v2864_v35  ;;  %v2876_v7 = vand.u32 2147483648, %v2864_v35  ;;  %v2874_v62 = vand.u32 2147483647, %v2864_v35  ;;  %vm2870_vm11 = vweird.f32 %v2864_v35 }
 0x7b3   :  { %v2858_v0 = vor.u32 1.1754944e-38, %v2857_v43  ;;  %vm2856_vm14 = vcmp.eq.f32.partialorder %v2855_v31, 8.507059e+37 }
 0x7b4   :  { %vm2875_vm15 = vcmp.eq.f32.partialorder %v2874_v62, 8.507059e+37  ;;  %v10963_v62 = vld [vmem:[#allocation108_spill] sm:$0xff] }
 0x7b5   :  { %v4282_v26 = vpop.eup %4281 }
 0x7b6   :  { %v2884_v3 = vadd.f32 1.0, %v4282_v26 }
 0x7b7   :  { %v4284_v8 = vpop.eup %4283 }
 0x7b8   :  { %v4286_v28 = vpop.eup %4285  ;;  %v2847_v13 = vmul.f32 %v4284_v8, %v2845_v61  ;;  %4287 = vrcp.f32 %v2884_v3  ;;  %vm2852_vm8 = vweird.f32 %v4284_v8  ;;  %v2896_v43 = vand.u32 2147483648, %v2884_v3 }
 0x7b9   :  { %v2866_v12 = vmul.f32 %v4286_v28, %v2864_v35  ;;  %4289 = vtanh.f32 %v2840_v51  ;;  %vm2871_vm9 = vweird.f32 %v4286_v28  ;;  %vm2853_vm12 = vmor %vm2851_vm10, %vm2852_vm8  ;;  %vm2890_vm1 = vweird.f32 %v2884_v3 }
 0x7ba   :  { %v2848_v1 = vsub.f32 1.0, %v2847_v13  ;;  %vm2872_vm13 = vmor %vm2870_vm11, %vm2871_vm9  ;;  %v2877_v13 = vor.u32 1.1754944e-38, %v2876_v7  ;;  %v2897_v31 = vor.u32 1.1754944e-38, %v2896_v43  ;;  %v10975_v43 = vld [vmem:[#allocation76_spill] sm:$0xff] }
 0x7bb   :  { %v2867_v63 = vsub.f32 1.0, %v2866_v12 }
 0x7bc   :  { %v2849_v44 = vmul.f32 %v4284_v8, %v2848_v1 }
 0x7bd   :  { %v2868_v18 = vmul.f32 %v4286_v28, %v2867_v63 }
 0x7be   :  { %v4288_v57 = vpop.eup %4287  ;;  %v2850_v19 = vadd.f32 %v4284_v8, %v2849_v44 }
 0x7bf   :  { %v2869_v26 = vadd.f32 %v4286_v28, %v2868_v18  ;;  %v2886_v38 = vmul.f32 %v4288_v57, %v2884_v3  ;;  %v4290_v51 = vpop.eup %4289  ;;  %vm2891_vm0 = vweird.f32 %v4288_v57 }
 0x7c0   :  { %v2854_v12 = vsel %vm2853_vm12, %v4284_v8, %v2850_v19  ;;  %v2894_v8 = vand.u32 2147483647, %v2884_v3  ;;  %vm2892_vm2 = vmor %vm2890_vm1, %vm2891_vm0  ;;  %v10962_v3 = vld [vmem:[#allocation107_spill] sm:$0xff]  ;;  %v10965_v19 = vld [vmem:[#allocation17_spill] sm:$0xff] }
 0x7c1   :  { %v2859_v2 = vsel %vm2856_vm14, %v2858_v0, %v2854_v12  ;;  %v2873_v1 = vsel %vm2872_vm13, %v4286_v28, %v2869_v26  ;;  %v2887_v40 = vsub.f32 1.0, %v2886_v38  ;;  %v10966_v0 = vld [vmem:[#allocation23_spill] sm:$0xff]  ;;  %v10967_v26 = vld [vmem:[#allocation68_spill] sm:$0xff]  ;;  %v10969_v12 = vld [vmem:[#allocation69_spill] sm:$0xff] }
 0x7c2   :  { %v2878_v63 = vsel %vm2875_vm15, %v2877_v13, %v2873_v1  ;;  %v2901_v17 = vmul.f32 %v4290_v51, %v2859_v2  ;;  %vm2895_vm3 = vcmp.eq.f32.partialorder %v2894_v8, 8.507059e+37  ;;  %v10940_v2 = vld [vmem:[#allocation46_spill] sm:$0xff]  ;;  %v10968_v13 = vld [vmem:[#allocation85_spill] sm:$0xff]  ;;  %v10971_v1 = vld [vmem:[#allocation72_spill] sm:$0xff] }
 0x7c3   :  { %v2900_v59 = vmul.f32 %v2878_v63, %v7789_v11  ;;  %v2888_v44 = vmul.f32 %v4288_v57, %v2887_v40  ;;  %v10939_v40 = vld [vmem:[#allocation45_spill] sm:$0xff]  ;;  %v10941_v11 = vld [vmem:[#allocation48_spill] sm:$0xff]  ;;  %v10970_v51 = vld [vmem:[#allocation70_spill] sm:$0xff] }
 0x7c4   :  { %v10972_v63 = vld [vmem:[#allocation89_spill] sm:$0xff] }
 0x7c5   :  { %v8053_v61 = vadd.f32 %v2901_v17, %v2900_v59  ;;  %v2889_v35 = vadd.f32 %v4288_v57, %v2888_v44  ;;  %v10938_v17 = vld [vmem:[#allocation59_spill] sm:$0xff]  ;;  %v10961_v59 = vld [vmem:[#allocation106_spill] sm:$0xff]  ;;  %v10973_v44 = vld [vmem:[#allocation73_spill] sm:$0xff] }
 0x7c6   :  { %v10976_v8 = vld [vmem:[#allocation93_spill] sm:$0xff] }
 0x7c7   :  { %4291 = vtanh.f32 %v8053_v61  ;;  %v2893_v7 = vsel %vm2892_vm2, %v4288_v57, %v2889_v35  ;;  %v10964_v57 = vld [vmem:[#allocation109_spill] sm:$0xff]  ;;  %v10974_v35 = vld [vmem:[#allocation74_spill] sm:$0xff] }
 0x7c8   :  { %v2898_v38 = vsel %vm2895_vm3, %v2897_v31, %v2893_v7  ;;  %v10977_v7 = vld [vmem:[#allocation77_spill] sm:$0xff]  ;;  %v10978_v31 = vld [vmem:[#allocation78_spill] sm:$0xff] }
 0x7cd   :  { %v4292_v28 = vpop.eup %4291 }
 0x7ce   :  { %v2904_v18 = vmul.f32 %v4292_v28, %v2898_v38  ;;  %v10979_v28 = vld [vmem:[#allocation80_spill] sm:$0xff]  ;;  %v10980_v38 = vld [vmem:[#allocation97_spill] sm:$0xff] }
 0x7d0   :  { %2922 = vmatmul.f32.vlgmr.msra.gmra.mxu0 %v2904_v18  ;;  %2942 = vmatmul.f32.vlgmr.msra.gmra.mxu1 %v2904_v18 }
 0x7d1   :  { %2962 = vmatmul.f32.vlgmr.msra.gmra.mxu2 %v2904_v18  ;;  %2982 = vmatmul.f32.vlgmr.msra.gmra.mxu3 %v2904_v18  ;;  %v10981_v18 = vld [vmem:[#allocation81_spill] sm:$0xff] }
 0x7d2   :  { %3134 = vmatpush.msra.mxu0 %v7520_v34  ;;  %3154 = vmatpush.msra.mxu1 %v7523_v39  ;;  %v10919_v34 = vld [vmem:[#allocation113_spill] sm:$0xff]  ;;  %v10920_v39 = vld [vmem:[#allocation28_spill] sm:$0xff] }
 0x7d3   :  { %3174 = vmatpush.msra.mxu2 %v7526_v42  ;;  %3194 = vmatpush.msra.mxu3 %v7529_v29  ;;  %v10921_v42 = vld [vmem:[#allocation29_spill] sm:$0xff]  ;;  %v10922_v29 = vld [vmem:[#allocation43_spill] sm:$0xff] }
 0x7d4   :  { %3135 = vmatpush.msra.mxu0 %v7532_v9  ;;  %3155 = vmatpush.msra.mxu1 %v7535_v22  ;;  %v10923_v9 = vld [vmem:[#allocation30_spill] sm:$0xff]  ;;  %v10924_v22 = vld [vmem:[#allocation32_spill] sm:$0xff] }
 0x7d5   :  { %3175 = vmatpush.msra.mxu2 %v7538_v4  ;;  %3195 = vmatpush.msra.mxu3 %v7541_v41  ;;  %v10925_v4 = vld [vmem:[#allocation33_spill] sm:$0xff]  ;;  %v10926_v41 = vld [vmem:[#allocation47_spill] sm:$0xff] }
 0x7d6   :  { %3136 = vmatpush.msra.mxu0 %v7544_v52  ;;  %3156 = vmatpush.msra.mxu1 %v7547_v45  ;;  %v10927_v52 = vld [vmem:[#allocation34_spill] sm:$0xff]  ;;  %v10928_v45 = vld [vmem:[#allocation36_spill] sm:$0xff] }
 0x7d7   :  { %3176 = vmatpush.msra.mxu2 %v7550_v48  ;;  %3196 = vmatpush.msra.mxu3 %v7553_v49  ;;  %v10929_v48 = vld [vmem:[#allocation37_spill] sm:$0xff]  ;;  %v10930_v49 = vld [vmem:[#allocation51_spill] sm:$0xff] }
 0x7d8   :  { %3002 = vmatmul.f32.vlgmr.msrb.gmra.mxu0 %v10919_v34  ;;  %3022 = vmatmul.f32.vlgmr.msrb.gmra.mxu1 %v10919_v34 }
 0x7d9   :  { %3042 = vmatmul.f32.vlgmr.msrb.gmra.mxu2 %v10919_v34  ;;  %3062 = vmatmul.f32.vlgmr.msrb.gmra.mxu3 %v10919_v34  ;;  %v10982_v34 = vld [vmem:[#allocation82_spill] sm:$0xff] }
 0x7da   :  { %3137 = vmatpush.msra.mxu0 %v7560_v53  ;;  %3157 = vmatpush.msra.mxu1 %v7563_v58  ;;  %v10931_v53 = vld [vmem:[#allocation38_spill] sm:$0xff]  ;;  %v10932_v58 = vld [vmem:[#allocation39_spill] sm:$0xff] }
 0x7db   :  { %3177 = vmatpush.msra.mxu2 %v7566_v50  ;;  %3197 = vmatpush.msra.mxu3 %v7569_v5  ;;  %v10933_v50 = vld [vmem:[#allocation40_spill] sm:$0xff]  ;;  %v10934_v5 = vld [vmem:[#allocation55_spill] sm:$0xff] }
 0x7dc   :  { %3138 = vmatpush.msra.mxu0 %v7572_v36  ;;  %3158 = vmatpush.msra.mxu1 %v7575_v55  ;;  %v10935_v36 = vld [vmem:[#allocation41_spill] sm:$0xff]  ;;  %v10936_v55 = vld [vmem:[#allocation42_spill] sm:$0xff] }
 0x7dd   :  { %3178 = vmatpush.msra.mxu2 %v7578_v37  ;;  %3198 = vmatpush.msra.mxu3 %v10816_v10  ;;  %v10937_v37 = vld [vmem:[#allocation44_spill] sm:$0xff]  ;;  %v10942_v10 = vld [vmem:[#allocation63_spill] sm:$0xff] }
 0x7de   :  { %3139 = vmatpush.msra.mxu0 %v10817_v60  ;;  %3159 = vmatpush.msra.mxu1 %v10818_v32  ;;  %v10943_v60 = vld [vmem:[#allocation49_spill] sm:$0xff]  ;;  %v10944_v32 = vld [vmem:[#allocation50_spill] sm:$0xff] }
 0x7df   :  { %3179 = vmatpush.msra.mxu2 %v10819_v16  ;;  %3199 = vmatpush.msra.mxu3 %v10820_v23  ;;  %v10945_v16 = vld [vmem:[#allocation52_spill] sm:$0xff]  ;;  %v10946_v23 = vld [vmem:[#allocation67_spill] sm:$0xff] }
 0x7e0   :  { %3140 = vmatpush.msra.mxu0 %v10821_v30  ;;  %3160 = vmatpush.msra.mxu1 %v10822_v15  ;;  %v10947_v30 = vld [vmem:[#allocation53_spill] sm:$0xff]  ;;  %v10948_v15 = vld [vmem:[#allocation54_spill] sm:$0xff] }
 0x7e1   :  { %3180 = vmatpush.msra.mxu2 %v10823_v33  ;;  %3200 = vmatpush.msra.mxu3 %v10824_v21  ;;  %v10949_v33 = vld [vmem:[#allocation56_spill] sm:$0xff]  ;;  %v10950_v21 = vld [vmem:[#allocation71_spill] sm:$0xff] }
 0x7e2   :  { %3141 = vmatpush.msra.mxu0 %v10825_v24  ;;  %3161 = vmatpush.msra.mxu1 %v10826_v14  ;;  %v10951_v24 = vld [vmem:[#allocation57_spill] sm:$0xff]  ;;  %v10952_v14 = vld [vmem:[#allocation58_spill] sm:$0xff] }
 0x7e3   :  { %3181 = vmatpush.msra.mxu2 %v10827_v20  ;;  %3201 = vmatpush.msra.mxu3 %v10828_v25  ;;  %v10953_v20 = vld [vmem:[#allocation60_spill] sm:$0xff]  ;;  %v10954_v25 = vld [vmem:[#allocation75_spill] sm:$0xff] }
 0x7e4   :  { %3142 = vmatpush.msra.mxu0 %v10829_v46  ;;  %3162 = vmatpush.msra.mxu1 %v10830_v27  ;;  %v10955_v46 = vld [vmem:[#allocation61_spill] sm:$0xff]  ;;  %v10956_v27 = vld [vmem:[#allocation62_spill] sm:$0xff] }
 0x7e5   :  { %3182 = vmatpush.msra.mxu2 %v10831_v56  ;;  %3202 = vmatpush.msra.mxu3 %v10832_v47  ;;  %v10957_v56 = vld [vmem:[#allocation64_spill] sm:$0xff]  ;;  %v10958_v47 = vld [vmem:[#allocation79_spill] sm:$0xff] }
 0x7e6   :  { %3143 = vmatpush.msra.mxu0 %v10833_v54  ;;  %3163 = vmatpush.msra.mxu1 %v10834_v6  ;;  %v10959_v54 = vld [vmem:[#allocation65_spill] sm:$0xff]  ;;  %v10960_v6 = vld [vmem:[#allocation66_spill] sm:$0xff] }
 0x7e7   :  { %3183 = vmatpush.msra.mxu2 %v10920_v39  ;;  %3203 = vmatpush.msra.mxu3 %v10921_v42  ;;  %v10983_v39 = vld [vmem:[#allocation83_spill] sm:$0xff]  ;;  %v10984_v42 = vld [vmem:[#allocation101_spill] sm:$0xff] }
 0x7e8   :  { %3144 = vmatpush.msra.mxu0 %v10922_v29  ;;  %3164 = vmatpush.msra.mxu1 %v10923_v9  ;;  %v10985_v29 = vld [vmem:[#allocation84_spill] sm:$0xff]  ;;  %v10986_v9 = vld [vmem:[#allocation86_spill] sm:$0xff] }
 0x7e9   :  { %3184 = vmatpush.msra.mxu2 %v10924_v22  ;;  %3204 = vmatpush.msra.mxu3 %v10925_v4  ;;  %v10987_v22 = vld [vmem:[#allocation87_spill] sm:$0xff]  ;;  %v10988_v4 = vld [vmem:[#allocation102_spill] sm:$0xff] }
 0x7ea   :  { %3145 = vmatpush.msra.mxu0 %v10926_v41  ;;  %3165 = vmatpush.msra.mxu1 %v10927_v52  ;;  %v10989_v41 = vld [vmem:[#allocation88_spill] sm:$0xff]  ;;  %v10990_v52 = vld [vmem:[#allocation90_spill] sm:$0xff] }
 0x7eb   :  { %3185 = vmatpush.msra.mxu2 %v10928_v45  ;;  %3205 = vmatpush.msra.mxu3 %v10929_v48  ;;  %v10991_v45 = vld [vmem:[#allocation112_spill] sm:$0xff] }
 0x7ec   :  { %3146 = vmatpush.msra.mxu0 %v10930_v49  ;;  %3166 = vmatpush.msra.mxu1 %v10931_v53  ;;  %v10992_v48 = vld [vmem:[#allocation104_spill] sm:$0xff]  ;;  %v10994_v53 = vld [vmem:[#allocation98_spill] sm:$0xff] }
 0x7ed   :  { %3186 = vmatpush.msra.mxu2 %v10932_v58  ;;  %3206 = vmatpush.msra.mxu3 %v10933_v50  ;;  %v10993_v49 = vld [vmem:[#allocation96_spill] sm:$0xff]  ;;  %v10995_v58 = vld [vmem:[#allocation99_spill] sm:$0xff]  ;;  %v10996_v50 = vld [vmem:[#allocation105_spill] sm:$0xff] }
 0x7ee   :  { %3147 = vmatpush.msra.mxu0 %v10934_v5  ;;  %3167 = vmatpush.msra.mxu1 %v10935_v36  ;;  %v10997_v5 = vld [vmem:[#allocation100_spill] sm:$0xff]  ;;  %v10998_v36 = vld [vmem:[#allocation111_spill] sm:$0xff] }
 0x7ef   :  { %3187 = vmatpush.msra.mxu2 %v10936_v55  ;;  %3207 = vmatpush.msra.mxu3 %v10937_v37  ;;  %v10999_v55 = vld [vmem:[#allocation114_spill] sm:$0xff] }
 0x7f0   :  { %3148 = vmatpush.msra.mxu0 %v10938_v17  ;;  %3168 = vmatpush.msra.mxu1 %v10939_v40  ;;  %v11000_v37 = vld [vmem:[#allocation110_spill] sm:$0xff]  ;;  %v11001_v17 = vld [vmem:[#allocation27_spill] sm:$0xff] }
 0x7f1   :  { %3188 = vmatpush.msra.mxu2 %v10940_v2  ;;  %3208 = vmatpush.msra.mxu3 %v10941_v11  ;;  %v11002_v40 = vld [vmem:[#allocation19_spill] sm:$0xff]  ;;  %v11003_v2 = vld [vmem:[#allocation20_spill] sm:$0xff]  ;;  %v11004_v11 = vld [vmem:[#allocation21_spill] sm:$0xff] }
 0x7f2   :  { %3149 = vmatpush.msra.mxu0 %v10942_v10  ;;  %3169 = vmatpush.msra.mxu1 %v10943_v60  ;;  %v11005_v10 = vld [vmem:[#allocation31_spill] sm:$0xff]  ;;  %v11006_v60 = vld [vmem:[#allocation22_spill] sm:$0xff] }
 0x7f3   :  { %3189 = vmatpush.msra.mxu2 %v10944_v32  ;;  %3209 = vmatpush.msra.mxu3 %v10945_v16  ;;  %v11007_v32 = vld [vmem:[#allocation24_spill] sm:$0xff]  ;;  %v11008_v16 = vld [vmem:[#allocation25_spill] sm:$0xff] }
 0x7f4   :  { %3214 = vmatpush.msrb.mxu0 %v10946_v23  ;;  %3234 = vmatpush.msrb.mxu1 %v10947_v30  ;;  %v11009_v23 = vld [vmem:[#allocation35_spill] sm:$0xff] }
 0x7f5   :  { %3254 = vmatpush.msrb.mxu2 %v10948_v15  ;;  %3274 = vmatpush.msrb.mxu3 %v10949_v33 }
 0x7f6   :  { %3215 = vmatpush.msrb.mxu0 %v10950_v21  ;;  %3235 = vmatpush.msrb.mxu1 %v10951_v24 }
 0x7f7   :  { %3255 = vmatpush.msrb.mxu2 %v10952_v14  ;;  %3275 = vmatpush.msrb.mxu3 %v10953_v20 }
 0x7f8   :  { %3216 = vmatpush.msrb.mxu0 %v10954_v25  ;;  %3236 = vmatpush.msrb.mxu1 %v10955_v46 }
 0x7f9   :  { %3256 = vmatpush.msrb.mxu2 %v10956_v27  ;;  %3276 = vmatpush.msrb.mxu3 %v10957_v56 }
 0x7fa   :  { %3217 = vmatpush.msrb.mxu0 %v10958_v47  ;;  %3237 = vmatpush.msrb.mxu1 %v10959_v54 }
 0x7fb   :  { %3257 = vmatpush.msrb.mxu2 %v10960_v6  ;;  %3277 = vmatpush.msrb.mxu3 %v10961_v59 }
 0x7fc   :  { %3218 = vmatpush.msrb.mxu0 %v10962_v3  ;;  %3238 = vmatpush.msrb.mxu1 %v10963_v62 }
 0x7fd   :  { %3258 = vmatpush.msrb.mxu2 %v10964_v57  ;;  %3278 = vmatpush.msrb.mxu3 %v10965_v19 }
 0x7fe   :  { %3219 = vmatpush.msrb.mxu0 %v10966_v0  ;;  %3239 = vmatpush.msrb.mxu1 %v10967_v26 }
 0x7ff   :  { %3259 = vmatpush.msrb.mxu2 %v10968_v13  ;;  %3279 = vmatpush.msrb.mxu3 %v10969_v12 }
 0x800   :  { %3220 = vmatpush.msrb.mxu0 %v10970_v51  ;;  %3240 = vmatpush.msrb.mxu1 %v10971_v1 }
 0x801   :  { %3260 = vmatpush.msrb.mxu2 %v10972_v63  ;;  %3280 = vmatpush.msrb.mxu3 %v10973_v44 }
 0x802   :  { %3221 = vmatpush.msrb.mxu0 %v10974_v35  ;;  %3241 = vmatpush.msrb.mxu1 %v10975_v43 }
 0x803   :  { %3261 = vmatpush.msrb.mxu2 %v10976_v8  ;;  %3281 = vmatpush.msrb.mxu3 %v10977_v7 }
 0x804   :  { %3222 = vmatpush.msrb.mxu0 %v10978_v31  ;;  %3242 = vmatpush.msrb.mxu1 %v10979_v28 }
 0x805   :  { %3262 = vmatpush.msrb.mxu2 %v10980_v38  ;;  %3282 = vmatpush.msrb.mxu3 %v10981_v18 }
 0x806   :  { %3223 = vmatpush.msrb.mxu0 %v10982_v34  ;;  %3243 = vmatpush.msrb.mxu1 %v10983_v39 }
 0x807   :  { %3263 = vmatpush.msrb.mxu2 %v10984_v42  ;;  %3283 = vmatpush.msrb.mxu3 %v10985_v29 }
 0x808   :  { %3224 = vmatpush.msrb.mxu0 %v10986_v9  ;;  %3244 = vmatpush.msrb.mxu1 %v10987_v22 }
 0x809   :  { %3264 = vmatpush.msrb.mxu2 %v10988_v4  ;;  %3284 = vmatpush.msrb.mxu3 %v10989_v41 }
 0x80a   :  { %3225 = vmatpush.msrb.mxu0 %v10990_v52  ;;  %3245 = vmatpush.msrb.mxu1 %v10991_v45 }
 0x80b   :  { %3265 = vmatpush.msrb.mxu2 %v10992_v48  ;;  %3285 = vmatpush.msrb.mxu3 %v10993_v49 }
 0x80c   :  { %3226 = vmatpush.msrb.mxu0 %v10994_v53  ;;  %3246 = vmatpush.msrb.mxu1 %v10995_v58 }
 0x80d   :  { %3266 = vmatpush.msrb.mxu2 %v10996_v50  ;;  %3286 = vmatpush.msrb.mxu3 %v10997_v5 }
 0x80e   :  { %3227 = vmatpush.msrb.mxu0 %v10998_v36  ;;  %3247 = vmatpush.msrb.mxu1 %v10999_v55 }
 0x80f   :  { %3267 = vmatpush.msrb.mxu2 %v11000_v37  ;;  %3287 = vmatpush.msrb.mxu3 %v11001_v17 }
 0x810   :  { %3228 = vmatpush.msrb.mxu0 %v11002_v40  ;;  %3248 = vmatpush.msrb.mxu1 %v11003_v2  ;;  %v11010_v2 = vld [vmem:[#allocation103_spill] sm:$0xff] }
 0x811   :  { %3268 = vmatpush.msrb.mxu2 %v11004_v11  ;;  %3288 = vmatpush.msrb.mxu3 %v11005_v10  ;;  %v11011_v11 = vld [vmem:[#allocation92_spill] sm:$0xff] }
 0x812   :  { %3229 = vmatpush.msrb.mxu0 %v11006_v60  ;;  %3249 = vmatpush.msrb.mxu1 %v11007_v32 }
 0x813   :  { %3269 = vmatpush.msrb.mxu2 %v11008_v16  ;;  %3289 = vmatpush.msrb.mxu3 %v11009_v23  ;;  %v11012_v23 = vld [vmem:[#allocation94_spill] sm:$0xff] }
 0x84d   :  { %v2923_v30 = vpop.f32.mrf.mxu0  ;;  %v2943_v37 = vpop.f32.mrf.mxu1 }
 0x854   :  { %v2983_v55 = vpop.f32.mrf.mxu3  ;;  %v2963_v60 = vpop.f32.mrf.mxu2 }
 0x855   :  { %v3003_v17 = vpop.f32.mrf.mxu0  ;;  %v3023_v36 = vpop.f32.mrf.mxu1 }
 0x856   :  { %v3004_v40 = vadd.f32 %v3003_v17, %v2923_v30  ;;  %v3024_v5 = vadd.f32 %v3023_v36, %v2943_v37 }
 0x858   :  { %v3066_v50 = vadd.f32 %v3004_v40, %v11010_v2  ;;  %v3067_v58 = vadd.f32 %v3024_v5, %v11011_v11 }
 0x85a   :  { %v3070_v10 = vsub.f32 0.0, %v3066_v50  ;;  %v3089_v53 = vsub.f32 0.0, %v3067_v58 }
 0x85c   :  { %v3071_v49 = vmul.f32 1.442695, %v3070_v10  ;;  %v3090_v32 = vmul.f32 1.442695, %v3089_v53  ;;  %v3063_v48 = vpop.f32.mrf.mxu3  ;;  %v3043_v40 = vpop.f32.mrf.mxu2  ;;  %v11013_v10 = vld [vmem:[#allocation95_spill] sm:$0xff] }
 0x85d   :  { %v3064_v16 = vadd.f32 %v3063_v48, %v2983_v55  ;;  %v3044_v58 = vadd.f32 %v3043_v40, %v2963_v60 }
 0x85e   :  { %4293 = vpow2.f32 %v3071_v49 }
 0x85f   :  { %4295 = vpow2.f32 %v3090_v32  ;;  %v3069_v45 = vadd.f32 %v3064_v16, %v11012_v23  ;;  %v3068_v48 = vadd.f32 %v3044_v58, %v11013_v10 }
 0x861   :  { %v3109_v52 = vsub.f32 0.0, %v3069_v45 }
 0x863   :  { %v3110_v41 = vmul.f32 1.442695, %v3109_v52 }
 0x864   :  { %v4294_v4 = vpop.eup %4293 }
 0x865   :  { %v4296_v17 = vpop.eup %4295  ;;  %v3073_v36 = vadd.f32 1.0, %v4294_v4  ;;  %4297 = vpow2.f32 %v3110_v41 }
 0x866   :  { %v3092_v37 = vadd.f32 1.0, %v4296_v17 }
 0x867   :  { %4299 = vrcp.f32 %v3073_v36  ;;  %v3085_v16 = vand.u32 2147483648, %v3073_v36  ;;  %v3083_v30 = vand.u32 2147483647, %v3073_v36  ;;  %vm3079_vm6 = vweird.f32 %v3073_v36 }
 0x868   :  { %4301 = vrcp.f32 %v3092_v37  ;;  %v3104_v4 = vand.u32 2147483648, %v3092_v37  ;;  %v3102_v60 = vand.u32 2147483647, %v3092_v37  ;;  %vm3098_vm7 = vweird.f32 %v3092_v37 }
 0x869   :  { %v3086_v58 = vor.u32 1.1754944e-38, %v3085_v16  ;;  %vm3084_vm10 = vcmp.eq.f32.partialorder %v3083_v30, 8.507059e+37 }
 0x86a   :  { %vm3103_vm11 = vcmp.eq.f32.partialorder %v3102_v60, 8.507059e+37  ;;  %v8217_v60 = vld [vmem:[#allocation8 + $0x3d8] sm:$0xff] }
 0x86b   :  { %v4298_v50 = vpop.eup %4297 }
 0x86c   :  { %v3112_v5 = vadd.f32 1.0, %v4298_v50 }
 0x86d   :  { %v4300_v53 = vpop.eup %4299 }
 0x86e   :  { %v4302_v49 = vpop.eup %4301  ;;  %v3075_v55 = vmul.f32 %v4300_v53, %v3073_v36  ;;  %4303 = vrcp.f32 %v3112_v5  ;;  %vm3080_vm4 = vweird.f32 %v4300_v53  ;;  %v3124_v16 = vand.u32 2147483648, %v3112_v5 }
 0x86f   :  { %v3094_v32 = vmul.f32 %v4302_v49, %v3092_v37  ;;  %4305 = vtanh.f32 %v3068_v48  ;;  %vm3099_vm5 = vweird.f32 %v4302_v49  ;;  %vm3081_vm8 = vmor %vm3079_vm6, %vm3080_vm4  ;;  %vm3118_vm13 = vweird.f32 %v3112_v5 }
 0x870   :  { %v3076_v45 = vsub.f32 1.0, %v3075_v55  ;;  %vm3100_vm9 = vmor %vm3098_vm7, %vm3099_vm5  ;;  %v3105_v55 = vor.u32 1.1754944e-38, %v3104_v4  ;;  %v3125_v30 = vor.u32 1.1754944e-38, %v3124_v16  ;;  %v8251_v16 = vld [vmem:[#allocation8 + $0x368] sm:$0xff] }
 0x871   :  { %v3095_v52 = vsub.f32 1.0, %v3094_v32 }
 0x872   :  { %v3077_v41 = vmul.f32 %v4300_v53, %v3076_v45 }
 0x873   :  { %v3096_v17 = vmul.f32 %v4302_v49, %v3095_v52 }
 0x874   :  { %v4304_v40 = vpop.eup %4303  ;;  %v3078_v50 = vadd.f32 %v4300_v53, %v3077_v41 }
 0x875   :  { %v3097_v10 = vadd.f32 %v4302_v49, %v3096_v17  ;;  %v3114_v23 = vmul.f32 %v4304_v40, %v3112_v5  ;;  %v4306_v48 = vpop.eup %4305  ;;  %vm3119_vm12 = vweird.f32 %v4304_v40  ;;  %v8214_v17 = vld [vmem:[#allocation8 + $0x3d0] sm:$0xff] }
 0x876   :  { %v3082_v32 = vsel %vm3081_vm8, %v4300_v53, %v3078_v50  ;;  %v3122_v53 = vand.u32 2147483647, %v3112_v5  ;;  %vm3120_vm14 = vmor %vm3118_vm13, %vm3119_vm12  ;;  %v8211_v5 = vld [vmem:[#allocation8 + $0x3c8] sm:$0xff] }
 0x877   :  { %v3087_v11 = vsel %vm3084_vm10, %v3086_v58, %v3082_v32  ;;  %v3101_v45 = vsel %vm3100_vm9, %v4302_v49, %v3097_v10  ;;  %v3115_v2 = vsub.f32 1.0, %v3114_v23  ;;  %v8223_v50 = vld [vmem:[#allocation8 + $0x3a8] sm:$0xff]  ;;  %v8226_v58 = vld [vmem:[#allocation8 + $0x3b0] sm:$0xff] }
 0x878   :  { %v3106_v52 = vsel %vm3103_vm11, %v3105_v55, %v3101_v45  ;;  %v3129_v22 = vmul.f32 %v4306_v48, %v3087_v11  ;;  %vm3123_vm15 = vcmp.eq.f32.partialorder %v3122_v53, 8.507059e+37  ;;  %v8208_v11 = vld [vmem:[#allocation8 + $0x3c0] sm:$0xff]  ;;  %v8229_v55 = vld [vmem:[#allocation8 + $0x3b8] sm:$0xff]  ;;  %v11014_v32 = vld [vmem:[#allocation16_spill] sm:$0xff] }
 0x879   :  { %v3128_v9 = vmul.f32 %v3106_v52, %v8053_v61  ;;  %v3116_v41 = vmul.f32 %v4304_v40, %v3115_v2  ;;  %v8196_v61 = vld [vmem:[#allocation8 + $0x3e0] sm:$0xff]  ;;  %v8205_v2 = vld [vmem:[#allocation8 + $0x3f8] sm:$0xff]  ;;  %v8239_v45 = vld [vmem:[#allocation8 + $0x388] sm:$0xff] }
 0x87a   :  { %v8236_v48 = vld [vmem:[#allocation8 + $0x380] sm:$0xff]  ;;  %v8242_v52 = vld [vmem:[#allocation8 + $0x390] sm:$0xff] }
 0x87b   :  { %v8193_v36 = vadd.f32 %v3129_v22, %v3128_v9  ;;  %v3117_v37 = vadd.f32 %v4304_v40, %v3116_v41  ;;  %v8199_v9 = vld [vmem:[#allocation8 + $0x3e8] sm:$0xff]  ;;  %v8202_v22 = vld [vmem:[#allocation8 + $0x3f0] sm:$0xff]  ;;  %v8245_v41 = vld [vmem:[#allocation8 + $0x398] sm:$0xff] }
 0x87c   :  { %v8254_v53 = vld [vmem:[#allocation8 + $0x370] sm:$0xff] }
 0x87d   :  { %4307 = vtanh.f32 %v8193_v36  ;;  %v3121_v4 = vsel %vm3120_vm14, %v4304_v40, %v3117_v37  ;;  %v8220_v40 = vld [vmem:[#allocation8 + $0x3a0] sm:$0xff] }
 0x87e   :  { %v3126_v23 = vsel %vm3123_vm15, %v3125_v30, %v3121_v4  ;;  %v8248_v37 = vld [vmem:[#allocation8 + $0x360] sm:$0xff]  ;;  %v8257_v4 = vld [vmem:[#allocation8 + $0x378] sm:$0xff] }
 0x87f   :  { %11015 = vst [vmem:[#allocation26_spill] sm:$0xff] %v8257_v4  ;;  %v8260_v30 = vld [vmem:[#allocation8 + $0x340] sm:$0xff] }
 0x880   :  { %11016 = vst [vmem:[#allocation113_spill] sm:$0xff] %v8260_v30 }
 0x883   :  { %v4308_v10 = vpop.eup %4307 }
 0x884   :  { %v3132_v49 = vmul.f32 %v4308_v10, %v3126_v23  ;;  %v8263_v10 = vld [vmem:[#allocation8 + $0x348] sm:$0xff]  ;;  %v8266_v23 = vld [vmem:[#allocation8 + $0x350] sm:$0xff] }
 0x885   :  { %11017 = vst [vmem:[#allocation28_spill] sm:$0xff] %v8263_v10 }
 0x886   :  { %3150 = vmatmul.f32.vlgmr.msra.gmra.mxu0 %v3132_v49  ;;  %3170 = vmatmul.f32.vlgmr.msra.gmra.mxu1 %v3132_v49  ;;  %11018 = vst [vmem:[#allocation29_spill] sm:$0xff] %v8266_v23 }
 0x887   :  { %3190 = vmatmul.f32.vlgmr.msra.gmra.mxu2 %v3132_v49  ;;  %3210 = vmatmul.f32.vlgmr.msra.gmra.mxu3 %v3132_v49  ;;  %v8269_v49 = vld [vmem:[#allocation8 + $0x358] sm:$0xff] }
 0x888   :  { %3362 = vmatpush.msra.mxu0 %v8196_v61  ;;  %3382 = vmatpush.msra.mxu1 %v8199_v9  ;;  %11019 = vst [vmem:[#allocation43_spill] sm:$0xff] %v8269_v49 }
 0x889   :  { %3402 = vmatpush.msra.mxu2 %v8202_v22  ;;  %3422 = vmatpush.msra.mxu3 %v8205_v2 }
 0x88a   :  { %3363 = vmatpush.msra.mxu0 %v8208_v11  ;;  %3383 = vmatpush.msra.mxu1 %v8211_v5 }
 0x88b   :  { %3403 = vmatpush.msra.mxu2 %v8214_v17  ;;  %3423 = vmatpush.msra.mxu3 %v8217_v60 }
 0x88c   :  { %3364 = vmatpush.msra.mxu0 %v8220_v40  ;;  %3384 = vmatpush.msra.mxu1 %v8223_v50 }
 0x88d   :  { %3404 = vmatpush.msra.mxu2 %v8226_v58  ;;  %3424 = vmatpush.msra.mxu3 %v8229_v55 }
 0x88e   :  { %3230 = vmatmul.f32.vlgmr.msrb.gmra.mxu0 %v11014_v32  ;;  %3250 = vmatmul.f32.vlgmr.msrb.gmra.mxu1 %v11014_v32 }
 0x88f   :  { %3270 = vmatmul.f32.vlgmr.msrb.gmra.mxu2 %v11014_v32  ;;  %3290 = vmatmul.f32.vlgmr.msrb.gmra.mxu3 %v11014_v32  ;;  %v8272_v32 = vld [vmem:[#allocation8 + $0x320] sm:$0xff] }
 0x890   :  { %3365 = vmatpush.msra.mxu0 %v8236_v48  ;;  %3385 = vmatpush.msra.mxu1 %v8239_v45  ;;  %11020 = vst [vmem:[#allocation30_spill] sm:$0xff] %v8272_v32 }
 0x891   :  { %3405 = vmatpush.msra.mxu2 %v8242_v52  ;;  %3425 = vmatpush.msra.mxu3 %v8245_v41 }
 0x892   :  { %3366 = vmatpush.msra.mxu0 %v8248_v37  ;;  %3386 = vmatpush.msra.mxu1 %v8251_v16 }
 0x893   :  { %3406 = vmatpush.msra.mxu2 %v8254_v53  ;;  %3426 = vmatpush.msra.mxu3 %v8257_v4  ;;  %v8275_v4 = vld [vmem:[#allocation8 + $0x328] sm:$0xff] }
 0x894   :  { %3367 = vmatpush.msra.mxu0 %v8260_v30  ;;  %3387 = vmatpush.msra.mxu1 %v8263_v10  ;;  %11021 = vst [vmem:[#allocation32_spill] sm:$0xff] %v8275_v4  ;;  %v8278_v30 = vld [vmem:[#allocation8 + $0x330] sm:$0xff]  ;;  %v8281_v10 = vld [vmem:[#allocation8 + $0x338] sm:$0xff] }
 0x895   :  { %3407 = vmatpush.msra.mxu2 %v8266_v23  ;;  %3427 = vmatpush.msra.mxu3 %v8269_v49  ;;  %11022 = vst [vmem:[#allocation33_spill] sm:$0xff] %v8278_v30  ;;  %v8284_v23 = vld [vmem:[#allocation8 + $0x300] sm:$0xff]  ;;  %v8287_v49 = vld [vmem:[#allocation8 + $0x308] sm:$0xff] }
 0x896   :  { %3368 = vmatpush.msra.mxu0 %v8272_v32  ;;  %3388 = vmatpush.msra.mxu1 %v8275_v4  ;;  %11023 = vst [vmem:[#allocation47_spill] sm:$0xff] %v8281_v10  ;;  %v8290_v32 = vld [vmem:[#allocation8 + $0x310] sm:$0xff]  ;;  %v8293_v4 = vld [vmem:[#allocation8 + $0x318] sm:$0xff] }
 0x897   :  { %3408 = vmatpush.msra.mxu2 %v8278_v30  ;;  %3428 = vmatpush.msra.mxu3 %v8281_v10  ;;  %11024 = vst [vmem:[#allocation34_spill] sm:$0xff] %v8284_v23  ;;  %v8296_v30 = vld [vmem:[#allocation8 + $0x2e0] sm:$0xff]  ;;  %v8299_v10 = vld [vmem:[#allocation8 + $0x2e8] sm:$0xff] }
 0x898   :  { %3369 = vmatpush.msra.mxu0 %v8284_v23  ;;  %11025 = vst [vmem:[#allocation36_spill] sm:$0xff] %v8287_v49  ;;  %3389 = vmatpush.msra.mxu1 %v8287_v49  ;;  %v8302_v23 = vld [vmem:[#allocation8 + $0x2f0] sm:$0xff]  ;;  %v8305_v49 = vld [vmem:[#allocation8 + $0x2f8] sm:$0xff] }
 0x899   :  { %11026 = vst [vmem:[#allocation37_spill] sm:$0xff] %v8290_v32  ;;  %3409 = vmatpush.msra.mxu2 %v8290_v32  ;;  %3429 = vmatpush.msra.mxu3 %v8293_v4  ;;  %v8308_v32 = vld [vmem:[#allocation8 + $0x2c0] sm:$0xff] }
 0x89a   :  { %11027 = vst [vmem:[#allocation51_spill] sm:$0xff] %v8293_v4  ;;  %3370 = vmatpush.msra.mxu0 %v8296_v30  ;;  %3390 = vmatpush.msra.mxu1 %v8299_v10  ;;  %v8311_v4 = vld [vmem:[#allocation8 + $0x2c8] sm:$0xff] }
 0x89b   :  { %11028 = vst [vmem:[#allocation38_spill] sm:$0xff] %v8296_v30  ;;  %3410 = vmatpush.msra.mxu2 %v8302_v23  ;;  %3430 = vmatpush.msra.mxu3 %v8305_v49  ;;  %v8314_v30 = vld [vmem:[#allocation8 + $0x2d0] sm:$0xff] }
 0x89c   :  { %11029 = vst [vmem:[#allocation39_spill] sm:$0xff] %v8299_v10  ;;  %3371 = vmatpush.msra.mxu0 %v8308_v32  ;;  %3391 = vmatpush.msra.mxu1 %v8311_v4  ;;  %v8317_v10 = vld [vmem:[#allocation8 + $0x2d8] sm:$0xff] }
 0x89d   :  { %11030 = vst [vmem:[#allocation40_spill] sm:$0xff] %v8302_v23  ;;  %3411 = vmatpush.msra.mxu2 %v8314_v30  ;;  %3431 = vmatpush.msra.mxu3 %v8317_v10  ;;  %v8320_v23 = vld [vmem:[#allocation8 + $0x2a0] sm:$0xff] }
 0x89e   :  { %11031 = vst [vmem:[#allocation55_spill] sm:$0xff] %v8305_v49  ;;  %3372 = vmatpush.msra.mxu0 %v8320_v23  ;;  %v8323_v49 = vld [vmem:[#allocation8 + $0x2a8] sm:$0xff] }
 0x89f   :  { %11032 = vst [vmem:[#allocation41_spill] sm:$0xff] %v8308_v32  ;;  %3392 = vmatpush.msra.mxu1 %v8323_v49  ;;  %v8326_v32 = vld [vmem:[#allocation8 + $0x2b0] sm:$0xff] }
 0x8a0   :  { %11033 = vst [vmem:[#allocation42_spill] sm:$0xff] %v8311_v4  ;;  %3412 = vmatpush.msra.mxu2 %v8326_v32  ;;  %v8329_v4 = vld [vmem:[#allocation8 + $0x2b8] sm:$0xff] }
 0x8a1   :  { %11034 = vst [vmem:[#allocation44_spill] sm:$0xff] %v8314_v30  ;;  %3432 = vmatpush.msra.mxu3 %v8329_v4  ;;  %v8332_v30 = vld [vmem:[#allocation8 + $0x280] sm:$0xff] }
 0x8a2   :  { %11035 = vst [vmem:[#allocation59_spill] sm:$0xff] %v8317_v10  ;;  %3373 = vmatpush.msra.mxu0 %v8332_v30  ;;  %v8335_v10 = vld [vmem:[#allocation8 + $0x288] sm:$0xff] }
 0x8a3   :  { %11036 = vst [vmem:[#allocation45_spill] sm:$0xff] %v8320_v23  ;;  %3393 = vmatpush.msra.mxu1 %v8335_v10  ;;  %v8338_v23 = vld [vmem:[#allocation8 + $0x290] sm:$0xff] }
 0x8a4   :  { %11037 = vst [vmem:[#allocation46_spill] sm:$0xff] %v8323_v49  ;;  %3413 = vmatpush.msra.mxu2 %v8338_v23  ;;  %v8341_v49 = vld [vmem:[#allocation8 + $0x298] sm:$0xff] }
 0x8a5   :  { %11038 = vst [vmem:[#allocation48_spill] sm:$0xff] %v8326_v32  ;;  %3433 = vmatpush.msra.mxu3 %v8341_v49  ;;  %v8344_v32 = vld [vmem:[#allocation8 + $0x260] sm:$0xff] }
 0x8a6   :  { %11039 = vst [vmem:[#allocation63_spill] sm:$0xff] %v8329_v4  ;;  %3374 = vmatpush.msra.mxu0 %v8344_v32  ;;  %v8347_v4 = vld [vmem:[#allocation8 + $0x268] sm:$0xff] }
 0x8a7   :  { %11040 = vst [vmem:[#allocation49_spill] sm:$0xff] %v8332_v30  ;;  %3394 = vmatpush.msra.mxu1 %v8347_v4  ;;  %v8350_v30 = vld [vmem:[#allocation8 + $0x270] sm:$0xff] }
 0x8a8   :  { %11041 = vst [vmem:[#allocation50_spill] sm:$0xff] %v8335_v10  ;;  %3414 = vmatpush.msra.mxu2 %v8350_v30  ;;  %v8353_v10 = vld [vmem:[#allocation8 + $0x278] sm:$0xff] }
 0x8a9   :  { %11042 = vst [vmem:[#allocation52_spill] sm:$0xff] %v8338_v23  ;;  %3434 = vmatpush.msra.mxu3 %v8353_v10  ;;  %v8356_v23 = vld [vmem:[#allocation8 + $0x240] sm:$0xff] }
 0x8aa   :  { %11043 = vst [vmem:[#allocation67_spill] sm:$0xff] %v8341_v49  ;;  %3375 = vmatpush.msra.mxu0 %v8356_v23  ;;  %v8359_v49 = vld [vmem:[#allocation8 + $0x248] sm:$0xff] }
 0x8ab   :  { %11044 = vst [vmem:[#allocation53_spill] sm:$0xff] %v8344_v32  ;;  %3395 = vmatpush.msra.mxu1 %v8359_v49  ;;  %v8362_v32 = vld [vmem:[#allocation8 + $0x250] sm:$0xff] }
 0x8ac   :  { %11045 = vst [vmem:[#allocation54_spill] sm:$0xff] %v8347_v4  ;;  %3415 = vmatpush.msra.mxu2 %v8362_v32  ;;  %v8365_v4 = vld [vmem:[#allocation8 + $0x258] sm:$0xff] }
 0x8ad   :  { %11046 = vst [vmem:[#allocation56_spill] sm:$0xff] %v8350_v30  ;;  %3435 = vmatpush.msra.mxu3 %v8365_v4  ;;  %v8368_v30 = vld [vmem:[#allocation8 + $0x220] sm:$0xff] }
 0x8ae   :  { %11047 = vst [vmem:[#allocation71_spill] sm:$0xff] %v8353_v10  ;;  %3376 = vmatpush.msra.mxu0 %v8368_v30  ;;  %v8371_v10 = vld [vmem:[#allocation8 + $0x228] sm:$0xff] }
 0x8af   :  { %11048 = vst [vmem:[#allocation57_spill] sm:$0xff] %v8356_v23  ;;  %3396 = vmatpush.msra.mxu1 %v8371_v10  ;;  %v8374_v23 = vld [vmem:[#allocation8 + $0x230] sm:$0xff] }
 0x8b0   :  { %11049 = vst [vmem:[#allocation58_spill] sm:$0xff] %v8359_v49  ;;  %3416 = vmatpush.msra.mxu2 %v8374_v23  ;;  %v8377_v49 = vld [vmem:[#allocation8 + $0x238] sm:$0xff] }
 0x8b1   :  { %11050 = vst [vmem:[#allocation60_spill] sm:$0xff] %v8362_v32  ;;  %3436 = vmatpush.msra.mxu3 %v8377_v49  ;;  %v8380_v32 = vld [vmem:[#allocation8 + $0x200] sm:$0xff] }
 0x8b2   :  { %11051 = vst [vmem:[#allocation75_spill] sm:$0xff] %v8365_v4  ;;  %3377 = vmatpush.msra.mxu0 %v8380_v32  ;;  %v8383_v4 = vld [vmem:[#allocation8 + $0x208] sm:$0xff] }
 0x8b3   :  { %11052 = vst [vmem:[#allocation61_spill] sm:$0xff] %v8368_v30  ;;  %3397 = vmatpush.msra.mxu1 %v8383_v4  ;;  %v8386_v30 = vld [vmem:[#allocation8 + $0x210] sm:$0xff] }
 0x8b4   :  { %11053 = vst [vmem:[#allocation62_spill] sm:$0xff] %v8371_v10  ;;  %3417 = vmatpush.msra.mxu2 %v8386_v30  ;;  %v8389_v10 = vld [vmem:[#allocation8 + $0x218] sm:$0xff] }
 0x8b5   :  { %11054 = vst [vmem:[#allocation64_spill] sm:$0xff] %v8374_v23  ;;  %3437 = vmatpush.msra.mxu3 %v8389_v10  ;;  %v8392_v23 = vld [vmem:[#allocation6 + $0x3e0] sm:$0xff] }
 0x8b6   :  { %11055 = vst [vmem:[#allocation79_spill] sm:$0xff] %v8377_v49  ;;  %3442 = vmatpush.msrb.mxu0 %v8392_v23  ;;  %v8395_v49 = vld [vmem:[#allocation6 + $0x3e8] sm:$0xff]  ;;  %3482 = vmatpush.msrb.mxu2 %v10948_v15  ;;  %v11062_v15 = vld [vmem:[#allocation86_spill] sm:$0xff] }
 0x8b7   :  { %11056 = vst [vmem:[#allocation65_spill] sm:$0xff] %v8380_v32  ;;  %3462 = vmatpush.msrb.mxu1 %v8395_v49  ;;  %3502 = vmatpush.msrb.mxu3 %v10949_v33  ;;  %v11063_v33 = vld [vmem:[#allocation87_spill] sm:$0xff] }
 0x8b8   :  { %11057 = vst [vmem:[#allocation66_spill] sm:$0xff] %v8383_v4  ;;  %3443 = vmatpush.msrb.mxu0 %v10950_v21  ;;  %3483 = vmatpush.msrb.mxu2 %v10952_v14  ;;  %v11064_v21 = vld [vmem:[#allocation102_spill] sm:$0xff] }
 0x8b9   :  { %11058 = vst [vmem:[#allocation106_spill] sm:$0xff] %v8386_v30  ;;  %3463 = vmatpush.msrb.mxu1 %v10951_v24  ;;  %3503 = vmatpush.msrb.mxu3 %v10953_v20  ;;  %v11065_v24 = vld [vmem:[#allocation88_spill] sm:$0xff]  ;;  %v11066_v14 = vld [vmem:[#allocation90_spill] sm:$0xff] }
 0x8ba   :  { %11059 = vst [vmem:[#allocation107_spill] sm:$0xff] %v8389_v10  ;;  %3444 = vmatpush.msrb.mxu0 %v10954_v25  ;;  %3484 = vmatpush.msrb.mxu2 %v10956_v27  ;;  %v11067_v20 = vld [vmem:[#allocation112_spill] sm:$0xff]  ;;  %v11070_v27 = vld [vmem:[#allocation98_spill] sm:$0xff] }
 0x8bb   :  { %11060 = vst [vmem:[#allocation108_spill] sm:$0xff] %v8392_v23  ;;  %3464 = vmatpush.msrb.mxu1 %v10955_v46  ;;  %3504 = vmatpush.msrb.mxu3 %v10957_v56  ;;  %v11068_v25 = vld [vmem:[#allocation104_spill] sm:$0xff]  ;;  %v11071_v56 = vld [vmem:[#allocation99_spill] sm:$0xff] }
 0x8bc   :  { %11061 = vst [vmem:[#allocation109_spill] sm:$0xff] %v8395_v49  ;;  %3445 = vmatpush.msrb.mxu0 %v10958_v47  ;;  %3485 = vmatpush.msrb.mxu2 %v10960_v6  ;;  %v11069_v46 = vld [vmem:[#allocation96_spill] sm:$0xff]  ;;  %v11072_v47 = vld [vmem:[#allocation105_spill] sm:$0xff]  ;;  %v11074_v6 = vld [vmem:[#allocation111_spill] sm:$0xff] }
 0x8bd   :  { %3465 = vmatpush.msrb.mxu1 %v10959_v54  ;;  %3505 = vmatpush.msrb.mxu3 %v10961_v59  ;;  %v11073_v54 = vld [vmem:[#allocation100_spill] sm:$0xff]  ;;  %v11075_v59 = vld [vmem:[#allocation114_spill] sm:$0xff] }
 0x8be   :  { %3446 = vmatpush.msrb.mxu0 %v10962_v3  ;;  %3486 = vmatpush.msrb.mxu2 %v10964_v57  ;;  %v11076_v3 = vld [vmem:[#allocation110_spill] sm:$0xff]  ;;  %v11078_v57 = vld [vmem:[#allocation19_spill] sm:$0xff] }
 0x8bf   :  { %3466 = vmatpush.msrb.mxu1 %v10963_v62  ;;  %3506 = vmatpush.msrb.mxu3 %v10965_v19  ;;  %v11077_v62 = vld [vmem:[#allocation27_spill] sm:$0xff]  ;;  %v11079_v19 = vld [vmem:[#allocation20_spill] sm:$0xff] }
 0x8c0   :  { %3447 = vmatpush.msrb.mxu0 %v10966_v0  ;;  %3487 = vmatpush.msrb.mxu2 %v10968_v13  ;;  %v11080_v0 = vld [vmem:[#allocation21_spill] sm:$0xff]  ;;  %v11082_v13 = vld [vmem:[#allocation22_spill] sm:$0xff] }
 0x8c1   :  { %3467 = vmatpush.msrb.mxu1 %v10967_v26  ;;  %3507 = vmatpush.msrb.mxu3 %v10969_v12  ;;  %v11081_v26 = vld [vmem:[#allocation31_spill] sm:$0xff]  ;;  %v11083_v12 = vld [vmem:[#allocation24_spill] sm:$0xff] }
 0x8c2   :  { %3448 = vmatpush.msrb.mxu0 %v10970_v51  ;;  %3488 = vmatpush.msrb.mxu2 %v10972_v63  ;;  %v11084_v51 = vld [vmem:[#allocation25_spill] sm:$0xff] }
 0x8c3   :  { %3468 = vmatpush.msrb.mxu1 %v10971_v1  ;;  %3508 = vmatpush.msrb.mxu3 %v10973_v44  ;;  %v11085_v1 = vld [vmem:[#allocation35_spill] sm:$0xff] }
 0x8c4   :  { %3449 = vmatpush.msrb.mxu0 %v10974_v35  ;;  %3489 = vmatpush.msrb.mxu2 %v10976_v8 }
 0x8c5   :  { %3469 = vmatpush.msrb.mxu1 %v10975_v43  ;;  %3509 = vmatpush.msrb.mxu3 %v10977_v7 }
 0x8c6   :  { %3450 = vmatpush.msrb.mxu0 %v10978_v31  ;;  %3490 = vmatpush.msrb.mxu2 %v10980_v38 }
 0x8c7   :  { %3470 = vmatpush.msrb.mxu1 %v10979_v28  ;;  %3510 = vmatpush.msrb.mxu3 %v10981_v18  ;;  %v11086_v28 = vld [vmem:[#allocation103_spill] sm:$0xff]  ;;  %v11087_v18 = vld [vmem:[#allocation92_spill] sm:$0xff] }
 0x8c8   :  { %3451 = vmatpush.msrb.mxu0 %v10982_v34  ;;  %3491 = vmatpush.msrb.mxu2 %v10984_v42 }
 0x8c9   :  { %3471 = vmatpush.msrb.mxu1 %v10983_v39  ;;  %3511 = vmatpush.msrb.mxu3 %v10985_v29 }
 0x8ca   :  { %3452 = vmatpush.msrb.mxu0 %v11062_v15  ;;  %3492 = vmatpush.msrb.mxu2 %v11064_v21 }
 0x8cb   :  { %3472 = vmatpush.msrb.mxu1 %v11063_v33  ;;  %3512 = vmatpush.msrb.mxu3 %v11065_v24 }
 0x8cc   :  { %3453 = vmatpush.msrb.mxu0 %v11066_v14  ;;  %3493 = vmatpush.msrb.mxu2 %v11068_v25  ;;  %v11088_v14 = vld [vmem:[#allocation94_spill] sm:$0xff] }
 0x8cd   :  { %3473 = vmatpush.msrb.mxu1 %v11067_v20  ;;  %3513 = vmatpush.msrb.mxu3 %v11069_v46 }
 0x8ce   :  { %3454 = vmatpush.msrb.mxu0 %v11070_v27  ;;  %3494 = vmatpush.msrb.mxu2 %v11072_v47 }
 0x8cf   :  { %3474 = vmatpush.msrb.mxu1 %v11071_v56  ;;  %3514 = vmatpush.msrb.mxu3 %v11073_v54 }
 0x8d0   :  { %3455 = vmatpush.msrb.mxu0 %v11074_v6  ;;  %3495 = vmatpush.msrb.mxu2 %v11076_v3 }
 0x8d1   :  { %3475 = vmatpush.msrb.mxu1 %v11075_v59  ;;  %3515 = vmatpush.msrb.mxu3 %v11077_v62 }
 0x8d2   :  { %3456 = vmatpush.msrb.mxu0 %v11078_v57  ;;  %3496 = vmatpush.msrb.mxu2 %v11080_v0 }
 0x8d3   :  { %3476 = vmatpush.msrb.mxu1 %v11079_v19  ;;  %3516 = vmatpush.msrb.mxu3 %v11081_v26  ;;  %v11089_v19 = vld [vmem:[#allocation95_spill] sm:$0xff] }
 0x8d4   :  { %3457 = vmatpush.msrb.mxu0 %v11082_v13  ;;  %3497 = vmatpush.msrb.mxu2 %v11084_v51 }
 0x8d5   :  { %3477 = vmatpush.msrb.mxu1 %v11083_v12  ;;  %3517 = vmatpush.msrb.mxu3 %v11085_v1 }
 0x903   :  { %v3151_v63 = vpop.f32.mrf.mxu0  ;;  %v3171_v44 = vpop.f32.mrf.mxu1 }
 0x90a   :  { %v3211_v35 = vpop.f32.mrf.mxu3  ;;  %v3191_v29 = vpop.f32.mrf.mxu2 }
 0x90b   :  { %v3231_v43 = vpop.f32.mrf.mxu0  ;;  %v3251_v8 = vpop.f32.mrf.mxu1 }
 0x90c   :  { %v3232_v7 = vadd.f32 %v3231_v43, %v3151_v63  ;;  %v3252_v31 = vadd.f32 %v3251_v8, %v3171_v44 }
 0x90e   :  { %v3294_v38 = vadd.f32 %v3232_v7, %v11086_v28  ;;  %v3295_v34 = vadd.f32 %v3252_v31, %v11087_v18 }
 0x910   :  { %v3298_v39 = vsub.f32 0.0, %v3294_v38  ;;  %v3317_v42 = vsub.f32 0.0, %v3295_v34 }
 0x912   :  { %v3299_v15 = vmul.f32 1.442695, %v3298_v39  ;;  %v3318_v33 = vmul.f32 1.442695, %v3317_v42  ;;  %v3291_v21 = vpop.f32.mrf.mxu3  ;;  %v3271_v6 = vpop.f32.mrf.mxu2 }
 0x913   :  { %v3292_v24 = vadd.f32 %v3291_v21, %v3211_v35  ;;  %v3272_v59 = vadd.f32 %v3271_v6, %v3191_v29 }
 0x914   :  { %4309 = vpow2.f32 %v3299_v15 }
 0x915   :  { %4311 = vpow2.f32 %v3318_v33  ;;  %v3297_v20 = vadd.f32 %v3292_v24, %v11088_v14  ;;  %v3296_v0 = vadd.f32 %v3272_v59, %v11089_v19 }
 0x917   :  { %v3337_v25 = vsub.f32 0.0, %v3297_v20 }
 0x919   :  { %v3338_v46 = vmul.f32 1.442695, %v3337_v25 }
 0x91a   :  { %v4310_v27 = vpop.eup %4309 }
 0x91b   :  { %v4312_v56 = vpop.eup %4311  ;;  %v3301_v47 = vadd.f32 1.0, %v4310_v27  ;;  %4313 = vpow2.f32 %v3338_v46 }
 0x91c   :  { %v3320_v54 = vadd.f32 1.0, %v4312_v56 }
 0x91d   :  { %4315 = vrcp.f32 %v3301_v47  ;;  %v3313_v63 = vand.u32 2147483648, %v3301_v47  ;;  %v3311_v43 = vand.u32 2147483647, %v3301_v47  ;;  %vm3307_vm2 = vweird.f32 %v3301_v47 }
 0x91e   :  { %4317 = vrcp.f32 %v3320_v54  ;;  %v3332_v44 = vand.u32 2147483648, %v3320_v54  ;;  %v3330_v7 = vand.u32 2147483647, %v3320_v54  ;;  %vm3326_vm3 = vweird.f32 %v3320_v54 }
 0x91f   :  { %v3314_v34 = vor.u32 1.1754944e-38, %v3313_v63  ;;  %vm3312_vm6 = vcmp.eq.f32.partialorder %v3311_v43, 8.507059e+37  ;;  %v11095_v63 = vld [vmem:[#allocation43_spill] sm:$0xff]  ;;  %v11098_v43 = vld [vmem:[#allocation33_spill] sm:$0xff] }
 0x920   :  { %v3333_v29 = vor.u32 1.1754944e-38, %v3332_v44  ;;  %vm3331_vm7 = vcmp.eq.f32.partialorder %v3330_v7, 8.507059e+37  ;;  %v11096_v44 = vld [vmem:[#allocation30_spill] sm:$0xff] }
 0x921   :  { %v4314_v3 = vpop.eup %4313  ;;  %v11100_v7 = vld [vmem:[#allocation34_spill] sm:$0xff] }
 0x922   :  { %v3340_v62 = vadd.f32 1.0, %v4314_v3 }
 0x923   :  { %v4316_v57 = vpop.eup %4315 }
 0x924   :  { %v4318_v26 = vpop.eup %4317  ;;  %v3303_v13 = vmul.f32 %v4316_v57, %v3301_v47  ;;  %4319 = vrcp.f32 %v3340_v62  ;;  %vm3308_vm0 = vweird.f32 %v4316_v57  ;;  %v3352_v6 = vand.u32 2147483648, %v3340_v62 }
 0x925   :  { %v3322_v12 = vmul.f32 %v4318_v26, %v3320_v54  ;;  %4321 = vtanh.f32 %v3296_v0  ;;  %vm3327_vm1 = vweird.f32 %v4318_v26  ;;  %vm3309_vm4 = vmor %vm3307_vm2, %vm3308_vm0  ;;  %vm3346_vm9 = vweird.f32 %v3340_v62 }
 0x926   :  { %v3304_v51 = vsub.f32 1.0, %v3303_v13  ;;  %vm3328_vm5 = vmor %vm3326_vm3, %vm3327_vm1  ;;  %v3350_v59 = vand.u32 2147483647, %v3340_v62 }
 0x927   :  { %v3323_v1 = vsub.f32 1.0, %v3322_v12  ;;  %v11092_v12 = vld [vmem:[#allocation113_spill] sm:$0xff] }
 0x928   :  { %v3305_v35 = vmul.f32 %v4316_v57, %v3304_v51  ;;  %vm3351_vm11 = vcmp.eq.f32.partialorder %v3350_v59, 8.507059e+37  ;;  %v11093_v51 = vld [vmem:[#allocation28_spill] sm:$0xff] }
 0x929   :  { %v3324_v8 = vmul.f32 %v4318_v26, %v3323_v1  ;;  %v11094_v1 = vld [vmem:[#allocation29_spill] sm:$0xff]  ;;  %v11118_v59 = vld [vmem:[#allocation52_spill] sm:$0xff] }
 0x92a   :  { %v4320_v31 = vpop.eup %4319  ;;  %v3306_v38 = vadd.f32 %v4316_v57, %v3305_v35  ;;  %v11097_v35 = vld [vmem:[#allocation32_spill] sm:$0xff] }
 0x92b   :  { %v3325_v39 = vadd.f32 %v4318_v26, %v3324_v8  ;;  %v3342_v42 = vmul.f32 %v4320_v31, %v3340_v62  ;;  %v4322_v33 = vpop.eup %4321  ;;  %vm3347_vm8 = vweird.f32 %v4320_v31  ;;  %v11091_v62 = vld [vmem:[#allocation26_spill] sm:$0xff]  ;;  %v11099_v8 = vld [vmem:[#allocation47_spill] sm:$0xff] }
 0x92c   :  { %v3310_v15 = vsel %vm3309_vm4, %v4316_v57, %v3306_v38  ;;  %vm3348_vm10 = vmor %vm3346_vm9, %vm3347_vm8  ;;  %v3353_v57 = vor.u32 1.1754944e-38, %v3352_v6  ;;  %v11102_v38 = vld [vmem:[#allocation37_spill] sm:$0xff]  ;;  %v11117_v6 = vld [vmem:[#allocation50_spill] sm:$0xff] }
 0x92d   :  { %v3315_v21 = vsel %vm3312_vm6, %v3314_v34, %v3310_v15  ;;  %v3329_v24 = vsel %vm3328_vm5, %v4318_v26, %v3325_v39  ;;  %v3343_v20 = vsub.f32 1.0, %v3342_v42  ;;  %v11103_v34 = vld [vmem:[#allocation51_spill] sm:$0xff]  ;;  %v11104_v39 = vld [vmem:[#allocation38_spill] sm:$0xff] }
 0x92e   :  { %v3334_v25 = vsel %vm3331_vm7, %v3333_v29, %v3329_v24  ;;  %v3357_v46 = vmul.f32 %v4322_v33, %v3315_v21  ;;  %v11105_v42 = vld [vmem:[#allocation39_spill] sm:$0xff]  ;;  %v11106_v29 = vld [vmem:[#allocation40_spill] sm:$0xff]  ;;  %v11108_v33 = vld [vmem:[#allocation41_spill] sm:$0xff] }
 0x92f   :  { %v3356_v27 = vmul.f32 %v3334_v25, %v8193_v36  ;;  %v3344_v56 = vmul.f32 %v4320_v31, %v3343_v20  ;;  %v11090_v36 = vld [vmem:[#allocation115_spill] sm:$0xff]  ;;  %v11109_v21 = vld [vmem:[#allocation42_spill] sm:$0xff]  ;;  %v11110_v24 = vld [vmem:[#allocation44_spill] sm:$0xff] }
 0x930   :  { %v11107_v15 = vld [vmem:[#allocation55_spill] sm:$0xff]  ;;  %v11112_v25 = vld [vmem:[#allocation45_spill] sm:$0xff] }
 0x931   :  { %v8465_v47 = vadd.f32 %v3357_v46, %v3356_v27  ;;  %v3345_v54 = vadd.f32 %v4320_v31, %v3344_v56  ;;  %v11111_v20 = vld [vmem:[#allocation59_spill] sm:$0xff]  ;;  %v11113_v46 = vld [vmem:[#allocation46_spill] sm:$0xff]  ;;  %v11114_v27 = vld [vmem:[#allocation48_spill] sm:$0xff] }
 0x932   :  { %v11115_v56 = vld [vmem:[#allocation63_spill] sm:$0xff] }
 0x933   :  { %4323 = vtanh.f32 %v8465_v47  ;;  %v3349_v3 = vsel %vm3348_vm10, %v4320_v31, %v3345_v54  ;;  %v11101_v31 = vld [vmem:[#allocation36_spill] sm:$0xff]  ;;  %v11116_v54 = vld [vmem:[#allocation49_spill] sm:$0xff] }
 0x934   :  { %v3354_v26 = vsel %vm3351_vm11, %v3353_v57, %v3349_v3  ;;  %v11119_v3 = vld [vmem:[#allocation67_spill] sm:$0xff]  ;;  %v11120_v57 = vld [vmem:[#allocation53_spill] sm:$0xff] }
 0x939   :  { %v4324_v0 = vpop.eup %4323 }
 0x93a   :  { %v3360_v13 = vmul.f32 %v4324_v0, %v3354_v26  ;;  %v11121_v0 = vld [vmem:[#allocation54_spill] sm:$0xff]  ;;  %v11122_v26 = vld [vmem:[#allocation56_spill] sm:$0xff] }
 0x93c   :  { %3378 = vmatmul.f32.vlgmr.msra.gmra.mxu0 %v3360_v13  ;;  %3398 = vmatmul.f32.vlgmr.msra.gmra.mxu1 %v3360_v13 }
 0x93d   :  { %3418 = vmatmul.f32.vlgmr.msra.gmra.mxu2 %v3360_v13  ;;  %3438 = vmatmul.f32.vlgmr.msra.gmra.mxu3 %v3360_v13  ;;  %v11123_v13 = vld [vmem:[#allocation71_spill] sm:$0xff] }
 0x93e   :  { %3590 = vmatpush.msra.mxu0 %v8196_v61  ;;  %3610 = vmatpush.msra.mxu1 %v8199_v9 }
 0x93f   :  { %3630 = vmatpush.msra.mxu2 %v8202_v22  ;;  %3650 = vmatpush.msra.mxu3 %v8205_v2 }
 0x940   :  { %3591 = vmatpush.msra.mxu0 %v8208_v11  ;;  %3611 = vmatpush.msra.mxu1 %v8211_v5 }
 0x941   :  { %3631 = vmatpush.msra.mxu2 %v8214_v17  ;;  %3651 = vmatpush.msra.mxu3 %v8217_v60 }
 0x942   :  { %3592 = vmatpush.msra.mxu0 %v8220_v40  ;;  %3612 = vmatpush.msra.mxu1 %v8223_v50 }
 0x943   :  { %3632 = vmatpush.msra.mxu2 %v8226_v58  ;;  %3652 = vmatpush.msra.mxu3 %v8229_v55 }
 0x944   :  { %3458 = vmatmul.f32.vlgmr.msrb.gmra.mxu0 %v11090_v36  ;;  %3478 = vmatmul.f32.vlgmr.msrb.gmra.mxu1 %v11090_v36 }
 0x945   :  { %3498 = vmatmul.f32.vlgmr.msrb.gmra.mxu2 %v11090_v36  ;;  %3518 = vmatmul.f32.vlgmr.msrb.gmra.mxu3 %v11090_v36  ;;  %v11124_v36 = vld [vmem:[#allocation57_spill] sm:$0xff] }
 0x946   :  { %3593 = vmatpush.msra.mxu0 %v8236_v48  ;;  %3613 = vmatpush.msra.mxu1 %v8239_v45 }
 0x947   :  { %3633 = vmatpush.msra.mxu2 %v8242_v52  ;;  %3653 = vmatpush.msra.mxu3 %v8245_v41 }
 0x948   :  { %3594 = vmatpush.msra.mxu0 %v8248_v37  ;;  %3614 = vmatpush.msra.mxu1 %v8251_v16 }
 0x949   :  { %3634 = vmatpush.msra.mxu2 %v8254_v53  ;;  %3654 = vmatpush.msra.mxu3 %v11091_v62 }
 0x94a   :  { %3595 = vmatpush.msra.mxu0 %v11092_v12  ;;  %3615 = vmatpush.msra.mxu1 %v11093_v51 }
 0x94b   :  { %3635 = vmatpush.msra.mxu2 %v11094_v1  ;;  %3655 = vmatpush.msra.mxu3 %v11095_v63 }
 0x94c   :  { %3596 = vmatpush.msra.mxu0 %v11096_v44  ;;  %3616 = vmatpush.msra.mxu1 %v11097_v35 }
 0x94d   :  { %3636 = vmatpush.msra.mxu2 %v11098_v43  ;;  %3656 = vmatpush.msra.mxu3 %v11099_v8 }
 0x94e   :  { %3597 = vmatpush.msra.mxu0 %v11100_v7  ;;  %3617 = vmatpush.msra.mxu1 %v11101_v31 }
 0x94f   :  { %3637 = vmatpush.msra.mxu2 %v11102_v38  ;;  %3657 = vmatpush.msra.mxu3 %v11103_v34 }
 0x950   :  { %3598 = vmatpush.msra.mxu0 %v11104_v39  ;;  %3618 = vmatpush.msra.mxu1 %v11105_v42 }
 0x951   :  { %3638 = vmatpush.msra.mxu2 %v11106_v29  ;;  %3658 = vmatpush.msra.mxu3 %v11107_v15 }
 0x952   :  { %3599 = vmatpush.msra.mxu0 %v11108_v33  ;;  %3619 = vmatpush.msra.mxu1 %v11109_v21 }
 0x953   :  { %3639 = vmatpush.msra.mxu2 %v11110_v24  ;;  %3659 = vmatpush.msra.mxu3 %v11111_v20 }
 0x954   :  { %3600 = vmatpush.msra.mxu0 %v11112_v25  ;;  %3620 = vmatpush.msra.mxu1 %v11113_v46 }
 0x955   :  { %3640 = vmatpush.msra.mxu2 %v11114_v27  ;;  %3660 = vmatpush.msra.mxu3 %v11115_v56  ;;  %v11125_v27 = vld [vmem:[#allocation58_spill] sm:$0xff]  ;;  %v11126_v56 = vld [vmem:[#allocation60_spill] sm:$0xff] }
 0x956   :  { %3601 = vmatpush.msra.mxu0 %v11116_v54  ;;  %3621 = vmatpush.msra.mxu1 %v11117_v6  ;;  %v11127_v54 = vld [vmem:[#allocation75_spill] sm:$0xff]  ;;  %v11128_v6 = vld [vmem:[#allocation61_spill] sm:$0xff] }
 0x957   :  { %3641 = vmatpush.msra.mxu2 %v11118_v59  ;;  %3661 = vmatpush.msra.mxu3 %v11119_v3  ;;  %v11129_v59 = vld [vmem:[#allocation62_spill] sm:$0xff]  ;;  %v11130_v3 = vld [vmem:[#allocation64_spill] sm:$0xff] }
 0x958   :  { %3602 = vmatpush.msra.mxu0 %v11120_v57  ;;  %3622 = vmatpush.msra.mxu1 %v11121_v0  ;;  %v11131_v57 = vld [vmem:[#allocation79_spill] sm:$0xff] }
 0x959   :  { %3642 = vmatpush.msra.mxu2 %v11122_v26  ;;  %3662 = vmatpush.msra.mxu3 %v11123_v13 }
 0x95a   :  { %3603 = vmatpush.msra.mxu0 %v11124_v36  ;;  %3623 = vmatpush.msra.mxu1 %v11125_v27 }
 0x95b   :  { %3643 = vmatpush.msra.mxu2 %v11126_v56  ;;  %3663 = vmatpush.msra.mxu3 %v11127_v54  ;;  %v8538_v54 = vld [vmem:[#allocation6 + $0x3f0] sm:$0xff] }
 0x95c   :  { %3604 = vmatpush.msra.mxu0 %v11128_v6  ;;  %3624 = vmatpush.msra.mxu1 %v11129_v59  ;;  %11132 = vst [vmem:[#allocation17_spill] sm:$0xff] %v8538_v54  ;;  %v8541_v59 = vld [vmem:[#allocation6 + $0x3f8] sm:$0xff] }
 0x95d   :  { %3644 = vmatpush.msra.mxu2 %v11130_v3  ;;  %3664 = vmatpush.msra.mxu3 %v11131_v57  ;;  %11133 = vst [vmem:[#allocation23_spill] sm:$0xff] %v8541_v59  ;;  %v8544_v57 = vld [vmem:[#allocation6 + $0x3c0] sm:$0xff] }
 0x95e   :  { %3605 = vmatpush.msra.mxu0 %v8380_v32  ;;  %3625 = vmatpush.msra.mxu1 %v8383_v4  ;;  %11134 = vst [vmem:[#allocation68_spill] sm:$0xff] %v8544_v57  ;;  %v8547_v4 = vld [vmem:[#allocation6 + $0x3c8] sm:$0xff] }
 0x95f   :  { %3645 = vmatpush.msra.mxu2 %v8386_v30  ;;  %3665 = vmatpush.msra.mxu3 %v8389_v10  ;;  %11135 = vst [vmem:[#allocation85_spill] sm:$0xff] %v8547_v4  ;;  %v8550_v10 = vld [vmem:[#allocation6 + $0x3d0] sm:$0xff] }
 0x960   :  { %3670 = vmatpush.msrb.mxu0 %v8392_v23  ;;  %3690 = vmatpush.msrb.mxu1 %v8395_v49  ;;  %11136 = vst [vmem:[#allocation69_spill] sm:$0xff] %v8550_v10  ;;  %v8553_v49 = vld [vmem:[#allocation6 + $0x3d8] sm:$0xff] }
 0x961   :  { %3710 = vmatpush.msrb.mxu2 %v8538_v54  ;;  %3730 = vmatpush.msrb.mxu3 %v8541_v59  ;;  %11137 = vst [vmem:[#allocation70_spill] sm:$0xff] %v8553_v49  ;;  %v8556_v54 = vld [vmem:[#allocation6 + $0x3a0] sm:$0xff]  ;;  %v8559_v59 = vld [vmem:[#allocation6 + $0x3a8] sm:$0xff] }
 0x962   :  { %3671 = vmatpush.msrb.mxu0 %v8544_v57  ;;  %3691 = vmatpush.msrb.mxu1 %v8547_v4  ;;  %11138 = vst [vmem:[#allocation72_spill] sm:$0xff] %v8556_v54  ;;  %v8562_v57 = vld [vmem:[#allocation6 + $0x3b0] sm:$0xff]  ;;  %v8565_v4 = vld [vmem:[#allocation6 + $0x3b8] sm:$0xff] }
 0x963   :  { %3711 = vmatpush.msrb.mxu2 %v8550_v10  ;;  %3731 = vmatpush.msrb.mxu3 %v8553_v49  ;;  %11139 = vst [vmem:[#allocation89_spill] sm:$0xff] %v8559_v59  ;;  %v8568_v10 = vld [vmem:[#allocation6 + $0x380] sm:$0xff]  ;;  %v8571_v49 = vld [vmem:[#allocation6 + $0x388] sm:$0xff] }
 0x964   :  { %3672 = vmatpush.msrb.mxu0 %v8556_v54  ;;  %3692 = vmatpush.msrb.mxu1 %v8559_v59  ;;  %11140 = vst [vmem:[#allocation73_spill] sm:$0xff] %v8562_v57  ;;  %v8574_v54 = vld [vmem:[#allocation6 + $0x390] sm:$0xff]  ;;  %v8577_v59 = vld [vmem:[#allocation6 + $0x398] sm:$0xff] }
 0x965   :  { %3712 = vmatpush.msrb.mxu2 %v8562_v57  ;;  %11141 = vst [vmem:[#allocation74_spill] sm:$0xff] %v8565_v4  ;;  %3732 = vmatpush.msrb.mxu3 %v8565_v4  ;;  %v8580_v57 = vld [vmem:[#allocation6 + $0x360] sm:$0xff]  ;;  %v8583_v4 = vld [vmem:[#allocation6 + $0x368] sm:$0xff] }
 0x966   :  { %11142 = vst [vmem:[#allocation76_spill] sm:$0xff] %v8568_v10  ;;  %3673 = vmatpush.msrb.mxu0 %v8568_v10  ;;  %3693 = vmatpush.msrb.mxu1 %v8571_v49  ;;  %v8586_v10 = vld [vmem:[#allocation6 + $0x370] sm:$0xff] }
 0x967   :  { %11143 = vst [vmem:[#allocation93_spill] sm:$0xff] %v8571_v49  ;;  %3713 = vmatpush.msrb.mxu2 %v8574_v54  ;;  %3733 = vmatpush.msrb.mxu3 %v8577_v59  ;;  %v8589_v49 = vld [vmem:[#allocation6 + $0x378] sm:$0xff] }
 0x968   :  { %11144 = vst [vmem:[#allocation77_spill] sm:$0xff] %v8574_v54  ;;  %3674 = vmatpush.msrb.mxu0 %v8580_v57  ;;  %3694 = vmatpush.msrb.mxu1 %v8583_v4  ;;  %v8592_v54 = vld [vmem:[#allocation6 + $0x340] sm:$0xff] }
 0x969   :  { %11145 = vst [vmem:[#allocation78_spill] sm:$0xff] %v8577_v59  ;;  %3714 = vmatpush.msrb.mxu2 %v8586_v10  ;;  %3734 = vmatpush.msrb.mxu3 %v8589_v49  ;;  %v8595_v59 = vld [vmem:[#allocation6 + $0x348] sm:$0xff] }
 0x96a   :  { %11146 = vst [vmem:[#allocation80_spill] sm:$0xff] %v8580_v57  ;;  %3675 = vmatpush.msrb.mxu0 %v8592_v54  ;;  %3695 = vmatpush.msrb.mxu1 %v8595_v59  ;;  %v8598_v57 = vld [vmem:[#allocation6 + $0x350] sm:$0xff] }
 0x96b   :  { %11147 = vst [vmem:[#allocation97_spill] sm:$0xff] %v8583_v4  ;;  %3715 = vmatpush.msrb.mxu2 %v8598_v57  ;;  %v8601_v4 = vld [vmem:[#allocation6 + $0x358] sm:$0xff] }
 0x96c   :  { %11148 = vst [vmem:[#allocation81_spill] sm:$0xff] %v8586_v10  ;;  %3735 = vmatpush.msrb.mxu3 %v8601_v4  ;;  %v8604_v10 = vld [vmem:[#allocation6 + $0x320] sm:$0xff] }
 0x96d   :  { %11149 = vst [vmem:[#allocation82_spill] sm:$0xff] %v8589_v49  ;;  %3676 = vmatpush.msrb.mxu0 %v8604_v10  ;;  %v8607_v49 = vld [vmem:[#allocation6 + $0x328] sm:$0xff] }
 0x96e   :  { %11150 = vst [vmem:[#allocation83_spill] sm:$0xff] %v8592_v54  ;;  %3696 = vmatpush.msrb.mxu1 %v8607_v49  ;;  %v8610_v54 = vld [vmem:[#allocation6 + $0x330] sm:$0xff] }
 0x96f   :  { %11151 = vst [vmem:[#allocation101_spill] sm:$0xff] %v8595_v59  ;;  %3716 = vmatpush.msrb.mxu2 %v8610_v54  ;;  %v8613_v59 = vld [vmem:[#allocation6 + $0x338] sm:$0xff] }
 0x970   :  { %11152 = vst [vmem:[#allocation84_spill] sm:$0xff] %v8598_v57  ;;  %3736 = vmatpush.msrb.mxu3 %v8613_v59  ;;  %v8616_v57 = vld [vmem:[#allocation6 + $0x300] sm:$0xff] }
 0x971   :  { %11153 = vst [vmem:[#allocation16_spill] sm:$0xff] %v8601_v4  ;;  %3677 = vmatpush.msrb.mxu0 %v8616_v57  ;;  %v8619_v4 = vld [vmem:[#allocation6 + $0x308] sm:$0xff] }
 0x972   :  { %11154 = vst [vmem:[#allocation86_spill] sm:$0xff] %v8604_v10  ;;  %3697 = vmatpush.msrb.mxu1 %v8619_v4  ;;  %v8622_v10 = vld [vmem:[#allocation6 + $0x310] sm:$0xff] }
 0x973   :  { %11155 = vst [vmem:[#allocation87_spill] sm:$0xff] %v8607_v49  ;;  %3717 = vmatpush.msrb.mxu2 %v8622_v10  ;;  %v8625_v49 = vld [vmem:[#allocation6 + $0x318] sm:$0xff] }
 0x974   :  { %11156 = vst [vmem:[#allocation102_spill] sm:$0xff] %v8610_v54  ;;  %3737 = vmatpush.msrb.mxu3 %v8625_v49  ;;  %v8628_v54 = vld [vmem:[#allocation6 + $0x2e0] sm:$0xff] }
 0x975   :  { %11157 = vst [vmem:[#allocation88_spill] sm:$0xff] %v8613_v59  ;;  %3678 = vmatpush.msrb.mxu0 %v8628_v54  ;;  %v8631_v59 = vld [vmem:[#allocation6 + $0x2e8] sm:$0xff] }
 0x976   :  { %11158 = vst [vmem:[#allocation90_spill] sm:$0xff] %v8616_v57  ;;  %3698 = vmatpush.msrb.mxu1 %v8631_v59  ;;  %v8634_v57 = vld [vmem:[#allocation6 + $0x2f0] sm:$0xff] }
 0x977   :  { %11159 = vst [vmem:[#allocation112_spill] sm:$0xff] %v8619_v4  ;;  %3718 = vmatpush.msrb.mxu2 %v8634_v57  ;;  %v8637_v4 = vld [vmem:[#allocation6 + $0x2f8] sm:$0xff] }
 0x978   :  { %11160 = vst [vmem:[#allocation104_spill] sm:$0xff] %v8622_v10  ;;  %3738 = vmatpush.msrb.mxu3 %v8637_v4  ;;  %v8640_v10 = vld [vmem:[#allocation6 + $0x2c0] sm:$0xff] }
 0x979   :  { %11161 = vst [vmem:[#allocation96_spill] sm:$0xff] %v8625_v49  ;;  %3679 = vmatpush.msrb.mxu0 %v8640_v10  ;;  %v8643_v49 = vld [vmem:[#allocation6 + $0x2c8] sm:$0xff] }
 0x97a   :  { %11162 = vst [vmem:[#allocation98_spill] sm:$0xff] %v8628_v54  ;;  %3699 = vmatpush.msrb.mxu1 %v8643_v49  ;;  %v8646_v54 = vld [vmem:[#allocation6 + $0x2d0] sm:$0xff] }
 0x97b   :  { %11163 = vst [vmem:[#allocation99_spill] sm:$0xff] %v8631_v59  ;;  %3719 = vmatpush.msrb.mxu2 %v8646_v54  ;;  %v8649_v59 = vld [vmem:[#allocation6 + $0x2d8] sm:$0xff] }
 0x97c   :  { %11164 = vst [vmem:[#allocation105_spill] sm:$0xff] %v8634_v57  ;;  %3739 = vmatpush.msrb.mxu3 %v8649_v59  ;;  %v8652_v57 = vld [vmem:[#allocation6 + $0x2a0] sm:$0xff] }
 0x97d   :  { %11165 = vst [vmem:[#allocation100_spill] sm:$0xff] %v8637_v4  ;;  %3680 = vmatpush.msrb.mxu0 %v8652_v57  ;;  %v8655_v4 = vld [vmem:[#allocation6 + $0x2a8] sm:$0xff] }
 0x97e   :  { %11166 = vst [vmem:[#allocation111_spill] sm:$0xff] %v8640_v10  ;;  %3700 = vmatpush.msrb.mxu1 %v8655_v4  ;;  %v8658_v10 = vld [vmem:[#allocation6 + $0x2b0] sm:$0xff] }
 0x97f   :  { %11167 = vst [vmem:[#allocation114_spill] sm:$0xff] %v8643_v49  ;;  %3720 = vmatpush.msrb.mxu2 %v8658_v10  ;;  %v8661_v49 = vld [vmem:[#allocation6 + $0x2b8] sm:$0xff] }
 0x980   :  { %11168 = vst [vmem:[#allocation110_spill] sm:$0xff] %v8646_v54  ;;  %3740 = vmatpush.msrb.mxu3 %v8661_v49  ;;  %v8664_v54 = vld [vmem:[#allocation6 + $0x280] sm:$0xff] }
 0x981   :  { %11169 = vst [vmem:[#allocation27_spill] sm:$0xff] %v8649_v59  ;;  %3681 = vmatpush.msrb.mxu0 %v8664_v54  ;;  %v8667_v59 = vld [vmem:[#allocation6 + $0x288] sm:$0xff] }
 0x982   :  { %11170 = vst [vmem:[#allocation19_spill] sm:$0xff] %v8652_v57  ;;  %3701 = vmatpush.msrb.mxu1 %v8667_v59  ;;  %v8670_v57 = vld [vmem:[#allocation6 + $0x290] sm:$0xff] }
 0x983   :  { %11171 = vst [vmem:[#allocation20_spill] sm:$0xff] %v8655_v4  ;;  %3721 = vmatpush.msrb.mxu2 %v8670_v57  ;;  %v8673_v4 = vld [vmem:[#allocation6 + $0x298] sm:$0xff] }
 0x984   :  { %11172 = vst [vmem:[#allocation21_spill] sm:$0xff] %v8658_v10  ;;  %3741 = vmatpush.msrb.mxu3 %v8673_v4  ;;  %v8676_v10 = vld [vmem:[#allocation6 + $0x260] sm:$0xff] }
 0x985   :  { %11173 = vst [vmem:[#allocation31_spill] sm:$0xff] %v8661_v49  ;;  %3682 = vmatpush.msrb.mxu0 %v8676_v10  ;;  %v8679_v49 = vld [vmem:[#allocation6 + $0x268] sm:$0xff] }
 0x986   :  { %11174 = vst [vmem:[#allocation22_spill] sm:$0xff] %v8664_v54  ;;  %3702 = vmatpush.msrb.mxu1 %v8679_v49  ;;  %v8682_v54 = vld [vmem:[#allocation6 + $0x270] sm:$0xff] }
 0x987   :  { %11175 = vst [vmem:[#allocation24_spill] sm:$0xff] %v8667_v59  ;;  %3722 = vmatpush.msrb.mxu2 %v8682_v54  ;;  %v8685_v59 = vld [vmem:[#allocation6 + $0x278] sm:$0xff] }
 0x988   :  { %11176 = vst [vmem:[#allocation25_spill] sm:$0xff] %v8670_v57  ;;  %3742 = vmatpush.msrb.mxu3 %v8685_v59  ;;  %v8688_v57 = vld [vmem:[#allocation6 + $0x240] sm:$0xff] }
 0x989   :  { %11177 = vst [vmem:[#allocation35_spill] sm:$0xff] %v8673_v4  ;;  %3683 = vmatpush.msrb.mxu0 %v8688_v57  ;;  %v8691_v4 = vld [vmem:[#allocation6 + $0x248] sm:$0xff] }
 0x98a   :  { %11178 = vst [vmem:[#allocation115_spill] sm:$0xff] %v8676_v10  ;;  %3703 = vmatpush.msrb.mxu1 %v8691_v4  ;;  %v8694_v10 = vld [vmem:[#allocation6 + $0x250] sm:$0xff] }
 0x98b   :  { %11179 = vst [vmem:[#allocation26_spill] sm:$0xff] %v8679_v49  ;;  %3723 = vmatpush.msrb.mxu2 %v8694_v10  ;;  %v8697_v49 = vld [vmem:[#allocation6 + $0x258] sm:$0xff] }
 0x98c   :  { %11180 = vst [vmem:[#allocation113_spill] sm:$0xff] %v8682_v54  ;;  %3743 = vmatpush.msrb.mxu3 %v8697_v49  ;;  %v8700_v54 = vld [vmem:[#allocation6 + $0x220] sm:$0xff] }
 0x98d   :  { %11181 = vst [vmem:[#allocation28_spill] sm:$0xff] %v8685_v59  ;;  %3684 = vmatpush.msrb.mxu0 %v8700_v54  ;;  %v8703_v59 = vld [vmem:[#allocation6 + $0x228] sm:$0xff] }
 0x98e   :  { %11182 = vst [vmem:[#allocation29_spill] sm:$0xff] %v8688_v57  ;;  %3704 = vmatpush.msrb.mxu1 %v8703_v59  ;;  %v8706_v57 = vld [vmem:[#allocation6 + $0x230] sm:$0xff] }
 0x98f   :  { %11183 = vst [vmem:[#allocation43_spill] sm:$0xff] %v8691_v4  ;;  %3724 = vmatpush.msrb.mxu2 %v8706_v57  ;;  %v8709_v4 = vld [vmem:[#allocation6 + $0x238] sm:$0xff] }
 0x990   :  { %11184 = vst [vmem:[#allocation30_spill] sm:$0xff] %v8694_v10  ;;  %3744 = vmatpush.msrb.mxu3 %v8709_v4  ;;  %v8712_v10 = vld [vmem:[#allocation6 + $0x200] sm:$0xff] }
 0x991   :  { %11185 = vst [vmem:[#allocation32_spill] sm:$0xff] %v8697_v49  ;;  %3685 = vmatpush.msrb.mxu0 %v8712_v10  ;;  %v8715_v49 = vld [vmem:[#allocation6 + $0x208] sm:$0xff] }
 0x992   :  { %11186 = vst [vmem:[#allocation33_spill] sm:$0xff] %v8700_v54  ;;  %3705 = vmatpush.msrb.mxu1 %v8715_v49  ;;  %v8718_v54 = vld [vmem:[#allocation6 + $0x210] sm:$0xff] }
 0x993   :  { %11187 = vst [vmem:[#allocation47_spill] sm:$0xff] %v8703_v59  ;;  %3725 = vmatpush.msrb.mxu2 %v8718_v54  ;;  %v8721_v59 = vld [vmem:[#allocation6 + $0x218] sm:$0xff] }
 0x994   :  { %11188 = vst [vmem:[#allocation34_spill] sm:$0xff] %v8706_v57  ;;  %3745 = vmatpush.msrb.mxu3 %v8721_v59 }
 0x995   :  { %11189 = vst [vmem:[#allocation36_spill] sm:$0xff] %v8709_v4 }
 0x996   :  { %11190 = vst [vmem:[#allocation37_spill] sm:$0xff] %v8712_v10 }
 0x997   :  { %11191 = vst [vmem:[#allocation51_spill] sm:$0xff] %v8715_v49 }
 0x998   :  { %11192 = vst [vmem:[#allocation38_spill] sm:$0xff] %v8718_v54 }
 0x999   :  { %11193 = vst [vmem:[#allocation39_spill] sm:$0xff] %v8721_v59 }
 0x9b9   :  { %v3379_v57 = vpop.f32.mrf.mxu0  ;;  %v3399_v23 = vpop.f32.mrf.mxu1 }
 0x9c0   :  { %v3439_v30 = vpop.f32.mrf.mxu3  ;;  %v3419_v36 = vpop.f32.mrf.mxu2 }
 0x9c1   :  { %v3459_v4 = vpop.f32.mrf.mxu0  ;;  %v3479_v32 = vpop.f32.mrf.mxu1 }
 0x9c2   :  { %v3460_v3 = vadd.f32 %v3459_v4, %v3379_v57  ;;  %v3480_v6 = vadd.f32 %v3479_v32, %v3399_v23 }
 0x9c4   :  { %v3522_v10 = vadd.f32 %v3460_v3, %v11086_v28  ;;  %v3523_v56 = vadd.f32 %v3480_v6, %v11087_v18 }
 0x9c6   :  { %v3526_v49 = vsub.f32 0.0, %v3522_v10  ;;  %v3545_v27 = vsub.f32 0.0, %v3523_v56 }
 0x9c8   :  { %v3527_v13 = vmul.f32 1.442695, %v3526_v49  ;;  %v3546_v54 = vmul.f32 1.442695, %v3545_v27  ;;  %v3519_v26 = vpop.f32.mrf.mxu3  ;;  %v3499_v3 = vpop.f32.mrf.mxu2 }
 0x9c9   :  { %v3520_v0 = vadd.f32 %v3519_v26, %v3439_v30  ;;  %v3500_v10 = vadd.f32 %v3499_v3, %v3419_v36 }
 0x9ca   :  { %4325 = vpow2.f32 %v3527_v13 }
 0x9cb   :  { %4327 = vpow2.f32 %v3546_v54  ;;  %v3525_v59 = vadd.f32 %v3520_v0, %v11088_v14  ;;  %v3524_v30 = vadd.f32 %v3500_v10, %v11089_v19 }
 0x9cd   :  { %v3565_v46 = vsub.f32 0.0, %v3525_v59 }
 0x9cf   :  { %v3566_v25 = vmul.f32 1.442695, %v3565_v46 }
 0x9d0   :  { %v4326_v20 = vpop.eup %4325 }
 0x9d1   :  { %v4328_v4 = vpop.eup %4327  ;;  %v3529_v23 = vadd.f32 1.0, %v4326_v20  ;;  %4329 = vpow2.f32 %v3566_v25 }
 0x9d2   :  { %v3548_v32 = vadd.f32 1.0, %v4328_v4 }
 0x9d3   :  { %4331 = vrcp.f32 %v3529_v23  ;;  %v3541_v0 = vand.u32 2147483648, %v3529_v23  ;;  %v3539_v26 = vand.u32 2147483647, %v3529_v23  ;;  %vm3535_vm14 = vweird.f32 %v3529_v23 }
 0x9d4   :  { %4333 = vrcp.f32 %v3548_v32  ;;  %v3560_v20 = vand.u32 2147483648, %v3548_v32  ;;  %v3558_v36 = vand.u32 2147483647, %v3548_v32  ;;  %vm3554_vm15 = vweird.f32 %v3548_v32 }
 0x9d5   :  { %v3542_v10 = vor.u32 1.1754944e-38, %v3541_v0  ;;  %vm3540_vm2 = vcmp.eq.f32.partialorder %v3539_v26, 8.507059e+37 }
 0x9d6   :  { %vm3559_vm3 = vcmp.eq.f32.partialorder %v3558_v36, 8.507059e+37  ;;  %v11238_v36 = vld [vmem:[#allocation97_spill] sm:$0xff] }
 0x9d7   :  { %v4330_v56 = vpop.eup %4329 }
 0x9d8   :  { %v3568_v49 = vadd.f32 1.0, %v4330_v56 }
 0x9d9   :  { %v4332_v27 = vpop.eup %4331 }
 0x9da   :  { %v4334_v6 = vpop.eup %4333  ;;  %v3531_v54 = vmul.f32 %v4332_v27, %v3529_v23  ;;  %4335 = vrcp.f32 %v3568_v49  ;;  %vm3536_vm12 = vweird.f32 %v4332_v27  ;;  %v3580_v0 = vand.u32 2147483648, %v3568_v49 }
 0x9db   :  { %v3550_v57 = vmul.f32 %v4334_v6, %v3548_v32  ;;  %4337 = vtanh.f32 %v3524_v30  ;;  %vm3555_vm13 = vweird.f32 %v4334_v6  ;;  %vm3537_vm0 = vmor %vm3535_vm14, %vm3536_vm12  ;;  %vm3574_vm5 = vweird.f32 %v3568_v49 }
 0x9dc   :  { %v3532_v59 = vsub.f32 1.0, %v3531_v54  ;;  %vm3556_vm1 = vmor %vm3554_vm15, %vm3555_vm13  ;;  %v3561_v54 = vor.u32 1.1754944e-38, %v3560_v20  ;;  %v3581_v26 = vor.u32 1.1754944e-38, %v3580_v0  ;;  %v11250_v0 = vld [vmem:[#allocation112_spill] sm:$0xff] }
 0x9dd   :  { %v3551_v46 = vsub.f32 1.0, %v3550_v57 }
 0x9de   :  { %v3533_v25 = vmul.f32 %v4332_v27, %v3532_v59 }
 0x9df   :  { %v3552_v13 = vmul.f32 %v4334_v6, %v3551_v46 }
 0x9e0   :  { %v4336_v4 = vpop.eup %4335  ;;  %v3534_v3 = vadd.f32 %v4332_v27, %v3533_v25 }
 0x9e1   :  { %v3553_v56 = vadd.f32 %v4334_v6, %v3552_v13  ;;  %v3570_v19 = vmul.f32 %v4336_v4, %v3568_v49  ;;  %v4338_v30 = vpop.eup %4337  ;;  %vm3575_vm4 = vweird.f32 %v4336_v4 }
 0x9e2   :  { %v3538_v57 = vsel %vm3537_vm0, %v4332_v27, %v3534_v3  ;;  %v3578_v27 = vand.u32 2147483647, %v3568_v49  ;;  %vm3576_vm6 = vmor %vm3574_vm5, %vm3575_vm4  ;;  %v11237_v49 = vld [vmem:[#allocation80_spill] sm:$0xff]  ;;  %v11240_v3 = vld [vmem:[#allocation82_spill] sm:$0xff] }
 0x9e3   :  { %v3543_v14 = vsel %vm3540_vm2, %v3542_v10, %v3538_v57  ;;  %v3557_v59 = vsel %vm3556_vm1, %v4334_v6, %v3553_v56  ;;  %v3571_v18 = vsub.f32 1.0, %v3570_v19  ;;  %v11241_v10 = vld [vmem:[#allocation83_spill] sm:$0xff]  ;;  %v11242_v56 = vld [vmem:[#allocation101_spill] sm:$0xff]  ;;  %v11244_v57 = vld [vmem:[#allocation16_spill] sm:$0xff] }
 0x9e4   :  { %v3562_v46 = vsel %vm3559_vm3, %v3561_v54, %v3557_v59  ;;  %v3585_v28 = vmul.f32 %v4338_v30, %v3543_v14  ;;  %vm3579_vm7 = vcmp.eq.f32.partialorder %v3578_v27, 8.507059e+37  ;;  %v11215_v14 = vld [vmem:[#allocation64_spill] sm:$0xff]  ;;  %v11245_v30 = vld [vmem:[#allocation86_spill] sm:$0xff]  ;;  %v11246_v59 = vld [vmem:[#allocation87_spill] sm:$0xff] }
 0x9e5   :  { %v3584_v24 = vmul.f32 %v3562_v46, %v8465_v47  ;;  %v3572_v25 = vmul.f32 %v4336_v4, %v3571_v18  ;;  %v11214_v18 = vld [vmem:[#allocation62_spill] sm:$0xff]  ;;  %v11216_v47 = vld [vmem:[#allocation79_spill] sm:$0xff]  ;;  %v11243_v54 = vld [vmem:[#allocation84_spill] sm:$0xff] }
 0x9e6   :  { %v11247_v46 = vld [vmem:[#allocation102_spill] sm:$0xff]  ;;  %v11251_v27 = vld [vmem:[#allocation104_spill] sm:$0xff] }
 0x9e7   :  { %v8729_v23 = vadd.f32 %v3585_v28, %v3584_v24  ;;  %v3573_v32 = vadd.f32 %v4336_v4, %v3572_v25  ;;  %v11213_v28 = vld [vmem:[#allocation61_spill] sm:$0xff]  ;;  %v11236_v24 = vld [vmem:[#allocation78_spill] sm:$0xff]  ;;  %v11248_v25 = vld [vmem:[#allocation88_spill] sm:$0xff] }
 0x9e9   :  { %4339 = vtanh.f32 %v8729_v23  ;;  %v3577_v20 = vsel %vm3576_vm6, %v4336_v4, %v3573_v32  ;;  %v11239_v4 = vld [vmem:[#allocation81_spill] sm:$0xff]  ;;  %v11249_v32 = vld [vmem:[#allocation90_spill] sm:$0xff] }
 0x9ea   :  { %v3582_v19 = vsel %vm3579_vm7, %v3581_v26, %v3577_v20  ;;  %v11252_v20 = vld [vmem:[#allocation96_spill] sm:$0xff]  ;;  %v11253_v26 = vld [vmem:[#allocation98_spill] sm:$0xff] }
 0x9ef   :  { %v4340_v6 = vpop.eup %4339 }
 0x9f0   :  { %v3588_v13 = vmul.f32 %v4340_v6, %v3582_v19  ;;  %v11254_v6 = vld [vmem:[#allocation99_spill] sm:$0xff]  ;;  %v11255_v19 = vld [vmem:[#allocation105_spill] sm:$0xff] }
 0x9f2   :  { %3606 = vmatmul.f32.vlgmr.msra.gmra.mxu0 %v3588_v13  ;;  %3626 = vmatmul.f32.vlgmr.msra.gmra.mxu1 %v3588_v13 }
 0x9f3   :  { %3646 = vmatmul.f32.vlgmr.msra.gmra.mxu2 %v3588_v13  ;;  %3666 = vmatmul.f32.vlgmr.msra.gmra.mxu3 %v3588_v13  ;;  %v11256_v13 = vld [vmem:[#allocation100_spill] sm:$0xff] }
 0x9f4   :  { %3818 = vmatpush.msra.mxu0 %v8196_v61  ;;  %3838 = vmatpush.msra.mxu1 %v8199_v9  ;;  %v11194_v61 = vld [vmem:[#allocation18_spill] sm:$0xff]  ;;  %v11195_v9 = vld [vmem:[#allocation44_spill] sm:$0xff] }
 0x9f5   :  { %3858 = vmatpush.msra.mxu2 %v8202_v22  ;;  %3878 = vmatpush.msra.mxu3 %v8205_v2  ;;  %v11196_v22 = vld [vmem:[#allocation59_spill] sm:$0xff]  ;;  %v11197_v2 = vld [vmem:[#allocation45_spill] sm:$0xff] }
 0x9f6   :  { %3819 = vmatpush.msra.mxu0 %v8208_v11  ;;  %3839 = vmatpush.msra.mxu1 %v8211_v5  ;;  %v11198_v11 = vld [vmem:[#allocation46_spill] sm:$0xff]  ;;  %v11199_v5 = vld [vmem:[#allocation48_spill] sm:$0xff] }
 0x9f7   :  { %3859 = vmatpush.msra.mxu2 %v8214_v17  ;;  %3879 = vmatpush.msra.mxu3 %v8217_v60  ;;  %v11200_v17 = vld [vmem:[#allocation63_spill] sm:$0xff]  ;;  %v11201_v60 = vld [vmem:[#allocation49_spill] sm:$0xff] }
 0x9f8   :  { %3820 = vmatpush.msra.mxu0 %v8220_v40  ;;  %3840 = vmatpush.msra.mxu1 %v8223_v50  ;;  %v11202_v40 = vld [vmem:[#allocation50_spill] sm:$0xff]  ;;  %v11203_v50 = vld [vmem:[#allocation52_spill] sm:$0xff] }
 0x9f9   :  { %3860 = vmatpush.msra.mxu2 %v8226_v58  ;;  %3880 = vmatpush.msra.mxu3 %v8229_v55  ;;  %v11204_v58 = vld [vmem:[#allocation67_spill] sm:$0xff]  ;;  %v11205_v55 = vld [vmem:[#allocation53_spill] sm:$0xff] }
 0x9fa   :  { %3686 = vmatmul.f32.vlgmr.msrb.gmra.mxu0 %v11194_v61  ;;  %3706 = vmatmul.f32.vlgmr.msrb.gmra.mxu1 %v11194_v61 }
 0x9fb   :  { %3726 = vmatmul.f32.vlgmr.msrb.gmra.mxu2 %v11194_v61  ;;  %3746 = vmatmul.f32.vlgmr.msrb.gmra.mxu3 %v11194_v61  ;;  %v11257_v61 = vld [vmem:[#allocation111_spill] sm:$0xff] }
 0x9fc   :  { %3821 = vmatpush.msra.mxu0 %v8236_v48  ;;  %3841 = vmatpush.msra.mxu1 %v8239_v45  ;;  %v11206_v48 = vld [vmem:[#allocation54_spill] sm:$0xff]  ;;  %v11207_v45 = vld [vmem:[#allocation56_spill] sm:$0xff] }
 0x9fd   :  { %3861 = vmatpush.msra.mxu2 %v8242_v52  ;;  %3881 = vmatpush.msra.mxu3 %v8245_v41  ;;  %v11208_v52 = vld [vmem:[#allocation71_spill] sm:$0xff]  ;;  %v11209_v41 = vld [vmem:[#allocation57_spill] sm:$0xff] }
 0x9fe   :  { %3822 = vmatpush.msra.mxu0 %v8248_v37  ;;  %3842 = vmatpush.msra.mxu1 %v8251_v16  ;;  %v11210_v37 = vld [vmem:[#allocation58_spill] sm:$0xff]  ;;  %v11211_v16 = vld [vmem:[#allocation60_spill] sm:$0xff] }
 0x9ff   :  { %3862 = vmatpush.msra.mxu2 %v8254_v53  ;;  %3882 = vmatpush.msra.mxu3 %v11091_v62  ;;  %v11212_v53 = vld [vmem:[#allocation75_spill] sm:$0xff]  ;;  %v11217_v62 = vld [vmem:[#allocation65_spill] sm:$0xff] }
 0xa00   :  { %3823 = vmatpush.msra.mxu0 %v11092_v12  ;;  %3843 = vmatpush.msra.mxu1 %v11093_v51  ;;  %v11218_v12 = vld [vmem:[#allocation66_spill] sm:$0xff] }
 0xa01   :  { %3863 = vmatpush.msra.mxu2 %v11094_v1  ;;  %3883 = vmatpush.msra.mxu3 %v11095_v63  ;;  %v11219_v51 = vld [vmem:[#allocation106_spill] sm:$0xff]  ;;  %v11220_v1 = vld [vmem:[#allocation107_spill] sm:$0xff]  ;;  %v11221_v63 = vld [vmem:[#allocation108_spill] sm:$0xff] }
 0xa02   :  { %3824 = vmatpush.msra.mxu0 %v11096_v44  ;;  %3844 = vmatpush.msra.mxu1 %v11097_v35  ;;  %v11222_v44 = vld [vmem:[#allocation109_spill] sm:$0xff] }
 0xa03   :  { %3864 = vmatpush.msra.mxu2 %v11098_v43  ;;  %3884 = vmatpush.msra.mxu3 %v11099_v8  ;;  %v11223_v35 = vld [vmem:[#allocation17_spill] sm:$0xff]  ;;  %v11224_v43 = vld [vmem:[#allocation23_spill] sm:$0xff]  ;;  %v11225_v8 = vld [vmem:[#allocation68_spill] sm:$0xff] }
 0xa04   :  { %3825 = vmatpush.msra.mxu0 %v11100_v7  ;;  %3845 = vmatpush.msra.mxu1 %v11101_v31  ;;  %v11226_v7 = vld [vmem:[#allocation85_spill] sm:$0xff] }
 0xa05   :  { %3865 = vmatpush.msra.mxu2 %v11102_v38  ;;  %3885 = vmatpush.msra.mxu3 %v11103_v34  ;;  %v11227_v31 = vld [vmem:[#allocation69_spill] sm:$0xff]  ;;  %v11228_v38 = vld [vmem:[#allocation70_spill] sm:$0xff]  ;;  %v11229_v34 = vld [vmem:[#allocation72_spill] sm:$0xff] }
 0xa06   :  { %3826 = vmatpush.msra.mxu0 %v11104_v39  ;;  %3846 = vmatpush.msra.mxu1 %v11105_v42  ;;  %v11230_v39 = vld [vmem:[#allocation89_spill] sm:$0xff] }
 0xa07   :  { %3866 = vmatpush.msra.mxu2 %v11106_v29  ;;  %3886 = vmatpush.msra.mxu3 %v11107_v15  ;;  %v11231_v42 = vld [vmem:[#allocation73_spill] sm:$0xff]  ;;  %v11232_v29 = vld [vmem:[#allocation74_spill] sm:$0xff]  ;;  %v11233_v15 = vld [vmem:[#allocation76_spill] sm:$0xff] }
 0xa08   :  { %3827 = vmatpush.msra.mxu0 %v11108_v33  ;;  %3847 = vmatpush.msra.mxu1 %v11109_v21  ;;  %v11234_v33 = vld [vmem:[#allocation93_spill] sm:$0xff] }
 0xa09   :  { %3867 = vmatpush.msra.mxu2 %v11195_v9  ;;  %3887 = vmatpush.msra.mxu3 %v11196_v22  ;;  %v11235_v21 = vld [vmem:[#allocation77_spill] sm:$0xff]  ;;  %v11258_v9 = vld [vmem:[#allocation114_spill] sm:$0xff] }
 0xa0a   :  { %3828 = vmatpush.msra.mxu0 %v11197_v2  ;;  %3848 = vmatpush.msra.mxu1 %v11198_v11  ;;  %v11259_v22 = vld [vmem:[#allocation110_spill] sm:$0xff]  ;;  %v11260_v2 = vld [vmem:[#allocation27_spill] sm:$0xff] }
 0xa0b   :  { %3868 = vmatpush.msra.mxu2 %v11199_v5  ;;  %3888 = vmatpush.msra.mxu3 %v11200_v17  ;;  %v11261_v11 = vld [vmem:[#allocation19_spill] sm:$0xff]  ;;  %v11262_v5 = vld [vmem:[#allocation20_spill] sm:$0xff]  ;;  %v11263_v17 = vld [vmem:[#allocation21_spill] sm:$0xff] }
 0xa0c   :  { %3829 = vmatpush.msra.mxu0 %v11201_v60  ;;  %3849 = vmatpush.msra.mxu1 %v11202_v40  ;;  %v11264_v60 = vld [vmem:[#allocation31_spill] sm:$0xff]  ;;  %v11265_v40 = vld [vmem:[#allocation22_spill] sm:$0xff] }
 0xa0d   :  { %3869 = vmatpush.msra.mxu2 %v11203_v50  ;;  %3889 = vmatpush.msra.mxu3 %v11204_v58  ;;  %v11266_v50 = vld [vmem:[#allocation24_spill] sm:$0xff]  ;;  %v11267_v58 = vld [vmem:[#allocation25_spill] sm:$0xff] }
 0xa0e   :  { %3830 = vmatpush.msra.mxu0 %v11205_v55  ;;  %3850 = vmatpush.msra.mxu1 %v11206_v48  ;;  %v11268_v55 = vld [vmem:[#allocation35_spill] sm:$0xff] }
 0xa0f   :  { %3870 = vmatpush.msra.mxu2 %v11207_v45  ;;  %3890 = vmatpush.msra.mxu3 %v11208_v52  ;;  %v11269_v48 = vld [vmem:[#allocation115_spill] sm:$0xff]  ;;  %v11270_v45 = vld [vmem:[#allocation26_spill] sm:$0xff]  ;;  %v11271_v52 = vld [vmem:[#allocation113_spill] sm:$0xff] }
 0xa10   :  { %3831 = vmatpush.msra.mxu0 %v11209_v41  ;;  %3851 = vmatpush.msra.mxu1 %v11210_v37  ;;  %v11272_v41 = vld [vmem:[#allocation28_spill] sm:$0xff]  ;;  %v11273_v37 = vld [vmem:[#allocation29_spill] sm:$0xff] }
 0xa11   :  { %3871 = vmatpush.msra.mxu2 %v11211_v16  ;;  %3891 = vmatpush.msra.mxu3 %v11212_v53  ;;  %v11274_v16 = vld [vmem:[#allocation43_spill] sm:$0xff]  ;;  %v11275_v53 = vld [vmem:[#allocation30_spill] sm:$0xff] }
 0xa12   :  { %3832 = vmatpush.msra.mxu0 %v11213_v28  ;;  %3852 = vmatpush.msra.mxu1 %v11214_v18  ;;  %v11276_v28 = vld [vmem:[#allocation32_spill] sm:$0xff]  ;;  %v11277_v18 = vld [vmem:[#allocation33_spill] sm:$0xff] }
 0xa13   :  { %3872 = vmatpush.msra.mxu2 %v11215_v14  ;;  %3892 = vmatpush.msra.mxu3 %v11216_v47  ;;  %v11278_v14 = vld [vmem:[#allocation47_spill] sm:$0xff]  ;;  %v11279_v47 = vld [vmem:[#allocation34_spill] sm:$0xff] }
 0xa14   :  { %3833 = vmatpush.msra.mxu0 %v11217_v62  ;;  %3853 = vmatpush.msra.mxu1 %v11218_v12  ;;  %v11280_v62 = vld [vmem:[#allocation36_spill] sm:$0xff]  ;;  %v11281_v12 = vld [vmem:[#allocation37_spill] sm:$0xff] }
 0xa15   :  { %3873 = vmatpush.msra.mxu2 %v11219_v51  ;;  %3893 = vmatpush.msra.mxu3 %v11220_v1  ;;  %v11282_v51 = vld [vmem:[#allocation51_spill] sm:$0xff]  ;;  %v11283_v1 = vld [vmem:[#allocation38_spill] sm:$0xff] }
 0xa16   :  { %3898 = vmatpush.msrb.mxu0 %v11221_v63  ;;  %3918 = vmatpush.msrb.mxu1 %v11222_v44  ;;  %v11284_v63 = vld [vmem:[#allocation39_spill] sm:$0xff] }
 0xa17   :  { %3938 = vmatpush.msrb.mxu2 %v11223_v35  ;;  %3958 = vmatpush.msrb.mxu3 %v11224_v43 }
 0xa18   :  { %3899 = vmatpush.msrb.mxu0 %v11225_v8  ;;  %3919 = vmatpush.msrb.mxu1 %v11226_v7 }
 0xa19   :  { %3939 = vmatpush.msrb.mxu2 %v11227_v31  ;;  %3959 = vmatpush.msrb.mxu3 %v11228_v38 }
 0xa1a   :  { %3900 = vmatpush.msrb.mxu0 %v11229_v34  ;;  %3920 = vmatpush.msrb.mxu1 %v11230_v39  ;;  %v11285_v34 = vld [vmem:[#allocation103_spill] sm:$0xff] }
 0xa1b   :  { %3940 = vmatpush.msrb.mxu2 %v11231_v42  ;;  %3960 = vmatpush.msrb.mxu3 %v11232_v29  ;;  %v11286_v42 = vld [vmem:[#allocation92_spill] sm:$0xff] }
 0xa1c   :  { %3901 = vmatpush.msrb.mxu0 %v11233_v15  ;;  %3921 = vmatpush.msrb.mxu1 %v11234_v33 }
 0xa1d   :  { %3941 = vmatpush.msrb.mxu2 %v11235_v21  ;;  %3961 = vmatpush.msrb.mxu3 %v11236_v24 }
 0xa1e   :  { %3902 = vmatpush.msrb.mxu0 %v11237_v49  ;;  %3922 = vmatpush.msrb.mxu1 %v11238_v36 }
 0xa1f   :  { %3942 = vmatpush.msrb.mxu2 %v11239_v4  ;;  %3962 = vmatpush.msrb.mxu3 %v11240_v3  ;;  %v11287_v3 = vld [vmem:[#allocation94_spill] sm:$0xff] }
 0xa20   :  { %3903 = vmatpush.msrb.mxu0 %v11241_v10  ;;  %3923 = vmatpush.msrb.mxu1 %v11242_v56 }
 0xa21   :  { %3943 = vmatpush.msrb.mxu2 %v11243_v54  ;;  %3963 = vmatpush.msrb.mxu3 %v11244_v57 }
 0xa22   :  { %3904 = vmatpush.msrb.mxu0 %v11245_v30  ;;  %3924 = vmatpush.msrb.mxu1 %v11246_v59 }
 0xa23   :  { %3944 = vmatpush.msrb.mxu2 %v11247_v46  ;;  %3964 = vmatpush.msrb.mxu3 %v11248_v25 }
 0xa24   :  { %3905 = vmatpush.msrb.mxu0 %v11249_v32  ;;  %3925 = vmatpush.msrb.mxu1 %v11250_v0 }
 0xa25   :  { %3945 = vmatpush.msrb.mxu2 %v11251_v27  ;;  %3965 = vmatpush.msrb.mxu3 %v11252_v20 }
 0xa26   :  { %3906 = vmatpush.msrb.mxu0 %v11253_v26  ;;  %3926 = vmatpush.msrb.mxu1 %v11254_v6  ;;  %v11288_v26 = vld [vmem:[#allocation95_spill] sm:$0xff] }
 0xa27   :  { %3946 = vmatpush.msrb.mxu2 %v11255_v19  ;;  %3966 = vmatpush.msrb.mxu3 %v11256_v13 }
 0xa28   :  { %3907 = vmatpush.msrb.mxu0 %v11257_v61  ;;  %3927 = vmatpush.msrb.mxu1 %v11258_v9 }
 0xa29   :  { %3947 = vmatpush.msrb.mxu2 %v11259_v22  ;;  %3967 = vmatpush.msrb.mxu3 %v11260_v2 }
 0xa2a   :  { %3908 = vmatpush.msrb.mxu0 %v11261_v11  ;;  %3928 = vmatpush.msrb.mxu1 %v11262_v5 }
 0xa2b   :  { %3948 = vmatpush.msrb.mxu2 %v11263_v17  ;;  %3968 = vmatpush.msrb.mxu3 %v11264_v60 }
 0xa2c   :  { %3909 = vmatpush.msrb.mxu0 %v11265_v40  ;;  %3929 = vmatpush.msrb.mxu1 %v11266_v50 }
 0xa2d   :  { %3949 = vmatpush.msrb.mxu2 %v11267_v58  ;;  %3969 = vmatpush.msrb.mxu3 %v11268_v55 }
 0xa2e   :  { %3910 = vmatpush.msrb.mxu0 %v11269_v48  ;;  %3930 = vmatpush.msrb.mxu1 %v11270_v45 }
 0xa2f   :  { %3950 = vmatpush.msrb.mxu2 %v11271_v52  ;;  %3970 = vmatpush.msrb.mxu3 %v11272_v41 }
 0xa30   :  { %3911 = vmatpush.msrb.mxu0 %v11273_v37  ;;  %3931 = vmatpush.msrb.mxu1 %v11274_v16 }
 0xa31   :  { %3951 = vmatpush.msrb.mxu2 %v11275_v53  ;;  %3971 = vmatpush.msrb.mxu3 %v11276_v28 }
 0xa32   :  { %3912 = vmatpush.msrb.mxu0 %v11277_v18  ;;  %3932 = vmatpush.msrb.mxu1 %v11278_v14 }
 0xa33   :  { %3952 = vmatpush.msrb.mxu2 %v11279_v47  ;;  %3972 = vmatpush.msrb.mxu3 %v11280_v62 }
 0xa34   :  { %3913 = vmatpush.msrb.mxu0 %v11281_v12  ;;  %3933 = vmatpush.msrb.mxu1 %v11282_v51 }
 0xa35   :  { %3953 = vmatpush.msrb.mxu2 %v11283_v1  ;;  %3973 = vmatpush.msrb.mxu3 %v11284_v63 }
 0xa6f   :  { %v3607_v44 = vpop.f32.mrf.mxu0  ;;  %v3627_v35 = vpop.f32.mrf.mxu1 }
 0xa76   :  { %v3667_v43 = vpop.f32.mrf.mxu3  ;;  %v3647_v21 = vpop.f32.mrf.mxu2 }
 0xa77   :  { %v3687_v8 = vpop.f32.mrf.mxu0  ;;  %v3707_v7 = vpop.f32.mrf.mxu1 }
 0xa78   :  { %v3688_v31 = vadd.f32 %v3687_v8, %v3607_v44  ;;  %v3708_v38 = vadd.f32 %v3707_v7, %v3627_v35 }
 0xa7a   :  { %v3750_v39 = vadd.f32 %v3688_v31, %v11285_v34  ;;  %v3751_v29 = vadd.f32 %v3708_v38, %v11286_v42 }
 0xa7c   :  { %v3754_v15 = vsub.f32 0.0, %v3750_v39  ;;  %v3773_v33 = vsub.f32 0.0, %v3751_v29 }
 0xa7e   :  { %v3755_v24 = vmul.f32 1.442695, %v3754_v15  ;;  %v3774_v49 = vmul.f32 1.442695, %v3773_v33  ;;  %v3747_v36 = vpop.f32.mrf.mxu3  ;;  %v3727_v25 = vpop.f32.mrf.mxu2 }
 0xa7f   :  { %v3748_v4 = vadd.f32 %v3747_v36, %v3667_v43  ;;  %v3728_v32 = vadd.f32 %v3727_v25, %v3647_v21 }
 0xa80   :  { %4341 = vpow2.f32 %v3755_v24 }
 0xa81   :  { %4343 = vpow2.f32 %v3774_v49  ;;  %v3753_v10 = vadd.f32 %v3748_v4, %v11287_v3  ;;  %v3752_v6 = vadd.f32 %v3728_v32, %v11288_v26 }
 0xa83   :  { %v3793_v56 = vsub.f32 0.0, %v3753_v10 }
 0xa85   :  { %v3794_v54 = vmul.f32 1.442695, %v3793_v56 }
 0xa86   :  { %v4342_v57 = vpop.eup %4341 }
 0xa87   :  { %v4344_v30 = vpop.eup %4343  ;;  %v3757_v59 = vadd.f32 1.0, %v4342_v57  ;;  %4345 = vpow2.f32 %v3794_v54 }
 0xa88   :  { %v3776_v46 = vadd.f32 1.0, %v4344_v30 }
 0xa89   :  { %4347 = vrcp.f32 %v3757_v59  ;;  %v3769_v2 = vand.u32 2147483648, %v3757_v59  ;;  %v3767_v17 = vand.u32 2147483647, %v3757_v59  ;;  %vm3763_vm10 = vweird.f32 %v3757_v59 }
 0xa8a   :  { %4349 = vrcp.f32 %v3776_v46  ;;  %v3788_v11 = vand.u32 2147483648, %v3776_v46  ;;  %v3786_v40 = vand.u32 2147483647, %v3776_v46  ;;  %vm3782_vm11 = vweird.f32 %v3776_v46 }
 0xa8b   :  { %v3770_v55 = vor.u32 1.1754944e-38, %v3769_v2  ;;  %vm3768_vm14 = vcmp.eq.f32.partialorder %v3767_v17, 8.507059e+37 }
 0xa8c   :  { %v3789_v52 = vor.u32 1.1754944e-38, %v3788_v11  ;;  %vm3787_vm15 = vcmp.eq.f32.partialorder %v3786_v40, 8.507059e+37 }
 0xa8d   :  { %v4346_v0 = vpop.eup %4345 }
 0xa8e   :  { %v3796_v27 = vadd.f32 1.0, %v4346_v0 }
 0xa8f   :  { %v4348_v20 = vpop.eup %4347 }
 0xa90   :  { %v4350_v19 = vpop.eup %4349  ;;  %v3759_v13 = vmul.f32 %v4348_v20, %v3757_v59  ;;  %4351 = vrcp.f32 %v3796_v27  ;;  %vm3764_vm8 = vweird.f32 %v4348_v20  ;;  %v3808_v1 = vand.u32 2147483648, %v3796_v27 }
 0xa91   :  { %v3778_v61 = vmul.f32 %v4350_v19, %v3776_v46  ;;  %4353 = vtanh.f32 %v3752_v6  ;;  %vm3783_vm9 = vweird.f32 %v4350_v19  ;;  %vm3765_vm12 = vmor %vm3763_vm10, %vm3764_vm8  ;;  %vm3802_vm1 = vweird.f32 %v3796_v27 }
 0xa92   :  { %v3760_v9 = vsub.f32 1.0, %v3759_v13  ;;  %vm3784_vm13 = vmor %vm3782_vm11, %vm3783_vm9  ;;  %v3806_v63 = vand.u32 2147483647, %v3796_v27  ;;  %v3809_v35 = vor.u32 1.1754944e-38, %v3808_v1 }
 0xa93   :  { %v3779_v22 = vsub.f32 1.0, %v3778_v61 }
 0xa94   :  { %v3761_v5 = vmul.f32 %v4348_v20, %v3760_v9  ;;  %vm3807_vm3 = vcmp.eq.f32.partialorder %v3806_v63, 8.507059e+37 }
 0xa95   :  { %v3780_v60 = vmul.f32 %v4350_v19, %v3779_v22 }
 0xa96   :  { %v4352_v50 = vpop.eup %4351  ;;  %v3762_v58 = vadd.f32 %v4348_v20, %v3761_v5 }
 0xa97   :  { %v3781_v48 = vadd.f32 %v4350_v19, %v3780_v60  ;;  %v3798_v45 = vmul.f32 %v4352_v50, %v3796_v27  ;;  %v4354_v37 = vpop.eup %4353  ;;  %vm3803_vm0 = vweird.f32 %v4352_v50 }
 0xa98   :  { %v3766_v41 = vsel %vm3765_vm12, %v4348_v20, %v3762_v58  ;;  %vm3804_vm2 = vmor %vm3802_vm1, %vm3803_vm0 }
 0xa99   :  { %v3771_v16 = vsel %vm3768_vm14, %v3770_v55, %v3766_v41  ;;  %v3785_v53 = vsel %vm3784_vm13, %v4350_v19, %v3781_v48  ;;  %v3799_v28 = vsub.f32 1.0, %v3798_v45 }
 0xa9a   :  { %v3790_v18 = vsel %vm3787_vm15, %v3789_v52, %v3785_v53  ;;  %v3813_v14 = vmul.f32 %v4354_v37, %v3771_v16 }
 0xa9b   :  { %v3812_v47 = vmul.f32 %v3790_v18, %v8729_v23  ;;  %v3800_v62 = vmul.f32 %v4352_v50, %v3799_v28  ;;  %v11289_v23 = vld [vmem:[#allocation91_spill] sm:$0xff] }
 0xa9d   :  { %v8869_v12 = vadd.f32 %v3813_v14, %v3812_v47  ;;  %v3801_v51 = vadd.f32 %v4352_v50, %v3800_v62 }
 0xa9f   :  { %4355 = vtanh.f32 %v8869_v12  ;;  %v3805_v44 = vsel %vm3804_vm2, %v4352_v50, %v3801_v51 }
 0xaa0   :  { %v3810_v8 = vsel %vm3807_vm3, %v3809_v35, %v3805_v44 }
 0xaa5   :  { %v4356_v43 = vpop.eup %4355 }
 0xaa6   :  { %v3816_v7 = vmul.f32 %v4356_v43, %v3810_v8 }
 0xaa8   :  { %3834 = vmatmul.f32.vlgmr.msra.gmra.mxu0 %v3816_v7  ;;  %3854 = vmatmul.f32.vlgmr.msra.gmra.mxu1 %v3816_v7 }
 0xaa9   :  { %3874 = vmatmul.f32.vlgmr.msra.gmra.mxu2 %v3816_v7  ;;  %3894 = vmatmul.f32.vlgmr.msra.gmra.mxu3 %v3816_v7 }
 0xab0   :  { %3914 = vmatmul.f32.vlgmr.msrb.gmra.mxu0 %v11289_v23  ;;  %3934 = vmatmul.f32.vlgmr.msrb.gmra.mxu1 %v11289_v23 }
 0xab1   :  { %3954 = vmatmul.f32.vlgmr.msrb.gmra.mxu2 %v11289_v23  ;;  %3974 = vmatmul.f32.vlgmr.msrb.gmra.mxu3 %v11289_v23 }
 0xb25   :  { %v3835_v31 = vpop.f32.mrf.mxu0  ;;  %v3855_v38 = vpop.f32.mrf.mxu1 }
 0xb2c   :  { %v3895_v39 = vpop.f32.mrf.mxu3  ;;  %v3875_v10 = vpop.f32.mrf.mxu2 }
 0xb2d   :  { %v3915_v29 = vpop.f32.mrf.mxu0  ;;  %v3935_v15 = vpop.f32.mrf.mxu1 }
 0xb2e   :  { %v3916_v33 = vadd.f32 %v3915_v29, %v3835_v31  ;;  %v3936_v21 = vadd.f32 %v3935_v15, %v3855_v38  ;;  %v5028_v38 = vmov 128.0  }
 0xb30   :  { %v3978_v24 = vadd.f32 %v3916_v33, %v11285_v34  ;;  %v3979_v49 = vadd.f32 %v3936_v21, %v11286_v42 }
 0xb32   :  { %v3982_v36 = vsub.f32 0.0, %v3978_v24  ;;  %v4001_v4 = vsub.f32 0.0, %v3979_v49 }
 0xb34   :  { %v3983_v56 = vmul.f32 1.442695, %v3982_v36  ;;  %v4002_v54 = vmul.f32 1.442695, %v4001_v4  ;;  %v3975_v57 = vpop.f32.mrf.mxu3  ;;  %v3955_v20 = vpop.f32.mrf.mxu2 }
 0xb35   :  { %v3976_v30 = vadd.f32 %v3975_v57, %v3895_v39  ;;  %v3956_v42 = vadd.f32 %v3955_v20, %v3875_v10  ;;  %v4116_v20 = vld [vmem:[%s8895_s5] ss:$0 sm:$0xff] }
 0xb36   :  { %4357 = vpow2.f32 %v3983_v56 }
 0xb37   :  { %4359 = vpow2.f32 %v4002_v54  ;;  %v3981_v59 = vadd.f32 %v3976_v30, %v11287_v3  ;;  %v3980_v61 = vadd.f32 %v3956_v42, %v11288_v26 }
 0xb39   :  { %v4021_v46 = vsub.f32 0.0, %v3981_v59 }
 0xb3b   :  { %v4022_v25 = vmul.f32 1.442695, %v4021_v46 }
 0xb3c   :  { %v4358_v32 = vpop.eup %4357 }
 0xb3d   :  { %v4360_v0 = vpop.eup %4359  ;;  %v3985_v27 = vadd.f32 1.0, %v4358_v32  ;;  %4361 = vpow2.f32 %v4022_v25 }
 0xb3e   :  { %v4004_v34 = vadd.f32 1.0, %v4360_v0  ;;  %v4115_v0 = vld [vmem:[%s8894_s4] ss:$0 sm:$0xff] }
 0xb3f   :  { %4363 = vrcp.f32 %v3985_v27  ;;  %v3997_v5 = vand.u32 2147483648, %v3985_v27  ;;  %v3995_v60 = vand.u32 2147483647, %v3985_v27  ;;  %vm3991_vm6 = vweird.f32 %v3985_v27 }
 0xb40   :  { %4365 = vrcp.f32 %v4004_v34  ;;  %v4016_v40 = vand.u32 2147483648, %v4004_v34  ;;  %v4014_v58 = vand.u32 2147483647, %v4004_v34  ;;  %vm4010_vm8 = vweird.f32 %v4004_v34 }
 0xb41   :  { %v3998_v26 = vor.u32 1.1754944e-38, %v3997_v5  ;;  %vm3996_vm9 = vcmp.eq.f32.partialorder %v3995_v60, 8.507059e+37 }
 0xb42   :  { %v4017_v37 = vor.u32 1.1754944e-38, %v4016_v40  ;;  %vm4015_vm11 = vcmp.eq.f32.partialorder %v4014_v58, 8.507059e+37 }
 0xb43   :  { %v4362_v6 = vpop.eup %4361 }
 0xb44   :  { %v4024_v19 = vadd.f32 1.0, %v4362_v6 }
 0xb45   :  { %v4364_v13 = vpop.eup %4363 }
 0xb46   :  { %v4366_v9 = vpop.eup %4365  ;;  %v3987_v22 = vmul.f32 %v4364_v13, %v3985_v27  ;;  %4367 = vrcp.f32 %v4024_v19  ;;  %vm3992_vm4 = vweird.f32 %v4364_v13  ;;  %v4036_v44 = vand.u32 2147483648, %v4024_v19 }
 0xb47   :  { %v4006_v3 = vmul.f32 %v4366_v9, %v4004_v34  ;;  %4369 = vtanh.f32 %v3980_v61  ;;  %vm4011_vm5 = vweird.f32 %v4366_v9  ;;  %vm3993_vm7 = vmor %vm3991_vm6, %vm3992_vm4  ;;  %vm4030_vm13 = vweird.f32 %v4024_v19 }
 0xb48   :  { %v3988_v2 = vsub.f32 1.0, %v3987_v22  ;;  %vm4012_vm10 = vmor %vm4010_vm8, %vm4011_vm5  ;;  %v4034_v35 = vand.u32 2147483647, %v4024_v19  ;;  %v4037_v8 = vor.u32 1.1754944e-38, %v4036_v44 }
 0xb49   :  { %v4007_v11 = vsub.f32 1.0, %v4006_v3 }
 0xb4a   :  { %v3989_v17 = vmul.f32 %v4364_v13, %v3988_v2  ;;  %vm4035_vm15 = vcmp.eq.f32.partialorder %v4034_v35, 8.507059e+37 }
 0xb4b   :  { %v4008_v50 = vmul.f32 %v4366_v9, %v4007_v11 }
 0xb4c   :  { %v4368_v55 = vpop.eup %4367  ;;  %v3990_v48 = vadd.f32 %v4364_v13, %v3989_v17 }
 0xb4d   :  { %v4009_v45 = vadd.f32 %v4366_v9, %v4008_v50  ;;  %v4026_v52 = vmul.f32 %v4368_v55, %v4024_v19  ;;  %v4370_v16 = vpop.eup %4369  ;;  %vm4031_vm12 = vweird.f32 %v4368_v55 }
 0xb4e   :  { %v3994_v41 = vsel %vm3993_vm7, %v4364_v13, %v3990_v48  ;;  %vm4032_vm14 = vmor %vm4030_vm13, %vm4031_vm12 }
 0xb4f   :  { %v3999_v53 = vsel %vm3996_vm9, %v3998_v26, %v3994_v41  ;;  %v4013_v28 = vsel %vm4012_vm10, %v4366_v9, %v4009_v45  ;;  %v4027_v18 = vsub.f32 1.0, %v4026_v52 }
 0xb50   :  { %v4041_v14 = vmul.f32 %v4370_v16, %v3999_v53  ;;  %v4018_v47 = vsel %vm4015_vm11, %v4017_v37, %v4013_v28 }
 0xb51   :  { %v4028_v62 = vmul.f32 %v4368_v55, %v4027_v18  ;;  %v4040_v51 = vmul.f32 %v4018_v47, %v8869_v12 }
 0xb53   :  { %v4042_v1 = vadd.f32 %v4041_v14, %v4040_v51  ;;  %v4029_v63 = vadd.f32 %v4368_v55, %v4028_v62 }
 0xb55   :  { %4371 = vtanh.f32 %v4042_v1  ;;  %v4033_v43 = vsel %vm4032_vm14, %v4368_v55, %v4029_v63 }
 0xb56   :  { %v4038_v23 = vsel %vm4035_vm15, %v4037_v8, %v4033_v43  ;;  %4373 = vrcp.f32 %v5028_v38 }
 0xb5b   :  { %v4372_v7 = vpop.eup %4371 }
 0xb5c   :  { %v4044_v31 = vmul.f32 %v4372_v7, %v4038_v23  ;;  %v4374_v39 = vpop.eup %4373 }
 0xb5d   :  { %v4048_v29 = vmul.f32 128.0, %v4374_v39  ;;  %vm4052_vm0 = vweird.f32 %v4374_v39 }
 0xb5e   :  { %4045 = vadd.xlane.f32.xlu0 %v4044_v31 }
 0xb5f   :  { %v4049_v12 = vsub.f32 1.0, %v4048_v29 }
 0xb61   :  { %v4050_v15 = vmul.f32 %v4374_v39, %v4049_v12 }
 0xb63   :  { %v4051_v33 = vadd.f32 %v4374_v39, %v4050_v15 }
 0xb65   :  { %v4053_v21 = vsel %vm4052_vm0, %v4374_v39, %v4051_v33 }
 0xbd1   :  { %v4046_v24 = vpop.xlane.xlu0 %4045 }
 0xbd2   :  { %v4054_v49 = vmul.f32 %v4053_v21, %v4046_v24 }
 0xbd4   :  { %v4055_v36 = vsub.f32 %v4044_v31, %v4054_v49 }
 0xbd6   :  { %v4056_v4 = vmul.f32 %v4055_v36, %v4055_v36 }
 0xbd8   :  { %4057 = vadd.xlane.f32.xlu0 %v4056_v4 }
 0xc4b   :  { %v4058_v10 = vpop.xlane.xlu0 %4057 }
 0xc4c   :  { %v4059_v56 = vmul.f32 %v4058_v10, %v4053_v21 }
 0xc4e   :  { %v4060_v54 = vadd.f32 1e-05, %v4059_v56 }
 0xc50   :  { %4375 = vrsqrt.f32 %v4060_v54  ;;  %vm4067_vm2 = vweird.f32 %v4060_v54 }
 0xc56   :  { %v4376_v57 = vpop.eup %4375 }
 0xc57   :  { %v4062_v30 = vmul.f32 %v4376_v57, %v4060_v54  ;;  %vm4068_vm1 = vweird.f32 %v4376_v57 }
 0xc58   :  { %vm4069_vm3 = vmor %vm4067_vm2, %vm4068_vm1 }
 0xc59   :  { %v4063_v59 = vmul.f32 %v4376_v57, %v4062_v30 }
 0xc5b   :  { %v4064_v46 = vmul.f32 0.5, %v4063_v59 }
 0xc5d   :  { %v4065_v25 = vsub.f32 1.5, %v4064_v46 }
 0xc5f   :  { %v4066_v32 = vmul.f32 %v4376_v57, %v4065_v25 }
 0xc61   :  { %v4070_v27 = vsel %vm4069_vm3, %v4376_v57, %v4066_v32 }
 0xc62   :  { %v4071_v34 = vmul.f32 %v4070_v27, %v4055_v36 }
 0xc64   :  { %v4076_v42 = vmul.f32 %v4115_v0, %v4071_v34 }
 0xc66   :  { %v4081_v6 = vadd.f32 %v4116_v20, %v4076_v42 }
 0xc68   :  { %4082 = vst [vmem:[#allocation11] sm:$0xff] %v4081_v6 }
 0xc69   :  { %4093 = dma.vmem_to_hbm [thread:$0]  %s4089_s24, 128, %s4091_s27, [#allocation5]  }
 0xc6a   :  { %5015 = dma.done.wait [#allocation5], 128  }
 0xc6b   :  { %5016 = vsyncadd [#allocation5], 4294967168 }
 0xc6c   :  { %4098 = vsyncpa [#allocation4], 1 }
 0xc6d   :  { %4099 = vsyncpa [#allocation7], 1 }
 0xc6e   :  { %4100 = vsyncpa [#allocation10], 1 }
 0xc6f   :  { %4101 = vsyncpa [#allocation5], 1 }

</bundles_post_ra>
